<compile_context>
chip_gen: v6e
topology: v6e:2x2x1
jax: 0.10.0
libtpu: 0.0.40
codegen_flags: <defaults>
</compile_context>

<pallas_src>
import functools
import math

import jax
import jax.numpy as jnp
from jax.experimental import pallas as pl
from jax.experimental.pallas import tpu as pltpu

# ---- small model config (consistent with the module's constructor shapes) ----
VOCAB = 32            # vocab_size
EMB = 16              # embedding_dim (encoder & decoder)
EMB_PAD = 32          # embeddings zero-padded to 32 lanes (downstream weights get zero rows)
ENC_HIDDEN = 32       # encoder LSTM hidden per direction
ENC_FEAT = 2 * ENC_HIDDEN   # bidirectional feature dim = 64
DEC_DIM = 32          # decoder_dim
NUM_HEADS = 8
HEAD_DIM = DEC_DIM // NUM_HEADS
NUM_LAYERS = 2
B, S, T = 2, 8, 6     # batch, source len, target len

# ---------------- packed-slab row offsets (static) ----------------
# slab128 : encoder bi-LSTM weights/biases + LayerNorm params (128 lanes wide)
_IN0 = EMB_PAD + ENC_HIDDEN            # 64  ([x|h] rows, layer 0)
_IN1 = ENC_FEAT + ENC_HIDDEN           # 96  ([x|h] rows, layer 1)
R_WF0 = 0
R_WB0 = R_WF0 + _IN0                   # 64
R_B0 = R_WB0 + _IN0                    # 128
R_WF1 = R_B0 + 2 * B                   # 132
R_WB1 = R_WF1 + _IN1                   # 228
R_B1 = R_WB1 + _IN1                    # 324
R_LNG = R_B1 + 2 * B                   # 328
R_LNB = R_LNG + 1                      # 329
SLAB128_ROWS = R_LNB + 1               # 330

# slab192 : decoder GRU block-diagonal [x|h] weights + fused [b_ih|b_hh] biases
_GIN0 = EMB_PAD + DEC_DIM              # 64 (padded [embedded | context])
R_WG0 = 0
R_GB0 = R_WG0 + _GIN0 + DEC_DIM        # 96
R_WG1 = R_GB0 + 1                      # 97
R_GB1 = R_WG1 + 2 * DEC_DIM            # 161
SLAB192_ROWS = R_GB1 + 1               # 162

# slab32 : attention / projections / fc_out / embedding tables (32 lanes wide)
R_WQ = 0
R_WK = R_WQ + DEC_DIM                  # 32
R_WV = R_WK + ENC_FEAT                 # 96
R_WO = R_WV + ENC_FEAT                 # 160
R_HPW = R_WO + DEC_DIM                 # 192
R_FCW = R_HPW + ENC_FEAT               # 256
R_BO = R_FCW + 2 * DEC_DIM             # 320
R_HPB = R_BO + 1                       # 321
R_FCB = R_HPB + 1                      # 322
R_EENC = R_FCB + 1                     # 323
R_EDEC = R_EENC + VOCAB                # 355
SLAB32_ROWS = R_EDEC + VOCAB           # 387


# ============================== fused Pallas kernel ==============================

def _seq2seq_kernel(ints_ref, s128_ref, s192_ref, s32_ref, out_ref, *,
                    batch, src_len, tgt_len, hidden, dec_dim, emb_pad,
                    num_heads, head_dim, vocab, num_layers, scale):
    H = hidden
    D = dec_dim
    Bn = batch
    Sn = src_len
    feat = 2 * H

    # ------------- token ids / lengths (tiny int32 buffer) -------------
    ints = ints_ref[...]                                  # [B, S+2]
    src = ints[:, 0:Sn]                                   # [B, S]
    lengths = ints[:, Sn:Sn + 1]                          # [B, 1]
    tgt0 = ints[:, Sn + 1:Sn + 2]                         # [B, 1]

    # ------------- embeddings via one-hot MXU matmuls (in-kernel) -------------
    enc_emb = s32_ref[R_EENC:R_EENC + vocab, :]           # [V, EMB_PAD]
    dec_emb = s32_ref[R_EDEC:R_EDEC + vocab, :]
    iota_v3 = jax.lax.broadcasted_iota(jnp.int32, (Bn, Sn, vocab), 2)
    oh_src = (src[:, :, None] == iota_v3).astype(jnp.float32).reshape(Bn * Sn, vocab)
    emb3 = jnp.dot(oh_src, enc_emb,
                   preferred_element_type=jnp.float32).reshape(Bn, Sn, emb_pad)
    iota_v2 = jax.lax.broadcasted_iota(jnp.int32, (Bn, vocab), 1)
    embedded = jnp.dot((tgt0 == iota_v2).astype(jnp.float32), dec_emb,
                       preferred_element_type=jnp.float32)             # [B, EMB_PAD]

    # ------------- bidirectional 2-layer LSTM encoder -------------
    xs = [emb3[:, t, :] for t in range(Sn)]               # layer-0 inputs [B, EMB_PAD]
    layer_rows = ((R_WF0, R_WB0, R_B0, _IN0), (R_WF1, R_WB1, R_B1, _IN1))
    finals = []
    for l in range(num_layers):
        rwf, rwb, rb, nin = layer_rows[l]
        w_f = s128_ref[rwf:rwf + nin, :]                  # [In+H, 4H]
        w_b = s128_ref[rwb:rwb + nin, :]
        bias = s128_ref[rb:rb + 2 * Bn, :]                # [2B, 4H] (fwd rows, bwd rows)
        h = jnp.zeros((2 * Bn, H), jnp.float32)           # rows 0:B fwd, B:2B bwd
        c = jnp.zeros((2 * Bn, H), jnp.float32)
        outs_f = [None] * Sn
        outs_b = [None] * Sn
        for i in range(Sn):                               # fwd t=i, bwd t=Sn-1-i
            x_f = xs[i]
            x_b = xs[Sn - 1 - i]
            g_f = jnp.dot(jnp.concatenate([x_f, h[:Bn, :]], axis=-1), w_f,
                          preferred_element_type=jnp.float32)           # [B, 4H]
            g_b = jnp.dot(jnp.concatenate([x_b, h[Bn:, :]], axis=-1), w_b,
                          preferred_element_type=jnp.float32)
            gates = jnp.concatenate([g_f, g_b], axis=0) + bias          # [2B, 4H]
            # One full-width sigmoid; g-gate columns were pre-scaled by 2 so the
            # tanh gate comes out of the same EUP push: tanh(x) = 2*sigmoid(2x)-1.
            sig = jax.nn.sigmoid(gates)
            i_g = sig[:, 0:H]
            f_g = sig[:, H:2 * H]
            g_g = 2.0 * sig[:, 2 * H:3 * H] - 1.0
            o_g = sig[:, 3 * H:4 * H]
            c = f_g * c + i_g * g_g
            h = o_g * jnp.tanh(c)
            outs_f[i] = h[:Bn, :]
            outs_b[Sn - 1 - i] = h[Bn:, :]
        xs = [jnp.concatenate([outs_f[t], outs_b[t]], axis=-1) for t in range(Sn)]
        finals.append(jnp.concatenate([h[:Bn, :], h[Bn:, :]], axis=-1))  # [B, 2H]

    # LayerNorm over the feature axis (biased variance, eps = 1e-5)
    gamma = s128_ref[R_LNG:R_LNG + 1, :][:, 0:feat]
    beta = s128_ref[R_LNB:R_LNB + 1, :][:, 0:feat]
    enc_cat = jnp.stack(xs, axis=1)                       # [B, S, 2H]
    mu = jnp.mean(enc_cat, axis=-1, keepdims=True)
    var = jnp.mean((enc_cat - mu) ** 2, axis=-1, keepdims=True)
    enc_norm = (enc_cat - mu) * jax.lax.rsqrt(var + 1e-5) * gamma + beta

    # decoder initial hidden: hidden_projection(cat(h_fwd, h_bwd)) per layer
    comb = jnp.concatenate(finals, axis=0)                # [L*B, 2H]
    hp_w = s32_ref[R_HPW:R_HPW + feat, :]
    hp_b = s32_ref[R_HPB:R_HPB + 1, :]
    proj = jnp.dot(comb, hp_w, preferred_element_type=jnp.float32) + hp_b
    h0 = proj[0:Bn, :]                                    # GRU layer-0 hidden
    h1 = proj[Bn:2 * Bn, :]                               # GRU layer-1 hidden

    # ------------- attention setup (all hoisted out of the decode loop) -------------
    enc2d = enc_norm.reshape(Bn * Sn, feat)
    wk = s32_ref[R_WK:R_WK + feat, :]
    wv = s32_ref[R_WV:R_WV + feat, :]
    kmat = jnp.dot(enc2d, wk, preferred_element_type=jnp.float32).reshape(Bn, Sn, D)
    vmat = jnp.dot(enc2d, wv, preferred_element_type=jnp.float32).reshape(Bn, Sn, D)

    iota_s = jax.lax.broadcasted_iota(jnp.int32, (Bn, Sn), 1)
    keep = (iota_s < lengths).astype(jnp.float32)                        # [B, S]
    mask_bias = jnp.broadcast_to(((keep - 1.0) * 1e9)[:, :, None],
                                 (Bn, Sn, num_heads))                    # 0 / -1e9

    # head pooling matrices: pool[d, h] = 1 iff lane d belongs to head h
    d_i = jax.lax.broadcasted_iota(jnp.int32, (D, num_heads), 0)
    h_i = jax.lax.broadcasted_iota(jnp.int32, (D, num_heads), 1)
    pool = jnp.logical_and(d_i >= h_i * head_dim,
                           d_i < (h_i + 1) * head_dim).astype(jnp.float32)   # [D, nh]
    h_j = jax.lax.broadcasted_iota(jnp.int32, (num_heads, D), 0)
    d_j = jax.lax.broadcasted_iota(jnp.int32, (num_heads, D), 1)
    pool_t = jnp.logical_and(d_j >= h_j * head_dim,
                             d_j < (h_j + 1) * head_dim).astype(jnp.float32)  # [nh, D]

    wq = s32_ref[R_WQ:R_WQ + D, :]
    wo = s32_ref[R_WO:R_WO + D, :]
    bo = s32_ref[R_BO:R_BO + 1, :]
    wg0 = s192_ref[R_WG0:R_WG0 + _GIN0 + D, :]            # [96, 6D]
    gb0 = s192_ref[R_GB0:R_GB0 + 1, :]                    # [1, 6D] = [b_ih | b_hh]
    wg1 = s192_ref[R_WG1:R_WG1 + 2 * D, :]                # [64, 6D]
    gb1 = s192_ref[R_GB1:R_GB1 + 1, :]
    wfc = s32_ref[R_FCW:R_FCW + 2 * D, :]
    bfc = s32_ref[R_FCB:R_FCB + 1, :]

    lane_f = jax.lax.broadcasted_iota(jnp.int32, (Bn, vocab), 1).astype(jnp.float32)
    inv_scale = jnp.float32(1.0 / scale)

    preds = [jnp.zeros((Bn, vocab), jnp.float32)]         # outputs[:, 0] stays zero
    for t in range(1, tgt_len):
        # -------- multi-head attention (query = top GRU layer hidden) --------
        q = jnp.dot(h1, wq, preferred_element_type=jnp.float32)             # [B, D]
        prod = q[:, None, :] * kmat                                          # [B, S, D]
        scores = jnp.dot(prod.reshape(Bn * Sn, D), pool,
                         preferred_element_type=jnp.float32
                         ).reshape(Bn, Sn, num_heads) * inv_scale            # [B, S, nh]
        scores = scores + mask_bias
        m = jnp.max(scores, axis=1, keepdims=True)
        e = jnp.exp(scores - m)
        w = e / jnp.sum(e, axis=1, keepdims=True)                            # exact div
        w_exp = jnp.dot(w.reshape(Bn * Sn, num_heads), pool_t,
                        preferred_element_type=jnp.float32).reshape(Bn, Sn, D)
        ctx = jnp.sum(w_exp * vmat, axis=1)                                  # [B, D]
        context = jnp.dot(ctx, wo, preferred_element_type=jnp.float32) + bo

        # -------- GRU layer 0 (input = [embedded | context]) --------
        u0 = jnp.concatenate([embedded, context, h0], axis=-1)              # [B, 96]
        g0 = jnp.dot(u0, wg0, preferred_element_type=jnp.float32) + gb0     # [B, 6D]
        rz = jax.nn.sigmoid(g0[:, 0:2 * D] + g0[:, 3 * D:5 * D])            # one sigmoid
        r = rz[:, 0:D]
        z = rz[:, D:2 * D]
        n = jnp.tanh(g0[:, 2 * D:3 * D] + r * g0[:, 5 * D:6 * D])
        h0 = (1.0 - z) * n + z * h0

        # -------- GRU layer 1 --------
        u1 = jnp.concatenate([h0, h1], axis=-1)                              # [B, 2D]
        g1 = jnp.dot(u1, wg1, preferred_element_type=jnp.float32) + gb1
        rz = jax.nn.sigmoid(g1[:, 0:2 * D] + g1[:, 3 * D:5 * D])
        r = rz[:, 0:D]
        z = rz[:, D:2 * D]
        n = jnp.tanh(g1[:, 2 * D:3 * D] + r * g1[:, 5 * D:6 * D])
        h1 = (1.0 - z) * n + z * h1

        # -------- output projection --------
        combined = jnp.concatenate([h1, context], axis=-1)                   # [B, 2D]
        pred = jnp.dot(combined, wfc, preferred_element_type=jnp.float32) + bfc
        preds.append(pred)

        # -------- greedy argmax -> one-hot -> embedding (teacher forcing = 0.0) --------
        mx = jnp.max(pred, axis=-1, keepdims=True)
        cand = jnp.where(pred == mx, lane_f, jnp.float32(vocab))
        idx = jnp.min(cand, axis=-1, keepdims=True)                          # first argmax
        onehot = (lane_f == idx).astype(jnp.float32)                         # [B, VOCAB]
        embedded = jnp.dot(onehot, dec_emb, preferred_element_type=jnp.float32)

    # single lane-dense store: [B, T*VOCAB]
    out_ref[...] = jnp.concatenate(preds, axis=-1)


# ============================== weight preparation ==============================

def prepare_params(params):
    """One-time pack of all weights into three lane-aligned f32 slabs."""
    H = ENC_HIDDEN
    f32 = jnp.float32

    # ---- slab128 : encoder LSTM (per-direction [x|h]-stacked) + LayerNorm ----
    rows128 = []
    for l in range(NUM_LAYERS):
        p = params['enc_lstm'][l]
        pad = EMB_PAD - EMB if l == 0 else 0
        for d in ('f', 'b'):
            w_ih_t = p[f'w_ih_{d}'].T                                  # [in_real, 4H]
            if pad:
                w_ih_t = jnp.concatenate([w_ih_t, jnp.zeros((pad, 4 * H), f32)], axis=0)
            w = jnp.concatenate([w_ih_t, p[f'w_hh_{d}'].T], axis=0)    # [In+H, 4H]
            w = w.at[:, 2 * H:3 * H].multiply(2.0)                     # tanh = 2*sigmoid(2x)-1 fold
            rows128.append(w)
        bias_rows = []
        for d in ('f', 'b'):
            bsum = p[f'b_ih_{d}'] + p[f'b_hh_{d}']
            bsum = bsum.at[2 * H:3 * H].multiply(2.0)
            bias_rows.append(jnp.tile(bsum.reshape(1, -1), (B, 1)))
        rows128.append(jnp.concatenate(bias_rows, axis=0))             # [2B, 4H]
    rows128.append(jnp.pad(params['ln_gamma'].reshape(1, -1),
                           ((0, 0), (0, 4 * H - ENC_FEAT))))
    rows128.append(jnp.pad(params['ln_beta'].reshape(1, -1),
                           ((0, 0), (0, 4 * H - ENC_FEAT))))
    slab128 = jnp.concatenate(rows128, axis=0)
    assert slab128.shape == (SLAB128_ROWS, 4 * H)

    # ---- slab192 : decoder GRU, block-diagonal [[W_ih.T, 0], [0, W_hh.T]] ----
    rows192 = []
    for l in range(NUM_LAYERS):
        p = params['gru'][l]
        wih_t = p['w_ih'].T                                            # [in_real, 3D]
        if l == 0:  # insert zero rows for the embedded padding (dims EMB:EMB_PAD)
            wih_t = jnp.concatenate(
                [wih_t[:EMB], jnp.zeros((EMB_PAD - EMB, 3 * DEC_DIM), f32), wih_t[EMB:]],
                axis=0)
        whh_t = p['w_hh'].T
        in_dim = wih_t.shape[0]
        top = jnp.concatenate([wih_t, jnp.zeros((in_dim, 3 * DEC_DIM), f32)], axis=1)
        bot = jnp.concatenate([jnp.zeros((DEC_DIM, 3 * DEC_DIM), f32), whh_t], axis=1)
        rows192.append(jnp.concatenate([top, bot], axis=0))            # [In+D, 6D]
        rows192.append(jnp.concatenate([p['b_ih'], p['b_hh']]).reshape(1, -1))
    slab192 = jnp.concatenate(rows192, axis=0)
    assert slab192.shape == (SLAB192_ROWS, 6 * DEC_DIM)

    # ---- slab32 : attention / projections / fc_out / (padded) embedding tables ----
    rows32 = [
        params['attn_wq'].T, params['attn_wk'].T, params['attn_wv'].T,
        params['attn_wo'].T, params['hidden_proj_w'].T, params['fc_w'].T,
        params['attn_bo'].reshape(1, -1), params['hidden_proj_b'].reshape(1, -1),
        params['fc_b'].reshape(1, -1),
        jnp.pad(params['enc_emb'], ((0, 0), (0, EMB_PAD - EMB))),
        jnp.pad(params['dec_emb'], ((0, 0), (0, EMB_PAD - EMB))),
    ]
    slab32 = jnp.concatenate(rows32, axis=0)
    assert slab32.shape == (SLAB32_ROWS, DEC_DIM)

    return {'slab128': slab128, 'slab192': slab192, 'slab32': slab32}


# ============================== model forward ==============================

def seq2seq_forward(prep, source, target, source_lengths):
    """Deterministic (teacher_forcing_ratio = 0.0) forward, eval mode."""
    Bn, Sn = source.shape
    Tn = target.shape[1]

    # tokens + lengths + first target token packed into one tiny int32 buffer
    ints = jnp.concatenate(
        [source.astype(jnp.int32),
         source_lengths.astype(jnp.int32)[:, None],
         target[:, 0].astype(jnp.int32)[:, None]], axis=1)          # [B, S+2]

    vmem = pl.BlockSpec(memory_space=pltpu.MemorySpace.VMEM)

    out_flat = pl.pallas_call(
        functools.partial(_seq2seq_kernel, batch=Bn, src_len=Sn, tgt_len=Tn,
                          hidden=ENC_HIDDEN, dec_dim=DEC_DIM, emb_pad=EMB_PAD,
                          num_heads=NUM_HEADS, head_dim=HEAD_DIM,
                          vocab=VOCAB, num_layers=NUM_LAYERS,
                          scale=math.sqrt(HEAD_DIM)),
        out_shape=jax.ShapeDtypeStruct((Bn, Tn * VOCAB), jnp.float32),
        in_specs=[vmem] * 4,
        out_specs=vmem,
    )(ints, prep['slab128'], prep['slab192'], prep['slab32'])

    return out_flat.reshape(Bn, Tn, VOCAB)                           # free reshape


# ============================== parameter init ==============================

def init_params(key):
    keys = jax.random.split(key, 128)
    counter = [0]

    def nk():
        k = keys[counter[0]]
        counter[0] += 1
        return k

    def uni(shape, fan_in):
        bound = 1.0 / math.sqrt(fan_in)
        return jax.random.uniform(nk(), shape, jnp.float32, -bound, bound)

    params = {}
    # embeddings (padding_idx = 0 -> zero row)
    params['enc_emb'] = (jax.random.normal(nk(), (VOCAB, EMB), jnp.float32) * 0.1).at[0].set(0.0)
    params['dec_emb'] = (jax.random.normal(nk(), (VOCAB, EMB), jnp.float32) * 0.1).at[0].set(0.0)

    # encoder bi-LSTM (2 layers)
    enc_lstm = []
    for l in range(NUM_LAYERS):
        in_dim = EMB if l == 0 else 2 * ENC_HIDDEN
        layer = {}
        for d in ('f', 'b'):
            layer[f'w_ih_{d}'] = uni((4 * ENC_HIDDEN, in_dim), ENC_HIDDEN)
            layer[f'w_hh_{d}'] = uni((4 * ENC_HIDDEN, ENC_HIDDEN), ENC_HIDDEN)
            layer[f'b_ih_{d}'] = uni((4 * ENC_HIDDEN,), ENC_HIDDEN)
            layer[f'b_hh_{d}'] = uni((4 * ENC_HIDDEN,), ENC_HIDDEN)
        enc_lstm.append(layer)
    params['enc_lstm'] = enc_lstm
    params['ln_gamma'] = jnp.ones((2 * ENC_HIDDEN,), jnp.float32)
    params['ln_beta'] = jnp.zeros((2 * ENC_HIDDEN,), jnp.float32)

    # attention
    params['attn_wq'] = uni((DEC_DIM, DEC_DIM), DEC_DIM)              # bias=False
    params['attn_wk'] = uni((DEC_DIM, 2 * ENC_HIDDEN), 2 * ENC_HIDDEN)
    params['attn_wv'] = uni((DEC_DIM, 2 * ENC_HIDDEN), 2 * ENC_HIDDEN)
    params['attn_wo'] = uni((DEC_DIM, DEC_DIM), DEC_DIM)
    params['attn_bo'] = uni((DEC_DIM,), DEC_DIM)

    # decoder GRU (2 layers)
    gru = []
    for l in range(NUM_LAYERS):
        in_dim = (EMB + DEC_DIM) if l == 0 else DEC_DIM
        gru.append({
            'w_ih': uni((3 * DEC_DIM, in_dim), DEC_DIM),
            'w_hh': uni((3 * DEC_DIM, DEC_DIM), DEC_DIM),
            'b_ih': uni((3 * DEC_DIM,), DEC_DIM),
            'b_hh': uni((3 * DEC_DIM,), DEC_DIM),
        })
    params['gru'] = gru

    # output / projection linears
    params['fc_w'] = uni((VOCAB, 2 * DEC_DIM), 2 * DEC_DIM)
    params['fc_b'] = uni((VOCAB,), 2 * DEC_DIM)
    params['hidden_proj_w'] = uni((DEC_DIM, 2 * ENC_HIDDEN), 2 * ENC_HIDDEN)
    params['hidden_proj_b'] = uni((DEC_DIM,), 2 * ENC_HIDDEN)
    return params


# ============================== main ==============================

if __name__ == "__main__":
    root = jax.random.PRNGKey(0)
    pkey, skey, tkey = jax.random.split(root, 3)

    params = init_params(pkey)
    prep = prepare_params(params)           # one-time weight transpose/fuse/pack

    source = jax.random.randint(skey, (B, S), 1, VOCAB, dtype=jnp.int32)
    target = jax.random.randint(tkey, (B, T), 1, VOCAB, dtype=jnp.int32)
    source_lengths = jnp.array([S, S - 3], dtype=jnp.int32)
    target_lengths = jnp.array([T, T - 2], dtype=jnp.int32)   # unused by forward (as in PyTorch)

    fwd = jax.jit(seq2seq_forward)
    out = fwd(prep, source, target, source_lengths)
    out = jax.block_until_ready(out)

    assert out.shape == (B, T, VOCAB), out.shape
    assert out.dtype == jnp.float32
    assert bool(jnp.all(out[:, 0] == 0.0))          # outputs[:, 0] left as zeros
    assert bool(jnp.all(jnp.isfinite(out)))
    print("KERNEL_OK")
</pallas_src>

<mosaic_0001>
module attributes {stable_mosaic.version = 11 : i64} {
  func.func @_seq2seq_kernel(%arg0: memref<2x10xi32, #tpu.memory_space<vmem>>, %arg1: memref<330x128xf32, #tpu.memory_space<vmem>>, %arg2: memref<162x192xf32, #tpu.memory_space<vmem>>, %arg3: memref<387x32xf32, #tpu.memory_space<vmem>>, %arg4: memref<2x192xf32, #tpu.memory_space<vmem>>) attributes {dimension_semantics = [], scalar_prefetch = 0 : i64, scratch_operands = 0 : i64, tpu.core_type = #tpu.core_type<tc>} {
    %c0 = arith.constant 0 : index
    %c0_0 = arith.constant 0 : index
    %0 = vector.load %arg0[%c0, %c0_0] : memref<2x10xi32, #tpu.memory_space<vmem>>, vector<2x10xi32>
    %1 = vector.extract_strided_slice %0 {offsets = [0, 0], sizes = [2, 8], strides = [1, 1]} : vector<2x10xi32> to vector<2x8xi32>
    %2 = vector.extract_strided_slice %0 {offsets = [0, 8], sizes = [2, 1], strides = [1, 1]} : vector<2x10xi32> to vector<2x1xi32>
    %3 = vector.extract_strided_slice %0 {offsets = [0, 9], sizes = [2, 1], strides = [1, 1]} : vector<2x10xi32> to vector<2x1xi32>
    %c323 = arith.constant 323 : index
    %c0_1 = arith.constant 0 : index
    %4 = vector.load %arg3[%c323, %c0_1] : memref<387x32xf32, #tpu.memory_space<vmem>>, vector<32x32xf32>
    %c355 = arith.constant 355 : index
    %c0_2 = arith.constant 0 : index
    %5 = vector.load %arg3[%c355, %c0_2] : memref<387x32xf32, #tpu.memory_space<vmem>>, vector<32x32xf32>
    %6 = tpu.iota {dimensions = array<i32: 2>} : vector<2x8x32xi32>
    %7 = vector.shape_cast %1 : vector<2x8xi32> to vector<2x8x1xi32>
    %8 = vector.broadcast %7 : vector<2x8x1xi32> to vector<2x8x32xi32>
    %9 = arith.cmpi eq, %8, %6 : vector<2x8x32xi32>
    %10 = arith.extui %9 : vector<2x8x32xi1> to vector<2x8x32xi32>
    %11 = arith.sitofp %10 : vector<2x8x32xi32> to vector<2x8x32xf32>
    %12 = vector.shape_cast %11 : vector<2x8x32xf32> to vector<16x32xf32>
    %cst = arith.constant dense<0.000000e+00> : vector<16x32xf32>
    %13 = tpu.matmul %12, %4, %cst {dimension_numbers = #tpu.dot_dimension_numbers<[1], [0], [0], [1], [0, 0, 1, 1], [], []>} : vector<16x32xf32>, vector<32x32xf32>, vector<16x32xf32> -> vector<16x32xf32>
    %14 = vector.shape_cast %13 : vector<16x32xf32> to vector<2x8x32xf32>
    %15 = tpu.iota {dimensions = array<i32: 1>} : vector<2x32xi32>
    %16 = vector.broadcast %3 : vector<2x1xi32> to vector<2x32xi32>
    %17 = arith.cmpi eq, %16, %15 : vector<2x32xi32>
    %18 = arith.extui %17 : vector<2x32xi1> to vector<2x32xi32>
    %19 = arith.sitofp %18 : vector<2x32xi32> to vector<2x32xf32>
    %cst_3 = arith.constant dense<0.000000e+00> : vector<2x32xf32>
    %20 = tpu.matmul %19, %5, %cst_3 {dimension_numbers = #tpu.dot_dimension_numbers<[1], [0], [0], [1], [0, 0, 1, 1], [], []>} : vector<2x32xf32>, vector<32x32xf32>, vector<2x32xf32> -> vector<2x32xf32>
    %21 = vector.extract_strided_slice %14 {offsets = [0, 0, 0], sizes = [2, 1, 32], strides = [1, 1, 1]} : vector<2x8x32xf32> to vector<2x1x32xf32>
    %22 = vector.shape_cast %21 : vector<2x1x32xf32> to vector<2x32xf32>
    %23 = vector.extract_strided_slice %14 {offsets = [0, 1, 0], sizes = [2, 1, 32], strides = [1, 1, 1]} : vector<2x8x32xf32> to vector<2x1x32xf32>
    %24 = vector.shape_cast %23 : vector<2x1x32xf32> to vector<2x32xf32>
    %25 = vector.extract_strided_slice %14 {offsets = [0, 2, 0], sizes = [2, 1, 32], strides = [1, 1, 1]} : vector<2x8x32xf32> to vector<2x1x32xf32>
    %26 = vector.shape_cast %25 : vector<2x1x32xf32> to vector<2x32xf32>
    %27 = vector.extract_strided_slice %14 {offsets = [0, 3, 0], sizes = [2, 1, 32], strides = [1, 1, 1]} : vector<2x8x32xf32> to vector<2x1x32xf32>
    %28 = vector.shape_cast %27 : vector<2x1x32xf32> to vector<2x32xf32>
    %29 = vector.extract_strided_slice %14 {offsets = [0, 4, 0], sizes = [2, 1, 32], strides = [1, 1, 1]} : vector<2x8x32xf32> to vector<2x1x32xf32>
    %30 = vector.shape_cast %29 : vector<2x1x32xf32> to vector<2x32xf32>
    %31 = vector.extract_strided_slice %14 {offsets = [0, 5, 0], sizes = [2, 1, 32], strides = [1, 1, 1]} : vector<2x8x32xf32> to vector<2x1x32xf32>
    %32 = vector.shape_cast %31 : vector<2x1x32xf32> to vector<2x32xf32>
    %33 = vector.extract_strided_slice %14 {offsets = [0, 6, 0], sizes = [2, 1, 32], strides = [1, 1, 1]} : vector<2x8x32xf32> to vector<2x1x32xf32>
    %34 = vector.shape_cast %33 : vector<2x1x32xf32> to vector<2x32xf32>
    %35 = vector.extract_strided_slice %14 {offsets = [0, 7, 0], sizes = [2, 1, 32], strides = [1, 1, 1]} : vector<2x8x32xf32> to vector<2x1x32xf32>
    %36 = vector.shape_cast %35 : vector<2x1x32xf32> to vector<2x32xf32>
    %c0_4 = arith.constant 0 : index
    %c0_5 = arith.constant 0 : index
    %37 = vector.load %arg1[%c0_4, %c0_5] : memref<330x128xf32, #tpu.memory_space<vmem>>, vector<64x128xf32>
    %c64 = arith.constant 64 : index
    %c0_6 = arith.constant 0 : index
    %38 = vector.load %arg1[%c64, %c0_6] : memref<330x128xf32, #tpu.memory_space<vmem>>, vector<64x128xf32>
    %c128 = arith.constant 128 : index
    %c0_7 = arith.constant 0 : index
    %39 = vector.load %arg1[%c128, %c0_7] : memref<330x128xf32, #tpu.memory_space<vmem>>, vector<4x128xf32>
    %cst_8 = arith.constant 0.000000e+00 : f32
    %40 = vector.broadcast %cst_8 : f32 to vector<4x32xf32>
    %cst_9 = arith.constant 0.000000e+00 : f32
    %41 = vector.broadcast %cst_9 : f32 to vector<4x32xf32>
    %42 = vector.extract_strided_slice %40 {offsets = [0, 0], sizes = [2, 32], strides = [1, 1]} : vector<4x32xf32> to vector<2x32xf32>
    %43 = tpu.concatenate %22, %42 in 1 : vector<2x32xf32>, vector<2x32xf32> -> vector<2x64xf32>
    %cst_10 = arith.constant dense<0.000000e+00> : vector<2x128xf32>
    %44 = tpu.matmul %43, %37, %cst_10 {dimension_numbers = #tpu.dot_dimension_numbers<[1], [0], [0], [1], [0, 0, 1, 1], [], []>} : vector<2x64xf32>, vector<64x128xf32>, vector<2x128xf32> -> vector<2x128xf32>
    %45 = vector.extract_strided_slice %40 {offsets = [2, 0], sizes = [2, 32], strides = [1, 1]} : vector<4x32xf32> to vector<2x32xf32>
    %46 = tpu.concatenate %36, %45 in 1 : vector<2x32xf32>, vector<2x32xf32> -> vector<2x64xf32>
    %cst_11 = arith.constant dense<0.000000e+00> : vector<2x128xf32>
    %47 = tpu.matmul %46, %38, %cst_11 {dimension_numbers = #tpu.dot_dimension_numbers<[1], [0], [0], [1], [0, 0, 1, 1], [], []>} : vector<2x64xf32>, vector<64x128xf32>, vector<2x128xf32> -> vector<2x128xf32>
    %48 = tpu.concatenate %44, %47 in 0 : vector<2x128xf32>, vector<2x128xf32> -> vector<4x128xf32>
    %49 = arith.addf %48, %39 : vector<4x128xf32>
    %50 = arith.negf %49 : vector<4x128xf32>
    %51 = math.exp %50 : vector<4x128xf32>
    %cst_12 = arith.constant 1.000000e+00 : f32
    %52 = vector.broadcast %cst_12 : f32 to vector<4x128xf32>
    %53 = arith.addf %52, %51 : vector<4x128xf32>
    %54 = arith.divf %52, %53 : vector<4x128xf32>
    %55 = vector.extract_strided_slice %54 {offsets = [0, 0], sizes = [4, 32], strides = [1, 1]} : vector<4x128xf32> to vector<4x32xf32>
    %56 = vector.extract_strided_slice %54 {offsets = [0, 32], sizes = [4, 32], strides = [1, 1]} : vector<4x128xf32> to vector<4x32xf32>
    %57 = vector.extract_strided_slice %54 {offsets = [0, 64], sizes = [4, 32], strides = [1, 1]} : vector<4x128xf32> to vector<4x32xf32>
    %cst_13 = arith.constant 2.000000e+00 : f32
    %58 = vector.broadcast %cst_13 : f32 to vector<4x32xf32>
    %59 = arith.mulf %58, %57 : vector<4x32xf32>
    %cst_14 = arith.constant 1.000000e+00 : f32
    %60 = vector.broadcast %cst_14 : f32 to vector<4x32xf32>
    %61 = arith.subf %59, %60 : vector<4x32xf32>
    %62 = vector.extract_strided_slice %54 {offsets = [0, 96], sizes = [4, 32], strides = [1, 1]} : vector<4x128xf32> to vector<4x32xf32>
    %63 = arith.mulf %56, %41 : vector<4x32xf32>
    %64 = arith.mulf %55, %61 : vector<4x32xf32>
    %65 = arith.addf %63, %64 : vector<4x32xf32>
    %66 = math.tanh %65 : vector<4x32xf32>
    %67 = arith.mulf %62, %66 : vector<4x32xf32>
    %68 = vector.extract_strided_slice %67 {offsets = [0, 0], sizes = [2, 32], strides = [1, 1]} : vector<4x32xf32> to vector<2x32xf32>
    %69 = vector.extract_strided_slice %67 {offsets = [2, 0], sizes = [2, 32], strides = [1, 1]} : vector<4x32xf32> to vector<2x32xf32>
    %70 = vector.extract_strided_slice %67 {offsets = [0, 0], sizes = [2, 32], strides = [1, 1]} : vector<4x32xf32> to vector<2x32xf32>
    %71 = tpu.concatenate %24, %70 in 1 : vector<2x32xf32>, vector<2x32xf32> -> vector<2x64xf32>
    %cst_15 = arith.constant dense<0.000000e+00> : vector<2x128xf32>
    %72 = tpu.matmul %71, %37, %cst_15 {dimension_numbers = #tpu.dot_dimension_numbers<[1], [0], [0], [1], [0, 0, 1, 1], [], []>} : vector<2x64xf32>, vector<64x128xf32>, vector<2x128xf32> -> vector<2x128xf32>
    %73 = vector.extract_strided_slice %67 {offsets = [2, 0], sizes = [2, 32], strides = [1, 1]} : vector<4x32xf32> to vector<2x32xf32>
    %74 = tpu.concatenate %34, %73 in 1 : vector<2x32xf32>, vector<2x32xf32> -> vector<2x64xf32>
    %cst_16 = arith.constant dense<0.000000e+00> : vector<2x128xf32>
    %75 = tpu.matmul %74, %38, %cst_16 {dimension_numbers = #tpu.dot_dimension_numbers<[1], [0], [0], [1], [0, 0, 1, 1], [], []>} : vector<2x64xf32>, vector<64x128xf32>, vector<2x128xf32> -> vector<2x128xf32>
    %76 = tpu.concatenate %72, %75 in 0 : vector<2x128xf32>, vector<2x128xf32> -> vector<4x128xf32>
    %77 = arith.addf %76, %39 : vector<4x128xf32>
    %78 = arith.negf %77 : vector<4x128xf32>
    %79 = math.exp %78 : vector<4x128xf32>
    %cst_17 = arith.constant 1.000000e+00 : f32
    %80 = vector.broadcast %cst_17 : f32 to vector<4x128xf32>
    %81 = arith.addf %80, %79 : vector<4x128xf32>
    %82 = arith.divf %80, %81 : vector<4x128xf32>
    %83 = vector.extract_strided_slice %82 {offsets = [0, 0], sizes = [4, 32], strides = [1, 1]} : vector<4x128xf32> to vector<4x32xf32>
    %84 = vector.extract_strided_slice %82 {offsets = [0, 32], sizes = [4, 32], strides = [1, 1]} : vector<4x128xf32> to vector<4x32xf32>
    %85 = vector.extract_strided_slice %82 {offsets = [0, 64], sizes = [4, 32], strides = [1, 1]} : vector<4x128xf32> to vector<4x32xf32>
    %cst_18 = arith.constant 2.000000e+00 : f32
    %86 = vector.broadcast %cst_18 : f32 to vector<4x32xf32>
    %87 = arith.mulf %86, %85 : vector<4x32xf32>
    %cst_19 = arith.constant 1.000000e+00 : f32
    %88 = vector.broadcast %cst_19 : f32 to vector<4x32xf32>
    %89 = arith.subf %87, %88 : vector<4x32xf32>
    %90 = vector.extract_strided_slice %82 {offsets = [0, 96], sizes = [4, 32], strides = [1, 1]} : vector<4x128xf32> to vector<4x32xf32>
    %91 = arith.mulf %84, %65 : vector<4x32xf32>
    %92 = arith.mulf %83, %89 : vector<4x32xf32>
    %93 = arith.addf %91, %92 : vector<4x32xf32>
    %94 = math.tanh %93 : vector<4x32xf32>
    %95 = arith.mulf %90, %94 : vector<4x32xf32>
    %96 = vector.extract_strided_slice %95 {offsets = [0, 0], sizes = [2, 32], strides = [1, 1]} : vector<4x32xf32> to vector<2x32xf32>
    %97 = vector.extract_strided_slice %95 {offsets = [2, 0], sizes = [2, 32], strides = [1, 1]} : vector<4x32xf32> to vector<2x32xf32>
    %98 = vector.extract_strided_slice %95 {offsets = [0, 0], sizes = [2, 32], strides = [1, 1]} : vector<4x32xf32> to vector<2x32xf32>
    %99 = tpu.concatenate %26, %98 in 1 : vector<2x32xf32>, vector<2x32xf32> -> vector<2x64xf32>
    %cst_20 = arith.constant dense<0.000000e+00> : vector<2x128xf32>
    %100 = tpu.matmul %99, %37, %cst_20 {dimension_numbers = #tpu.dot_dimension_numbers<[1], [0], [0], [1], [0, 0, 1, 1], [], []>} : vector<2x64xf32>, vector<64x128xf32>, vector<2x128xf32> -> vector<2x128xf32>
    %101 = vector.extract_strided_slice %95 {offsets = [2, 0], sizes = [2, 32], strides = [1, 1]} : vector<4x32xf32> to vector<2x32xf32>
    %102 = tpu.concatenate %32, %101 in 1 : vector<2x32xf32>, vector<2x32xf32> -> vector<2x64xf32>
    %cst_21 = arith.constant dense<0.000000e+00> : vector<2x128xf32>
    %103 = tpu.matmul %102, %38, %cst_21 {dimension_numbers = #tpu.dot_dimension_numbers<[1], [0], [0], [1], [0, 0, 1, 1], [], []>} : vector<2x64xf32>, vector<64x128xf32>, vector<2x128xf32> -> vector<2x128xf32>
    %104 = tpu.concatenate %100, %103 in 0 : vector<2x128xf32>, vector<2x128xf32> -> vector<4x128xf32>
    %105 = arith.addf %104, %39 : vector<4x128xf32>
    %106 = arith.negf %105 : vector<4x128xf32>
    %107 = math.exp %106 : vector<4x128xf32>
    %cst_22 = arith.constant 1.000000e+00 : f32
    %108 = vector.broadcast %cst_22 : f32 to vector<4x128xf32>
    %109 = arith.addf %108, %107 : vector<4x128xf32>
    %110 = arith.divf %108, %109 : vector<4x128xf32>
    %111 = vector.extract_strided_slice %110 {offsets = [0, 0], sizes = [4, 32], strides = [1, 1]} : vector<4x128xf32> to vector<4x32xf32>
    %112 = vector.extract_strided_slice %110 {offsets = [0, 32], sizes = [4, 32], strides = [1, 1]} : vector<4x128xf32> to vector<4x32xf32>
    %113 = vector.extract_strided_slice %110 {offsets = [0, 64], sizes = [4, 32], strides = [1, 1]} : vector<4x128xf32> to vector<4x32xf32>
    %cst_23 = arith.constant 2.000000e+00 : f32
    %114 = vector.broadcast %cst_23 : f32 to vector<4x32xf32>
    %115 = arith.mulf %114, %113 : vector<4x32xf32>
    %cst_24 = arith.constant 1.000000e+00 : f32
    %116 = vector.broadcast %cst_24 : f32 to vector<4x32xf32>
    %117 = arith.subf %115, %116 : vector<4x32xf32>
    %118 = vector.extract_strided_slice %110 {offsets = [0, 96], sizes = [4, 32], strides = [1, 1]} : vector<4x128xf32> to vector<4x32xf32>
    %119 = arith.mulf %112, %93 : vector<4x32xf32>
    %120 = arith.mulf %111, %117 : vector<4x32xf32>
    %121 = arith.addf %119, %120 : vector<4x32xf32>
    %122 = math.tanh %121 : vector<4x32xf32>
    %123 = arith.mulf %118, %122 : vector<4x32xf32>
    %124 = vector.extract_strided_slice %123 {offsets = [0, 0], sizes = [2, 32], strides = [1, 1]} : vector<4x32xf32> to vector<2x32xf32>
    %125 = vector.extract_strided_slice %123 {offsets = [2, 0], sizes = [2, 32], strides = [1, 1]} : vector<4x32xf32> to vector<2x32xf32>
    %126 = vector.extract_strided_slice %123 {offsets = [0, 0], sizes = [2, 32], strides = [1, 1]} : vector<4x32xf32> to vector<2x32xf32>
    %127 = tpu.concatenate %28, %126 in 1 : vector<2x32xf32>, vector<2x32xf32> -> vector<2x64xf32>
    %cst_25 = arith.constant dense<0.000000e+00> : vector<2x128xf32>
    %128 = tpu.matmul %127, %37, %cst_25 {dimension_numbers = #tpu.dot_dimension_numbers<[1], [0], [0], [1], [0, 0, 1, 1], [], []>} : vector<2x64xf32>, vector<64x128xf32>, vector<2x128xf32> -> vector<2x128xf32>
    %129 = vector.extract_strided_slice %123 {offsets = [2, 0], sizes = [2, 32], strides = [1, 1]} : vector<4x32xf32> to vector<2x32xf32>
    %130 = tpu.concatenate %30, %129 in 1 : vector<2x32xf32>, vector<2x32xf32> -> vector<2x64xf32>
    %cst_26 = arith.constant dense<0.000000e+00> : vector<2x128xf32>
    %131 = tpu.matmul %130, %38, %cst_26 {dimension_numbers = #tpu.dot_dimension_numbers<[1], [0], [0], [1], [0, 0, 1, 1], [], []>} : vector<2x64xf32>, vector<64x128xf32>, vector<2x128xf32> -> vector<2x128xf32>
    %132 = tpu.concatenate %128, %131 in 0 : vector<2x128xf32>, vector<2x128xf32> -> vector<4x128xf32>
    %133 = arith.addf %132, %39 : vector<4x128xf32>
    %134 = arith.negf %133 : vector<4x128xf32>
    %135 = math.exp %134 : vector<4x128xf32>
    %cst_27 = arith.constant 1.000000e+00 : f32
    %136 = vector.broadcast %cst_27 : f32 to vector<4x128xf32>
    %137 = arith.addf %136, %135 : vector<4x128xf32>
    %138 = arith.divf %136, %137 : vector<4x128xf32>
    %139 = vector.extract_strided_slice %138 {offsets = [0, 0], sizes = [4, 32], strides = [1, 1]} : vector<4x128xf32> to vector<4x32xf32>
    %140 = vector.extract_strided_slice %138 {offsets = [0, 32], sizes = [4, 32], strides = [1, 1]} : vector<4x128xf32> to vector<4x32xf32>
    %141 = vector.extract_strided_slice %138 {offsets = [0, 64], sizes = [4, 32], strides = [1, 1]} : vector<4x128xf32> to vector<4x32xf32>
    %cst_28 = arith.constant 2.000000e+00 : f32
    %142 = vector.broadcast %cst_28 : f32 to vector<4x32xf32>
    %143 = arith.mulf %142, %141 : vector<4x32xf32>
    %cst_29 = arith.constant 1.000000e+00 : f32
    %144 = vector.broadcast %cst_29 : f32 to vector<4x32xf32>
    %145 = arith.subf %143, %144 : vector<4x32xf32>
    %146 = vector.extract_strided_slice %138 {offsets = [0, 96], sizes = [4, 32], strides = [1, 1]} : vector<4x128xf32> to vector<4x32xf32>
    %147 = arith.mulf %140, %121 : vector<4x32xf32>
    %148 = arith.mulf %139, %145 : vector<4x32xf32>
    %149 = arith.addf %147, %148 : vector<4x32xf32>
    %150 = math.tanh %149 : vector<4x32xf32>
    %151 = arith.mulf %146, %150 : vector<4x32xf32>
    %152 = vector.extract_strided_slice %151 {offsets = [0, 0], sizes = [2, 32], strides = [1, 1]} : vector<4x32xf32> to vector<2x32xf32>
    %153 = vector.extract_strided_slice %151 {offsets = [2, 0], sizes = [2, 32], strides = [1, 1]} : vector<4x32xf32> to vector<2x32xf32>
    %154 = vector.extract_strided_slice %151 {offsets = [0, 0], sizes = [2, 32], strides = [1, 1]} : vector<4x32xf32> to vector<2x32xf32>
    %155 = tpu.concatenate %30, %154 in 1 : vector<2x32xf32>, vector<2x32xf32> -> vector<2x64xf32>
    %cst_30 = arith.constant dense<0.000000e+00> : vector<2x128xf32>
    %156 = tpu.matmul %155, %37, %cst_30 {dimension_numbers = #tpu.dot_dimension_numbers<[1], [0], [0], [1], [0, 0, 1, 1], [], []>} : vector<2x64xf32>, vector<64x128xf32>, vector<2x128xf32> -> vector<2x128xf32>
    %157 = vector.extract_strided_slice %151 {offsets = [2, 0], sizes = [2, 32], strides = [1, 1]} : vector<4x32xf32> to vector<2x32xf32>
    %158 = tpu.concatenate %28, %157 in 1 : vector<2x32xf32>, vector<2x32xf32> -> vector<2x64xf32>
    %cst_31 = arith.constant dense<0.000000e+00> : vector<2x128xf32>
    %159 = tpu.matmul %158, %38, %cst_31 {dimension_numbers = #tpu.dot_dimension_numbers<[1], [0], [0], [1], [0, 0, 1, 1], [], []>} : vector<2x64xf32>, vector<64x128xf32>, vector<2x128xf32> -> vector<2x128xf32>
    %160 = tpu.concatenate %156, %159 in 0 : vector<2x128xf32>, vector<2x128xf32> -> vector<4x128xf32>
    %161 = arith.addf %160, %39 : vector<4x128xf32>
    %162 = arith.negf %161 : vector<4x128xf32>
    %163 = math.exp %162 : vector<4x128xf32>
    %cst_32 = arith.constant 1.000000e+00 : f32
    %164 = vector.broadcast %cst_32 : f32 to vector<4x128xf32>
    %165 = arith.addf %164, %163 : vector<4x128xf32>
    %166 = arith.divf %164, %165 : vector<4x128xf32>
    %167 = vector.extract_strided_slice %166 {offsets = [0, 0], sizes = [4, 32], strides = [1, 1]} : vector<4x128xf32> to vector<4x32xf32>
    %168 = vector.extract_strided_slice %166 {offsets = [0, 32], sizes = [4, 32], strides = [1, 1]} : vector<4x128xf32> to vector<4x32xf32>
    %169 = vector.extract_strided_slice %166 {offsets = [0, 64], sizes = [4, 32], strides = [1, 1]} : vector<4x128xf32> to vector<4x32xf32>
    %cst_33 = arith.constant 2.000000e+00 : f32
    %170 = vector.broadcast %cst_33 : f32 to vector<4x32xf32>
    %171 = arith.mulf %170, %169 : vector<4x32xf32>
    %cst_34 = arith.constant 1.000000e+00 : f32
    %172 = vector.broadcast %cst_34 : f32 to vector<4x32xf32>
    %173 = arith.subf %171, %172 : vector<4x32xf32>
    %174 = vector.extract_strided_slice %166 {offsets = [0, 96], sizes = [4, 32], strides = [1, 1]} : vector<4x128xf32> to vector<4x32xf32>
    %175 = arith.mulf %168, %149 : vector<4x32xf32>
    %176 = arith.mulf %167, %173 : vector<4x32xf32>
    %177 = arith.addf %175, %176 : vector<4x32xf32>
    %178 = math.tanh %177 : vector<4x32xf32>
    %179 = arith.mulf %174, %178 : vector<4x32xf32>
    %180 = vector.extract_strided_slice %179 {offsets = [0, 0], sizes = [2, 32], strides = [1, 1]} : vector<4x32xf32> to vector<2x32xf32>
    %181 = vector.extract_strided_slice %179 {offsets = [2, 0], sizes = [2, 32], strides = [1, 1]} : vector<4x32xf32> to vector<2x32xf32>
    %182 = vector.extract_strided_slice %179 {offsets = [0, 0], sizes = [2, 32], strides = [1, 1]} : vector<4x32xf32> to vector<2x32xf32>
    %183 = tpu.concatenate %32, %182 in 1 : vector<2x32xf32>, vector<2x32xf32> -> vector<2x64xf32>
    %cst_35 = arith.constant dense<0.000000e+00> : vector<2x128xf32>
    %184 = tpu.matmul %183, %37, %cst_35 {dimension_numbers = #tpu.dot_dimension_numbers<[1], [0], [0], [1], [0, 0, 1, 1], [], []>} : vector<2x64xf32>, vector<64x128xf32>, vector<2x128xf32> -> vector<2x128xf32>
    %185 = vector.extract_strided_slice %179 {offsets = [2, 0], sizes = [2, 32], strides = [1, 1]} : vector<4x32xf32> to vector<2x32xf32>
    %186 = tpu.concatenate %26, %185 in 1 : vector<2x32xf32>, vector<2x32xf32> -> vector<2x64xf32>
    %cst_36 = arith.constant dense<0.000000e+00> : vector<2x128xf32>
    %187 = tpu.matmul %186, %38, %cst_36 {dimension_numbers = #tpu.dot_dimension_numbers<[1], [0], [0], [1], [0, 0, 1, 1], [], []>} : vector<2x64xf32>, vector<64x128xf32>, vector<2x128xf32> -> vector<2x128xf32>
    %188 = tpu.concatenate %184, %187 in 0 : vector<2x128xf32>, vector<2x128xf32> -> vector<4x128xf32>
    %189 = arith.addf %188, %39 : vector<4x128xf32>
    %190 = arith.negf %189 : vector<4x128xf32>
    %191 = math.exp %190 : vector<4x128xf32>
    %cst_37 = arith.constant 1.000000e+00 : f32
    %192 = vector.broadcast %cst_37 : f32 to vector<4x128xf32>
    %193 = arith.addf %192, %191 : vector<4x128xf32>
    %194 = arith.divf %192, %193 : vector<4x128xf32>
    %195 = vector.extract_strided_slice %194 {offsets = [0, 0], sizes = [4, 32], strides = [1, 1]} : vector<4x128xf32> to vector<4x32xf32>
    %196 = vector.extract_strided_slice %194 {offsets = [0, 32], sizes = [4, 32], strides = [1, 1]} : vector<4x128xf32> to vector<4x32xf32>
    %197 = vector.extract_strided_slice %194 {offsets = [0, 64], sizes = [4, 32], strides = [1, 1]} : vector<4x128xf32> to vector<4x32xf32>
    %cst_38 = arith.constant 2.000000e+00 : f32
    %198 = vector.broadcast %cst_38 : f32 to vector<4x32xf32>
    %199 = arith.mulf %198, %197 : vector<4x32xf32>
    %cst_39 = arith.constant 1.000000e+00 : f32
    %200 = vector.broadcast %cst_39 : f32 to vector<4x32xf32>
    %201 = arith.subf %199, %200 : vector<4x32xf32>
    %202 = vector.extract_strided_slice %194 {offsets = [0, 96], sizes = [4, 32], strides = [1, 1]} : vector<4x128xf32> to vector<4x32xf32>
    %203 = arith.mulf %196, %177 : vector<4x32xf32>
    %204 = arith.mulf %195, %201 : vector<4x32xf32>
    %205 = arith.addf %203, %204 : vector<4x32xf32>
    %206 = math.tanh %205 : vector<4x32xf32>
    %207 = arith.mulf %202, %206 : vector<4x32xf32>
    %208 = vector.extract_strided_slice %207 {offsets = [0, 0], sizes = [2, 32], strides = [1, 1]} : vector<4x32xf32> to vector<2x32xf32>
    %209 = vector.extract_strided_slice %207 {offsets = [2, 0], sizes = [2, 32], strides = [1, 1]} : vector<4x32xf32> to vector<2x32xf32>
    %210 = vector.extract_strided_slice %207 {offsets = [0, 0], sizes = [2, 32], strides = [1, 1]} : vector<4x32xf32> to vector<2x32xf32>
    %211 = tpu.concatenate %34, %210 in 1 : vector<2x32xf32>, vector<2x32xf32> -> vector<2x64xf32>
    %cst_40 = arith.constant dense<0.000000e+00> : vector<2x128xf32>
    %212 = tpu.matmul %211, %37, %cst_40 {dimension_numbers = #tpu.dot_dimension_numbers<[1], [0], [0], [1], [0, 0, 1, 1], [], []>} : vector<2x64xf32>, vector<64x128xf32>, vector<2x128xf32> -> vector<2x128xf32>
    %213 = vector.extract_strided_slice %207 {offsets = [2, 0], sizes = [2, 32], strides = [1, 1]} : vector<4x32xf32> to vector<2x32xf32>
    %214 = tpu.concatenate %24, %213 in 1 : vector<2x32xf32>, vector<2x32xf32> -> vector<2x64xf32>
    %cst_41 = arith.constant dense<0.000000e+00> : vector<2x128xf32>
    %215 = tpu.matmul %214, %38, %cst_41 {dimension_numbers = #tpu.dot_dimension_numbers<[1], [0], [0], [1], [0, 0, 1, 1], [], []>} : vector<2x64xf32>, vector<64x128xf32>, vector<2x128xf32> -> vector<2x128xf32>
    %216 = tpu.concatenate %212, %215 in 0 : vector<2x128xf32>, vector<2x128xf32> -> vector<4x128xf32>
    %217 = arith.addf %216, %39 : vector<4x128xf32>
    %218 = arith.negf %217 : vector<4x128xf32>
    %219 = math.exp %218 : vector<4x128xf32>
    %cst_42 = arith.constant 1.000000e+00 : f32
    %220 = vector.broadcast %cst_42 : f32 to vector<4x128xf32>
    %221 = arith.addf %220, %219 : vector<4x128xf32>
    %222 = arith.divf %220, %221 : vector<4x128xf32>
    %223 = vector.extract_strided_slice %222 {offsets = [0, 0], sizes = [4, 32], strides = [1, 1]} : vector<4x128xf32> to vector<4x32xf32>
    %224 = vector.extract_strided_slice %222 {offsets = [0, 32], sizes = [4, 32], strides = [1, 1]} : vector<4x128xf32> to vector<4x32xf32>
    %225 = vector.extract_strided_slice %222 {offsets = [0, 64], sizes = [4, 32], strides = [1, 1]} : vector<4x128xf32> to vector<4x32xf32>
    %cst_43 = arith.constant 2.000000e+00 : f32
    %226 = vector.broadcast %cst_43 : f32 to vector<4x32xf32>
    %227 = arith.mulf %226, %225 : vector<4x32xf32>
    %cst_44 = arith.constant 1.000000e+00 : f32
    %228 = vector.broadcast %cst_44 : f32 to vector<4x32xf32>
    %229 = arith.subf %227, %228 : vector<4x32xf32>
    %230 = vector.extract_strided_slice %222 {offsets = [0, 96], sizes = [4, 32], strides = [1, 1]} : vector<4x128xf32> to vector<4x32xf32>
    %231 = arith.mulf %224, %205 : vector<4x32xf32>
    %232 = arith.mulf %223, %229 : vector<4x32xf32>
    %233 = arith.addf %231, %232 : vector<4x32xf32>
    %234 = math.tanh %233 : vector<4x32xf32>
    %235 = arith.mulf %230, %234 : vector<4x32xf32>
    %236 = vector.extract_strided_slice %235 {offsets = [0, 0], sizes = [2, 32], strides = [1, 1]} : vector<4x32xf32> to vector<2x32xf32>
    %237 = vector.extract_strided_slice %235 {offsets = [2, 0], sizes = [2, 32], strides = [1, 1]} : vector<4x32xf32> to vector<2x32xf32>
    %238 = vector.extract_strided_slice %235 {offsets = [0, 0], sizes = [2, 32], strides = [1, 1]} : vector<4x32xf32> to vector<2x32xf32>
    %239 = tpu.concatenate %36, %238 in 1 : vector<2x32xf32>, vector<2x32xf32> -> vector<2x64xf32>
    %cst_45 = arith.constant dense<0.000000e+00> : vector<2x128xf32>
    %240 = tpu.matmul %239, %37, %cst_45 {dimension_numbers = #tpu.dot_dimension_numbers<[1], [0], [0], [1], [0, 0, 1, 1], [], []>} : vector<2x64xf32>, vector<64x128xf32>, vector<2x128xf32> -> vector<2x128xf32>
    %241 = vector.extract_strided_slice %235 {offsets = [2, 0], sizes = [2, 32], strides = [1, 1]} : vector<4x32xf32> to vector<2x32xf32>
    %242 = tpu.concatenate %22, %241 in 1 : vector<2x32xf32>, vector<2x32xf32> -> vector<2x64xf32>
    %cst_46 = arith.constant dense<0.000000e+00> : vector<2x128xf32>
    %243 = tpu.matmul %242, %38, %cst_46 {dimension_numbers = #tpu.dot_dimension_numbers<[1], [0], [0], [1], [0, 0, 1, 1], [], []>} : vector<2x64xf32>, vector<64x128xf32>, vector<2x128xf32> -> vector<2x128xf32>
    %244 = tpu.concatenate %240, %243 in 0 : vector<2x128xf32>, vector<2x128xf32> -> vector<4x128xf32>
    %245 = arith.addf %244, %39 : vector<4x128xf32>
    %246 = arith.negf %245 : vector<4x128xf32>
    %247 = math.exp %246 : vector<4x128xf32>
    %cst_47 = arith.constant 1.000000e+00 : f32
    %248 = vector.broadcast %cst_47 : f32 to vector<4x128xf32>
    %249 = arith.addf %248, %247 : vector<4x128xf32>
    %250 = arith.divf %248, %249 : vector<4x128xf32>
    %251 = vector.extract_strided_slice %250 {offsets = [0, 0], sizes = [4, 32], strides = [1, 1]} : vector<4x128xf32> to vector<4x32xf32>
    %252 = vector.extract_strided_slice %250 {offsets = [0, 32], sizes = [4, 32], strides = [1, 1]} : vector<4x128xf32> to vector<4x32xf32>
    %253 = vector.extract_strided_slice %250 {offsets = [0, 64], sizes = [4, 32], strides = [1, 1]} : vector<4x128xf32> to vector<4x32xf32>
    %cst_48 = arith.constant 2.000000e+00 : f32
    %254 = vector.broadcast %cst_48 : f32 to vector<4x32xf32>
    %255 = arith.mulf %254, %253 : vector<4x32xf32>
    %cst_49 = arith.constant 1.000000e+00 : f32
    %256 = vector.broadcast %cst_49 : f32 to vector<4x32xf32>
    %257 = arith.subf %255, %256 : vector<4x32xf32>
    %258 = vector.extract_strided_slice %250 {offsets = [0, 96], sizes = [4, 32], strides = [1, 1]} : vector<4x128xf32> to vector<4x32xf32>
    %259 = arith.mulf %252, %233 : vector<4x32xf32>
    %260 = arith.mulf %251, %257 : vector<4x32xf32>
    %261 = arith.addf %259, %260 : vector<4x32xf32>
    %262 = math.tanh %261 : vector<4x32xf32>
    %263 = arith.mulf %258, %262 : vector<4x32xf32>
    %264 = vector.extract_strided_slice %263 {offsets = [0, 0], sizes = [2, 32], strides = [1, 1]} : vector<4x32xf32> to vector<2x32xf32>
    %265 = vector.extract_strided_slice %263 {offsets = [2, 0], sizes = [2, 32], strides = [1, 1]} : vector<4x32xf32> to vector<2x32xf32>
    %266 = tpu.concatenate %68, %265 in 1 : vector<2x32xf32>, vector<2x32xf32> -> vector<2x64xf32>
    %267 = tpu.concatenate %96, %237 in 1 : vector<2x32xf32>, vector<2x32xf32> -> vector<2x64xf32>
    %268 = tpu.concatenate %124, %209 in 1 : vector<2x32xf32>, vector<2x32xf32> -> vector<2x64xf32>
    %269 = tpu.concatenate %152, %181 in 1 : vector<2x32xf32>, vector<2x32xf32> -> vector<2x64xf32>
    %270 = tpu.concatenate %180, %153 in 1 : vector<2x32xf32>, vector<2x32xf32> -> vector<2x64xf32>
    %271 = tpu.concatenate %208, %125 in 1 : vector<2x32xf32>, vector<2x32xf32> -> vector<2x64xf32>
    %272 = tpu.concatenate %236, %97 in 1 : vector<2x32xf32>, vector<2x32xf32> -> vector<2x64xf32>
    %273 = tpu.concatenate %264, %69 in 1 : vector<2x32xf32>, vector<2x32xf32> -> vector<2x64xf32>
    %274 = vector.extract_strided_slice %263 {offsets = [0, 0], sizes = [2, 32], strides = [1, 1]} : vector<4x32xf32> to vector<2x32xf32>
    %275 = vector.extract_strided_slice %263 {offsets = [2, 0], sizes = [2, 32], strides = [1, 1]} : vector<4x32xf32> to vector<2x32xf32>
    %276 = tpu.concatenate %274, %275 in 1 : vector<2x32xf32>, vector<2x32xf32> -> vector<2x64xf32>
    %c132 = arith.constant 132 : index
    %c0_50 = arith.constant 0 : index
    %277 = vector.load %arg1[%c132, %c0_50] : memref<330x128xf32, #tpu.memory_space<vmem>>, vector<96x128xf32>
    %c228 = arith.constant 228 : index
    %c0_51 = arith.constant 0 : index
    %278 = vector.load %arg1[%c228, %c0_51] : memref<330x128xf32, #tpu.memory_space<vmem>>, vector<96x128xf32>
    %c324 = arith.constant 324 : index
    %c0_52 = arith.constant 0 : index
    %279 = vector.load %arg1[%c324, %c0_52] : memref<330x128xf32, #tpu.memory_space<vmem>>, vector<4x128xf32>
    %cst_53 = arith.constant 0.000000e+00 : f32
    %280 = vector.broadcast %cst_53 : f32 to vector<4x32xf32>
    %cst_54 = arith.constant 0.000000e+00 : f32
    %281 = vector.broadcast %cst_54 : f32 to vector<4x32xf32>
    %282 = vector.extract_strided_slice %280 {offsets = [0, 0], sizes = [2, 32], strides = [1, 1]} : vector<4x32xf32> to vector<2x32xf32>
    %283 = tpu.concatenate %266, %282 in 1 : vector<2x64xf32>, vector<2x32xf32> -> vector<2x96xf32>
    %cst_55 = arith.constant dense<0.000000e+00> : vector<2x128xf32>
    %284 = tpu.matmul %283, %277, %cst_55 {dimension_numbers = #tpu.dot_dimension_numbers<[1], [0], [0], [1], [0, 0, 1, 1], [], []>} : vector<2x96xf32>, vector<96x128xf32>, vector<2x128xf32> -> vector<2x128xf32>
    %285 = vector.extract_strided_slice %280 {offsets = [2, 0], sizes = [2, 32], strides = [1, 1]} : vector<4x32xf32> to vector<2x32xf32>
    %286 = tpu.concatenate %273, %285 in 1 : vector<2x64xf32>, vector<2x32xf32> -> vector<2x96xf32>
    %cst_56 = arith.constant dense<0.000000e+00> : vector<2x128xf32>
    %287 = tpu.matmul %286, %278, %cst_56 {dimension_numbers = #tpu.dot_dimension_numbers<[1], [0], [0], [1], [0, 0, 1, 1], [], []>} : vector<2x96xf32>, vector<96x128xf32>, vector<2x128xf32> -> vector<2x128xf32>
    %288 = tpu.concatenate %284, %287 in 0 : vector<2x128xf32>, vector<2x128xf32> -> vector<4x128xf32>
    %289 = arith.addf %288, %279 : vector<4x128xf32>
    %290 = arith.negf %289 : vector<4x128xf32>
    %291 = math.exp %290 : vector<4x128xf32>
    %cst_57 = arith.constant 1.000000e+00 : f32
    %292 = vector.broadcast %cst_57 : f32 to vector<4x128xf32>
    %293 = arith.addf %292, %291 : vector<4x128xf32>
    %294 = arith.divf %292, %293 : vector<4x128xf32>
    %295 = vector.extract_strided_slice %294 {offsets = [0, 0], sizes = [4, 32], strides = [1, 1]} : vector<4x128xf32> to vector<4x32xf32>
    %296 = vector.extract_strided_slice %294 {offsets = [0, 32], sizes = [4, 32], strides = [1, 1]} : vector<4x128xf32> to vector<4x32xf32>
    %297 = vector.extract_strided_slice %294 {offsets = [0, 64], sizes = [4, 32], strides = [1, 1]} : vector<4x128xf32> to vector<4x32xf32>
    %cst_58 = arith.constant 2.000000e+00 : f32
    %298 = vector.broadcast %cst_58 : f32 to vector<4x32xf32>
    %299 = arith.mulf %298, %297 : vector<4x32xf32>
    %cst_59 = arith.constant 1.000000e+00 : f32
    %300 = vector.broadcast %cst_59 : f32 to vector<4x32xf32>
    %301 = arith.subf %299, %300 : vector<4x32xf32>
    %302 = vector.extract_strided_slice %294 {offsets = [0, 96], sizes = [4, 32], strides = [1, 1]} : vector<4x128xf32> to vector<4x32xf32>
    %303 = arith.mulf %296, %281 : vector<4x32xf32>
    %304 = arith.mulf %295, %301 : vector<4x32xf32>
    %305 = arith.addf %303, %304 : vector<4x32xf32>
    %306 = math.tanh %305 : vector<4x32xf32>
    %307 = arith.mulf %302, %306 : vector<4x32xf32>
    %308 = vector.extract_strided_slice %307 {offsets = [0, 0], sizes = [2, 32], strides = [1, 1]} : vector<4x32xf32> to vector<2x32xf32>
    %309 = vector.extract_strided_slice %307 {offsets = [2, 0], sizes = [2, 32], strides = [1, 1]} : vector<4x32xf32> to vector<2x32xf32>
    %310 = vector.extract_strided_slice %307 {offsets = [0, 0], sizes = [2, 32], strides = [1, 1]} : vector<4x32xf32> to vector<2x32xf32>
    %311 = tpu.concatenate %267, %310 in 1 : vector<2x64xf32>, vector<2x32xf32> -> vector<2x96xf32>
    %cst_60 = arith.constant dense<0.000000e+00> : vector<2x128xf32>
    %312 = tpu.matmul %311, %277, %cst_60 {dimension_numbers = #tpu.dot_dimension_numbers<[1], [0], [0], [1], [0, 0, 1, 1], [], []>} : vector<2x96xf32>, vector<96x128xf32>, vector<2x128xf32> -> vector<2x128xf32>
    %313 = vector.extract_strided_slice %307 {offsets = [2, 0], sizes = [2, 32], strides = [1, 1]} : vector<4x32xf32> to vector<2x32xf32>
    %314 = tpu.concatenate %272, %313 in 1 : vector<2x64xf32>, vector<2x32xf32> -> vector<2x96xf32>
    %cst_61 = arith.constant dense<0.000000e+00> : vector<2x128xf32>
    %315 = tpu.matmul %314, %278, %cst_61 {dimension_numbers = #tpu.dot_dimension_numbers<[1], [0], [0], [1], [0, 0, 1, 1], [], []>} : vector<2x96xf32>, vector<96x128xf32>, vector<2x128xf32> -> vector<2x128xf32>
    %316 = tpu.concatenate %312, %315 in 0 : vector<2x128xf32>, vector<2x128xf32> -> vector<4x128xf32>
    %317 = arith.addf %316, %279 : vector<4x128xf32>
    %318 = arith.negf %317 : vector<4x128xf32>
    %319 = math.exp %318 : vector<4x128xf32>
    %cst_62 = arith.constant 1.000000e+00 : f32
    %320 = vector.broadcast %cst_62 : f32 to vector<4x128xf32>
    %321 = arith.addf %320, %319 : vector<4x128xf32>
    %322 = arith.divf %320, %321 : vector<4x128xf32>
    %323 = vector.extract_strided_slice %322 {offsets = [0, 0], sizes = [4, 32], strides = [1, 1]} : vector<4x128xf32> to vector<4x32xf32>
    %324 = vector.extract_strided_slice %322 {offsets = [0, 32], sizes = [4, 32], strides = [1, 1]} : vector<4x128xf32> to vector<4x32xf32>
    %325 = vector.extract_strided_slice %322 {offsets = [0, 64], sizes = [4, 32], strides = [1, 1]} : vector<4x128xf32> to vector<4x32xf32>
    %cst_63 = arith.constant 2.000000e+00 : f32
    %326 = vector.broadcast %cst_63 : f32 to vector<4x32xf32>
    %327 = arith.mulf %326, %325 : vector<4x32xf32>
    %cst_64 = arith.constant 1.000000e+00 : f32
    %328 = vector.broadcast %cst_64 : f32 to vector<4x32xf32>
    %329 = arith.subf %327, %328 : vector<4x32xf32>
    %330 = vector.extract_strided_slice %322 {offsets = [0, 96], sizes = [4, 32], strides = [1, 1]} : vector<4x128xf32> to vector<4x32xf32>
    %331 = arith.mulf %324, %305 : vector<4x32xf32>
    %332 = arith.mulf %323, %329 : vector<4x32xf32>
    %333 = arith.addf %331, %332 : vector<4x32xf32>
    %334 = math.tanh %333 : vector<4x32xf32>
    %335 = arith.mulf %330, %334 : vector<4x32xf32>
    %336 = vector.extract_strided_slice %335 {offsets = [0, 0], sizes = [2, 32], strides = [1, 1]} : vector<4x32xf32> to vector<2x32xf32>
    %337 = vector.extract_strided_slice %335 {offsets = [2, 0], sizes = [2, 32], strides = [1, 1]} : vector<4x32xf32> to vector<2x32xf32>
    %338 = vector.extract_strided_slice %335 {offsets = [0, 0], sizes = [2, 32], strides = [1, 1]} : vector<4x32xf32> to vector<2x32xf32>
    %339 = tpu.concatenate %268, %338 in 1 : vector<2x64xf32>, vector<2x32xf32> -> vector<2x96xf32>
    %cst_65 = arith.constant dense<0.000000e+00> : vector<2x128xf32>
    %340 = tpu.matmul %339, %277, %cst_65 {dimension_numbers = #tpu.dot_dimension_numbers<[1], [0], [0], [1], [0, 0, 1, 1], [], []>} : vector<2x96xf32>, vector<96x128xf32>, vector<2x128xf32> -> vector<2x128xf32>
    %341 = vector.extract_strided_slice %335 {offsets = [2, 0], sizes = [2, 32], strides = [1, 1]} : vector<4x32xf32> to vector<2x32xf32>
    %342 = tpu.concatenate %271, %341 in 1 : vector<2x64xf32>, vector<2x32xf32> -> vector<2x96xf32>
    %cst_66 = arith.constant dense<0.000000e+00> : vector<2x128xf32>
    %343 = tpu.matmul %342, %278, %cst_66 {dimension_numbers = #tpu.dot_dimension_numbers<[1], [0], [0], [1], [0, 0, 1, 1], [], []>} : vector<2x96xf32>, vector<96x128xf32>, vector<2x128xf32> -> vector<2x128xf32>
    %344 = tpu.concatenate %340, %343 in 0 : vector<2x128xf32>, vector<2x128xf32> -> vector<4x128xf32>
    %345 = arith.addf %344, %279 : vector<4x128xf32>
    %346 = arith.negf %345 : vector<4x128xf32>
    %347 = math.exp %346 : vector<4x128xf32>
    %cst_67 = arith.constant 1.000000e+00 : f32
    %348 = vector.broadcast %cst_67 : f32 to vector<4x128xf32>
    %349 = arith.addf %348, %347 : vector<4x128xf32>
    %350 = arith.divf %348, %349 : vector<4x128xf32>
    %351 = vector.extract_strided_slice %350 {offsets = [0, 0], sizes = [4, 32], strides = [1, 1]} : vector<4x128xf32> to vector<4x32xf32>
    %352 = vector.extract_strided_slice %350 {offsets = [0, 32], sizes = [4, 32], strides = [1, 1]} : vector<4x128xf32> to vector<4x32xf32>
    %353 = vector.extract_strided_slice %350 {offsets = [0, 64], sizes = [4, 32], strides = [1, 1]} : vector<4x128xf32> to vector<4x32xf32>
    %cst_68 = arith.constant 2.000000e+00 : f32
    %354 = vector.broadcast %cst_68 : f32 to vector<4x32xf32>
    %355 = arith.mulf %354, %353 : vector<4x32xf32>
    %cst_69 = arith.constant 1.000000e+00 : f32
    %356 = vector.broadcast %cst_69 : f32 to vector<4x32xf32>
    %357 = arith.subf %355, %356 : vector<4x32xf32>
    %358 = vector.extract_strided_slice %350 {offsets = [0, 96], sizes = [4, 32], strides = [1, 1]} : vector<4x128xf32> to vector<4x32xf32>
    %359 = arith.mulf %352, %333 : vector<4x32xf32>
    %360 = arith.mulf %351, %357 : vector<4x32xf32>
    %361 = arith.addf %359, %360 : vector<4x32xf32>
    %362 = math.tanh %361 : vector<4x32xf32>
    %363 = arith.mulf %358, %362 : vector<4x32xf32>
    %364 = vector.extract_strided_slice %363 {offsets = [0, 0], sizes = [2, 32], strides = [1, 1]} : vector<4x32xf32> to vector<2x32xf32>
    %365 = vector.extract_strided_slice %363 {offsets = [2, 0], sizes = [2, 32], strides = [1, 1]} : vector<4x32xf32> to vector<2x32xf32>
    %366 = vector.extract_strided_slice %363 {offsets = [0, 0], sizes = [2, 32], strides = [1, 1]} : vector<4x32xf32> to vector<2x32xf32>
    %367 = tpu.concatenate %269, %366 in 1 : vector<2x64xf32>, vector<2x32xf32> -> vector<2x96xf32>
    %cst_70 = arith.constant dense<0.000000e+00> : vector<2x128xf32>
    %368 = tpu.matmul %367, %277, %cst_70 {dimension_numbers = #tpu.dot_dimension_numbers<[1], [0], [0], [1], [0, 0, 1, 1], [], []>} : vector<2x96xf32>, vector<96x128xf32>, vector<2x128xf32> -> vector<2x128xf32>
    %369 = vector.extract_strided_slice %363 {offsets = [2, 0], sizes = [2, 32], strides = [1, 1]} : vector<4x32xf32> to vector<2x32xf32>
    %370 = tpu.concatenate %270, %369 in 1 : vector<2x64xf32>, vector<2x32xf32> -> vector<2x96xf32>
    %cst_71 = arith.constant dense<0.000000e+00> : vector<2x128xf32>
    %371 = tpu.matmul %370, %278, %cst_71 {dimension_numbers = #tpu.dot_dimension_numbers<[1], [0], [0], [1], [0, 0, 1, 1], [], []>} : vector<2x96xf32>, vector<96x128xf32>, vector<2x128xf32> -> vector<2x128xf32>
    %372 = tpu.concatenate %368, %371 in 0 : vector<2x128xf32>, vector<2x128xf32> -> vector<4x128xf32>
    %373 = arith.addf %372, %279 : vector<4x128xf32>
    %374 = arith.negf %373 : vector<4x128xf32>
    %375 = math.exp %374 : vector<4x128xf32>
    %cst_72 = arith.constant 1.000000e+00 : f32
    %376 = vector.broadcast %cst_72 : f32 to vector<4x128xf32>
    %377 = arith.addf %376, %375 : vector<4x128xf32>
    %378 = arith.divf %376, %377 : vector<4x128xf32>
    %379 = vector.extract_strided_slice %378 {offsets = [0, 0], sizes = [4, 32], strides = [1, 1]} : vector<4x128xf32> to vector<4x32xf32>
    %380 = vector.extract_strided_slice %378 {offsets = [0, 32], sizes = [4, 32], strides = [1, 1]} : vector<4x128xf32> to vector<4x32xf32>
    %381 = vector.extract_strided_slice %378 {offsets = [0, 64], sizes = [4, 32], strides = [1, 1]} : vector<4x128xf32> to vector<4x32xf32>
    %cst_73 = arith.constant 2.000000e+00 : f32
    %382 = vector.broadcast %cst_73 : f32 to vector<4x32xf32>
    %383 = arith.mulf %382, %381 : vector<4x32xf32>
    %cst_74 = arith.constant 1.000000e+00 : f32
    %384 = vector.broadcast %cst_74 : f32 to vector<4x32xf32>
    %385 = arith.subf %383, %384 : vector<4x32xf32>
    %386 = vector.extract_strided_slice %378 {offsets = [0, 96], sizes = [4, 32], strides = [1, 1]} : vector<4x128xf32> to vector<4x32xf32>
    %387 = arith.mulf %380, %361 : vector<4x32xf32>
    %388 = arith.mulf %379, %385 : vector<4x32xf32>
    %389 = arith.addf %387, %388 : vector<4x32xf32>
    %390 = math.tanh %389 : vector<4x32xf32>
    %391 = arith.mulf %386, %390 : vector<4x32xf32>
    %392 = vector.extract_strided_slice %391 {offsets = [0, 0], sizes = [2, 32], strides = [1, 1]} : vector<4x32xf32> to vector<2x32xf32>
    %393 = vector.extract_strided_slice %391 {offsets = [2, 0], sizes = [2, 32], strides = [1, 1]} : vector<4x32xf32> to vector<2x32xf32>
    %394 = vector.extract_strided_slice %391 {offsets = [0, 0], sizes = [2, 32], strides = [1, 1]} : vector<4x32xf32> to vector<2x32xf32>
    %395 = tpu.concatenate %270, %394 in 1 : vector<2x64xf32>, vector<2x32xf32> -> vector<2x96xf32>
    %cst_75 = arith.constant dense<0.000000e+00> : vector<2x128xf32>
    %396 = tpu.matmul %395, %277, %cst_75 {dimension_numbers = #tpu.dot_dimension_numbers<[1], [0], [0], [1], [0, 0, 1, 1], [], []>} : vector<2x96xf32>, vector<96x128xf32>, vector<2x128xf32> -> vector<2x128xf32>
    %397 = vector.extract_strided_slice %391 {offsets = [2, 0], sizes = [2, 32], strides = [1, 1]} : vector<4x32xf32> to vector<2x32xf32>
    %398 = tpu.concatenate %269, %397 in 1 : vector<2x64xf32>, vector<2x32xf32> -> vector<2x96xf32>
    %cst_76 = arith.constant dense<0.000000e+00> : vector<2x128xf32>
    %399 = tpu.matmul %398, %278, %cst_76 {dimension_numbers = #tpu.dot_dimension_numbers<[1], [0], [0], [1], [0, 0, 1, 1], [], []>} : vector<2x96xf32>, vector<96x128xf32>, vector<2x128xf32> -> vector<2x128xf32>
    %400 = tpu.concatenate %396, %399 in 0 : vector<2x128xf32>, vector<2x128xf32> -> vector<4x128xf32>
    %401 = arith.addf %400, %279 : vector<4x128xf32>
    %402 = arith.negf %401 : vector<4x128xf32>
    %403 = math.exp %402 : vector<4x128xf32>
    %cst_77 = arith.constant 1.000000e+00 : f32
    %404 = vector.broadcast %cst_77 : f32 to vector<4x128xf32>
    %405 = arith.addf %404, %403 : vector<4x128xf32>
    %406 = arith.divf %404, %405 : vector<4x128xf32>
    %407 = vector.extract_strided_slice %406 {offsets = [0, 0], sizes = [4, 32], strides = [1, 1]} : vector<4x128xf32> to vector<4x32xf32>
    %408 = vector.extract_strided_slice %406 {offsets = [0, 32], sizes = [4, 32], strides = [1, 1]} : vector<4x128xf32> to vector<4x32xf32>
    %409 = vector.extract_strided_slice %406 {offsets = [0, 64], sizes = [4, 32], strides = [1, 1]} : vector<4x128xf32> to vector<4x32xf32>
    %cst_78 = arith.constant 2.000000e+00 : f32
    %410 = vector.broadcast %cst_78 : f32 to vector<4x32xf32>
    %411 = arith.mulf %410, %409 : vector<4x32xf32>
    %cst_79 = arith.constant 1.000000e+00 : f32
    %412 = vector.broadcast %cst_79 : f32 to vector<4x32xf32>
    %413 = arith.subf %411, %412 : vector<4x32xf32>
    %414 = vector.extract_strided_slice %406 {offsets = [0, 96], sizes = [4, 32], strides = [1, 1]} : vector<4x128xf32> to vector<4x32xf32>
    %415 = arith.mulf %408, %389 : vector<4x32xf32>
    %416 = arith.mulf %407, %413 : vector<4x32xf32>
    %417 = arith.addf %415, %416 : vector<4x32xf32>
    %418 = math.tanh %417 : vector<4x32xf32>
    %419 = arith.mulf %414, %418 : vector<4x32xf32>
    %420 = vector.extract_strided_slice %419 {offsets = [0, 0], sizes = [2, 32], strides = [1, 1]} : vector<4x32xf32> to vector<2x32xf32>
    %421 = vector.extract_strided_slice %419 {offsets = [2, 0], sizes = [2, 32], strides = [1, 1]} : vector<4x32xf32> to vector<2x32xf32>
    %422 = vector.extract_strided_slice %419 {offsets = [0, 0], sizes = [2, 32], strides = [1, 1]} : vector<4x32xf32> to vector<2x32xf32>
    %423 = tpu.concatenate %271, %422 in 1 : vector<2x64xf32>, vector<2x32xf32> -> vector<2x96xf32>
    %cst_80 = arith.constant dense<0.000000e+00> : vector<2x128xf32>
    %424 = tpu.matmul %423, %277, %cst_80 {dimension_numbers = #tpu.dot_dimension_numbers<[1], [0], [0], [1], [0, 0, 1, 1], [], []>} : vector<2x96xf32>, vector<96x128xf32>, vector<2x128xf32> -> vector<2x128xf32>
    %425 = vector.extract_strided_slice %419 {offsets = [2, 0], sizes = [2, 32], strides = [1, 1]} : vector<4x32xf32> to vector<2x32xf32>
    %426 = tpu.concatenate %268, %425 in 1 : vector<2x64xf32>, vector<2x32xf32> -> vector<2x96xf32>
    %cst_81 = arith.constant dense<0.000000e+00> : vector<2x128xf32>
    %427 = tpu.matmul %426, %278, %cst_81 {dimension_numbers = #tpu.dot_dimension_numbers<[1], [0], [0], [1], [0, 0, 1, 1], [], []>} : vector<2x96xf32>, vector<96x128xf32>, vector<2x128xf32> -> vector<2x128xf32>
    %428 = tpu.concatenate %424, %427 in 0 : vector<2x128xf32>, vector<2x128xf32> -> vector<4x128xf32>
    %429 = arith.addf %428, %279 : vector<4x128xf32>
    %430 = arith.negf %429 : vector<4x128xf32>
    %431 = math.exp %430 : vector<4x128xf32>
    %cst_82 = arith.constant 1.000000e+00 : f32
    %432 = vector.broadcast %cst_82 : f32 to vector<4x128xf32>
    %433 = arith.addf %432, %431 : vector<4x128xf32>
    %434 = arith.divf %432, %433 : vector<4x128xf32>
    %435 = vector.extract_strided_slice %434 {offsets = [0, 0], sizes = [4, 32], strides = [1, 1]} : vector<4x128xf32> to vector<4x32xf32>
    %436 = vector.extract_strided_slice %434 {offsets = [0, 32], sizes = [4, 32], strides = [1, 1]} : vector<4x128xf32> to vector<4x32xf32>
    %437 = vector.extract_strided_slice %434 {offsets = [0, 64], sizes = [4, 32], strides = [1, 1]} : vector<4x128xf32> to vector<4x32xf32>
    %cst_83 = arith.constant 2.000000e+00 : f32
    %438 = vector.broadcast %cst_83 : f32 to vector<4x32xf32>
    %439 = arith.mulf %438, %437 : vector<4x32xf32>
    %cst_84 = arith.constant 1.000000e+00 : f32
    %440 = vector.broadcast %cst_84 : f32 to vector<4x32xf32>
    %441 = arith.subf %439, %440 : vector<4x32xf32>
    %442 = vector.extract_strided_slice %434 {offsets = [0, 96], sizes = [4, 32], strides = [1, 1]} : vector<4x128xf32> to vector<4x32xf32>
    %443 = arith.mulf %436, %417 : vector<4x32xf32>
    %444 = arith.mulf %435, %441 : vector<4x32xf32>
    %445 = arith.addf %443, %444 : vector<4x32xf32>
    %446 = math.tanh %445 : vector<4x32xf32>
    %447 = arith.mulf %442, %446 : vector<4x32xf32>
    %448 = vector.extract_strided_slice %447 {offsets = [0, 0], sizes = [2, 32], strides = [1, 1]} : vector<4x32xf32> to vector<2x32xf32>
    %449 = vector.extract_strided_slice %447 {offsets = [2, 0], sizes = [2, 32], strides = [1, 1]} : vector<4x32xf32> to vector<2x32xf32>
    %450 = vector.extract_strided_slice %447 {offsets = [0, 0], sizes = [2, 32], strides = [1, 1]} : vector<4x32xf32> to vector<2x32xf32>
    %451 = tpu.concatenate %272, %450 in 1 : vector<2x64xf32>, vector<2x32xf32> -> vector<2x96xf32>
    %cst_85 = arith.constant dense<0.000000e+00> : vector<2x128xf32>
    %452 = tpu.matmul %451, %277, %cst_85 {dimension_numbers = #tpu.dot_dimension_numbers<[1], [0], [0], [1], [0, 0, 1, 1], [], []>} : vector<2x96xf32>, vector<96x128xf32>, vector<2x128xf32> -> vector<2x128xf32>
    %453 = vector.extract_strided_slice %447 {offsets = [2, 0], sizes = [2, 32], strides = [1, 1]} : vector<4x32xf32> to vector<2x32xf32>
    %454 = tpu.concatenate %267, %453 in 1 : vector<2x64xf32>, vector<2x32xf32> -> vector<2x96xf32>
    %cst_86 = arith.constant dense<0.000000e+00> : vector<2x128xf32>
    %455 = tpu.matmul %454, %278, %cst_86 {dimension_numbers = #tpu.dot_dimension_numbers<[1], [0], [0], [1], [0, 0, 1, 1], [], []>} : vector<2x96xf32>, vector<96x128xf32>, vector<2x128xf32> -> vector<2x128xf32>
    %456 = tpu.concatenate %452, %455 in 0 : vector<2x128xf32>, vector<2x128xf32> -> vector<4x128xf32>
    %457 = arith.addf %456, %279 : vector<4x128xf32>
    %458 = arith.negf %457 : vector<4x128xf32>
    %459 = math.exp %458 : vector<4x128xf32>
    %cst_87 = arith.constant 1.000000e+00 : f32
    %460 = vector.broadcast %cst_87 : f32 to vector<4x128xf32>
    %461 = arith.addf %460, %459 : vector<4x128xf32>
    %462 = arith.divf %460, %461 : vector<4x128xf32>
    %463 = vector.extract_strided_slice %462 {offsets = [0, 0], sizes = [4, 32], strides = [1, 1]} : vector<4x128xf32> to vector<4x32xf32>
    %464 = vector.extract_strided_slice %462 {offsets = [0, 32], sizes = [4, 32], strides = [1, 1]} : vector<4x128xf32> to vector<4x32xf32>
    %465 = vector.extract_strided_slice %462 {offsets = [0, 64], sizes = [4, 32], strides = [1, 1]} : vector<4x128xf32> to vector<4x32xf32>
    %cst_88 = arith.constant 2.000000e+00 : f32
    %466 = vector.broadcast %cst_88 : f32 to vector<4x32xf32>
    %467 = arith.mulf %466, %465 : vector<4x32xf32>
    %cst_89 = arith.constant 1.000000e+00 : f32
    %468 = vector.broadcast %cst_89 : f32 to vector<4x32xf32>
    %469 = arith.subf %467, %468 : vector<4x32xf32>
    %470 = vector.extract_strided_slice %462 {offsets = [0, 96], sizes = [4, 32], strides = [1, 1]} : vector<4x128xf32> to vector<4x32xf32>
    %471 = arith.mulf %464, %445 : vector<4x32xf32>
    %472 = arith.mulf %463, %469 : vector<4x32xf32>
    %473 = arith.addf %471, %472 : vector<4x32xf32>
    %474 = math.tanh %473 : vector<4x32xf32>
    %475 = arith.mulf %470, %474 : vector<4x32xf32>
    %476 = vector.extract_strided_slice %475 {offsets = [0, 0], sizes = [2, 32], strides = [1, 1]} : vector<4x32xf32> to vector<2x32xf32>
    %477 = vector.extract_strided_slice %475 {offsets = [2, 0], sizes = [2, 32], strides = [1, 1]} : vector<4x32xf32> to vector<2x32xf32>
    %478 = vector.extract_strided_slice %475 {offsets = [0, 0], sizes = [2, 32], strides = [1, 1]} : vector<4x32xf32> to vector<2x32xf32>
    %479 = tpu.concatenate %273, %478 in 1 : vector<2x64xf32>, vector<2x32xf32> -> vector<2x96xf32>
    %cst_90 = arith.constant dense<0.000000e+00> : vector<2x128xf32>
    %480 = tpu.matmul %479, %277, %cst_90 {dimension_numbers = #tpu.dot_dimension_numbers<[1], [0], [0], [1], [0, 0, 1, 1], [], []>} : vector<2x96xf32>, vector<96x128xf32>, vector<2x128xf32> -> vector<2x128xf32>
    %481 = vector.extract_strided_slice %475 {offsets = [2, 0], sizes = [2, 32], strides = [1, 1]} : vector<4x32xf32> to vector<2x32xf32>
    %482 = tpu.concatenate %266, %481 in 1 : vector<2x64xf32>, vector<2x32xf32> -> vector<2x96xf32>
    %cst_91 = arith.constant dense<0.000000e+00> : vector<2x128xf32>
    %483 = tpu.matmul %482, %278, %cst_91 {dimension_numbers = #tpu.dot_dimension_numbers<[1], [0], [0], [1], [0, 0, 1, 1], [], []>} : vector<2x96xf32>, vector<96x128xf32>, vector<2x128xf32> -> vector<2x128xf32>
    %484 = tpu.concatenate %480, %483 in 0 : vector<2x128xf32>, vector<2x128xf32> -> vector<4x128xf32>
    %485 = arith.addf %484, %279 : vector<4x128xf32>
    %486 = arith.negf %485 : vector<4x128xf32>
    %487 = math.exp %486 : vector<4x128xf32>
    %cst_92 = arith.constant 1.000000e+00 : f32
    %488 = vector.broadcast %cst_92 : f32 to vector<4x128xf32>
    %489 = arith.addf %488, %487 : vector<4x128xf32>
    %490 = arith.divf %488, %489 : vector<4x128xf32>
    %491 = vector.extract_strided_slice %490 {offsets = [0, 0], sizes = [4, 32], strides = [1, 1]} : vector<4x128xf32> to vector<4x32xf32>
    %492 = vector.extract_strided_slice %490 {offsets = [0, 32], sizes = [4, 32], strides = [1, 1]} : vector<4x128xf32> to vector<4x32xf32>
    %493 = vector.extract_strided_slice %490 {offsets = [0, 64], sizes = [4, 32], strides = [1, 1]} : vector<4x128xf32> to vector<4x32xf32>
    %cst_93 = arith.constant 2.000000e+00 : f32
    %494 = vector.broadcast %cst_93 : f32 to vector<4x32xf32>
    %495 = arith.mulf %494, %493 : vector<4x32xf32>
    %cst_94 = arith.constant 1.000000e+00 : f32
    %496 = vector.broadcast %cst_94 : f32 to vector<4x32xf32>
    %497 = arith.subf %495, %496 : vector<4x32xf32>
    %498 = vector.extract_strided_slice %490 {offsets = [0, 96], sizes = [4, 32], strides = [1, 1]} : vector<4x128xf32> to vector<4x32xf32>
    %499 = arith.mulf %492, %473 : vector<4x32xf32>
    %500 = arith.mulf %491, %497 : vector<4x32xf32>
    %501 = arith.addf %499, %500 : vector<4x32xf32>
    %502 = math.tanh %501 : vector<4x32xf32>
    %503 = arith.mulf %498, %502 : vector<4x32xf32>
    %504 = vector.extract_strided_slice %503 {offsets = [0, 0], sizes = [2, 32], strides = [1, 1]} : vector<4x32xf32> to vector<2x32xf32>
    %505 = vector.extract_strided_slice %503 {offsets = [2, 0], sizes = [2, 32], strides = [1, 1]} : vector<4x32xf32> to vector<2x32xf32>
    %506 = tpu.concatenate %308, %505 in 1 : vector<2x32xf32>, vector<2x32xf32> -> vector<2x64xf32>
    %507 = tpu.concatenate %336, %477 in 1 : vector<2x32xf32>, vector<2x32xf32> -> vector<2x64xf32>
    %508 = tpu.concatenate %364, %449 in 1 : vector<2x32xf32>, vector<2x32xf32> -> vector<2x64xf32>
    %509 = tpu.concatenate %392, %421 in 1 : vector<2x32xf32>, vector<2x32xf32> -> vector<2x64xf32>
    %510 = tpu.concatenate %420, %393 in 1 : vector<2x32xf32>, vector<2x32xf32> -> vector<2x64xf32>
    %511 = tpu.concatenate %448, %365 in 1 : vector<2x32xf32>, vector<2x32xf32> -> vector<2x64xf32>
    %512 = tpu.concatenate %476, %337 in 1 : vector<2x32xf32>, vector<2x32xf32> -> vector<2x64xf32>
    %513 = tpu.concatenate %504, %309 in 1 : vector<2x32xf32>, vector<2x32xf32> -> vector<2x64xf32>
    %514 = vector.extract_strided_slice %503 {offsets = [0, 0], sizes = [2, 32], strides = [1, 1]} : vector<4x32xf32> to vector<2x32xf32>
    %515 = vector.extract_strided_slice %503 {offsets = [2, 0], sizes = [2, 32], strides = [1, 1]} : vector<4x32xf32> to vector<2x32xf32>
    %516 = tpu.concatenate %514, %515 in 1 : vector<2x32xf32>, vector<2x32xf32> -> vector<2x64xf32>
    %c328 = arith.constant 328 : index
    %c0_95 = arith.constant 0 : index
    %517 = vector.load %arg1[%c328, %c0_95] : memref<330x128xf32, #tpu.memory_space<vmem>>, vector<1x128xf32>
    %518 = vector.extract_strided_slice %517 {offsets = [0, 0], sizes = [1, 64], strides = [1, 1]} : vector<1x128xf32> to vector<1x64xf32>
    %c329 = arith.constant 329 : index
    %c0_96 = arith.constant 0 : index
    %519 = vector.load %arg1[%c329, %c0_96] : memref<330x128xf32, #tpu.memory_space<vmem>>, vector<1x128xf32>
    %520 = vector.extract_strided_slice %519 {offsets = [0, 0], sizes = [1, 64], strides = [1, 1]} : vector<1x128xf32> to vector<1x64xf32>
    %521 = vector.shape_cast %506 : vector<2x64xf32> to vector<2x1x64xf32>
    %522 = vector.shape_cast %507 : vector<2x64xf32> to vector<2x1x64xf32>
    %523 = vector.shape_cast %508 : vector<2x64xf32> to vector<2x1x64xf32>
    %524 = vector.shape_cast %509 : vector<2x64xf32> to vector<2x1x64xf32>
    %525 = vector.shape_cast %510 : vector<2x64xf32> to vector<2x1x64xf32>
    %526 = vector.shape_cast %511 : vector<2x64xf32> to vector<2x1x64xf32>
    %527 = vector.shape_cast %512 : vector<2x64xf32> to vector<2x1x64xf32>
    %528 = vector.shape_cast %513 : vector<2x64xf32> to vector<2x1x64xf32>
    %529 = tpu.concatenate %521, %522, %523, %524, %525, %526, %527, %528 in 1 : vector<2x1x64xf32>, vector<2x1x64xf32>, vector<2x1x64xf32>, vector<2x1x64xf32>, vector<2x1x64xf32>, vector<2x1x64xf32>, vector<2x1x64xf32>, vector<2x1x64xf32> -> vector<2x8x64xf32>
    %cst_97 = arith.constant dense<0.000000e+00> : vector<2x8xf32>
    %530 = vector.multi_reduction <add>, %529, %cst_97 [2] : vector<2x8x64xf32> to vector<2x8xf32>
    %531 = vector.shape_cast %530 : vector<2x8xf32> to vector<2x8x1xf32>
    %cst_98 = arith.constant 6.400000e+01 : f32
    %532 = vector.broadcast %cst_98 : f32 to vector<2x8x1xf32>
    %533 = arith.divf %531, %532 : vector<2x8x1xf32>
    %534 = vector.broadcast %533 : vector<2x8x1xf32> to vector<2x8x64xf32>
    %535 = arith.subf %529, %534 : vector<2x8x64xf32>
    %536 = arith.mulf %535, %535 : vector<2x8x64xf32>
    %cst_99 = arith.constant dense<0.000000e+00> : vector<2x8xf32>
    %537 = vector.multi_reduction <add>, %536, %cst_99 [2] : vector<2x8x64xf32> to vector<2x8xf32>
    %538 = vector.shape_cast %537 : vector<2x8xf32> to vector<2x8x1xf32>
    %cst_100 = arith.constant 6.400000e+01 : f32
    %539 = vector.broadcast %cst_100 : f32 to vector<2x8x1xf32>
    %540 = arith.divf %538, %539 : vector<2x8x1xf32>
    %541 = vector.broadcast %533 : vector<2x8x1xf32> to vector<2x8x64xf32>
    %542 = arith.subf %529, %541 : vector<2x8x64xf32>
    %cst_101 = arith.constant 9.99999974E-6 : f32
    %543 = vector.broadcast %cst_101 : f32 to vector<2x8x1xf32>
    %544 = arith.addf %540, %543 : vector<2x8x1xf32>
    %545 = math.rsqrt %544 : vector<2x8x1xf32>
    %546 = vector.broadcast %545 : vector<2x8x1xf32> to vector<2x8x64xf32>
    %547 = arith.mulf %542, %546 : vector<2x8x64xf32>
    %548 = vector.shape_cast %518 : vector<1x64xf32> to vector<1x1x64xf32>
    %549 = vector.broadcast %548 : vector<1x1x64xf32> to vector<2x8x64xf32>
    %550 = arith.mulf %547, %549 : vector<2x8x64xf32>
    %551 = vector.shape_cast %520 : vector<1x64xf32> to vector<1x1x64xf32>
    %552 = vector.broadcast %551 : vector<1x1x64xf32> to vector<2x8x64xf32>
    %553 = arith.addf %550, %552 : vector<2x8x64xf32>
    %554 = tpu.concatenate %276, %516 in 0 : vector<2x64xf32>, vector<2x64xf32> -> vector<4x64xf32>
    %c192 = arith.constant 192 : index
    %c0_102 = arith.constant 0 : index
    %555 = vector.load %arg3[%c192, %c0_102] : memref<387x32xf32, #tpu.memory_space<vmem>>, vector<64x32xf32>
    %c321 = arith.constant 321 : index
    %c0_103 = arith.constant 0 : index
    %556 = vector.load %arg3[%c321, %c0_103] : memref<387x32xf32, #tpu.memory_space<vmem>>, vector<1x32xf32>
    %cst_104 = arith.constant dense<0.000000e+00> : vector<4x32xf32>
    %557 = tpu.matmul %554, %555, %cst_104 {dimension_numbers = #tpu.dot_dimension_numbers<[1], [0], [0], [1], [0, 0, 1, 1], [], []>} : vector<4x64xf32>, vector<64x32xf32>, vector<4x32xf32> -> vector<4x32xf32>
    %558 = vector.broadcast %556 : vector<1x32xf32> to vector<4x32xf32>
    %559 = arith.addf %557, %558 : vector<4x32xf32>
    %560 = vector.extract_strided_slice %559 {offsets = [0, 0], sizes = [2, 32], strides = [1, 1]} : vector<4x32xf32> to vector<2x32xf32>
    %561 = vector.extract_strided_slice %559 {offsets = [2, 0], sizes = [2, 32], strides = [1, 1]} : vector<4x32xf32> to vector<2x32xf32>
    %562 = vector.shape_cast %553 : vector<2x8x64xf32> to vector<16x64xf32>
    %c32 = arith.constant 32 : index
    %c0_105 = arith.constant 0 : index
    %563 = vector.load %arg3[%c32, %c0_105] : memref<387x32xf32, #tpu.memory_space<vmem>>, vector<64x32xf32>
    %c96 = arith.constant 96 : index
    %c0_106 = arith.constant 0 : index
    %564 = vector.load %arg3[%c96, %c0_106] : memref<387x32xf32, #tpu.memory_space<vmem>>, vector<64x32xf32>
    %cst_107 = arith.constant dense<0.000000e+00> : vector<16x32xf32>
    %565 = tpu.matmul %562, %563, %cst_107 {dimension_numbers = #tpu.dot_dimension_numbers<[1], [0], [0], [1], [0, 0, 1, 1], [], []>} : vector<16x64xf32>, vector<64x32xf32>, vector<16x32xf32> -> vector<16x32xf32>
    %566 = vector.shape_cast %565 : vector<16x32xf32> to vector<2x8x32xf32>
    %cst_108 = arith.constant dense<0.000000e+00> : vector<16x32xf32>
    %567 = tpu.matmul %562, %564, %cst_108 {dimension_numbers = #tpu.dot_dimension_numbers<[1], [0], [0], [1], [0, 0, 1, 1], [], []>} : vector<16x64xf32>, vector<64x32xf32>, vector<16x32xf32> -> vector<16x32xf32>
    %568 = vector.shape_cast %567 : vector<16x32xf32> to vector<2x8x32xf32>
    %569 = tpu.iota {dimensions = array<i32: 1>} : vector<2x8xi32>
    %570 = vector.broadcast %2 : vector<2x1xi32> to vector<2x8xi32>
    %571 = arith.cmpi slt, %569, %570 : vector<2x8xi32>
    %572 = arith.extui %571 : vector<2x8xi1> to vector<2x8xi32>
    %573 = arith.sitofp %572 : vector<2x8xi32> to vector<2x8xf32>
    %cst_109 = arith.constant 1.000000e+00 : f32
    %574 = vector.broadcast %cst_109 : f32 to vector<2x8xf32>
    %575 = arith.subf %573, %574 : vector<2x8xf32>
    %cst_110 = arith.constant 1.000000e+09 : f32
    %576 = vector.broadcast %cst_110 : f32 to vector<2x8xf32>
    %577 = arith.mulf %575, %576 : vector<2x8xf32>
    %578 = vector.shape_cast %577 : vector<2x8xf32> to vector<2x8x1xf32>
    %579 = vector.shape_cast %578 : vector<2x8x1xf32> to vector<2x8x1xf32>
    %580 = vector.broadcast %579 : vector<2x8x1xf32> to vector<2x8x8xf32>
    %581 = tpu.iota {dimensions = array<i32: 0>} : vector<32x8xi32>
    %582 = tpu.iota {dimensions = array<i32: 1>} : vector<32x8xi32>
    %c4_i32 = arith.constant 4 : i32
    %583 = vector.broadcast %c4_i32 : i32 to vector<32x8xi32>
    %584 = arith.muli %582, %583 : vector<32x8xi32>
    %585 = arith.cmpi sge, %581, %584 : vector<32x8xi32>
    %c1_i32 = arith.constant 1 : i32
    %586 = vector.broadcast %c1_i32 : i32 to vector<32x8xi32>
    %587 = arith.addi %582, %586 : vector<32x8xi32>
    %c4_i32_111 = arith.constant 4 : i32
    %588 = vector.broadcast %c4_i32_111 : i32 to vector<32x8xi32>
    %589 = arith.muli %587, %588 : vector<32x8xi32>
    %590 = arith.cmpi slt, %581, %589 : vector<32x8xi32>
    %591 = arith.andi %585, %590 : vector<32x8xi1>
    %592 = arith.extui %591 : vector<32x8xi1> to vector<32x8xi32>
    %593 = arith.sitofp %592 : vector<32x8xi32> to vector<32x8xf32>
    %594 = tpu.iota {dimensions = array<i32: 0>} : vector<8x32xi32>
    %595 = tpu.iota {dimensions = array<i32: 1>} : vector<8x32xi32>
    %c4_i32_112 = arith.constant 4 : i32
    %596 = vector.broadcast %c4_i32_112 : i32 to vector<8x32xi32>
    %597 = arith.muli %594, %596 : vector<8x32xi32>
    %598 = arith.cmpi sge, %595, %597 : vector<8x32xi32>
    %c1_i32_113 = arith.constant 1 : i32
    %599 = vector.broadcast %c1_i32_113 : i32 to vector<8x32xi32>
    %600 = arith.addi %594, %599 : vector<8x32xi32>
    %c4_i32_114 = arith.constant 4 : i32
    %601 = vector.broadcast %c4_i32_114 : i32 to vector<8x32xi32>
    %602 = arith.muli %600, %601 : vector<8x32xi32>
    %603 = arith.cmpi slt, %595, %602 : vector<8x32xi32>
    %604 = arith.andi %598, %603 : vector<8x32xi1>
    %605 = arith.extui %604 : vector<8x32xi1> to vector<8x32xi32>
    %606 = arith.sitofp %605 : vector<8x32xi32> to vector<8x32xf32>
    %c0_115 = arith.constant 0 : index
    %c0_116 = arith.constant 0 : index
    %607 = vector.load %arg3[%c0_115, %c0_116] : memref<387x32xf32, #tpu.memory_space<vmem>>, vector<32x32xf32>
    %c160 = arith.constant 160 : index
    %c0_117 = arith.constant 0 : index
    %608 = vector.load %arg3[%c160, %c0_117] : memref<387x32xf32, #tpu.memory_space<vmem>>, vector<32x32xf32>
    %c320 = arith.constant 320 : index
    %c0_118 = arith.constant 0 : index
    %609 = vector.load %arg3[%c320, %c0_118] : memref<387x32xf32, #tpu.memory_space<vmem>>, vector<1x32xf32>
    %c0_119 = arith.constant 0 : index
    %c0_120 = arith.constant 0 : index
    %610 = vector.load %arg2[%c0_119, %c0_120] : memref<162x192xf32, #tpu.memory_space<vmem>>, vector<96x192xf32>
    %c96_121 = arith.constant 96 : index
    %c0_122 = arith.constant 0 : index
    %611 = vector.load %arg2[%c96_121, %c0_122] : memref<162x192xf32, #tpu.memory_space<vmem>>, vector<1x192xf32>
    %c97 = arith.constant 97 : index
    %c0_123 = arith.constant 0 : index
    %612 = vector.load %arg2[%c97, %c0_123] : memref<162x192xf32, #tpu.memory_space<vmem>>, vector<64x192xf32>
    %c161 = arith.constant 161 : index
    %c0_124 = arith.constant 0 : index
    %613 = vector.load %arg2[%c161, %c0_124] : memref<162x192xf32, #tpu.memory_space<vmem>>, vector<1x192xf32>
    %c256 = arith.constant 256 : index
    %c0_125 = arith.constant 0 : index
    %614 = vector.load %arg3[%c256, %c0_125] : memref<387x32xf32, #tpu.memory_space<vmem>>, vector<64x32xf32>
    %c322 = arith.constant 322 : index
    %c0_126 = arith.constant 0 : index
    %615 = vector.load %arg3[%c322, %c0_126] : memref<387x32xf32, #tpu.memory_space<vmem>>, vector<1x32xf32>
    %616 = tpu.iota {dimensions = array<i32: 1>} : vector<2x32xi32>
    %617 = arith.sitofp %616 : vector<2x32xi32> to vector<2x32xf32>
    %cst_127 = arith.constant 0.000000e+00 : f32
    %618 = vector.broadcast %cst_127 : f32 to vector<2x32xf32>
    %cst_128 = arith.constant dense<0.000000e+00> : vector<2x32xf32>
    %619 = tpu.matmul %561, %607, %cst_128 {dimension_numbers = #tpu.dot_dimension_numbers<[1], [0], [0], [1], [0, 0, 1, 1], [], []>} : vector<2x32xf32>, vector<32x32xf32>, vector<2x32xf32> -> vector<2x32xf32>
    %620 = vector.shape_cast %619 : vector<2x32xf32> to vector<2x1x32xf32>
    %621 = vector.broadcast %620 : vector<2x1x32xf32> to vector<2x8x32xf32>
    %622 = arith.mulf %621, %566 : vector<2x8x32xf32>
    %623 = vector.shape_cast %622 : vector<2x8x32xf32> to vector<16x32xf32>
    %cst_129 = arith.constant dense<0.000000e+00> : vector<16x8xf32>
    %624 = tpu.matmul %623, %593, %cst_129 {dimension_numbers = #tpu.dot_dimension_numbers<[1], [0], [0], [1], [0, 0, 1, 1], [], []>} : vector<16x32xf32>, vector<32x8xf32>, vector<16x8xf32> -> vector<16x8xf32>
    %625 = vector.shape_cast %624 : vector<16x8xf32> to vector<2x8x8xf32>
    %cst_130 = arith.constant 5.000000e-01 : f32
    %626 = vector.broadcast %cst_130 : f32 to vector<2x8x8xf32>
    %627 = arith.mulf %625, %626 : vector<2x8x8xf32>
    %628 = arith.addf %627, %580 : vector<2x8x8xf32>
    %cst_131 = arith.constant dense<0xFF800000> : vector<2x8xf32>
    %629 = vector.multi_reduction <maximumf>, %628, %cst_131 [1] : vector<2x8x8xf32> to vector<2x8xf32>
    %630 = vector.shape_cast %629 : vector<2x8xf32> to vector<2x1x8xf32>
    %631 = vector.broadcast %630 : vector<2x1x8xf32> to vector<2x8x8xf32>
    %632 = arith.subf %628, %631 : vector<2x8x8xf32>
    %633 = math.exp %632 : vector<2x8x8xf32>
    %cst_132 = arith.constant dense<0.000000e+00> : vector<2x8xf32>
    %634 = vector.multi_reduction <add>, %633, %cst_132 [1] : vector<2x8x8xf32> to vector<2x8xf32>
    %635 = vector.shape_cast %634 : vector<2x8xf32> to vector<2x1x8xf32>
    %636 = vector.broadcast %635 : vector<2x1x8xf32> to vector<2x8x8xf32>
    %637 = arith.divf %633, %636 : vector<2x8x8xf32>
    %638 = vector.shape_cast %637 : vector<2x8x8xf32> to vector<16x8xf32>
    %cst_133 = arith.constant dense<0.000000e+00> : vector<16x32xf32>
    %639 = tpu.matmul %638, %606, %cst_133 {dimension_numbers = #tpu.dot_dimension_numbers<[1], [0], [0], [1], [0, 0, 1, 1], [], []>} : vector<16x8xf32>, vector<8x32xf32>, vector<16x32xf32> -> vector<16x32xf32>
    %640 = vector.shape_cast %639 : vector<16x32xf32> to vector<2x8x32xf32>
    %641 = arith.mulf %640, %568 : vector<2x8x32xf32>
    %cst_134 = arith.constant dense<0.000000e+00> : vector<2x32xf32>
    %642 = vector.multi_reduction <add>, %641, %cst_134 [1] : vector<2x8x32xf32> to vector<2x32xf32>
    %cst_135 = arith.constant dense<0.000000e+00> : vector<2x32xf32>
    %643 = tpu.matmul %642, %608, %cst_135 {dimension_numbers = #tpu.dot_dimension_numbers<[1], [0], [0], [1], [0, 0, 1, 1], [], []>} : vector<2x32xf32>, vector<32x32xf32>, vector<2x32xf32> -> vector<2x32xf32>
    %644 = vector.broadcast %609 : vector<1x32xf32> to vector<2x32xf32>
    %645 = arith.addf %643, %644 : vector<2x32xf32>
    %646 = tpu.concatenate %20, %645, %560 in 1 : vector<2x32xf32>, vector<2x32xf32>, vector<2x32xf32> -> vector<2x96xf32>
    %cst_136 = arith.constant dense<0.000000e+00> : vector<2x192xf32>
    %647 = tpu.matmul %646, %610, %cst_136 {dimension_numbers = #tpu.dot_dimension_numbers<[1], [0], [0], [1], [0, 0, 1, 1], [], []>} : vector<2x96xf32>, vector<96x192xf32>, vector<2x192xf32> -> vector<2x192xf32>
    %648 = vector.broadcast %611 : vector<1x192xf32> to vector<2x192xf32>
    %649 = arith.addf %647, %648 : vector<2x192xf32>
    %650 = vector.extract_strided_slice %649 {offsets = [0, 0], sizes = [2, 64], strides = [1, 1]} : vector<2x192xf32> to vector<2x64xf32>
    %651 = vector.extract_strided_slice %649 {offsets = [0, 96], sizes = [2, 64], strides = [1, 1]} : vector<2x192xf32> to vector<2x64xf32>
    %652 = arith.addf %650, %651 : vector<2x64xf32>
    %653 = arith.negf %652 : vector<2x64xf32>
    %654 = math.exp %653 : vector<2x64xf32>
    %cst_137 = arith.constant 1.000000e+00 : f32
    %655 = vector.broadcast %cst_137 : f32 to vector<2x64xf32>
    %656 = arith.addf %655, %654 : vector<2x64xf32>
    %657 = arith.divf %655, %656 : vector<2x64xf32>
    %658 = vector.extract_strided_slice %657 {offsets = [0, 0], sizes = [2, 32], strides = [1, 1]} : vector<2x64xf32> to vector<2x32xf32>
    %659 = vector.extract_strided_slice %657 {offsets = [0, 32], sizes = [2, 32], strides = [1, 1]} : vector<2x64xf32> to vector<2x32xf32>
    %660 = vector.extract_strided_slice %649 {offsets = [0, 64], sizes = [2, 32], strides = [1, 1]} : vector<2x192xf32> to vector<2x32xf32>
    %661 = vector.extract_strided_slice %649 {offsets = [0, 160], sizes = [2, 32], strides = [1, 1]} : vector<2x192xf32> to vector<2x32xf32>
    %662 = arith.mulf %658, %661 : vector<2x32xf32>
    %663 = arith.addf %660, %662 : vector<2x32xf32>
    %664 = math.tanh %663 : vector<2x32xf32>
    %cst_138 = arith.constant 1.000000e+00 : f32
    %665 = vector.broadcast %cst_138 : f32 to vector<2x32xf32>
    %666 = arith.subf %665, %659 : vector<2x32xf32>
    %667 = arith.mulf %666, %664 : vector<2x32xf32>
    %668 = arith.mulf %659, %560 : vector<2x32xf32>
    %669 = arith.addf %667, %668 : vector<2x32xf32>
    %670 = tpu.concatenate %669, %561 in 1 : vector<2x32xf32>, vector<2x32xf32> -> vector<2x64xf32>
    %cst_139 = arith.constant dense<0.000000e+00> : vector<2x192xf32>
    %671 = tpu.matmul %670, %612, %cst_139 {dimension_numbers = #tpu.dot_dimension_numbers<[1], [0], [0], [1], [0, 0, 1, 1], [], []>} : vector<2x64xf32>, vector<64x192xf32>, vector<2x192xf32> -> vector<2x192xf32>
    %672 = vector.broadcast %613 : vector<1x192xf32> to vector<2x192xf32>
    %673 = arith.addf %671, %672 : vector<2x192xf32>
    %674 = vector.extract_strided_slice %673 {offsets = [0, 0], sizes = [2, 64], strides = [1, 1]} : vector<2x192xf32> to vector<2x64xf32>
    %675 = vector.extract_strided_slice %673 {offsets = [0, 96], sizes = [2, 64], strides = [1, 1]} : vector<2x192xf32> to vector<2x64xf32>
    %676 = arith.addf %674, %675 : vector<2x64xf32>
    %677 = arith.negf %676 : vector<2x64xf32>
    %678 = math.exp %677 : vector<2x64xf32>
    %cst_140 = arith.constant 1.000000e+00 : f32
    %679 = vector.broadcast %cst_140 : f32 to vector<2x64xf32>
    %680 = arith.addf %679, %678 : vector<2x64xf32>
    %681 = arith.divf %679, %680 : vector<2x64xf32>
    %682 = vector.extract_strided_slice %681 {offsets = [0, 0], sizes = [2, 32], strides = [1, 1]} : vector<2x64xf32> to vector<2x32xf32>
    %683 = vector.extract_strided_slice %681 {offsets = [0, 32], sizes = [2, 32], strides = [1, 1]} : vector<2x64xf32> to vector<2x32xf32>
    %684 = vector.extract_strided_slice %673 {offsets = [0, 64], sizes = [2, 32], strides = [1, 1]} : vector<2x192xf32> to vector<2x32xf32>
    %685 = vector.extract_strided_slice %673 {offsets = [0, 160], sizes = [2, 32], strides = [1, 1]} : vector<2x192xf32> to vector<2x32xf32>
    %686 = arith.mulf %682, %685 : vector<2x32xf32>
    %687 = arith.addf %684, %686 : vector<2x32xf32>
    %688 = math.tanh %687 : vector<2x32xf32>
    %cst_141 = arith.constant 1.000000e+00 : f32
    %689 = vector.broadcast %cst_141 : f32 to vector<2x32xf32>
    %690 = arith.subf %689, %683 : vector<2x32xf32>
    %691 = arith.mulf %690, %688 : vector<2x32xf32>
    %692 = arith.mulf %683, %561 : vector<2x32xf32>
    %693 = arith.addf %691, %692 : vector<2x32xf32>
    %694 = tpu.concatenate %693, %645 in 1 : vector<2x32xf32>, vector<2x32xf32> -> vector<2x64xf32>
    %cst_142 = arith.constant dense<0.000000e+00> : vector<2x32xf32>
    %695 = tpu.matmul %694, %614, %cst_142 {dimension_numbers = #tpu.dot_dimension_numbers<[1], [0], [0], [1], [0, 0, 1, 1], [], []>} : vector<2x64xf32>, vector<64x32xf32>, vector<2x32xf32> -> vector<2x32xf32>
    %696 = vector.broadcast %615 : vector<1x32xf32> to vector<2x32xf32>
    %697 = arith.addf %695, %696 : vector<2x32xf32>
    %cst_143 = arith.constant dense<0xFF800000> : vector<2xf32>
    %698 = vector.multi_reduction <maximumf>, %697, %cst_143 [1] : vector<2x32xf32> to vector<2xf32>
    %699 = vector.shape_cast %698 : vector<2xf32> to vector<2x1xf32>
    %700 = vector.broadcast %699 : vector<2x1xf32> to vector<2x32xf32>
    %701 = arith.cmpf oeq, %697, %700 : vector<2x32xf32>
    %cst_144 = arith.constant 3.200000e+01 : f32
    %702 = vector.broadcast %cst_144 : f32 to vector<2x32xf32>
    %703 = arith.select %701, %617, %702 : vector<2x32xi1>, vector<2x32xf32>
    %cst_145 = arith.constant dense<0x7F800000> : vector<2xf32>
    %704 = vector.multi_reduction <minimumf>, %703, %cst_145 [1] : vector<2x32xf32> to vector<2xf32>
    %705 = vector.shape_cast %704 : vector<2xf32> to vector<2x1xf32>
    %706 = vector.broadcast %705 : vector<2x1xf32> to vector<2x32xf32>
    %707 = arith.cmpf oeq, %617, %706 : vector<2x32xf32>
    %708 = arith.extui %707 : vector<2x32xi1> to vector<2x32xi32>
    %709 = arith.sitofp %708 : vector<2x32xi32> to vector<2x32xf32>
    %cst_146 = arith.constant dense<0.000000e+00> : vector<2x32xf32>
    %710 = tpu.matmul %709, %5, %cst_146 {dimension_numbers = #tpu.dot_dimension_numbers<[1], [0], [0], [1], [0, 0, 1, 1], [], []>} : vector<2x32xf32>, vector<32x32xf32>, vector<2x32xf32> -> vector<2x32xf32>
    %cst_147 = arith.constant dense<0.000000e+00> : vector<2x32xf32>
    %711 = tpu.matmul %693, %607, %cst_147 {dimension_numbers = #tpu.dot_dimension_numbers<[1], [0], [0], [1], [0, 0, 1, 1], [], []>} : vector<2x32xf32>, vector<32x32xf32>, vector<2x32xf32> -> vector<2x32xf32>
    %712 = vector.shape_cast %711 : vector<2x32xf32> to vector<2x1x32xf32>
    %713 = vector.broadcast %712 : vector<2x1x32xf32> to vector<2x8x32xf32>
    %714 = arith.mulf %713, %566 : vector<2x8x32xf32>
    %715 = vector.shape_cast %714 : vector<2x8x32xf32> to vector<16x32xf32>
    %cst_148 = arith.constant dense<0.000000e+00> : vector<16x8xf32>
    %716 = tpu.matmul %715, %593, %cst_148 {dimension_numbers = #tpu.dot_dimension_numbers<[1], [0], [0], [1], [0, 0, 1, 1], [], []>} : vector<16x32xf32>, vector<32x8xf32>, vector<16x8xf32> -> vector<16x8xf32>
    %717 = vector.shape_cast %716 : vector<16x8xf32> to vector<2x8x8xf32>
    %cst_149 = arith.constant 5.000000e-01 : f32
    %718 = vector.broadcast %cst_149 : f32 to vector<2x8x8xf32>
    %719 = arith.mulf %717, %718 : vector<2x8x8xf32>
    %720 = arith.addf %719, %580 : vector<2x8x8xf32>
    %cst_150 = arith.constant dense<0xFF800000> : vector<2x8xf32>
    %721 = vector.multi_reduction <maximumf>, %720, %cst_150 [1] : vector<2x8x8xf32> to vector<2x8xf32>
    %722 = vector.shape_cast %721 : vector<2x8xf32> to vector<2x1x8xf32>
    %723 = vector.broadcast %722 : vector<2x1x8xf32> to vector<2x8x8xf32>
    %724 = arith.subf %720, %723 : vector<2x8x8xf32>
    %725 = math.exp %724 : vector<2x8x8xf32>
    %cst_151 = arith.constant dense<0.000000e+00> : vector<2x8xf32>
    %726 = vector.multi_reduction <add>, %725, %cst_151 [1] : vector<2x8x8xf32> to vector<2x8xf32>
    %727 = vector.shape_cast %726 : vector<2x8xf32> to vector<2x1x8xf32>
    %728 = vector.broadcast %727 : vector<2x1x8xf32> to vector<2x8x8xf32>
    %729 = arith.divf %725, %728 : vector<2x8x8xf32>
    %730 = vector.shape_cast %729 : vector<2x8x8xf32> to vector<16x8xf32>
    %cst_152 = arith.constant dense<0.000000e+00> : vector<16x32xf32>
    %731 = tpu.matmul %730, %606, %cst_152 {dimension_numbers = #tpu.dot_dimension_numbers<[1], [0], [0], [1], [0, 0, 1, 1], [], []>} : vector<16x8xf32>, vector<8x32xf32>, vector<16x32xf32> -> vector<16x32xf32>
    %732 = vector.shape_cast %731 : vector<16x32xf32> to vector<2x8x32xf32>
    %733 = arith.mulf %732, %568 : vector<2x8x32xf32>
    %cst_153 = arith.constant dense<0.000000e+00> : vector<2x32xf32>
    %734 = vector.multi_reduction <add>, %733, %cst_153 [1] : vector<2x8x32xf32> to vector<2x32xf32>
    %cst_154 = arith.constant dense<0.000000e+00> : vector<2x32xf32>
    %735 = tpu.matmul %734, %608, %cst_154 {dimension_numbers = #tpu.dot_dimension_numbers<[1], [0], [0], [1], [0, 0, 1, 1], [], []>} : vector<2x32xf32>, vector<32x32xf32>, vector<2x32xf32> -> vector<2x32xf32>
    %736 = vector.broadcast %609 : vector<1x32xf32> to vector<2x32xf32>
    %737 = arith.addf %735, %736 : vector<2x32xf32>
    %738 = tpu.concatenate %710, %737, %669 in 1 : vector<2x32xf32>, vector<2x32xf32>, vector<2x32xf32> -> vector<2x96xf32>
    %cst_155 = arith.constant dense<0.000000e+00> : vector<2x192xf32>
    %739 = tpu.matmul %738, %610, %cst_155 {dimension_numbers = #tpu.dot_dimension_numbers<[1], [0], [0], [1], [0, 0, 1, 1], [], []>} : vector<2x96xf32>, vector<96x192xf32>, vector<2x192xf32> -> vector<2x192xf32>
    %740 = vector.broadcast %611 : vector<1x192xf32> to vector<2x192xf32>
    %741 = arith.addf %739, %740 : vector<2x192xf32>
    %742 = vector.extract_strided_slice %741 {offsets = [0, 0], sizes = [2, 64], strides = [1, 1]} : vector<2x192xf32> to vector<2x64xf32>
    %743 = vector.extract_strided_slice %741 {offsets = [0, 96], sizes = [2, 64], strides = [1, 1]} : vector<2x192xf32> to vector<2x64xf32>
    %744 = arith.addf %742, %743 : vector<2x64xf32>
    %745 = arith.negf %744 : vector<2x64xf32>
    %746 = math.exp %745 : vector<2x64xf32>
    %cst_156 = arith.constant 1.000000e+00 : f32
    %747 = vector.broadcast %cst_156 : f32 to vector<2x64xf32>
    %748 = arith.addf %747, %746 : vector<2x64xf32>
    %749 = arith.divf %747, %748 : vector<2x64xf32>
    %750 = vector.extract_strided_slice %749 {offsets = [0, 0], sizes = [2, 32], strides = [1, 1]} : vector<2x64xf32> to vector<2x32xf32>
    %751 = vector.extract_strided_slice %749 {offsets = [0, 32], sizes = [2, 32], strides = [1, 1]} : vector<2x64xf32> to vector<2x32xf32>
    %752 = vector.extract_strided_slice %741 {offsets = [0, 64], sizes = [2, 32], strides = [1, 1]} : vector<2x192xf32> to vector<2x32xf32>
    %753 = vector.extract_strided_slice %741 {offsets = [0, 160], sizes = [2, 32], strides = [1, 1]} : vector<2x192xf32> to vector<2x32xf32>
    %754 = arith.mulf %750, %753 : vector<2x32xf32>
    %755 = arith.addf %752, %754 : vector<2x32xf32>
    %756 = math.tanh %755 : vector<2x32xf32>
    %cst_157 = arith.constant 1.000000e+00 : f32
    %757 = vector.broadcast %cst_157 : f32 to vector<2x32xf32>
    %758 = arith.subf %757, %751 : vector<2x32xf32>
    %759 = arith.mulf %758, %756 : vector<2x32xf32>
    %760 = arith.mulf %751, %669 : vector<2x32xf32>
    %761 = arith.addf %759, %760 : vector<2x32xf32>
    %762 = tpu.concatenate %761, %693 in 1 : vector<2x32xf32>, vector<2x32xf32> -> vector<2x64xf32>
    %cst_158 = arith.constant dense<0.000000e+00> : vector<2x192xf32>
    %763 = tpu.matmul %762, %612, %cst_158 {dimension_numbers = #tpu.dot_dimension_numbers<[1], [0], [0], [1], [0, 0, 1, 1], [], []>} : vector<2x64xf32>, vector<64x192xf32>, vector<2x192xf32> -> vector<2x192xf32>
    %764 = vector.broadcast %613 : vector<1x192xf32> to vector<2x192xf32>
    %765 = arith.addf %763, %764 : vector<2x192xf32>
    %766 = vector.extract_strided_slice %765 {offsets = [0, 0], sizes = [2, 64], strides = [1, 1]} : vector<2x192xf32> to vector<2x64xf32>
    %767 = vector.extract_strided_slice %765 {offsets = [0, 96], sizes = [2, 64], strides = [1, 1]} : vector<2x192xf32> to vector<2x64xf32>
    %768 = arith.addf %766, %767 : vector<2x64xf32>
    %769 = arith.negf %768 : vector<2x64xf32>
    %770 = math.exp %769 : vector<2x64xf32>
    %cst_159 = arith.constant 1.000000e+00 : f32
    %771 = vector.broadcast %cst_159 : f32 to vector<2x64xf32>
    %772 = arith.addf %771, %770 : vector<2x64xf32>
    %773 = arith.divf %771, %772 : vector<2x64xf32>
    %774 = vector.extract_strided_slice %773 {offsets = [0, 0], sizes = [2, 32], strides = [1, 1]} : vector<2x64xf32> to vector<2x32xf32>
    %775 = vector.extract_strided_slice %773 {offsets = [0, 32], sizes = [2, 32], strides = [1, 1]} : vector<2x64xf32> to vector<2x32xf32>
    %776 = vector.extract_strided_slice %765 {offsets = [0, 64], sizes = [2, 32], strides = [1, 1]} : vector<2x192xf32> to vector<2x32xf32>
    %777 = vector.extract_strided_slice %765 {offsets = [0, 160], sizes = [2, 32], strides = [1, 1]} : vector<2x192xf32> to vector<2x32xf32>
    %778 = arith.mulf %774, %777 : vector<2x32xf32>
    %779 = arith.addf %776, %778 : vector<2x32xf32>
    %780 = math.tanh %779 : vector<2x32xf32>
    %cst_160 = arith.constant 1.000000e+00 : f32
    %781 = vector.broadcast %cst_160 : f32 to vector<2x32xf32>
    %782 = arith.subf %781, %775 : vector<2x32xf32>
    %783 = arith.mulf %782, %780 : vector<2x32xf32>
    %784 = arith.mulf %775, %693 : vector<2x32xf32>
    %785 = arith.addf %783, %784 : vector<2x32xf32>
    %786 = tpu.concatenate %785, %737 in 1 : vector<2x32xf32>, vector<2x32xf32> -> vector<2x64xf32>
    %cst_161 = arith.constant dense<0.000000e+00> : vector<2x32xf32>
    %787 = tpu.matmul %786, %614, %cst_161 {dimension_numbers = #tpu.dot_dimension_numbers<[1], [0], [0], [1], [0, 0, 1, 1], [], []>} : vector<2x64xf32>, vector<64x32xf32>, vector<2x32xf32> -> vector<2x32xf32>
    %788 = vector.broadcast %615 : vector<1x32xf32> to vector<2x32xf32>
    %789 = arith.addf %787, %788 : vector<2x32xf32>
    %cst_162 = arith.constant dense<0xFF800000> : vector<2xf32>
    %790 = vector.multi_reduction <maximumf>, %789, %cst_162 [1] : vector<2x32xf32> to vector<2xf32>
    %791 = vector.shape_cast %790 : vector<2xf32> to vector<2x1xf32>
    %792 = vector.broadcast %791 : vector<2x1xf32> to vector<2x32xf32>
    %793 = arith.cmpf oeq, %789, %792 : vector<2x32xf32>
    %cst_163 = arith.constant 3.200000e+01 : f32
    %794 = vector.broadcast %cst_163 : f32 to vector<2x32xf32>
    %795 = arith.select %793, %617, %794 : vector<2x32xi1>, vector<2x32xf32>
    %cst_164 = arith.constant dense<0x7F800000> : vector<2xf32>
    %796 = vector.multi_reduction <minimumf>, %795, %cst_164 [1] : vector<2x32xf32> to vector<2xf32>
    %797 = vector.shape_cast %796 : vector<2xf32> to vector<2x1xf32>
    %798 = vector.broadcast %797 : vector<2x1xf32> to vector<2x32xf32>
    %799 = arith.cmpf oeq, %617, %798 : vector<2x32xf32>
    %800 = arith.extui %799 : vector<2x32xi1> to vector<2x32xi32>
    %801 = arith.sitofp %800 : vector<2x32xi32> to vector<2x32xf32>
    %cst_165 = arith.constant dense<0.000000e+00> : vector<2x32xf32>
    %802 = tpu.matmul %801, %5, %cst_165 {dimension_numbers = #tpu.dot_dimension_numbers<[1], [0], [0], [1], [0, 0, 1, 1], [], []>} : vector<2x32xf32>, vector<32x32xf32>, vector<2x32xf32> -> vector<2x32xf32>
    %cst_166 = arith.constant dense<0.000000e+00> : vector<2x32xf32>
    %803 = tpu.matmul %785, %607, %cst_166 {dimension_numbers = #tpu.dot_dimension_numbers<[1], [0], [0], [1], [0, 0, 1, 1], [], []>} : vector<2x32xf32>, vector<32x32xf32>, vector<2x32xf32> -> vector<2x32xf32>
    %804 = vector.shape_cast %803 : vector<2x32xf32> to vector<2x1x32xf32>
    %805 = vector.broadcast %804 : vector<2x1x32xf32> to vector<2x8x32xf32>
    %806 = arith.mulf %805, %566 : vector<2x8x32xf32>
    %807 = vector.shape_cast %806 : vector<2x8x32xf32> to vector<16x32xf32>
    %cst_167 = arith.constant dense<0.000000e+00> : vector<16x8xf32>
    %808 = tpu.matmul %807, %593, %cst_167 {dimension_numbers = #tpu.dot_dimension_numbers<[1], [0], [0], [1], [0, 0, 1, 1], [], []>} : vector<16x32xf32>, vector<32x8xf32>, vector<16x8xf32> -> vector<16x8xf32>
    %809 = vector.shape_cast %808 : vector<16x8xf32> to vector<2x8x8xf32>
    %cst_168 = arith.constant 5.000000e-01 : f32
    %810 = vector.broadcast %cst_168 : f32 to vector<2x8x8xf32>
    %811 = arith.mulf %809, %810 : vector<2x8x8xf32>
    %812 = arith.addf %811, %580 : vector<2x8x8xf32>
    %cst_169 = arith.constant dense<0xFF800000> : vector<2x8xf32>
    %813 = vector.multi_reduction <maximumf>, %812, %cst_169 [1] : vector<2x8x8xf32> to vector<2x8xf32>
    %814 = vector.shape_cast %813 : vector<2x8xf32> to vector<2x1x8xf32>
    %815 = vector.broadcast %814 : vector<2x1x8xf32> to vector<2x8x8xf32>
    %816 = arith.subf %812, %815 : vector<2x8x8xf32>
    %817 = math.exp %816 : vector<2x8x8xf32>
    %cst_170 = arith.constant dense<0.000000e+00> : vector<2x8xf32>
    %818 = vector.multi_reduction <add>, %817, %cst_170 [1] : vector<2x8x8xf32> to vector<2x8xf32>
    %819 = vector.shape_cast %818 : vector<2x8xf32> to vector<2x1x8xf32>
    %820 = vector.broadcast %819 : vector<2x1x8xf32> to vector<2x8x8xf32>
    %821 = arith.divf %817, %820 : vector<2x8x8xf32>
    %822 = vector.shape_cast %821 : vector<2x8x8xf32> to vector<16x8xf32>
    %cst_171 = arith.constant dense<0.000000e+00> : vector<16x32xf32>
    %823 = tpu.matmul %822, %606, %cst_171 {dimension_numbers = #tpu.dot_dimension_numbers<[1], [0], [0], [1], [0, 0, 1, 1], [], []>} : vector<16x8xf32>, vector<8x32xf32>, vector<16x32xf32> -> vector<16x32xf32>
    %824 = vector.shape_cast %823 : vector<16x32xf32> to vector<2x8x32xf32>
    %825 = arith.mulf %824, %568 : vector<2x8x32xf32>
    %cst_172 = arith.constant dense<0.000000e+00> : vector<2x32xf32>
    %826 = vector.multi_reduction <add>, %825, %cst_172 [1] : vector<2x8x32xf32> to vector<2x32xf32>
    %cst_173 = arith.constant dense<0.000000e+00> : vector<2x32xf32>
    %827 = tpu.matmul %826, %608, %cst_173 {dimension_numbers = #tpu.dot_dimension_numbers<[1], [0], [0], [1], [0, 0, 1, 1], [], []>} : vector<2x32xf32>, vector<32x32xf32>, vector<2x32xf32> -> vector<2x32xf32>
    %828 = vector.broadcast %609 : vector<1x32xf32> to vector<2x32xf32>
    %829 = arith.addf %827, %828 : vector<2x32xf32>
    %830 = tpu.concatenate %802, %829, %761 in 1 : vector<2x32xf32>, vector<2x32xf32>, vector<2x32xf32> -> vector<2x96xf32>
    %cst_174 = arith.constant dense<0.000000e+00> : vector<2x192xf32>
    %831 = tpu.matmul %830, %610, %cst_174 {dimension_numbers = #tpu.dot_dimension_numbers<[1], [0], [0], [1], [0, 0, 1, 1], [], []>} : vector<2x96xf32>, vector<96x192xf32>, vector<2x192xf32> -> vector<2x192xf32>
    %832 = vector.broadcast %611 : vector<1x192xf32> to vector<2x192xf32>
    %833 = arith.addf %831, %832 : vector<2x192xf32>
    %834 = vector.extract_strided_slice %833 {offsets = [0, 0], sizes = [2, 64], strides = [1, 1]} : vector<2x192xf32> to vector<2x64xf32>
    %835 = vector.extract_strided_slice %833 {offsets = [0, 96], sizes = [2, 64], strides = [1, 1]} : vector<2x192xf32> to vector<2x64xf32>
    %836 = arith.addf %834, %835 : vector<2x64xf32>
    %837 = arith.negf %836 : vector<2x64xf32>
    %838 = math.exp %837 : vector<2x64xf32>
    %cst_175 = arith.constant 1.000000e+00 : f32
    %839 = vector.broadcast %cst_175 : f32 to vector<2x64xf32>
    %840 = arith.addf %839, %838 : vector<2x64xf32>
    %841 = arith.divf %839, %840 : vector<2x64xf32>
    %842 = vector.extract_strided_slice %841 {offsets = [0, 0], sizes = [2, 32], strides = [1, 1]} : vector<2x64xf32> to vector<2x32xf32>
    %843 = vector.extract_strided_slice %841 {offsets = [0, 32], sizes = [2, 32], strides = [1, 1]} : vector<2x64xf32> to vector<2x32xf32>
    %844 = vector.extract_strided_slice %833 {offsets = [0, 64], sizes = [2, 32], strides = [1, 1]} : vector<2x192xf32> to vector<2x32xf32>
    %845 = vector.extract_strided_slice %833 {offsets = [0, 160], sizes = [2, 32], strides = [1, 1]} : vector<2x192xf32> to vector<2x32xf32>
    %846 = arith.mulf %842, %845 : vector<2x32xf32>
    %847 = arith.addf %844, %846 : vector<2x32xf32>
    %848 = math.tanh %847 : vector<2x32xf32>
    %cst_176 = arith.constant 1.000000e+00 : f32
    %849 = vector.broadcast %cst_176 : f32 to vector<2x32xf32>
    %850 = arith.subf %849, %843 : vector<2x32xf32>
    %851 = arith.mulf %850, %848 : vector<2x32xf32>
    %852 = arith.mulf %843, %761 : vector<2x32xf32>
    %853 = arith.addf %851, %852 : vector<2x32xf32>
    %854 = tpu.concatenate %853, %785 in 1 : vector<2x32xf32>, vector<2x32xf32> -> vector<2x64xf32>
    %cst_177 = arith.constant dense<0.000000e+00> : vector<2x192xf32>
    %855 = tpu.matmul %854, %612, %cst_177 {dimension_numbers = #tpu.dot_dimension_numbers<[1], [0], [0], [1], [0, 0, 1, 1], [], []>} : vector<2x64xf32>, vector<64x192xf32>, vector<2x192xf32> -> vector<2x192xf32>
    %856 = vector.broadcast %613 : vector<1x192xf32> to vector<2x192xf32>
    %857 = arith.addf %855, %856 : vector<2x192xf32>
    %858 = vector.extract_strided_slice %857 {offsets = [0, 0], sizes = [2, 64], strides = [1, 1]} : vector<2x192xf32> to vector<2x64xf32>
    %859 = vector.extract_strided_slice %857 {offsets = [0, 96], sizes = [2, 64], strides = [1, 1]} : vector<2x192xf32> to vector<2x64xf32>
    %860 = arith.addf %858, %859 : vector<2x64xf32>
    %861 = arith.negf %860 : vector<2x64xf32>
    %862 = math.exp %861 : vector<2x64xf32>
    %cst_178 = arith.constant 1.000000e+00 : f32
    %863 = vector.broadcast %cst_178 : f32 to vector<2x64xf32>
    %864 = arith.addf %863, %862 : vector<2x64xf32>
    %865 = arith.divf %863, %864 : vector<2x64xf32>
    %866 = vector.extract_strided_slice %865 {offsets = [0, 0], sizes = [2, 32], strides = [1, 1]} : vector<2x64xf32> to vector<2x32xf32>
    %867 = vector.extract_strided_slice %865 {offsets = [0, 32], sizes = [2, 32], strides = [1, 1]} : vector<2x64xf32> to vector<2x32xf32>
    %868 = vector.extract_strided_slice %857 {offsets = [0, 64], sizes = [2, 32], strides = [1, 1]} : vector<2x192xf32> to vector<2x32xf32>
    %869 = vector.extract_strided_slice %857 {offsets = [0, 160], sizes = [2, 32], strides = [1, 1]} : vector<2x192xf32> to vector<2x32xf32>
    %870 = arith.mulf %866, %869 : vector<2x32xf32>
    %871 = arith.addf %868, %870 : vector<2x32xf32>
    %872 = math.tanh %871 : vector<2x32xf32>
    %cst_179 = arith.constant 1.000000e+00 : f32
    %873 = vector.broadcast %cst_179 : f32 to vector<2x32xf32>
    %874 = arith.subf %873, %867 : vector<2x32xf32>
    %875 = arith.mulf %874, %872 : vector<2x32xf32>
    %876 = arith.mulf %867, %785 : vector<2x32xf32>
    %877 = arith.addf %875, %876 : vector<2x32xf32>
    %878 = tpu.concatenate %877, %829 in 1 : vector<2x32xf32>, vector<2x32xf32> -> vector<2x64xf32>
    %cst_180 = arith.constant dense<0.000000e+00> : vector<2x32xf32>
    %879 = tpu.matmul %878, %614, %cst_180 {dimension_numbers = #tpu.dot_dimension_numbers<[1], [0], [0], [1], [0, 0, 1, 1], [], []>} : vector<2x64xf32>, vector<64x32xf32>, vector<2x32xf32> -> vector<2x32xf32>
    %880 = vector.broadcast %615 : vector<1x32xf32> to vector<2x32xf32>
    %881 = arith.addf %879, %880 : vector<2x32xf32>
    %cst_181 = arith.constant dense<0xFF800000> : vector<2xf32>
    %882 = vector.multi_reduction <maximumf>, %881, %cst_181 [1] : vector<2x32xf32> to vector<2xf32>
    %883 = vector.shape_cast %882 : vector<2xf32> to vector<2x1xf32>
    %884 = vector.broadcast %883 : vector<2x1xf32> to vector<2x32xf32>
    %885 = arith.cmpf oeq, %881, %884 : vector<2x32xf32>
    %cst_182 = arith.constant 3.200000e+01 : f32
    %886 = vector.broadcast %cst_182 : f32 to vector<2x32xf32>
    %887 = arith.select %885, %617, %886 : vector<2x32xi1>, vector<2x32xf32>
    %cst_183 = arith.constant dense<0x7F800000> : vector<2xf32>
    %888 = vector.multi_reduction <minimumf>, %887, %cst_183 [1] : vector<2x32xf32> to vector<2xf32>
    %889 = vector.shape_cast %888 : vector<2xf32> to vector<2x1xf32>
    %890 = vector.broadcast %889 : vector<2x1xf32> to vector<2x32xf32>
    %891 = arith.cmpf oeq, %617, %890 : vector<2x32xf32>
    %892 = arith.extui %891 : vector<2x32xi1> to vector<2x32xi32>
    %893 = arith.sitofp %892 : vector<2x32xi32> to vector<2x32xf32>
    %cst_184 = arith.constant dense<0.000000e+00> : vector<2x32xf32>
    %894 = tpu.matmul %893, %5, %cst_184 {dimension_numbers = #tpu.dot_dimension_numbers<[1], [0], [0], [1], [0, 0, 1, 1], [], []>} : vector<2x32xf32>, vector<32x32xf32>, vector<2x32xf32> -> vector<2x32xf32>
    %cst_185 = arith.constant dense<0.000000e+00> : vector<2x32xf32>
    %895 = tpu.matmul %877, %607, %cst_185 {dimension_numbers = #tpu.dot_dimension_numbers<[1], [0], [0], [1], [0, 0, 1, 1], [], []>} : vector<2x32xf32>, vector<32x32xf32>, vector<2x32xf32> -> vector<2x32xf32>
    %896 = vector.shape_cast %895 : vector<2x32xf32> to vector<2x1x32xf32>
    %897 = vector.broadcast %896 : vector<2x1x32xf32> to vector<2x8x32xf32>
    %898 = arith.mulf %897, %566 : vector<2x8x32xf32>
    %899 = vector.shape_cast %898 : vector<2x8x32xf32> to vector<16x32xf32>
    %cst_186 = arith.constant dense<0.000000e+00> : vector<16x8xf32>
    %900 = tpu.matmul %899, %593, %cst_186 {dimension_numbers = #tpu.dot_dimension_numbers<[1], [0], [0], [1], [0, 0, 1, 1], [], []>} : vector<16x32xf32>, vector<32x8xf32>, vector<16x8xf32> -> vector<16x8xf32>
    %901 = vector.shape_cast %900 : vector<16x8xf32> to vector<2x8x8xf32>
    %cst_187 = arith.constant 5.000000e-01 : f32
    %902 = vector.broadcast %cst_187 : f32 to vector<2x8x8xf32>
    %903 = arith.mulf %901, %902 : vector<2x8x8xf32>
    %904 = arith.addf %903, %580 : vector<2x8x8xf32>
    %cst_188 = arith.constant dense<0xFF800000> : vector<2x8xf32>
    %905 = vector.multi_reduction <maximumf>, %904, %cst_188 [1] : vector<2x8x8xf32> to vector<2x8xf32>
    %906 = vector.shape_cast %905 : vector<2x8xf32> to vector<2x1x8xf32>
    %907 = vector.broadcast %906 : vector<2x1x8xf32> to vector<2x8x8xf32>
    %908 = arith.subf %904, %907 : vector<2x8x8xf32>
    %909 = math.exp %908 : vector<2x8x8xf32>
    %cst_189 = arith.constant dense<0.000000e+00> : vector<2x8xf32>
    %910 = vector.multi_reduction <add>, %909, %cst_189 [1] : vector<2x8x8xf32> to vector<2x8xf32>
    %911 = vector.shape_cast %910 : vector<2x8xf32> to vector<2x1x8xf32>
    %912 = vector.broadcast %911 : vector<2x1x8xf32> to vector<2x8x8xf32>
    %913 = arith.divf %909, %912 : vector<2x8x8xf32>
    %914 = vector.shape_cast %913 : vector<2x8x8xf32> to vector<16x8xf32>
    %cst_190 = arith.constant dense<0.000000e+00> : vector<16x32xf32>
    %915 = tpu.matmul %914, %606, %cst_190 {dimension_numbers = #tpu.dot_dimension_numbers<[1], [0], [0], [1], [0, 0, 1, 1], [], []>} : vector<16x8xf32>, vector<8x32xf32>, vector<16x32xf32> -> vector<16x32xf32>
    %916 = vector.shape_cast %915 : vector<16x32xf32> to vector<2x8x32xf32>
    %917 = arith.mulf %916, %568 : vector<2x8x32xf32>
    %cst_191 = arith.constant dense<0.000000e+00> : vector<2x32xf32>
    %918 = vector.multi_reduction <add>, %917, %cst_191 [1] : vector<2x8x32xf32> to vector<2x32xf32>
    %cst_192 = arith.constant dense<0.000000e+00> : vector<2x32xf32>
    %919 = tpu.matmul %918, %608, %cst_192 {dimension_numbers = #tpu.dot_dimension_numbers<[1], [0], [0], [1], [0, 0, 1, 1], [], []>} : vector<2x32xf32>, vector<32x32xf32>, vector<2x32xf32> -> vector<2x32xf32>
    %920 = vector.broadcast %609 : vector<1x32xf32> to vector<2x32xf32>
    %921 = arith.addf %919, %920 : vector<2x32xf32>
    %922 = tpu.concatenate %894, %921, %853 in 1 : vector<2x32xf32>, vector<2x32xf32>, vector<2x32xf32> -> vector<2x96xf32>
    %cst_193 = arith.constant dense<0.000000e+00> : vector<2x192xf32>
    %923 = tpu.matmul %922, %610, %cst_193 {dimension_numbers = #tpu.dot_dimension_numbers<[1], [0], [0], [1], [0, 0, 1, 1], [], []>} : vector<2x96xf32>, vector<96x192xf32>, vector<2x192xf32> -> vector<2x192xf32>
    %924 = vector.broadcast %611 : vector<1x192xf32> to vector<2x192xf32>
    %925 = arith.addf %923, %924 : vector<2x192xf32>
    %926 = vector.extract_strided_slice %925 {offsets = [0, 0], sizes = [2, 64], strides = [1, 1]} : vector<2x192xf32> to vector<2x64xf32>
    %927 = vector.extract_strided_slice %925 {offsets = [0, 96], sizes = [2, 64], strides = [1, 1]} : vector<2x192xf32> to vector<2x64xf32>
    %928 = arith.addf %926, %927 : vector<2x64xf32>
    %929 = arith.negf %928 : vector<2x64xf32>
    %930 = math.exp %929 : vector<2x64xf32>
    %cst_194 = arith.constant 1.000000e+00 : f32
    %931 = vector.broadcast %cst_194 : f32 to vector<2x64xf32>
    %932 = arith.addf %931, %930 : vector<2x64xf32>
    %933 = arith.divf %931, %932 : vector<2x64xf32>
    %934 = vector.extract_strided_slice %933 {offsets = [0, 0], sizes = [2, 32], strides = [1, 1]} : vector<2x64xf32> to vector<2x32xf32>
    %935 = vector.extract_strided_slice %933 {offsets = [0, 32], sizes = [2, 32], strides = [1, 1]} : vector<2x64xf32> to vector<2x32xf32>
    %936 = vector.extract_strided_slice %925 {offsets = [0, 64], sizes = [2, 32], strides = [1, 1]} : vector<2x192xf32> to vector<2x32xf32>
    %937 = vector.extract_strided_slice %925 {offsets = [0, 160], sizes = [2, 32], strides = [1, 1]} : vector<2x192xf32> to vector<2x32xf32>
    %938 = arith.mulf %934, %937 : vector<2x32xf32>
    %939 = arith.addf %936, %938 : vector<2x32xf32>
    %940 = math.tanh %939 : vector<2x32xf32>
    %cst_195 = arith.constant 1.000000e+00 : f32
    %941 = vector.broadcast %cst_195 : f32 to vector<2x32xf32>
    %942 = arith.subf %941, %935 : vector<2x32xf32>
    %943 = arith.mulf %942, %940 : vector<2x32xf32>
    %944 = arith.mulf %935, %853 : vector<2x32xf32>
    %945 = arith.addf %943, %944 : vector<2x32xf32>
    %946 = tpu.concatenate %945, %877 in 1 : vector<2x32xf32>, vector<2x32xf32> -> vector<2x64xf32>
    %cst_196 = arith.constant dense<0.000000e+00> : vector<2x192xf32>
    %947 = tpu.matmul %946, %612, %cst_196 {dimension_numbers = #tpu.dot_dimension_numbers<[1], [0], [0], [1], [0, 0, 1, 1], [], []>} : vector<2x64xf32>, vector<64x192xf32>, vector<2x192xf32> -> vector<2x192xf32>
    %948 = vector.broadcast %613 : vector<1x192xf32> to vector<2x192xf32>
    %949 = arith.addf %947, %948 : vector<2x192xf32>
    %950 = vector.extract_strided_slice %949 {offsets = [0, 0], sizes = [2, 64], strides = [1, 1]} : vector<2x192xf32> to vector<2x64xf32>
    %951 = vector.extract_strided_slice %949 {offsets = [0, 96], sizes = [2, 64], strides = [1, 1]} : vector<2x192xf32> to vector<2x64xf32>
    %952 = arith.addf %950, %951 : vector<2x64xf32>
    %953 = arith.negf %952 : vector<2x64xf32>
    %954 = math.exp %953 : vector<2x64xf32>
    %cst_197 = arith.constant 1.000000e+00 : f32
    %955 = vector.broadcast %cst_197 : f32 to vector<2x64xf32>
    %956 = arith.addf %955, %954 : vector<2x64xf32>
    %957 = arith.divf %955, %956 : vector<2x64xf32>
    %958 = vector.extract_strided_slice %957 {offsets = [0, 0], sizes = [2, 32], strides = [1, 1]} : vector<2x64xf32> to vector<2x32xf32>
    %959 = vector.extract_strided_slice %957 {offsets = [0, 32], sizes = [2, 32], strides = [1, 1]} : vector<2x64xf32> to vector<2x32xf32>
    %960 = vector.extract_strided_slice %949 {offsets = [0, 64], sizes = [2, 32], strides = [1, 1]} : vector<2x192xf32> to vector<2x32xf32>
    %961 = vector.extract_strided_slice %949 {offsets = [0, 160], sizes = [2, 32], strides = [1, 1]} : vector<2x192xf32> to vector<2x32xf32>
    %962 = arith.mulf %958, %961 : vector<2x32xf32>
    %963 = arith.addf %960, %962 : vector<2x32xf32>
    %964 = math.tanh %963 : vector<2x32xf32>
    %cst_198 = arith.constant 1.000000e+00 : f32
    %965 = vector.broadcast %cst_198 : f32 to vector<2x32xf32>
    %966 = arith.subf %965, %959 : vector<2x32xf32>
    %967 = arith.mulf %966, %964 : vector<2x32xf32>
    %968 = arith.mulf %959, %877 : vector<2x32xf32>
    %969 = arith.addf %967, %968 : vector<2x32xf32>
    %970 = tpu.concatenate %969, %921 in 1 : vector<2x32xf32>, vector<2x32xf32> -> vector<2x64xf32>
    %cst_199 = arith.constant dense<0.000000e+00> : vector<2x32xf32>
    %971 = tpu.matmul %970, %614, %cst_199 {dimension_numbers = #tpu.dot_dimension_numbers<[1], [0], [0], [1], [0, 0, 1, 1], [], []>} : vector<2x64xf32>, vector<64x32xf32>, vector<2x32xf32> -> vector<2x32xf32>
    %972 = vector.broadcast %615 : vector<1x32xf32> to vector<2x32xf32>
    %973 = arith.addf %971, %972 : vector<2x32xf32>
    %cst_200 = arith.constant dense<0xFF800000> : vector<2xf32>
    %974 = vector.multi_reduction <maximumf>, %973, %cst_200 [1] : vector<2x32xf32> to vector<2xf32>
    %975 = vector.shape_cast %974 : vector<2xf32> to vector<2x1xf32>
    %976 = vector.broadcast %975 : vector<2x1xf32> to vector<2x32xf32>
    %977 = arith.cmpf oeq, %973, %976 : vector<2x32xf32>
    %cst_201 = arith.constant 3.200000e+01 : f32
    %978 = vector.broadcast %cst_201 : f32 to vector<2x32xf32>
    %979 = arith.select %977, %617, %978 : vector<2x32xi1>, vector<2x32xf32>
    %cst_202 = arith.constant dense<0x7F800000> : vector<2xf32>
    %980 = vector.multi_reduction <minimumf>, %979, %cst_202 [1] : vector<2x32xf32> to vector<2xf32>
    %981 = vector.shape_cast %980 : vector<2xf32> to vector<2x1xf32>
    %982 = vector.broadcast %981 : vector<2x1xf32> to vector<2x32xf32>
    %983 = arith.cmpf oeq, %617, %982 : vector<2x32xf32>
    %984 = arith.extui %983 : vector<2x32xi1> to vector<2x32xi32>
    %985 = arith.sitofp %984 : vector<2x32xi32> to vector<2x32xf32>
    %cst_203 = arith.constant dense<0.000000e+00> : vector<2x32xf32>
    %986 = tpu.matmul %985, %5, %cst_203 {dimension_numbers = #tpu.dot_dimension_numbers<[1], [0], [0], [1], [0, 0, 1, 1], [], []>} : vector<2x32xf32>, vector<32x32xf32>, vector<2x32xf32> -> vector<2x32xf32>
    %cst_204 = arith.constant dense<0.000000e+00> : vector<2x32xf32>
    %987 = tpu.matmul %969, %607, %cst_204 {dimension_numbers = #tpu.dot_dimension_numbers<[1], [0], [0], [1], [0, 0, 1, 1], [], []>} : vector<2x32xf32>, vector<32x32xf32>, vector<2x32xf32> -> vector<2x32xf32>
    %988 = vector.shape_cast %987 : vector<2x32xf32> to vector<2x1x32xf32>
    %989 = vector.broadcast %988 : vector<2x1x32xf32> to vector<2x8x32xf32>
    %990 = arith.mulf %989, %566 : vector<2x8x32xf32>
    %991 = vector.shape_cast %990 : vector<2x8x32xf32> to vector<16x32xf32>
    %cst_205 = arith.constant dense<0.000000e+00> : vector<16x8xf32>
    %992 = tpu.matmul %991, %593, %cst_205 {dimension_numbers = #tpu.dot_dimension_numbers<[1], [0], [0], [1], [0, 0, 1, 1], [], []>} : vector<16x32xf32>, vector<32x8xf32>, vector<16x8xf32> -> vector<16x8xf32>
    %993 = vector.shape_cast %992 : vector<16x8xf32> to vector<2x8x8xf32>
    %cst_206 = arith.constant 5.000000e-01 : f32
    %994 = vector.broadcast %cst_206 : f32 to vector<2x8x8xf32>
    %995 = arith.mulf %993, %994 : vector<2x8x8xf32>
    %996 = arith.addf %995, %580 : vector<2x8x8xf32>
    %cst_207 = arith.constant dense<0xFF800000> : vector<2x8xf32>
    %997 = vector.multi_reduction <maximumf>, %996, %cst_207 [1] : vector<2x8x8xf32> to vector<2x8xf32>
    %998 = vector.shape_cast %997 : vector<2x8xf32> to vector<2x1x8xf32>
    %999 = vector.broadcast %998 : vector<2x1x8xf32> to vector<2x8x8xf32>
    %1000 = arith.subf %996, %999 : vector<2x8x8xf32>
    %1001 = math.exp %1000 : vector<2x8x8xf32>
    %cst_208 = arith.constant dense<0.000000e+00> : vector<2x8xf32>
    %1002 = vector.multi_reduction <add>, %1001, %cst_208 [1] : vector<2x8x8xf32> to vector<2x8xf32>
    %1003 = vector.shape_cast %1002 : vector<2x8xf32> to vector<2x1x8xf32>
    %1004 = vector.broadcast %1003 : vector<2x1x8xf32> to vector<2x8x8xf32>
    %1005 = arith.divf %1001, %1004 : vector<2x8x8xf32>
    %1006 = vector.shape_cast %1005 : vector<2x8x8xf32> to vector<16x8xf32>
    %cst_209 = arith.constant dense<0.000000e+00> : vector<16x32xf32>
    %1007 = tpu.matmul %1006, %606, %cst_209 {dimension_numbers = #tpu.dot_dimension_numbers<[1], [0], [0], [1], [0, 0, 1, 1], [], []>} : vector<16x8xf32>, vector<8x32xf32>, vector<16x32xf32> -> vector<16x32xf32>
    %1008 = vector.shape_cast %1007 : vector<16x32xf32> to vector<2x8x32xf32>
    %1009 = arith.mulf %1008, %568 : vector<2x8x32xf32>
    %cst_210 = arith.constant dense<0.000000e+00> : vector<2x32xf32>
    %1010 = vector.multi_reduction <add>, %1009, %cst_210 [1] : vector<2x8x32xf32> to vector<2x32xf32>
    %cst_211 = arith.constant dense<0.000000e+00> : vector<2x32xf32>
    %1011 = tpu.matmul %1010, %608, %cst_211 {dimension_numbers = #tpu.dot_dimension_numbers<[1], [0], [0], [1], [0, 0, 1, 1], [], []>} : vector<2x32xf32>, vector<32x32xf32>, vector<2x32xf32> -> vector<2x32xf32>
    %1012 = vector.broadcast %609 : vector<1x32xf32> to vector<2x32xf32>
    %1013 = arith.addf %1011, %1012 : vector<2x32xf32>
    %1014 = tpu.concatenate %986, %1013, %945 in 1 : vector<2x32xf32>, vector<2x32xf32>, vector<2x32xf32> -> vector<2x96xf32>
    %cst_212 = arith.constant dense<0.000000e+00> : vector<2x192xf32>
    %1015 = tpu.matmul %1014, %610, %cst_212 {dimension_numbers = #tpu.dot_dimension_numbers<[1], [0], [0], [1], [0, 0, 1, 1], [], []>} : vector<2x96xf32>, vector<96x192xf32>, vector<2x192xf32> -> vector<2x192xf32>
    %1016 = vector.broadcast %611 : vector<1x192xf32> to vector<2x192xf32>
    %1017 = arith.addf %1015, %1016 : vector<2x192xf32>
    %1018 = vector.extract_strided_slice %1017 {offsets = [0, 0], sizes = [2, 64], strides = [1, 1]} : vector<2x192xf32> to vector<2x64xf32>
    %1019 = vector.extract_strided_slice %1017 {offsets = [0, 96], sizes = [2, 64], strides = [1, 1]} : vector<2x192xf32> to vector<2x64xf32>
    %1020 = arith.addf %1018, %1019 : vector<2x64xf32>
    %1021 = arith.negf %1020 : vector<2x64xf32>
    %1022 = math.exp %1021 : vector<2x64xf32>
    %cst_213 = arith.constant 1.000000e+00 : f32
    %1023 = vector.broadcast %cst_213 : f32 to vector<2x64xf32>
    %1024 = arith.addf %1023, %1022 : vector<2x64xf32>
    %1025 = arith.divf %1023, %1024 : vector<2x64xf32>
    %1026 = vector.extract_strided_slice %1025 {offsets = [0, 0], sizes = [2, 32], strides = [1, 1]} : vector<2x64xf32> to vector<2x32xf32>
    %1027 = vector.extract_strided_slice %1025 {offsets = [0, 32], sizes = [2, 32], strides = [1, 1]} : vector<2x64xf32> to vector<2x32xf32>
    %1028 = vector.extract_strided_slice %1017 {offsets = [0, 64], sizes = [2, 32], strides = [1, 1]} : vector<2x192xf32> to vector<2x32xf32>
    %1029 = vector.extract_strided_slice %1017 {offsets = [0, 160], sizes = [2, 32], strides = [1, 1]} : vector<2x192xf32> to vector<2x32xf32>
    %1030 = arith.mulf %1026, %1029 : vector<2x32xf32>
    %1031 = arith.addf %1028, %1030 : vector<2x32xf32>
    %1032 = math.tanh %1031 : vector<2x32xf32>
    %cst_214 = arith.constant 1.000000e+00 : f32
    %1033 = vector.broadcast %cst_214 : f32 to vector<2x32xf32>
    %1034 = arith.subf %1033, %1027 : vector<2x32xf32>
    %1035 = arith.mulf %1034, %1032 : vector<2x32xf32>
    %1036 = arith.mulf %1027, %945 : vector<2x32xf32>
    %1037 = arith.addf %1035, %1036 : vector<2x32xf32>
    %1038 = tpu.concatenate %1037, %969 in 1 : vector<2x32xf32>, vector<2x32xf32> -> vector<2x64xf32>
    %cst_215 = arith.constant dense<0.000000e+00> : vector<2x192xf32>
    %1039 = tpu.matmul %1038, %612, %cst_215 {dimension_numbers = #tpu.dot_dimension_numbers<[1], [0], [0], [1], [0, 0, 1, 1], [], []>} : vector<2x64xf32>, vector<64x192xf32>, vector<2x192xf32> -> vector<2x192xf32>
    %1040 = vector.broadcast %613 : vector<1x192xf32> to vector<2x192xf32>
    %1041 = arith.addf %1039, %1040 : vector<2x192xf32>
    %1042 = vector.extract_strided_slice %1041 {offsets = [0, 0], sizes = [2, 64], strides = [1, 1]} : vector<2x192xf32> to vector<2x64xf32>
    %1043 = vector.extract_strided_slice %1041 {offsets = [0, 96], sizes = [2, 64], strides = [1, 1]} : vector<2x192xf32> to vector<2x64xf32>
    %1044 = arith.addf %1042, %1043 : vector<2x64xf32>
    %1045 = arith.negf %1044 : vector<2x64xf32>
    %1046 = math.exp %1045 : vector<2x64xf32>
    %cst_216 = arith.constant 1.000000e+00 : f32
    %1047 = vector.broadcast %cst_216 : f32 to vector<2x64xf32>
    %1048 = arith.addf %1047, %1046 : vector<2x64xf32>
    %1049 = arith.divf %1047, %1048 : vector<2x64xf32>
    %1050 = vector.extract_strided_slice %1049 {offsets = [0, 0], sizes = [2, 32], strides = [1, 1]} : vector<2x64xf32> to vector<2x32xf32>
    %1051 = vector.extract_strided_slice %1049 {offsets = [0, 32], sizes = [2, 32], strides = [1, 1]} : vector<2x64xf32> to vector<2x32xf32>
    %1052 = vector.extract_strided_slice %1041 {offsets = [0, 64], sizes = [2, 32], strides = [1, 1]} : vector<2x192xf32> to vector<2x32xf32>
    %1053 = vector.extract_strided_slice %1041 {offsets = [0, 160], sizes = [2, 32], strides = [1, 1]} : vector<2x192xf32> to vector<2x32xf32>
    %1054 = arith.mulf %1050, %1053 : vector<2x32xf32>
    %1055 = arith.addf %1052, %1054 : vector<2x32xf32>
    %1056 = math.tanh %1055 : vector<2x32xf32>
    %cst_217 = arith.constant 1.000000e+00 : f32
    %1057 = vector.broadcast %cst_217 : f32 to vector<2x32xf32>
    %1058 = arith.subf %1057, %1051 : vector<2x32xf32>
    %1059 = arith.mulf %1058, %1056 : vector<2x32xf32>
    %1060 = arith.mulf %1051, %969 : vector<2x32xf32>
    %1061 = arith.addf %1059, %1060 : vector<2x32xf32>
    %1062 = tpu.concatenate %1061, %1013 in 1 : vector<2x32xf32>, vector<2x32xf32> -> vector<2x64xf32>
    %cst_218 = arith.constant dense<0.000000e+00> : vector<2x32xf32>
    %1063 = tpu.matmul %1062, %614, %cst_218 {dimension_numbers = #tpu.dot_dimension_numbers<[1], [0], [0], [1], [0, 0, 1, 1], [], []>} : vector<2x64xf32>, vector<64x32xf32>, vector<2x32xf32> -> vector<2x32xf32>
    %1064 = vector.broadcast %615 : vector<1x32xf32> to vector<2x32xf32>
    %1065 = arith.addf %1063, %1064 : vector<2x32xf32>
    %1066 = tpu.concatenate %618, %697, %789, %881, %973, %1065 in 1 : vector<2x32xf32>, vector<2x32xf32>, vector<2x32xf32>, vector<2x32xf32>, vector<2x32xf32>, vector<2x32xf32> -> vector<2x192xf32>
    %c0_219 = arith.constant 0 : index
    %c0_220 = arith.constant 0 : index
    %1067 = vector.load %arg4[%c0_219, %c0_220] : memref<2x192xf32, #tpu.memory_space<vmem>>, vector<2x192xf32>
    tpu.vector_store %arg4[%c0_219, %c0_220], %1066 {strides = array<i32>} : memref<2x192xf32, #tpu.memory_space<vmem>>, vector<2x192xf32>,
    return
  }
}

</mosaic_0001>

<bundles_post_ra>
// kernel: seq2seq_forward.1
= control target key start
LH: loop header
LB: loop body
LE: loop exit
PB: predicated region body
PF: predicated region fallthrough
CT: control target
= control target key end

     0   :  { %9 = vsyncpa [#allocation3], 0  ;;  %s10358_s15 = smov [#allocation2]   ;;  %s13590_s0 = inlined_call_operand.vmem [shape: s32[2,10], index: 0, kind: input, shape index: {}]   ;;  %s13591_s1 = inlined_call_operand.vmem [shape: f32[330,128], index: 1, kind: input, shape index: {}]   ;;  %s13592_s2 = inlined_call_operand.hbm [shape: f32[162,192], index: 2, kind: input, shape index: {}]   ;;  %s13593_s3 = inlined_call_operand.vmem [shape: f32[387,32], index: 3, kind: input, shape index: {}]   ;;  %s13594_s4 = inlined_call_operand.vmem [shape: f32[2,192], index: 4, kind: output, shape index: {}]  }
   0x1   :  { %s19_s16 = sshll.u32 %s10358_s15, 4  ;;  %s20_s16 = int_to_ptr.vmem [resolvable:$true] %s19_s16 }
   0x2   :  { %s10344_s17 = scalar_lea.vmem %s20_s16, 5376  ;;  %p10349_p1 = scmp.lt.s32.totalorder %s20_s16, %s20_s16 }
   0x3   :  { %p10345_p0 = scmp.ne.s32.totalorder %s20_s16, %s10344_s17  ;;  %p10350_p2 = scmp.lt.s32.totalorder %s10344_s17, %s10344_s17 }
   0x5   :  { %p10351_p3 = por %p10350_p2, %p10349_p1 }
   0x7   :  { %p10352_p4 = pnand %p10351_p3, %p10345_p0 }
   0x9   :  { %10355 = shalt.err (!%p10352_p4)
}
   0xa   :  { %s10359_s18 = smov 256   ;;  %s10360_s19 = smov 16  }
   0xb   :  { %25 = dma.hbm_to_vmem [thread:$0]  %s13592_s2, 5376, %s20_s16, [#allocation3], %s10359_s18, %s10359_s18, %s10360_s19  }
   0xc   :  { %10356 = dma.done.wait [#allocation3], 5376  }
   0xd   :  { %10357 = vsyncadd [#allocation3], 4294961920  ;;  %v40_v0 = vlaneseq  ;;  %v13597_v1 = vmov 0.0   ;;  %v10362_v4 = vmov 9   ;;  %v31_v6 = vld [vmem:[%s13590_s0] sm:$0x3] }
   0xe   :  { %8892 = vmatprep.subr.mxu1 %v13597_v1  ;;  %10008 = vset.pattern.permute.xlu1 %v10362_v4  ;;  %v35_v7 = vld [vmem:[%s13593_s3 + $0x15b] sm:$0xff]  ;;  %v34_v8 = vld [vmem:[%s13593_s3 + $0x153] sm:$0xff]  ;;  %v33_v10 = vld [vmem:[%s13593_s3 + $0x14b] sm:$0xff]  ;;  %vm10363_vm0 = vmmov 0   ;;  %vm62_vm1 = vcmask 261120   ;;  %vm243_vm5 = vcmask 1041409  }
   0xf   :  { %v10400_v2 = vshrl.u32 %v40_v0, 7  ;;  %8851 = vmatprep.subr.mxu0 %v35_v7  ;;  %145 = vperm.xlu1 %10008, %v31_v6   ;;  %v32_v12 = vld [vmem:[%s13593_s3 + $0x143] sm:$0xff]  ;;  %v10430_v13 = vld [vmem:[%s13591_s1 + $0x78] sm:$0xff]  ;;  %v10438_v14 = vld [vmem:[%s13591_s1 + $0x70] sm:$0xff]  ;;  %v10456_v17 = vand.u32 127, %v40_v0  ;;  %vm247_vm6 = vcmask 523264  }
  0x10   :  { %8852 = vmatpush3.msra.mxu0 %v35_v7  ;;  %8908 = vmatprep.mubr.msk.f32.mxu1 %vm10363_vm0, %v13597_v1  ;;  %v10445_v15 = vld [vmem:[%s13591_s1 + $0x68] sm:$0xff]  ;;  %v10452_v16 = vld [vmem:[%s13591_s1 + $0x60] sm:$0xff]  ;;  %v38_v23 = vld [vmem:[%s13593_s3 + $0x173] sm:$0xff]  ;;  %vm327_vm7 = vcmask 1040384   ;;  %vm406_vm8 = vcmask 1041408   ;;  %s10364_s20 = smov 64  }
  0x11   :  { %13688 = vst [vmem:[#allocation5_spill] sm:$0xff] %v10400_v2  ;;  %v10403_v3 = vsub.s32 0, %v10400_v2  ;;  %v10406_v5 = vsub.s32 1, %v10400_v2  ;;  %8853 = vmatprep.subr.mxu0 %v34_v8  ;;  %8893 = vmatpush3.msra.mxu1 %v10430_v13  ;;  %v39_v21 = vld [vmem:[%s13593_s3 + $0x17b] sm:$0xff]  ;;  %v37_v25 = vld [vmem:[%s13593_s3 + $0x16b] sm:$0xff]  ;;  %v36_v26 = vld [vmem:[%s13593_s3 + $0x163] sm:$0xff] }
  0x12   :  { %8854 = vmatpush3.msra.mxu0 %v34_v8  ;;  %8894 = vmatprep.subr.mxu1 %v13597_v1  ;;  %v10486_v28 = vld [vmem:[%s13591_s1 + $0x38] sm:$0xff]  ;;  %v10493_v29 = vld [vmem:[%s13591_s1 + $0x30] sm:$0xff]  ;;  %v10502_v30 = vld [vmem:[%s13591_s1 + $0x28] sm:$0xff]  ;;  %s10365_s21 = smov 32   ;;  %vm517_vm9 = vcmask 1047559   ;;  %vm434_vm10 = vcmask 1042434  }
  0x13   :  { %v45_v9 = vrot.slane %v31_v6, %v10403_v3  ;;  %v52_v11 = vrot.slane %v31_v6, %v10406_v5  ;;  %8855 = vmatprep.subr.mxu0 %v33_v10  ;;  %8895 = vmatpush3.msra.mxu1 %v10438_v14  ;;  %v10509_v31 = vld [vmem:[%s13591_s1 + $0x20] sm:$0xff]  ;;  %v10516_v32 = vld [vmem:[%s13591_s1 + $0x18] sm:$0xff]  ;;  %v10525_v33 = vld [vmem:[%s13591_s1 + $0x10] sm:$0xff]  ;;  %vm712_vm11 = vcmask 1046534   ;;  %vm629_vm12 = vcmask 1043459   ;;  %s10366_s11 = smov 96  }
  0x14   :  { %8856 = vmatpush3.msra.mxu0 %v33_v10  ;;  %8896 = vmatprep.subr.mxu1 %v13597_v1  ;;  %v10530_v34 = vld [vmem:[%s13591_s1 + $0x58] sm:$0xff]  ;;  %v10539_v35 = vld [vmem:[%s13591_s1 + $0x8] sm:$0xff]  ;;  %v10544_v36 = vld [vmem:[%s13591_s1 + $0x50] sm:$0xff]  ;;  %vm907_vm13 = vcmask 1045509   ;;  %vm824_vm14 = vcmask 1044484   ;;  %vm1861_vm15 = vcmask 785408  }
  0x15   :  { %47 = vbcast.lane.b32.xlu0 %v45_v9, 256  ;;  %8857 = vmatprep.subr.mxu0 %v32_v12  ;;  %v10551_v37 = vld [vmem:[%s13591_s1] sm:$0xff]  ;;  %v10556_v38 = vld [vmem:[%s13591_s1 + $0x48] sm:$0xff] }
  0x16   :  { %8858 = vmatpush3.msra.mxu0 %v32_v12  ;;  %8897 = vmatpush3.msra.mxu1 %v10445_v15  ;;  %v10566_v39 = vld [vmem:[%s13591_s1 + $0x40] sm:$0xff] }
  0x17   :  { %8862 = vmatprep.subr.mxu0 %v13597_v1  ;;  %8898 = vmatprep.subr.mxu1 %v13597_v1  ;;  %v10630_v55 = vld [vmem:[%s13591_s1 + $0x80] sm:$0xf] }
  0x18   :  { %8899 = vmatpush3.msra.mxu1 %v10452_v16 }
  0x19   :  { %54 = vbcast.lane.b32.xlu0 %v52_v11, 256  ;;  %8900 = vmatprep.subr.mxu1 %v13597_v1 }
  0x1a   :  { %8901 = vmatpush3.msra.mxu1 %v10530_v34 }
  0x1b   :  { %8902 = vmatprep.subr.mxu1 %v13597_v1 }
  0x1c   :  { %8903 = vmatpush3.msra.mxu1 %v10544_v36 }
  0x1d   :  { %8904 = vmatprep.subr.mxu1 %v13597_v1 }
  0x1e   :  { %8905 = vmatpush3.msra.mxu1 %v10556_v38 }
  0x1f   :  { %8906 = vmatprep.subr.mxu1 %v13597_v1 }
  0x20   :  { %8907 = vmatpush3.msra.mxu1 %v10566_v39 }
  0x21   :  { %8930 = vmatprep.subr.mxu1 %v13597_v1 }
  0x87   :  { %v48_v18 = vpop.permute.xlu0 %47 }
  0x88   :  { %vm56_vm2 = vcmp.eq.s32.totalorder %v48_v18, %v10456_v17 }
  0x89   :  { %v8124_v19 = vsel %vm56_vm2, 1.0, %v13597_v1  ;;  %vm3662_vm2 = vcmask 1042432  }
  0x8a   :  { %8859 = vmatprep.mubr.msk.f32.mxu0 %vm62_vm1, %v8124_v19  ;;  %v146_v24 = vpop.permute.xlu1 %145 }
  0x8b   :  { %v55_v20 = vpop.permute.xlu0 %54  ;;  %vm147_vm4 = vcmp.eq.s32.totalorder %v146_v24, %v10456_v17 }
  0x8c   :  { %vm57_vm3 = vcmp.eq.s32.totalorder %v55_v20, %v10456_v17  ;;  %v8128_v27 = vsel %vm147_vm4, 1.0, %v13597_v1  ;;  %vm3668_vm4 = vcmask 1044480  }
  0x8d   :  { %v8125_v22 = vsel %vm57_vm3, 1.0, %v13597_v1  ;;  %vm3665_vm3 = vcmask 1043456  }
  0x8e   :  { %8860 = vmatmul.mubr.msk.f32.vlgmr.msra.gmra.mxu0 %vm62_vm1, %v8125_v22 }
  0x8f   :  { %8863 = vmatpush3.msra.mxu0 %v39_v21  ;;  %8870 = vmatprep.mubr.msk.f32.mxu0 %vm10363_vm0, %v13597_v1 }
  0x90   :  { %8864 = vmatprep.subr.mxu0 %v13597_v1 }
  0x91   :  { %8865 = vmatpush3.msra.mxu0 %v38_v23 }
  0x92   :  { %8866 = vmatprep.subr.mxu0 %v13597_v1 }
  0x93   :  { %8867 = vmatpush3.msra.mxu0 %v37_v25 }
  0x94   :  { %8868 = vmatprep.subr.mxu0 %v13597_v1 }
  0x95   :  { %8869 = vmatpush3.msra.mxu0 %v36_v26 }
  0x96   :  { %8873 = vmatprep.subr.mxu0 %v13597_v1  ;;  %8871 = vmatmul.mubr.msk.f32.vlgmr.msra.gmra.mxu0 %vm62_vm1, %v8128_v27 }
  0x97   :  { %8874 = vmatpush3.msra.mxu0 %v10486_v28  ;;  %8889 = vmatprep.mubr.msk.f32.mxu0 %vm10363_vm0, %v13597_v1 }
  0x98   :  { %8875 = vmatprep.subr.mxu0 %v13597_v1 }
  0x99   :  { %8876 = vmatpush3.msra.mxu0 %v10493_v29 }
  0x9a   :  { %8877 = vmatprep.subr.mxu0 %v13597_v1 }
  0x9b   :  { %8878 = vmatpush3.msra.mxu0 %v10502_v30 }
  0x9c   :  { %8879 = vmatprep.subr.mxu0 %v13597_v1 }
  0x9d   :  { %8880 = vmatpush3.msra.mxu0 %v10509_v31 }
  0x9e   :  { %8881 = vmatprep.subr.mxu0 %v13597_v1 }
  0x9f   :  { %8882 = vmatpush3.msra.mxu0 %v10516_v32 }
  0xa0   :  { %8883 = vmatprep.subr.mxu0 %v13597_v1 }
  0xa1   :  { %8884 = vmatpush3.msra.mxu0 %v10525_v33 }
  0xa2   :  { %8885 = vmatprep.subr.mxu0 %v13597_v1 }
  0xa3   :  { %8886 = vmatpush3.msra.mxu0 %v10539_v35 }
  0xa4   :  { %8887 = vmatprep.subr.mxu0 %v13597_v1 }
  0xa5   :  { %8888 = vmatpush3.msra.mxu0 %v10551_v37 }
  0xa6   :  { %8911 = vmatprep.subr.mxu0 %v13597_v1 }
 0x14e   :  { %v8861_v40 = vpop.f32.mrf.mxu0 }
 0x14f   :  { %v10571_v41 = vrot.slane %v8861_v40, 7 }
 0x150   :  { %v10573_v42 = vpop.f32.mrf.mxu0 }
 0x151   :  { %v10578_v43 = vsel %vm243_vm5, %v10571_v41, %v10573_v42  ;;  %v323_v44 = vsel %vm62_vm1, %v10573_v42, 0.0  ;;  %v324_v45 = vsel %vm62_vm1, %v10571_v41, 0.0  ;;  %v10648_v21 = vsel %vm517_vm9, %v10571_v41, %v10573_v42 }
 0x152   :  { %v246_v46 = vsel %vm62_vm1, %v10578_v43, 0.0  ;;  %v328_v47 = vrot.slane %v323_v44, 7  ;;  %v329_v48 = vrot.slane %v324_v45, 7  ;;  %v10652_v23 = vsel %vm434_vm10, %v10571_v41, %v10573_v42 }
 0x153   :  { %8890 = vmatmul.mubr.msk.f32.vlgmr.msra.gmra.mxu0 %vm247_vm6, %v246_v46  ;;  %vm3671_vm9 = vcmask 1045504  }
 0x154   :  { %v330_v49 = vsel %vm327_vm7, %v328_v47, %v329_v48  ;;  %8912 = vmatpush3.msra.mxu0 %v10486_v28  ;;  %8927 = vmatprep.mubr.msk.f32.mxu0 %vm10363_vm0, %v13597_v1 }
 0x155   :  { %8909 = vmatmul.mubr.msk.f32.vlgmr.msra.gmra.mxu1 %vm247_vm6, %v330_v49  ;;  %8913 = vmatprep.subr.mxu0 %v13597_v1 }
 0x156   :  { %v10593_v50 = vpop.f32.mrf.mxu0  ;;  %8931 = vmatpush3.msra.mxu1 %v10430_v13  ;;  %8914 = vmatpush3.msra.mxu0 %v10493_v29 }
 0x157   :  { %8932 = vmatprep.subr.mxu1 %v13597_v1  ;;  %8915 = vmatprep.subr.mxu0 %v13597_v1 }
 0x158   :  { %v8872_v51 = vpop.f32.mrf.mxu0  ;;  %8933 = vmatpush3.msra.mxu1 %v10438_v14  ;;  %8916 = vmatpush3.msra.mxu0 %v10502_v30 }
 0x159   :  { %8934 = vmatprep.subr.mxu1 %v13597_v1  ;;  %8917 = vmatprep.subr.mxu0 %v13597_v1 }
 0x15a   :  { %8935 = vmatpush3.msra.mxu1 %v10445_v15  ;;  %8918 = vmatpush3.msra.mxu0 %v10509_v31 }
 0x15b   :  { %8936 = vmatprep.subr.mxu1 %v13597_v1  ;;  %8919 = vmatprep.subr.mxu0 %v13597_v1 }
 0x15c   :  { %8937 = vmatpush3.msra.mxu1 %v10452_v16  ;;  %8920 = vmatpush3.msra.mxu0 %v10516_v32 }
 0x15d   :  { %8938 = vmatprep.subr.mxu1 %v13597_v1  ;;  %8921 = vmatprep.subr.mxu0 %v13597_v1 }
 0x15e   :  { %8939 = vmatpush3.msra.mxu1 %v10530_v34  ;;  %8922 = vmatpush3.msra.mxu0 %v10525_v33 }
 0x15f   :  { %8940 = vmatprep.subr.mxu1 %v13597_v1  ;;  %8923 = vmatprep.subr.mxu0 %v13597_v1 }
 0x160   :  { %8941 = vmatpush3.msra.mxu1 %v10544_v36  ;;  %8924 = vmatpush3.msra.mxu0 %v10539_v35 }
 0x161   :  { %8942 = vmatprep.subr.mxu1 %v13597_v1  ;;  %8925 = vmatprep.subr.mxu0 %v13597_v1 }
 0x162   :  { %8943 = vmatpush3.msra.mxu1 %v10556_v38  ;;  %8926 = vmatpush3.msra.mxu0 %v10551_v37 }
 0x163   :  { %8944 = vmatprep.subr.mxu1 %v13597_v1  ;;  %8946 = vmatprep.mubr.msk.f32.mxu1 %vm10363_vm0, %v13597_v1 }
 0x164   :  { %8945 = vmatpush3.msra.mxu1 %v10566_v39  ;;  %8949 = vmatprep.subr.mxu0 %v13597_v1 }
 0x165   :  { %8968 = vmatprep.subr.mxu1 %v13597_v1 }
 0x213   :  { %v317_v52 = vpop.f32.mrf.mxu0 }
 0x215   :  { %v8891_v53 = vpop.f32.mrf.mxu0  ;;  %v399_v54 = vpop.f32.mrf.mxu1 }
 0x216   :  { %v404_v56 = vrot.slane %v399_v54, 6 }
 0x217   :  { %v8910_v57 = vpop.f32.mrf.mxu1 }
 0x218   :  { %v407_v58 = vsel %vm406_vm8, %v317_v52, %v404_v56 }
 0x219   :  { %v408_v59 = vadd.f32 %v407_v58, %v10630_v55 }
 0x21b   :  { %v8132_v60 = vmul.f32 -1.442695, %v408_v59 }
 0x21d   :  { %10010 = vpow2.f32 %v8132_v60 }
 0x22a   :  { %v10011_v61 = vpop.eup %10010 }
 0x22b   :  { %v412_v62 = vadd.f32 1.0, %v10011_v61 }
 0x22d   :  { %10012 = vrcp.f32 %v412_v62 }
 0x23a   :  { %v10013_v63 = vpop.eup %10012 }
 0x23b   :  { %v415_v0 = vmul.f32 2.0, %v10013_v63  ;;  %v417_v8 = vmul.f32 0.0, %v10013_v63 }
 0x23d   :  { %v8133_v4 = vadd.f32 -1.0, %v415_v0 }
 0x23f   :  { %419 = vrot.lane.b32.xlu1 %v8133_v4, %s10364_s20 }
 0x2b1   :  { %v420_v6 = vpop.permute.xlu1 %419 }
 0x2b2   :  { %v422_v7 = vmul.f32 %v10013_v63, %v420_v6 }
 0x2b4   :  { %424 = vrot.lane.b32.xlu0 %v422_v7, %s10365_s21 }
 0x326   :  { %v425_v9 = vpop.permute.xlu0 %424 }
 0x327   :  { %v10636_v10 = vadd.f32 %v425_v9, %v417_v8  ;;  %v10713_v9 = vsel %vm712_vm11, %v10571_v41, %v10573_v42 }
 0x329   :  { %10014 = vtanh.f32 %v10636_v10 }
 0x336   :  { %v10015_v11 = vpop.eup %10014 }
 0x337   :  { %430 = vrot.lane.b32.xlu1 %v10015_v11, %s10364_s20  ;;  %v10717_v11 = vsel %vm629_vm12, %v10571_v41, %v10573_v42 }
 0x3a9   :  { %v431_v12 = vpop.permute.xlu1 %430 }
 0x3aa   :  { %v10640_v18 = vmul.f32 %v10013_v63, %v431_v12 }
 0x3ac   :  { %v520_v19 = vrot.slane %v10640_v18, 4  ;;  %v438_v20 = vrot.slane %v10640_v18, 7 }
 0x3ae   :  { %521 = vrot.lane.b32.xlu0 %v520_v19, %s10364_s20  ;;  %439 = vrot.lane.b32.xlu1 %v438_v20, %s10364_s20 }
 0x420   :  { %v522_v22 = vpop.permute.xlu0 %521  ;;  %v440_v24 = vpop.permute.xlu1 %439 }
 0x421   :  { %v524_v25 = vsel %vm62_vm1, %v10648_v21, %v522_v22  ;;  %v442_v26 = vsel %vm62_vm1, %v10652_v23, %v440_v24 }
 0x422   :  { %v526_v27 = vrot.slane %v524_v25, 6  ;;  %v444_v40 = vrot.slane %v442_v26, 1 }
 0x424   :  { %8928 = vmatmul.mubr.msk.f32.vlgmr.msra.gmra.mxu0 %vm247_vm6, %v444_v40  ;;  %8947 = vmatmul.mubr.msk.f32.vlgmr.msra.gmra.mxu1 %vm247_vm6, %v526_v27 }
 0x425   :  { %8950 = vmatpush3.msra.mxu0 %v10486_v28  ;;  %8969 = vmatpush3.msra.mxu1 %v10430_v13 }
 0x426   :  { %8951 = vmatprep.subr.mxu0 %v13597_v1  ;;  %8970 = vmatprep.subr.mxu1 %v13597_v1 }
 0x427   :  { %8952 = vmatpush3.msra.mxu0 %v10493_v29  ;;  %8971 = vmatpush3.msra.mxu1 %v10438_v14 }
 0x428   :  { %8953 = vmatprep.subr.mxu0 %v13597_v1  ;;  %8972 = vmatprep.subr.mxu1 %v13597_v1 }
 0x429   :  { %8954 = vmatpush3.msra.mxu0 %v10502_v30  ;;  %8973 = vmatpush3.msra.mxu1 %v10445_v15 }
 0x42a   :  { %8955 = vmatprep.subr.mxu0 %v13597_v1  ;;  %8974 = vmatprep.subr.mxu1 %v13597_v1 }
 0x42b   :  { %8956 = vmatpush3.msra.mxu0 %v10509_v31  ;;  %8975 = vmatpush3.msra.mxu1 %v10452_v16 }
 0x42c   :  { %8957 = vmatprep.subr.mxu0 %v13597_v1  ;;  %8976 = vmatprep.subr.mxu1 %v13597_v1 }
 0x42d   :  { %8958 = vmatpush3.msra.mxu0 %v10516_v32  ;;  %8977 = vmatpush3.msra.mxu1 %v10530_v34 }
 0x42e   :  { %8959 = vmatprep.subr.mxu0 %v13597_v1  ;;  %8978 = vmatprep.subr.mxu1 %v13597_v1 }
 0x42f   :  { %8960 = vmatpush3.msra.mxu0 %v10525_v33  ;;  %8979 = vmatpush3.msra.mxu1 %v10544_v36 }
 0x430   :  { %8961 = vmatprep.subr.mxu0 %v13597_v1  ;;  %8980 = vmatprep.subr.mxu1 %v13597_v1 }
 0x431   :  { %8962 = vmatpush3.msra.mxu0 %v10539_v35  ;;  %8981 = vmatpush3.msra.mxu1 %v10556_v38 }
 0x432   :  { %8963 = vmatprep.subr.mxu0 %v13597_v1  ;;  %8982 = vmatprep.subr.mxu1 %v13597_v1 }
 0x433   :  { %8964 = vmatpush3.msra.mxu0 %v10551_v37  ;;  %8965 = vmatprep.mubr.msk.f32.mxu0 %vm10363_vm0, %v13597_v1 }
 0x434   :  { %8983 = vmatpush3.msra.mxu1 %v10566_v39  ;;  %8984 = vmatprep.mubr.msk.f32.mxu1 %vm10363_vm0, %v13597_v1 }
 0x435   :  { %8987 = vmatprep.subr.mxu0 %v13597_v1  ;;  %9006 = vmatprep.subr.mxu1 %v13597_v1 }
 0x4e4   :  { %v513_v44 = vpop.f32.mrf.mxu0  ;;  %v595_v45 = vpop.f32.mrf.mxu1 }
 0x4e5   :  { %v600_v46 = vrot.slane %v595_v45, 6 }
 0x4e6   :  { %v8929_v47 = vpop.f32.mrf.mxu0  ;;  %v8948_v48 = vpop.f32.mrf.mxu1 }
 0x4e7   :  { %v602_v49 = vsel %vm406_vm8, %v513_v44, %v600_v46 }
 0x4e8   :  { %v603_v51 = vadd.f32 %v602_v49, %v10630_v55 }
 0x4ea   :  { %v8136_v52 = vmul.f32 -1.442695, %v603_v51 }
 0x4ec   :  { %10016 = vpow2.f32 %v8136_v52 }
 0x4f9   :  { %v10017_v53 = vpop.eup %10016 }
 0x4fa   :  { %v607_v54 = vadd.f32 1.0, %v10017_v53 }
 0x4fc   :  { %10018 = vrcp.f32 %v607_v54 }
 0x509   :  { %v10019_v56 = vpop.eup %10018 }
 0x50a   :  { %v610_v57 = vmul.f32 2.0, %v10019_v56  ;;  %v612_v61 = vmul.f32 %v10019_v56, %v10636_v10 }
 0x50c   :  { %v8137_v58 = vadd.f32 -1.0, %v610_v57 }
 0x50e   :  { %614 = vrot.lane.b32.xlu0 %v8137_v58, %s10364_s20 }
 0x580   :  { %v615_v59 = vpop.permute.xlu0 %614 }
 0x581   :  { %v617_v60 = vmul.f32 %v10019_v56, %v615_v59 }
 0x583   :  { %619 = vrot.lane.b32.xlu1 %v617_v60, %s10365_s21 }
 0x5f5   :  { %v620_v62 = vpop.permute.xlu1 %619 }
 0x5f6   :  { %v10701_v63 = vadd.f32 %v620_v62, %v612_v61 }
 0x5f8   :  { %10020 = vtanh.f32 %v10701_v63 }
 0x605   :  { %v10021_v0 = vpop.eup %10020 }
 0x606   :  { %625 = vrot.lane.b32.xlu0 %v10021_v0, %s10364_s20 }
 0x678   :  { %v626_v4 = vpop.permute.xlu0 %625 }
 0x679   :  { %v10705_v6 = vmul.f32 %v10019_v56, %v626_v4 }
 0x67b   :  { %v715_v7 = vrot.slane %v10705_v6, 5  ;;  %v633_v8 = vrot.slane %v10705_v6, 6 }
 0x67d   :  { %716 = vrot.lane.b32.xlu1 %v715_v7, %s10364_s20  ;;  %634 = vrot.lane.b32.xlu0 %v633_v8, %s10364_s20  ;;  %v10782_v8 = vsel %vm824_vm14, %v10571_v41, %v10573_v42 }
 0x6ef   :  { %v717_v10 = vpop.permute.xlu1 %716  ;;  %v635_v12 = vpop.permute.xlu0 %634 }
 0x6f0   :  { %v719_v19 = vsel %vm62_vm1, %v10713_v9, %v717_v10  ;;  %v637_v20 = vsel %vm62_vm1, %v10717_v11, %v635_v12 }
 0x6f1   :  { %v721_v22 = vrot.slane %v719_v19, 5  ;;  %v639_v24 = vrot.slane %v637_v20, 2 }
 0x6f3   :  { %8966 = vmatmul.mubr.msk.f32.vlgmr.msra.gmra.mxu0 %vm247_vm6, %v639_v24  ;;  %8985 = vmatmul.mubr.msk.f32.vlgmr.msra.gmra.mxu1 %vm247_vm6, %v721_v22 }
 0x6f4   :  { %8988 = vmatpush3.msra.mxu0 %v10486_v28  ;;  %9007 = vmatpush3.msra.mxu1 %v10430_v13 }
 0x6f5   :  { %8989 = vmatprep.subr.mxu0 %v13597_v1  ;;  %9008 = vmatprep.subr.mxu1 %v13597_v1 }
 0x6f6   :  { %8990 = vmatpush3.msra.mxu0 %v10493_v29  ;;  %9009 = vmatpush3.msra.mxu1 %v10438_v14 }
 0x6f7   :  { %8991 = vmatprep.subr.mxu0 %v13597_v1  ;;  %9010 = vmatprep.subr.mxu1 %v13597_v1 }
 0x6f8   :  { %8992 = vmatpush3.msra.mxu0 %v10502_v30  ;;  %9011 = vmatpush3.msra.mxu1 %v10445_v15 }
 0x6f9   :  { %8993 = vmatprep.subr.mxu0 %v13597_v1  ;;  %9012 = vmatprep.subr.mxu1 %v13597_v1 }
 0x6fa   :  { %8994 = vmatpush3.msra.mxu0 %v10509_v31  ;;  %9013 = vmatpush3.msra.mxu1 %v10452_v16 }
 0x6fb   :  { %8995 = vmatprep.subr.mxu0 %v13597_v1  ;;  %9014 = vmatprep.subr.mxu1 %v13597_v1 }
 0x6fc   :  { %8996 = vmatpush3.msra.mxu0 %v10516_v32  ;;  %9015 = vmatpush3.msra.mxu1 %v10530_v34 }
 0x6fd   :  { %8997 = vmatprep.subr.mxu0 %v13597_v1  ;;  %9016 = vmatprep.subr.mxu1 %v13597_v1 }
 0x6fe   :  { %8998 = vmatpush3.msra.mxu0 %v10525_v33  ;;  %9017 = vmatpush3.msra.mxu1 %v10544_v36 }
 0x6ff   :  { %8999 = vmatprep.subr.mxu0 %v13597_v1  ;;  %9018 = vmatprep.subr.mxu1 %v13597_v1 }
 0x700   :  { %9000 = vmatpush3.msra.mxu0 %v10539_v35  ;;  %9019 = vmatpush3.msra.mxu1 %v10556_v38 }
 0x701   :  { %9001 = vmatprep.subr.mxu0 %v13597_v1  ;;  %9020 = vmatprep.subr.mxu1 %v13597_v1 }
 0x702   :  { %9002 = vmatpush3.msra.mxu0 %v10551_v37  ;;  %9003 = vmatprep.mubr.msk.f32.mxu0 %vm10363_vm0, %v13597_v1 }
 0x703   :  { %9021 = vmatpush3.msra.mxu1 %v10566_v39  ;;  %9022 = vmatprep.mubr.msk.f32.mxu1 %vm10363_vm0, %v13597_v1 }
 0x704   :  { %9025 = vmatprep.subr.mxu0 %v13597_v1  ;;  %9044 = vmatprep.subr.mxu1 %v13597_v1 }
 0x7b3   :  { %v708_v25 = vpop.f32.mrf.mxu0  ;;  %v790_v26 = vpop.f32.mrf.mxu1 }
 0x7b4   :  { %v795_v27 = vrot.slane %v790_v26, 6 }
 0x7b5   :  { %v8967_v40 = vpop.f32.mrf.mxu0  ;;  %v8986_v44 = vpop.f32.mrf.mxu1 }
 0x7b6   :  { %v797_v45 = vsel %vm406_vm8, %v708_v25, %v795_v27 }
 0x7b7   :  { %v798_v46 = vadd.f32 %v797_v45, %v10630_v55 }
 0x7b9   :  { %v8140_v47 = vmul.f32 -1.442695, %v798_v46 }
 0x7bb   :  { %10022 = vpow2.f32 %v8140_v47 }
 0x7c8   :  { %v10023_v48 = vpop.eup %10022 }
 0x7c9   :  { %v802_v49 = vadd.f32 1.0, %v10023_v48 }
 0x7cb   :  { %10024 = vrcp.f32 %v802_v49 }
 0x7d8   :  { %v10025_v51 = vpop.eup %10024 }
 0x7d9   :  { %v805_v52 = vmul.f32 2.0, %v10025_v51  ;;  %v807_v57 = vmul.f32 %v10025_v51, %v10701_v63  ;;  %v10778_v63 = vsel %vm907_vm13, %v10571_v41, %v10573_v42 }
 0x7db   :  { %v8141_v53 = vadd.f32 -1.0, %v805_v52 }
 0x7dd   :  { %809 = vrot.lane.b32.xlu1 %v8141_v53, %s10364_s20 }
 0x84f   :  { %v810_v54 = vpop.permute.xlu1 %809 }
 0x850   :  { %v812_v56 = vmul.f32 %v10025_v51, %v810_v54 }
 0x852   :  { %814 = vrot.lane.b32.xlu0 %v812_v56, %s10365_s21 }
 0x8c4   :  { %v815_v58 = vpop.permute.xlu0 %814 }
 0x8c5   :  { %v10766_v59 = vadd.f32 %v815_v58, %v807_v57 }
 0x8c7   :  { %10026 = vtanh.f32 %v10766_v59 }
 0x8d4   :  { %v10027_v60 = vpop.eup %10026 }
 0x8d5   :  { %820 = vrot.lane.b32.xlu1 %v10027_v60, %s10364_s20 }
 0x947   :  { %v821_v61 = vpop.permute.xlu1 %820 }
 0x948   :  { %v10770_v62 = vmul.f32 %v10025_v51, %v821_v61 }
 0x94a   :  { %v910_v0 = vrot.slane %v10770_v62, 6  ;;  %v828_v4 = vrot.slane %v10770_v62, 5 }
 0x94c   :  { %911 = vrot.lane.b32.xlu0 %v910_v0, %s10364_s20  ;;  %829 = vrot.lane.b32.xlu1 %v828_v4, %s10364_s20 }
 0x9be   :  { %v912_v7 = vpop.permute.xlu0 %911  ;;  %v830_v10 = vpop.permute.xlu1 %829 }
 0x9bf   :  { %v914_v12 = vsel %vm62_vm1, %v10778_v63, %v912_v7  ;;  %v832_v19 = vsel %vm62_vm1, %v10782_v8, %v830_v10 }
 0x9c0   :  { %v916_v20 = vrot.slane %v914_v12, 4  ;;  %v834_v22 = vrot.slane %v832_v19, 3 }
 0x9c2   :  { %9004 = vmatmul.mubr.msk.f32.vlgmr.msra.gmra.mxu0 %vm247_vm6, %v834_v22  ;;  %9023 = vmatmul.mubr.msk.f32.vlgmr.msra.gmra.mxu1 %vm247_vm6, %v916_v20 }
 0x9c3   :  { %9026 = vmatpush3.msra.mxu0 %v10486_v28  ;;  %9045 = vmatpush3.msra.mxu1 %v10430_v13 }
 0x9c4   :  { %9027 = vmatprep.subr.mxu0 %v13597_v1  ;;  %9046 = vmatprep.subr.mxu1 %v13597_v1 }
 0x9c5   :  { %9028 = vmatpush3.msra.mxu0 %v10493_v29  ;;  %9047 = vmatpush3.msra.mxu1 %v10438_v14 }
 0x9c6   :  { %9029 = vmatprep.subr.mxu0 %v13597_v1  ;;  %9048 = vmatprep.subr.mxu1 %v13597_v1 }
 0x9c7   :  { %9030 = vmatpush3.msra.mxu0 %v10502_v30  ;;  %9049 = vmatpush3.msra.mxu1 %v10445_v15 }
 0x9c8   :  { %9031 = vmatprep.subr.mxu0 %v13597_v1  ;;  %9050 = vmatprep.subr.mxu1 %v13597_v1 }
 0x9c9   :  { %9032 = vmatpush3.msra.mxu0 %v10509_v31  ;;  %9051 = vmatpush3.msra.mxu1 %v10452_v16 }
 0x9ca   :  { %9033 = vmatprep.subr.mxu0 %v13597_v1  ;;  %9052 = vmatprep.subr.mxu1 %v13597_v1 }
 0x9cb   :  { %9034 = vmatpush3.msra.mxu0 %v10516_v32  ;;  %9053 = vmatpush3.msra.mxu1 %v10530_v34 }
 0x9cc   :  { %9035 = vmatprep.subr.mxu0 %v13597_v1  ;;  %9054 = vmatprep.subr.mxu1 %v13597_v1 }
 0x9cd   :  { %9036 = vmatpush3.msra.mxu0 %v10525_v33  ;;  %9055 = vmatpush3.msra.mxu1 %v10544_v36 }
 0x9ce   :  { %9037 = vmatprep.subr.mxu0 %v13597_v1  ;;  %9056 = vmatprep.subr.mxu1 %v13597_v1 }
 0x9cf   :  { %9038 = vmatpush3.msra.mxu0 %v10539_v35  ;;  %9057 = vmatpush3.msra.mxu1 %v10556_v38 }
 0x9d0   :  { %9039 = vmatprep.subr.mxu0 %v13597_v1  ;;  %9058 = vmatprep.subr.mxu1 %v13597_v1 }
 0x9d1   :  { %9040 = vmatpush3.msra.mxu0 %v10551_v37  ;;  %9041 = vmatprep.mubr.msk.f32.mxu0 %vm10363_vm0, %v13597_v1 }
 0x9d2   :  { %9059 = vmatpush3.msra.mxu1 %v10566_v39  ;;  %9060 = vmatprep.mubr.msk.f32.mxu1 %vm10363_vm0, %v13597_v1 }
 0x9d3   :  { %9082 = vmatprep.subr.mxu1 %v13597_v1  ;;  %9063 = vmatprep.subr.mxu0 %v13597_v1 }
 0xa82   :  { %v903_v24 = vpop.f32.mrf.mxu0  ;;  %v985_v25 = vpop.f32.mrf.mxu1 }
 0xa83   :  { %v990_v26 = vrot.slane %v985_v25, 6 }
 0xa84   :  { %v9005_v27 = vpop.f32.mrf.mxu0  ;;  %v9024_v40 = vpop.f32.mrf.mxu1 }
 0xa85   :  { %v992_v44 = vsel %vm406_vm8, %v903_v24, %v990_v26 }
 0xa86   :  { %v993_v45 = vadd.f32 %v992_v44, %v10630_v55 }
 0xa88   :  { %v8144_v46 = vmul.f32 -1.442695, %v993_v45 }
 0xa8a   :  { %10028 = vpow2.f32 %v8144_v46 }
 0xa97   :  { %v10029_v47 = vpop.eup %10028 }
 0xa98   :  { %v997_v48 = vadd.f32 1.0, %v10029_v47 }
 0xa9a   :  { %10030 = vrcp.f32 %v997_v48 }
 0xaa7   :  { %v10031_v49 = vpop.eup %10030 }
 0xaa8   :  { %v1000_v51 = vmul.f32 2.0, %v10031_v49  ;;  %v1002_v56 = vmul.f32 %v10031_v49, %v10766_v59 }
 0xaaa   :  { %v8145_v52 = vadd.f32 -1.0, %v1000_v51 }
 0xaac   :  { %1004 = vrot.lane.b32.xlu0 %v8145_v52, %s10364_s20 }
 0xb1e   :  { %v1005_v53 = vpop.permute.xlu0 %1004 }
 0xb1f   :  { %v1007_v54 = vmul.f32 %v10031_v49, %v1005_v53 }
 0xb21   :  { %1009 = vrot.lane.b32.xlu1 %v1007_v54, %s10365_s21 }
 0xb93   :  { %v1010_v57 = vpop.permute.xlu1 %1009 }
 0xb94   :  { %v10831_v58 = vadd.f32 %v1010_v57, %v1002_v56 }
 0xb96   :  { %10032 = vtanh.f32 %v10831_v58 }
 0xba3   :  { %v10033_v60 = vpop.eup %10032 }
 0xba4   :  { %1015 = vrot.lane.b32.xlu0 %v10033_v60, %s10364_s20 }
 0xc16   :  { %v1016_v61 = vpop.permute.xlu0 %1015 }
 0xc17   :  { %v10835_v0 = vmul.f32 %v10031_v49, %v1016_v61 }
 0xc19   :  { %v1099_v4 = vrot.slane %v10835_v0, 7  ;;  %v1020_v7 = vrot.slane %v10835_v0, 4 }
 0xc1b   :  { %1100 = vrot.lane.b32.xlu1 %v1099_v4, %s10364_s20  ;;  %1021 = vrot.lane.b32.xlu0 %v1020_v7, %s10364_s20 }
 0xc8d   :  { %v1101_v59 = vpop.permute.xlu1 %1100  ;;  %v1022_v10 = vpop.permute.xlu0 %1021 }
 0xc8e   :  { %v1103_v12 = vsel %vm62_vm1, %v10782_v8, %v1101_v59  ;;  %v1024_v19 = vsel %vm62_vm1, %v10778_v63, %v1022_v10 }
 0xc8f   :  { %v1105_v20 = vrot.slane %v1103_v12, 3  ;;  %v1026_v22 = vrot.slane %v1024_v19, 4 }
 0xc91   :  { %9042 = vmatmul.mubr.msk.f32.vlgmr.msra.gmra.mxu0 %vm247_vm6, %v1026_v22  ;;  %9061 = vmatmul.mubr.msk.f32.vlgmr.msra.gmra.mxu1 %vm247_vm6, %v1105_v20 }
 0xc92   :  { %9083 = vmatpush3.msra.mxu1 %v10430_v13  ;;  %9064 = vmatpush3.msra.mxu0 %v10486_v28 }
 0xc93   :  { %9084 = vmatprep.subr.mxu1 %v13597_v1  ;;  %9065 = vmatprep.subr.mxu0 %v13597_v1 }
 0xc94   :  { %9085 = vmatpush3.msra.mxu1 %v10438_v14  ;;  %9066 = vmatpush3.msra.mxu0 %v10493_v29 }
 0xc95   :  { %9086 = vmatprep.subr.mxu1 %v13597_v1  ;;  %9067 = vmatprep.subr.mxu0 %v13597_v1 }
 0xc96   :  { %9087 = vmatpush3.msra.mxu1 %v10445_v15  ;;  %9068 = vmatpush3.msra.mxu0 %v10502_v30 }
 0xc97   :  { %9088 = vmatprep.subr.mxu1 %v13597_v1  ;;  %9069 = vmatprep.subr.mxu0 %v13597_v1 }
 0xc98   :  { %9089 = vmatpush3.msra.mxu1 %v10452_v16  ;;  %9070 = vmatpush3.msra.mxu0 %v10509_v31 }
 0xc99   :  { %9090 = vmatprep.subr.mxu1 %v13597_v1  ;;  %9071 = vmatprep.subr.mxu0 %v13597_v1 }
 0xc9a   :  { %9091 = vmatpush3.msra.mxu1 %v10530_v34  ;;  %9072 = vmatpush3.msra.mxu0 %v10516_v32 }
 0xc9b   :  { %9092 = vmatprep.subr.mxu1 %v13597_v1  ;;  %9073 = vmatprep.subr.mxu0 %v13597_v1 }
 0xc9c   :  { %9093 = vmatpush3.msra.mxu1 %v10544_v36  ;;  %9074 = vmatpush3.msra.mxu0 %v10525_v33 }
 0xc9d   :  { %9094 = vmatprep.subr.mxu1 %v13597_v1  ;;  %9075 = vmatprep.subr.mxu0 %v13597_v1 }
 0xc9e   :  { %9095 = vmatpush3.msra.mxu1 %v10556_v38  ;;  %9076 = vmatpush3.msra.mxu0 %v10539_v35 }
 0xc9f   :  { %9096 = vmatprep.subr.mxu1 %v13597_v1  ;;  %9098 = vmatprep.mubr.msk.f32.mxu1 %vm10363_vm0, %v13597_v1 }
 0xca0   :  { %9097 = vmatpush3.msra.mxu1 %v10566_v39  ;;  %9077 = vmatprep.subr.mxu0 %v13597_v1 }
 0xca1   :  { %9078 = vmatpush3.msra.mxu0 %v10551_v37  ;;  %9079 = vmatprep.mubr.msk.f32.mxu0 %vm10363_vm0, %v13597_v1 }
 0xca2   :  { %9101 = vmatprep.subr.mxu0 %v13597_v1  ;;  %9120 = vmatprep.subr.mxu1 %v13597_v1 }
 0xd51   :  { %v1095_v63 = vpop.f32.mrf.mxu0  ;;  %v1174_v8 = vpop.f32.mrf.mxu1 }
 0xd52   :  { %v1179_v24 = vrot.slane %v1174_v8, 6 }
 0xd53   :  { %v9043_v25 = vpop.f32.mrf.mxu0  ;;  %v9062_v26 = vpop.f32.mrf.mxu1 }
 0xd54   :  { %v1181_v27 = vsel %vm406_vm8, %v1095_v63, %v1179_v24 }
 0xd55   :  { %v1182_v40 = vadd.f32 %v1181_v27, %v10630_v55 }
 0xd57   :  { %v8148_v44 = vmul.f32 -1.442695, %v1182_v40 }
 0xd59   :  { %10034 = vpow2.f32 %v8148_v44 }
 0xd66   :  { %v10035_v45 = vpop.eup %10034 }
 0xd67   :  { %v1186_v46 = vadd.f32 1.0, %v10035_v45 }
 0xd69   :  { %10036 = vrcp.f32 %v1186_v46 }
 0xd76   :  { %v10037_v47 = vpop.eup %10036 }
 0xd77   :  { %v1189_v48 = vmul.f32 2.0, %v10037_v47  ;;  %v1191_v53 = vmul.f32 %v10037_v47, %v10831_v58 }
 0xd79   :  { %v8149_v49 = vadd.f32 -1.0, %v1189_v48 }
 0xd7b   :  { %1193 = vrot.lane.b32.xlu1 %v8149_v49, %s10364_s20 }
 0xded   :  { %v1194_v51 = vpop.permute.xlu1 %1193 }
 0xdee   :  { %v1196_v52 = vmul.f32 %v10037_v47, %v1194_v51 }
 0xdf0   :  { %1198 = vrot.lane.b32.xlu0 %v1196_v52, %s10365_s21 }
 0xe62   :  { %v1199_v54 = vpop.permute.xlu0 %1198 }
 0xe63   :  { %v10888_v56 = vadd.f32 %v1199_v54, %v1191_v53 }
 0xe65   :  { %10038 = vtanh.f32 %v10888_v56 }
 0xe72   :  { %v10039_v57 = vpop.eup %10038 }
 0xe73   :  { %1204 = vrot.lane.b32.xlu1 %v10039_v57, %s10364_s20  ;;  %v10216_v57 = vld [vmem:[%s13591_s1 + $0x10] sm:$0xff] }
 0xee5   :  { %v1205_v60 = vpop.permute.xlu1 %1204 }
 0xee6   :  { %v10892_v61 = vmul.f32 %v10037_v47, %v1205_v60 }
 0xee8   :  { %1288 = vrot.lane.b32.xlu0 %v10892_v61, %s10364_s20  ;;  %v1209_v4 = vrot.slane %v10892_v61, 3 }
 0xeea   :  { %1210 = vrot.lane.b32.xlu1 %v1209_v4, %s10364_s20 }
 0xf5a   :  { %v1289_v7 = vpop.permute.xlu0 %1288 }
 0xf5b   :  { %v1291_v58 = vsel %vm62_vm1, %v10717_v11, %v1289_v7 }
 0xf5c   :  { %v1293_v59 = vrot.slane %v1291_v58, 2  ;;  %v1211_v10 = vpop.permute.xlu1 %1210 }
 0xf5d   :  { %v1213_v12 = vsel %vm62_vm1, %v10713_v9, %v1211_v10 }
 0xf5e   :  { %v1215_v19 = vrot.slane %v1213_v12, 5  ;;  %9099 = vmatmul.mubr.msk.f32.vlgmr.msra.gmra.mxu1 %vm247_vm6, %v1293_v59 }
 0xf5f   :  { %9121 = vmatpush3.msra.mxu1 %v10430_v13  ;;  %9136 = vmatprep.mubr.msk.f32.mxu1 %vm10363_vm0, %v13597_v1 }
 0xf60   :  { %9080 = vmatmul.mubr.msk.f32.vlgmr.msra.gmra.mxu0 %vm247_vm6, %v1215_v19  ;;  %9122 = vmatprep.subr.mxu1 %v13597_v1 }
 0xf61   :  { %9102 = vmatpush3.msra.mxu0 %v10486_v28  ;;  %9123 = vmatpush3.msra.mxu1 %v10438_v14 }
 0xf62   :  { %9103 = vmatprep.subr.mxu0 %v13597_v1  ;;  %9124 = vmatprep.subr.mxu1 %v13597_v1 }
 0xf63   :  { %9104 = vmatpush3.msra.mxu0 %v10493_v29  ;;  %9125 = vmatpush3.msra.mxu1 %v10445_v15 }
 0xf64   :  { %9105 = vmatprep.subr.mxu0 %v13597_v1  ;;  %9126 = vmatprep.subr.mxu1 %v13597_v1 }
 0xf65   :  { %9106 = vmatpush3.msra.mxu0 %v10502_v30  ;;  %9127 = vmatpush3.msra.mxu1 %v10452_v16 }
 0xf66   :  { %9107 = vmatprep.subr.mxu0 %v13597_v1  ;;  %9128 = vmatprep.subr.mxu1 %v13597_v1 }
 0xf67   :  { %9108 = vmatpush3.msra.mxu0 %v10509_v31  ;;  %9129 = vmatpush3.msra.mxu1 %v10530_v34 }
 0xf68   :  { %9109 = vmatprep.subr.mxu0 %v13597_v1  ;;  %9130 = vmatprep.subr.mxu1 %v13597_v1 }
 0xf69   :  { %9110 = vmatpush3.msra.mxu0 %v10516_v32  ;;  %9131 = vmatpush3.msra.mxu1 %v10544_v36 }
 0xf6a   :  { %9111 = vmatprep.subr.mxu0 %v13597_v1  ;;  %9132 = vmatprep.subr.mxu1 %v13597_v1 }
 0xf6b   :  { %9112 = vmatpush3.msra.mxu0 %v10525_v33  ;;  %9133 = vmatpush3.msra.mxu1 %v10556_v38 }
 0xf6c   :  { %9113 = vmatprep.subr.mxu0 %v13597_v1  ;;  %9134 = vmatprep.subr.mxu1 %v13597_v1 }
 0xf6d   :  { %9114 = vmatpush3.msra.mxu0 %v10539_v35  ;;  %9117 = vmatprep.mubr.msk.f32.mxu0 %vm10363_vm0, %v13597_v1 }
 0xf6e   :  { %9115 = vmatprep.subr.mxu0 %v13597_v1  ;;  %9135 = vmatpush3.msra.mxu1 %v10566_v39 }
 0xf6f   :  { %9116 = vmatpush3.msra.mxu0 %v10551_v37  ;;  %9158 = vmatprep.subr.mxu1 %v13597_v1 }
 0xf70   :  { %9139 = vmatprep.subr.mxu0 %v13597_v1 }
0x101e   :  { %v1362_v13 = vpop.f32.mrf.mxu1 }
0x101f   :  { %v1367_v14 = vrot.slane %v1362_v13, 6 }
0x1020   :  { %v1284_v15 = vpop.f32.mrf.mxu0  ;;  %v9100_v16 = vpop.f32.mrf.mxu1 }
0x1021   :  { %v1369_v31 = vsel %vm406_vm8, %v1284_v15, %v1367_v14 }
0x1022   :  { %v1370_v32 = vadd.f32 %v1369_v31, %v10630_v55  ;;  %v9081_v33 = vpop.f32.mrf.mxu0 }
0x1024   :  { %v8152_v35 = vmul.f32 -1.442695, %v1370_v32 }
0x1026   :  { %10040 = vpow2.f32 %v8152_v35 }
0x1033   :  { %v10041_v9 = vpop.eup %10040 }
0x1034   :  { %v1374_v11 = vadd.f32 1.0, %v10041_v9 }
0x1036   :  { %10042 = vrcp.f32 %v1374_v11 }
0x1043   :  { %v10043_v20 = vpop.eup %10042 }
0x1044   :  { %v1377_v22 = vmul.f32 2.0, %v10043_v20  ;;  %v1379_v25 = vmul.f32 %v10043_v20, %v10888_v56  ;;  %v10210_v56 = vld [vmem:[%s13591_s1 + $0x78] sm:$0xff] }
0x1046   :  { %v8153_v63 = vadd.f32 -1.0, %v1377_v22 }
0x1048   :  { %1381 = vrot.lane.b32.xlu0 %v8153_v63, %s10364_s20 }
0x10ba   :  { %v1382_v8 = vpop.permute.xlu0 %1381 }
0x10bb   :  { %v1384_v24 = vmul.f32 %v10043_v20, %v1382_v8 }
0x10bd   :  { %1386 = vrot.lane.b32.xlu1 %v1384_v24, %s10365_s21 }
0x112f   :  { %v1387_v26 = vpop.permute.xlu1 %1386 }
0x1130   :  { %v10945_v27 = vadd.f32 %v1387_v26, %v1379_v25 }
0x1132   :  { %10044 = vtanh.f32 %v10945_v27 }
0x113f   :  { %v10045_v40 = vpop.eup %10044 }
0x1140   :  { %1392 = vrot.lane.b32.xlu0 %v10045_v40, %s10364_s20 }
0x11b2   :  { %v1393_v44 = vpop.permute.xlu0 %1392 }
0x11b3   :  { %v10949_v45 = vmul.f32 %v10043_v20, %v1393_v44 }
0x11b5   :  { %v1476_v46 = vrot.slane %v10949_v45, 1  ;;  %v1397_v47 = vrot.slane %v10949_v45, 2 }
0x11b7   :  { %1477 = vrot.lane.b32.xlu1 %v1476_v46, %s10364_s20  ;;  %1398 = vrot.lane.b32.xlu0 %v1397_v47, %s10364_s20 }
0x1229   :  { %v1478_v48 = vpop.permute.xlu1 %1477  ;;  %v10955_v49 = vpop.permute.xlu0 %1398 }
0x122a   :  { %v1480_v51 = vsel %vm62_vm1, %v10652_v23, %v1478_v48  ;;  %v1401_v52 = vsel %vm62_vm1, %v10648_v21, %v10955_v49  ;;  %v10211_v21 = vld [vmem:[%s13591_s1 + $0x70] sm:$0xff]  ;;  %v10212_v23 = vld [vmem:[%s13591_s1 + $0x68] sm:$0xff] }
0x122b   :  { %v1482_v53 = vrot.slane %v1480_v51, 1  ;;  %v1403_v54 = vrot.slane %v1401_v52, 6 }
0x122d   :  { %9118 = vmatmul.mubr.msk.f32.vlgmr.msra.gmra.mxu0 %vm247_vm6, %v1403_v54  ;;  %9137 = vmatmul.mubr.msk.f32.vlgmr.msra.gmra.mxu1 %vm247_vm6, %v1482_v53 }
0x122e   :  { %9159 = vmatpush3.msra.mxu1 %v10210_v56  ;;  %9140 = vmatpush3.msra.mxu0 %v10486_v28  ;;  %v10213_v28 = vld [vmem:[%s13591_s1 + $0x60] sm:$0xff] }
0x122f   :  { %9160 = vmatprep.subr.mxu1 %v13597_v1  ;;  %9141 = vmatprep.subr.mxu0 %v13597_v1 }
0x1230   :  { %9161 = vmatpush3.msra.mxu1 %v10211_v21  ;;  %9142 = vmatpush3.msra.mxu0 %v10493_v29  ;;  %v10214_v29 = vld [vmem:[%s13591_s1 + $0x20] sm:$0xff] }
0x1231   :  { %9162 = vmatprep.subr.mxu1 %v13597_v1  ;;  %9143 = vmatprep.subr.mxu0 %v13597_v1 }
0x1232   :  { %9163 = vmatpush3.msra.mxu1 %v10212_v23  ;;  %9144 = vmatpush3.msra.mxu0 %v10502_v30  ;;  %v10215_v30 = vld [vmem:[%s13591_s1 + $0x18] sm:$0xff] }
0x1233   :  { %9164 = vmatprep.subr.mxu1 %v13597_v1  ;;  %9145 = vmatprep.subr.mxu0 %v13597_v1 }
0x1234   :  { %9165 = vmatpush3.msra.mxu1 %v10213_v28  ;;  %9146 = vmatpush3.msra.mxu0 %v10214_v29 }
0x1235   :  { %9166 = vmatprep.subr.mxu1 %v13597_v1  ;;  %9147 = vmatprep.subr.mxu0 %v13597_v1 }
0x1236   :  { %9167 = vmatpush3.msra.mxu1 %v10530_v34  ;;  %9148 = vmatpush3.msra.mxu0 %v10215_v30  ;;  %v10217_v34 = vld [vmem:[%s13591_s1 + $0x8] sm:$0xff] }
0x1237   :  { %9168 = vmatprep.subr.mxu1 %v13597_v1  ;;  %9149 = vmatprep.subr.mxu0 %v13597_v1 }
0x1238   :  { %9169 = vmatpush3.msra.mxu1 %v10544_v36  ;;  %9150 = vmatpush3.msra.mxu0 %v10216_v57  ;;  %v11056_v57 = vld [vmem:[%s13591_s1 + $0x13c] sm:$0xff] }
0x1239   :  { %9170 = vmatprep.subr.mxu1 %v13597_v1  ;;  %9151 = vmatprep.subr.mxu0 %v13597_v1 }
0x123a   :  { %9171 = vmatpush3.msra.mxu1 %v10556_v38  ;;  %9174 = vmatprep.mubr.msk.f32.mxu1 %vm10363_vm0, %v13597_v1 }
0x123b   :  { %9172 = vmatprep.subr.mxu1 %v13597_v1  ;;  %9152 = vmatpush3.msra.mxu0 %v10217_v34  ;;  %v11061_v34 = vld [vmem:[%s13591_s1 + $0x134] sm:$0xff] }
0x123c   :  { %9173 = vmatpush3.msra.mxu1 %v10566_v39  ;;  %9153 = vmatprep.subr.mxu0 %v13597_v1 }
0x123d   :  { %9154 = vmatpush3.msra.mxu0 %v10551_v37  ;;  %9155 = vmatprep.mubr.msk.f32.mxu0 %vm10363_vm0, %v13597_v1 }
0x123e   :  { %9204 = vmatprep.subr.mxu1 %v13597_v1  ;;  %9177 = vmatprep.subr.mxu0 %v13597_v1 }
0x12ed   :  { %v1472_v36 = vpop.f32.mrf.mxu0  ;;  %v1551_v38 = vpop.f32.mrf.mxu1 }
0x12ee   :  { %v1556_v60 = vrot.slane %v1551_v38, 6  ;;  %v11073_v38 = vld [vmem:[%s13591_s1 + $0xd4] sm:$0xff] }
0x12ef   :  { %v9119_v4 = vpop.f32.mrf.mxu0  ;;  %v9138_v7 = vpop.f32.mrf.mxu1 }
0x12f0   :  { %v1558_v58 = vsel %vm406_vm8, %v1472_v36, %v1556_v60  ;;  %v11066_v36 = vld [vmem:[%s13591_s1 + $0xdc] sm:$0xff]  ;;  %v11079_v60 = vld [vmem:[%s13591_s1 + $0x12c] sm:$0xff]  ;;  %v11093_v7 = vld [vmem:[%s13591_s1 + $0x124] sm:$0xff] }
0x12f1   :  { %v1559_v39 = vadd.f32 %v1558_v58, %v10630_v55  ;;  %v11085_v4 = vld [vmem:[%s13591_s1 + $0xcc] sm:$0xff]  ;;  %v11101_v58 = vld [vmem:[%s13591_s1 + $0xc4] sm:$0xff] }
0x12f3   :  { %v8156_v59 = vmul.f32 -1.442695, %v1559_v39 }
0x12f5   :  { %10046 = vpow2.f32 %v8156_v59  ;;  %v11107_v59 = vld [vmem:[%s13591_s1 + $0x11c] sm:$0xff] }
0x1302   :  { %v10047_v10 = vpop.eup %10046 }
0x1303   :  { %v1563_v37 = vadd.f32 1.0, %v10047_v10  ;;  %v11115_v10 = vld [vmem:[%s13591_s1 + $0xbc] sm:$0xff] }
0x1305   :  { %10048 = vrcp.f32 %v1563_v37  ;;  %v11122_v37 = vld [vmem:[%s13591_s1 + $0x114] sm:$0xff] }
0x1312   :  { %v10049_v12 = vpop.eup %10048 }
0x1313   :  { %v1566_v19 = vmul.f32 2.0, %v10049_v12  ;;  %v1568_v16 = vmul.f32 %v10049_v12, %v10945_v27 }
0x1315   :  { %v8157_v13 = vadd.f32 -1.0, %v1566_v19  ;;  %v11132_v19 = vld [vmem:[%s13591_s1 + $0x10c] sm:$0xff] }
0x1317   :  { %1570 = vrot.lane.b32.xlu1 %v8157_v13, %s10364_s20  ;;  %v11137_v13 = vld [vmem:[%s13591_s1 + $0xb4] sm:$0xff] }
0x1389   :  { %v1571_v14 = vpop.permute.xlu1 %1570 }
0x138a   :  { %v1573_v15 = vmul.f32 %v10049_v12, %v1571_v14  ;;  %v11146_v14 = vld [vmem:[%s13591_s1 + $0x104] sm:$0xff] }
0x138c   :  { %1575 = vrot.lane.b32.xlu0 %v1573_v15, %s10365_s21  ;;  %v11151_v15 = vld [vmem:[%s13591_s1 + $0xac] sm:$0xff] }
0x13fe   :  { %v1576_v31 = vpop.permute.xlu0 %1575 }
0x13ff   :  { %v1578_v32 = vadd.f32 %v1576_v31, %v1568_v16  ;;  %v11160_v16 = vld [vmem:[%s13591_s1 + $0xfc] sm:$0xff]  ;;  %v11165_v31 = vld [vmem:[%s13591_s1 + $0xa4] sm:$0xff] }
0x1401   :  { %10050 = vtanh.f32 %v1578_v32 }
0x140e   :  { %v10051_v33 = vpop.eup %10050 }
0x140f   :  { %1581 = vrot.lane.b32.xlu1 %v10051_v33, %s10364_s20  ;;  %v11179_v33 = vld [vmem:[%s13591_s1 + $0x9c] sm:$0xff] }
0x1481   :  { %v1582_v35 = vpop.permute.xlu1 %1581 }
0x1482   :  { %v11022_v9 = vmul.f32 %v10049_v12, %v1582_v35  ;;  %v1829_v12 = vrot.slane %v10640_v18, 2  ;;  %v11188_v35 = vld [vmem:[%s13591_s1 + $0xec] sm:$0xff] }
0x1484   :  { %v1669_v11 = vrot.slane %v11022_v9, 2  ;;  %v1586_v20 = vrot.slane %v11022_v9, 1 }
0x1486   :  { %1670 = vrot.lane.b32.xlu1 %v1669_v11, %s10364_s20  ;;  %1587 = vrot.lane.b32.xlu0 %v1586_v20, %s10364_s20  ;;  %v11199_v11 = vld [vmem:[%s13591_s1 + $0x94] sm:$0xff]  ;;  %v11204_v20 = vld [vmem:[%s13591_s1 + $0xe4] sm:$0xff] }
0x14f8   :  { %v11028_v22 = vpop.permute.xlu1 %1670  ;;  %v1588_v63 = vpop.permute.xlu0 %1587 }
0x14f9   :  { %v1673_v8 = vsel %vm62_vm1, %v10578_v43, %v11028_v22  ;;  %v1590_v24 = vsel %vm62_vm1, %v10573_v42, %v1588_v63  ;;  %v1591_v25 = vsel %vm62_vm1, %v10571_v41, %v1588_v63  ;;  %v11211_v63 = vld [vmem:[%s13591_s1 + $0x8c] sm:$0xff] }
0x14fa   :  { %v1594_v26 = vrot.slane %v1590_v24, 7  ;;  %v1595_v27 = vrot.slane %v1591_v25, 7  ;;  %9175 = vmatmul.mubr.msk.f32.vlgmr.msra.gmra.mxu1 %vm247_vm6, %v1673_v8  ;;  %v11220_v8 = vld [vmem:[%s13591_s1 + $0x84] sm:$0xff] }
0x14fb   :  { %9228 = vmatprep.mubr.msk.f32.mxu1 %vm10363_vm0, %v13597_v1  ;;  %9205 = vmatpush3.msra.mxu1 %v11056_v57 }
0x14fc   :  { %v1596_v40 = vsel %vm327_vm7, %v1594_v26, %v1595_v27  ;;  %9206 = vmatprep.subr.mxu1 %v13597_v1 }
0x14fd   :  { %9156 = vmatmul.mubr.msk.f32.vlgmr.msra.gmra.mxu0 %vm247_vm6, %v1596_v40  ;;  %9207 = vmatpush3.msra.mxu1 %v11061_v34 }
0x14fe   :  { %9201 = vmatprep.mubr.msk.f32.mxu0 %vm10363_vm0, %v13597_v1  ;;  %9178 = vmatpush3.msra.mxu0 %v11066_v36 }
0x14ff   :  { %9179 = vmatprep.subr.mxu0 %v13597_v1  ;;  %9208 = vmatprep.subr.mxu1 %v13597_v1 }
0x1500   :  { %9180 = vmatpush3.msra.mxu0 %v11073_v38  ;;  %9209 = vmatpush3.msra.mxu1 %v11079_v60 }
0x1501   :  { %9181 = vmatprep.subr.mxu0 %v13597_v1  ;;  %9210 = vmatprep.subr.mxu1 %v13597_v1 }
0x1502   :  { %9182 = vmatpush3.msra.mxu0 %v11085_v4  ;;  %9211 = vmatpush3.msra.mxu1 %v11093_v7 }
0x1503   :  { %9183 = vmatprep.subr.mxu0 %v13597_v1  ;;  %9212 = vmatprep.subr.mxu1 %v13597_v1 }
0x1504   :  { %9184 = vmatpush3.msra.mxu0 %v11101_v58  ;;  %9213 = vmatpush3.msra.mxu1 %v11107_v59 }
0x1505   :  { %9185 = vmatprep.subr.mxu0 %v13597_v1  ;;  %9214 = vmatprep.subr.mxu1 %v13597_v1 }
0x1506   :  { %9186 = vmatpush3.msra.mxu0 %v11115_v10  ;;  %9215 = vmatpush3.msra.mxu1 %v11122_v37 }
0x1507   :  { %9216 = vmatprep.subr.mxu1 %v13597_v1  ;;  %9187 = vmatprep.subr.mxu0 %v13597_v1 }
0x1508   :  { %9217 = vmatpush3.msra.mxu1 %v11132_v19  ;;  %9188 = vmatpush3.msra.mxu0 %v11137_v13 }
0x1509   :  { %9218 = vmatprep.subr.mxu1 %v13597_v1  ;;  %9189 = vmatprep.subr.mxu0 %v13597_v1 }
0x150a   :  { %9219 = vmatpush3.msra.mxu1 %v11146_v14  ;;  %9190 = vmatpush3.msra.mxu0 %v11151_v15 }
0x150b   :  { %9220 = vmatprep.subr.mxu1 %v13597_v1  ;;  %9191 = vmatprep.subr.mxu0 %v13597_v1 }
0x150c   :  { %9221 = vmatpush3.msra.mxu1 %v11160_v16  ;;  %9192 = vmatpush3.msra.mxu0 %v11165_v31 }
0x150d   :  { %9222 = vmatprep.subr.mxu1 %v13597_v1  ;;  %9193 = vmatprep.subr.mxu0 %v13597_v1 }
0x150e   :  { %9194 = vmatpush3.msra.mxu0 %v11179_v33 }
0x150f   :  { %9195 = vmatprep.subr.mxu0 %v13597_v1 }
0x1510   :  { %9196 = vmatpush3.msra.mxu0 %v11199_v11 }
0x1511   :  { %9197 = vmatprep.subr.mxu0 %v13597_v1 }
0x1512   :  { %9198 = vmatpush3.msra.mxu0 %v11211_v63 }
0x1513   :  { %9199 = vmatprep.subr.mxu0 %v13597_v1 }
0x1514   :  { %9200 = vmatpush3.msra.mxu0 %v11220_v8 }
0x1515   :  { %9231 = vmatprep.subr.mxu0 %v13597_v1 }
0x15ba   :  { %v1743_v43 = vpop.f32.mrf.mxu1 }
0x15bb   :  { %v1748_v44 = vrot.slane %v1743_v43, 6 }
0x15bc   :  { %v9176_v42 = vpop.f32.mrf.mxu1 }
0x15bd   :  { %v1665_v46 = vpop.f32.mrf.mxu0 }
0x15be   :  { %v1750_v41 = vsel %vm406_vm8, %v1665_v46, %v1748_v44 }
0x15bf   :  { %v1751_v47 = vadd.f32 %v1750_v41, %v10630_v55  ;;  %v9157_v48 = vpop.f32.mrf.mxu0 }
0x15c1   :  { %v8160_v51 = vmul.f32 -1.442695, %v1751_v47 }
0x15c3   :  { %10052 = vpow2.f32 %v8160_v51 }
0x15d0   :  { %v10053_v52 = vpop.eup %10052 }
0x15d1   :  { %v1755_v53 = vadd.f32 1.0, %v10053_v52  ;;  %v11302_v52 = vld [vmem:[%s13591_s1 + $0x144] sm:$0xf] }
0x15d3   :  { %10054 = vrcp.f32 %v1755_v53 }
0x15e0   :  { %v11046_v54 = vpop.eup %10054 }
0x15e1   :  { %v1758_v56 = vmul.f32 2.0, %v11046_v54  ;;  %v1760_v55 = vmul.f32 %v11046_v54, %v1578_v32  ;;  %v11174_v32 = vld [vmem:[%s13591_s1 + $0xf4] sm:$0xff] }
0x15e2   :  { %9223 = vmatpush3.msra.mxu1 %v11174_v32 }
0x15e3   :  { %v8161_v21 = vadd.f32 -1.0, %v1758_v56  ;;  %9224 = vmatprep.subr.mxu1 %v13597_v1 }
0x15e4   :  { %9225 = vmatpush3.msra.mxu1 %v11188_v35 }
0x15e5   :  { %1762 = vrot.lane.b32.xlu0 %v8161_v21, %s10364_s20  ;;  %9226 = vmatprep.subr.mxu1 %v13597_v1 }
0x15e6   :  { %9227 = vmatpush3.msra.mxu1 %v11204_v20 }
0x15e7   :  { %9258 = vmatprep.subr.mxu1 %v13597_v1 }
0x1657   :  { %v1763_v23 = vpop.permute.xlu0 %1762 }
0x1658   :  { %v1765_v28 = vmul.f32 %v11046_v54, %v1763_v23 }
0x165a   :  { %1767 = vrot.lane.b32.xlu1 %v1765_v28, %s10365_s21 }
0x16cc   :  { %v1768_v29 = vpop.permute.xlu1 %1767 }
0x16cd   :  { %v1770_v30 = vadd.f32 %v1768_v29, %v1760_v55 }
0x16cf   :  { %10056 = vtanh.f32 %v1770_v30 }
0x16dc   :  { %v10057_v39 = vpop.eup %10056 }
0x16dd   :  { %1773 = vrot.lane.b32.xlu0 %v10057_v39, %s10364_s20 }
0x16e1   :  { %1830 = vrot.lane.b32.xlu0 %v1829_v12, %s10364_s20 }
0x174f   :  { %v1774_v24 = vpop.permute.xlu0 %1773 }
0x1750   :  { %v1776_v25 = vmul.f32 %v11046_v54, %v1774_v24 }
0x1752   :  { %v1781_v26 = vrot.slane %v1776_v25, 2  ;;  %1826 = vrot.lane.b32.xlu1 %v1776_v25, %s10365_s21 }
0x1753   :  { %v1831_v27 = vpop.permute.xlu0 %1830 }
0x1754   :  { %1782 = vrot.lane.b32.xlu0 %v1781_v26, %s10364_s20 }
0x1756   :  { %1777 = vrot.lane.b32.xlu1 %v10640_v18, %s10365_s21 }
0x17c4   :  { %v11229_v40 = vpop.permute.xlu1 %1826 }
0x17c5   :  { %v11233_v43 = vsel %vm62_vm1, %v11229_v40, %v1831_v27 }
0x17c6   :  { %v1935_v44 = vsel %vm247_vm6, %v11233_v43, 0.0  ;;  %v11238_v42 = vpop.permute.xlu0 %1782 }
0x17c7   :  { %9229 = vmatmul.mubr.msk.f32.vlgmr.msra.gmra.mxu1 %vm1861_vm15, %v1935_v44 }
0x17c8   :  { %v1778_v46 = vpop.permute.xlu1 %1777  ;;  %9259 = vmatpush3.msra.mxu1 %v11056_v57  ;;  %9282 = vmatprep.mubr.msk.f32.mxu1 %vm10363_vm0, %v13597_v1 }
0x17c9   :  { %v11245_v18 = vsel %vm62_vm1, %v1778_v46, %v11238_v42  ;;  %9260 = vmatprep.subr.mxu1 %v13597_v1  ;;  %v1821_v46 = vrot.slane %v10705_v6, 2 }
0x17ca   :  { %v1860_v41 = vsel %vm247_vm6, %v11245_v18, 0.0  ;;  %9261 = vmatpush3.msra.mxu1 %v11061_v34 }
0x17cb   :  { %9202 = vmatmul.mubr.msk.f32.vlgmr.msra.gmra.mxu0 %vm1861_vm15, %v1860_v41  ;;  %9262 = vmatprep.subr.mxu1 %v13597_v1 }
0x17cc   :  { %9232 = vmatpush3.msra.mxu0 %v11066_v36  ;;  %9263 = vmatpush3.msra.mxu1 %v11079_v60 }
0x17cd   :  { %9233 = vmatprep.subr.mxu0 %v13597_v1  ;;  %9264 = vmatprep.subr.mxu1 %v13597_v1 }
0x17ce   :  { %9234 = vmatpush3.msra.mxu0 %v11073_v38  ;;  %9265 = vmatpush3.msra.mxu1 %v11093_v7 }
0x17cf   :  { %9235 = vmatprep.subr.mxu0 %v13597_v1  ;;  %9266 = vmatprep.subr.mxu1 %v13597_v1 }
0x17d0   :  { %9236 = vmatpush3.msra.mxu0 %v11085_v4  ;;  %9267 = vmatpush3.msra.mxu1 %v11107_v59 }
0x17d1   :  { %9237 = vmatprep.subr.mxu0 %v13597_v1  ;;  %9268 = vmatprep.subr.mxu1 %v13597_v1 }
0x17d2   :  { %9238 = vmatpush3.msra.mxu0 %v11101_v58  ;;  %9269 = vmatpush3.msra.mxu1 %v11122_v37 }
0x17d3   :  { %9239 = vmatprep.subr.mxu0 %v13597_v1  ;;  %9270 = vmatprep.subr.mxu1 %v13597_v1 }
0x17d4   :  { %9240 = vmatpush3.msra.mxu0 %v11115_v10  ;;  %9271 = vmatpush3.msra.mxu1 %v11132_v19 }
0x17d5   :  { %9241 = vmatprep.subr.mxu0 %v13597_v1  ;;  %9272 = vmatprep.subr.mxu1 %v13597_v1 }
0x17d6   :  { %9242 = vmatpush3.msra.mxu0 %v11137_v13  ;;  %9273 = vmatpush3.msra.mxu1 %v11146_v14 }
0x17d7   :  { %9243 = vmatprep.subr.mxu0 %v13597_v1  ;;  %9274 = vmatprep.subr.mxu1 %v13597_v1 }
0x17d8   :  { %9244 = vmatpush3.msra.mxu0 %v11151_v15  ;;  %9275 = vmatpush3.msra.mxu1 %v11160_v16 }
0x17d9   :  { %9245 = vmatprep.subr.mxu0 %v13597_v1  ;;  %9276 = vmatprep.subr.mxu1 %v13597_v1 }
0x17da   :  { %9246 = vmatpush3.msra.mxu0 %v11165_v31  ;;  %9277 = vmatpush3.msra.mxu1 %v11174_v32 }
0x17db   :  { %9247 = vmatprep.subr.mxu0 %v13597_v1  ;;  %9278 = vmatprep.subr.mxu1 %v13597_v1 }
0x17dc   :  { %9248 = vmatpush3.msra.mxu0 %v11179_v33  ;;  %9279 = vmatpush3.msra.mxu1 %v11188_v35 }
0x17dd   :  { %9249 = vmatprep.subr.mxu0 %v13597_v1  ;;  %9280 = vmatprep.subr.mxu1 %v13597_v1 }
0x17de   :  { %9250 = vmatpush3.msra.mxu0 %v11199_v11  ;;  %9281 = vmatpush3.msra.mxu1 %v11204_v20 }
0x17df   :  { %9251 = vmatprep.subr.mxu0 %v13597_v1  ;;  %9255 = vmatprep.mubr.msk.f32.mxu0 %vm10363_vm0, %v13597_v1 }
0x17e0   :  { %9252 = vmatpush3.msra.mxu0 %v11211_v63  ;;  %9312 = vmatprep.subr.mxu1 %v13597_v1 }
0x17e1   :  { %9253 = vmatprep.subr.mxu0 %v13597_v1 }
0x17e2   :  { %9254 = vmatpush3.msra.mxu0 %v11220_v8 }
0x17e3   :  { %9285 = vmatprep.subr.mxu0 %v13597_v1 }
0x1887   :  { %v2005_v47 = vpop.f32.mrf.mxu1 }
0x1888   :  { %v2010_v51 = vrot.slane %v2005_v47, 6 }
0x1889   :  { %v9230_v48 = vpop.f32.mrf.mxu1 }
0x188b   :  { %v1931_v53 = vpop.f32.mrf.mxu0 }
0x188c   :  { %v2012_v54 = vsel %vm406_vm8, %v1931_v53, %v2010_v51 }
0x188d   :  { %v2013_v56 = vadd.f32 %v2012_v54, %v11302_v52  ;;  %v9203_v21 = vpop.f32.mrf.mxu0 }
0x188f   :  { %v8164_v23 = vmul.f32 -1.442695, %v2013_v56 }
0x1891   :  { %10058 = vpow2.f32 %v8164_v23 }
0x189e   :  { %v10059_v28 = vpop.eup %10058 }
0x189f   :  { %v2017_v55 = vadd.f32 1.0, %v10059_v28 }
0x18a1   :  { %10060 = vrcp.f32 %v2017_v55 }
0x18ae   :  { %v10061_v29 = vpop.eup %10060 }
0x18af   :  { %v2020_v30 = vmul.f32 2.0, %v10061_v29  ;;  %v2022_v25 = vmul.f32 0.0, %v10061_v29 }
0x18b1   :  { %v8165_v39 = vadd.f32 -1.0, %v2020_v30 }
0x18b3   :  { %2024 = vrot.lane.b32.xlu1 %v8165_v39, %s10364_s20 }
0x1925   :  { %v2025_v12 = vpop.permute.xlu1 %2024 }
0x1926   :  { %v2027_v24 = vmul.f32 %v10061_v29, %v2025_v12 }
0x1928   :  { %2029 = vrot.lane.b32.xlu0 %v2027_v24, %s10365_s21 }
0x192c   :  { %1818 = vrot.lane.b32.xlu0 %v11022_v9, %s10365_s21 }
0x199a   :  { %v2030_v26 = vpop.permute.xlu0 %2029 }
0x199b   :  { %v11310_v27 = vadd.f32 %v2030_v26, %v2022_v25 }
0x199d   :  { %10062 = vtanh.f32 %v11310_v27 }
0x199e   :  { %v1819_v51 = vpop.permute.xlu0 %1818 }
0x19aa   :  { %v10063_v44 = vpop.eup %10062 }
0x19ab   :  { %2035 = vrot.lane.b32.xlu1 %v10063_v44, %s10364_s20 }
0x19af   :  { %1822 = vrot.lane.b32.xlu1 %v1821_v46, %s10364_s20 }
0x19b3   :  { %1786 = vrot.lane.b32.xlu1 %v10705_v6, %s10365_s21 }
0x1a1d   :  { %v2036_v41 = vpop.permute.xlu1 %2035 }
0x1a1e   :  { %v11318_v47 = vmul.f32 %v10061_v29, %v2036_v41 }
0x1a20   :  { %v2117_v9 = vrot.slane %v11318_v47, 2 }
0x1a21   :  { %v1823_v48 = vpop.permute.xlu1 %1822 }
0x1a22   :  { %2118 = vrot.lane.b32.xlu0 %v2117_v9, %s10366_s11  ;;  %v11327_v53 = vsel %vm62_vm1, %v1819_v51, %v1823_v48 }
0x1a25   :  { %v1787_v6 = vpop.permute.xlu1 %1786 }
0x1a26   :  { %2040 = vrot.lane.b32.xlu0 %v11318_v47, %s10366_s11  ;;  %v11337_v21 = vsel %vm62_vm1, %v1787_v6, %v11028_v22 }
0x1a94   :  { %v2119_v54 = vpop.permute.xlu0 %2118 }
0x1a95   :  { %v2121_v56 = vsel %vm247_vm6, %v11327_v53, %v2119_v54 }
0x1a96   :  { %9283 = vmatmul.mubr.msk.f32.vlgmr.msra.gmra.mxu1 %vm1861_vm15, %v2121_v56 }
0x1a97   :  { %9313 = vmatpush3.msra.mxu1 %v11056_v57  ;;  %9336 = vmatprep.mubr.msk.f32.mxu1 %vm10363_vm0, %v13597_v1 }
0x1a98   :  { %v2041_v23 = vpop.permute.xlu0 %2040  ;;  %9314 = vmatprep.subr.mxu1 %v13597_v1 }
0x1a99   :  { %v2043_v28 = vsel %vm247_vm6, %v11337_v21, %v2041_v23  ;;  %9315 = vmatpush3.msra.mxu1 %v11061_v34 }
0x1a9a   :  { %9256 = vmatmul.mubr.msk.f32.vlgmr.msra.gmra.mxu0 %vm1861_vm15, %v2043_v28  ;;  %9316 = vmatprep.subr.mxu1 %v13597_v1 }
0x1a9b   :  { %9286 = vmatpush3.msra.mxu0 %v11066_v36  ;;  %9317 = vmatpush3.msra.mxu1 %v11079_v60 }
0x1a9c   :  { %9287 = vmatprep.subr.mxu0 %v13597_v1  ;;  %9318 = vmatprep.subr.mxu1 %v13597_v1 }
0x1a9d   :  { %9288 = vmatpush3.msra.mxu0 %v11073_v38  ;;  %9319 = vmatpush3.msra.mxu1 %v11093_v7 }
0x1a9e   :  { %9289 = vmatprep.subr.mxu0 %v13597_v1  ;;  %9320 = vmatprep.subr.mxu1 %v13597_v1 }
0x1a9f   :  { %9290 = vmatpush3.msra.mxu0 %v11085_v4  ;;  %9321 = vmatpush3.msra.mxu1 %v11107_v59 }
0x1aa0   :  { %9291 = vmatprep.subr.mxu0 %v13597_v1  ;;  %9322 = vmatprep.subr.mxu1 %v13597_v1 }
0x1aa1   :  { %9292 = vmatpush3.msra.mxu0 %v11101_v58  ;;  %9323 = vmatpush3.msra.mxu1 %v11122_v37 }
0x1aa2   :  { %9293 = vmatprep.subr.mxu0 %v13597_v1  ;;  %9324 = vmatprep.subr.mxu1 %v13597_v1 }
0x1aa3   :  { %9294 = vmatpush3.msra.mxu0 %v11115_v10  ;;  %9325 = vmatpush3.msra.mxu1 %v11132_v19 }
0x1aa4   :  { %9295 = vmatprep.subr.mxu0 %v13597_v1  ;;  %9326 = vmatprep.subr.mxu1 %v13597_v1 }
0x1aa5   :  { %9296 = vmatpush3.msra.mxu0 %v11137_v13  ;;  %9327 = vmatpush3.msra.mxu1 %v11146_v14 }
0x1aa6   :  { %9297 = vmatprep.subr.mxu0 %v13597_v1  ;;  %9328 = vmatprep.subr.mxu1 %v13597_v1 }
0x1aa7   :  { %9298 = vmatpush3.msra.mxu0 %v11151_v15  ;;  %9329 = vmatpush3.msra.mxu1 %v11160_v16 }
0x1aa8   :  { %9299 = vmatprep.subr.mxu0 %v13597_v1  ;;  %9330 = vmatprep.subr.mxu1 %v13597_v1 }
0x1aa9   :  { %9300 = vmatpush3.msra.mxu0 %v11165_v31  ;;  %9331 = vmatpush3.msra.mxu1 %v11174_v32 }
0x1aaa   :  { %9301 = vmatprep.subr.mxu0 %v13597_v1  ;;  %9332 = vmatprep.subr.mxu1 %v13597_v1 }
0x1aab   :  { %9302 = vmatpush3.msra.mxu0 %v11179_v33  ;;  %9333 = vmatpush3.msra.mxu1 %v11188_v35 }
0x1aac   :  { %9303 = vmatprep.subr.mxu0 %v13597_v1  ;;  %9334 = vmatprep.subr.mxu1 %v13597_v1 }
0x1aad   :  { %9304 = vmatpush3.msra.mxu0 %v11199_v11  ;;  %9335 = vmatpush3.msra.mxu1 %v11204_v20 }
0x1aae   :  { %9305 = vmatprep.subr.mxu0 %v13597_v1  ;;  %9309 = vmatprep.mubr.msk.f32.mxu0 %vm10363_vm0, %v13597_v1 }
0x1aaf   :  { %9306 = vmatpush3.msra.mxu0 %v11211_v63  ;;  %9366 = vmatprep.subr.mxu1 %v13597_v1 }
0x1ab0   :  { %9307 = vmatprep.subr.mxu0 %v13597_v1 }
0x1ab1   :  { %9308 = vmatpush3.msra.mxu0 %v11220_v8 }
0x1ab2   :  { %9339 = vmatprep.subr.mxu0 %v13597_v1 }
0x1b56   :  { %v2191_v22 = vpop.f32.mrf.mxu1 }
0x1b57   :  { %v2196_v29 = vrot.slane %v2191_v22, 6  ;;  %v1813_v22 = vrot.slane %v10770_v62, 2 }
0x1b58   :  { %v9284_v55 = vpop.f32.mrf.mxu1 }
0x1b5a   :  { %v2113_v30 = vpop.f32.mrf.mxu0 }
0x1b5b   :  { %v2198_v39 = vsel %vm406_vm8, %v2113_v30, %v2196_v29 }
0x1b5c   :  { %v2199_v12 = vadd.f32 %v2198_v39, %v11302_v52  ;;  %v9257_v24 = vpop.f32.mrf.mxu0 }
0x1b5e   :  { %v8168_v25 = vmul.f32 -1.442695, %v2199_v12 }
0x1b60   :  { %10064 = vpow2.f32 %v8168_v25 }
0x1b6d   :  { %v10065_v26 = vpop.eup %10064 }
0x1b6e   :  { %v2203_v44 = vadd.f32 1.0, %v10065_v26 }
0x1b70   :  { %10066 = vrcp.f32 %v2203_v44 }
0x1b7d   :  { %v10067_v46 = vpop.eup %10066 }
0x1b7e   :  { %v2206_v41 = vmul.f32 2.0, %v10067_v46  ;;  %v2208_v6 = vmul.f32 %v10067_v46, %v11310_v27 }
0x1b80   :  { %v8169_v48 = vadd.f32 -1.0, %v2206_v41 }
0x1b82   :  { %2210 = vrot.lane.b32.xlu1 %v8169_v48, %s10364_s20 }
0x1bf4   :  { %v2211_v51 = vpop.permute.xlu1 %2210 }
0x1bf5   :  { %v2213_v54 = vmul.f32 %v10067_v46, %v2211_v51 }
0x1bf7   :  { %2215 = vrot.lane.b32.xlu0 %v2213_v54, %s10365_s21 }
0x1bfb   :  { %1810 = vrot.lane.b32.xlu0 %v10949_v45, %s10365_s21 }
0x1c69   :  { %v2216_v56 = vpop.permute.xlu0 %2215 }
0x1c6a   :  { %v11398_v23 = vadd.f32 %v2216_v56, %v2208_v6 }
0x1c6c   :  { %10068 = vtanh.f32 %v11398_v23 }
0x1c6d   :  { %v1811_v30 = vpop.permute.xlu0 %1810 }
0x1c79   :  { %v10069_v28 = vpop.eup %10068 }
0x1c7a   :  { %2221 = vrot.lane.b32.xlu1 %v10069_v28, %s10364_s20 }
0x1c7e   :  { %1814 = vrot.lane.b32.xlu1 %v1813_v22, %s10364_s20 }
0x1c82   :  { %1790 = vrot.lane.b32.xlu1 %v10770_v62, %s10365_s21 }
0x1cec   :  { %v2222_v55 = vpop.permute.xlu1 %2221 }
0x1ced   :  { %v11406_v29 = vmul.f32 %v10067_v46, %v2222_v55 }
0x1cef   :  { %v2303_v45 = vrot.slane %v11406_v29, 2 }
0x1cf0   :  { %v1815_v27 = vpop.permute.xlu1 %1814 }
0x1cf1   :  { %2304 = vrot.lane.b32.xlu0 %v2303_v45, %s10366_s11  ;;  %v11415_v39 = vsel %vm62_vm1, %v1811_v30, %v1815_v27 }
0x1cf4   :  { %v1791_v24 = vpop.permute.xlu1 %1790 }
0x1cf5   :  { %2226 = vrot.lane.b32.xlu0 %v11406_v29, %s10366_s11  ;;  %v11425_v25 = vsel %vm62_vm1, %v1791_v24, %v10955_v49 }
0x1d63   :  { %v2305_v12 = vpop.permute.xlu0 %2304 }
0x1d64   :  { %v2307_v62 = vsel %vm247_vm6, %v11415_v39, %v2305_v12 }
0x1d65   :  { %9337 = vmatmul.mubr.msk.f32.vlgmr.msra.gmra.mxu1 %vm1861_vm15, %v2307_v62 }
0x1d66   :  { %9367 = vmatpush3.msra.mxu1 %v11056_v57  ;;  %9390 = vmatprep.mubr.msk.f32.mxu1 %vm10363_vm0, %v13597_v1 }
0x1d67   :  { %v2227_v26 = vpop.permute.xlu0 %2226  ;;  %9368 = vmatprep.subr.mxu1 %v13597_v1 }
0x1d68   :  { %v2229_v44 = vsel %vm247_vm6, %v11425_v25, %v2227_v26  ;;  %9369 = vmatpush3.msra.mxu1 %v11061_v34 }
0x1d69   :  { %9310 = vmatmul.mubr.msk.f32.vlgmr.msra.gmra.mxu0 %vm1861_vm15, %v2229_v44  ;;  %9370 = vmatprep.subr.mxu1 %v13597_v1 }
0x1d6a   :  { %9371 = vmatpush3.msra.mxu1 %v11079_v60  ;;  %9340 = vmatpush3.msra.mxu0 %v11066_v36 }
0x1d6b   :  { %9372 = vmatprep.subr.mxu1 %v13597_v1  ;;  %9341 = vmatprep.subr.mxu0 %v13597_v1 }
0x1d6c   :  { %9373 = vmatpush3.msra.mxu1 %v11093_v7  ;;  %9342 = vmatpush3.msra.mxu0 %v11073_v38 }
0x1d6d   :  { %9374 = vmatprep.subr.mxu1 %v13597_v1  ;;  %9343 = vmatprep.subr.mxu0 %v13597_v1 }
0x1d6e   :  { %9375 = vmatpush3.msra.mxu1 %v11107_v59  ;;  %9344 = vmatpush3.msra.mxu0 %v11085_v4 }
0x1d6f   :  { %9376 = vmatprep.subr.mxu1 %v13597_v1  ;;  %9345 = vmatprep.subr.mxu0 %v13597_v1 }
0x1d70   :  { %9377 = vmatpush3.msra.mxu1 %v11122_v37  ;;  %9346 = vmatpush3.msra.mxu0 %v11101_v58 }
0x1d71   :  { %9378 = vmatprep.subr.mxu1 %v13597_v1  ;;  %9347 = vmatprep.subr.mxu0 %v13597_v1 }
0x1d72   :  { %9379 = vmatpush3.msra.mxu1 %v11132_v19  ;;  %9348 = vmatpush3.msra.mxu0 %v11115_v10 }
0x1d73   :  { %9380 = vmatprep.subr.mxu1 %v13597_v1  ;;  %9349 = vmatprep.subr.mxu0 %v13597_v1 }
0x1d74   :  { %9381 = vmatpush3.msra.mxu1 %v11146_v14  ;;  %9350 = vmatpush3.msra.mxu0 %v11137_v13 }
0x1d75   :  { %9382 = vmatprep.subr.mxu1 %v13597_v1  ;;  %9351 = vmatprep.subr.mxu0 %v13597_v1 }
0x1d76   :  { %9383 = vmatpush3.msra.mxu1 %v11160_v16  ;;  %9352 = vmatpush3.msra.mxu0 %v11151_v15 }
0x1d77   :  { %9384 = vmatprep.subr.mxu1 %v13597_v1  ;;  %9353 = vmatprep.subr.mxu0 %v13597_v1 }
0x1d78   :  { %9385 = vmatpush3.msra.mxu1 %v11174_v32  ;;  %9354 = vmatpush3.msra.mxu0 %v11165_v31 }
0x1d79   :  { %9386 = vmatprep.subr.mxu1 %v13597_v1  ;;  %9355 = vmatprep.subr.mxu0 %v13597_v1 }
0x1d7a   :  { %9387 = vmatpush3.msra.mxu1 %v11188_v35  ;;  %9356 = vmatpush3.msra.mxu0 %v11179_v33 }
0x1d7b   :  { %9388 = vmatprep.subr.mxu1 %v13597_v1  ;;  %9357 = vmatprep.subr.mxu0 %v13597_v1 }
0x1d7c   :  { %9389 = vmatpush3.msra.mxu1 %v11204_v20  ;;  %9358 = vmatpush3.msra.mxu0 %v11199_v11 }
0x1d7d   :  { %9359 = vmatprep.subr.mxu0 %v13597_v1  ;;  %9363 = vmatprep.mubr.msk.f32.mxu0 %vm10363_vm0, %v13597_v1 }
0x1d7e   :  { %9360 = vmatpush3.msra.mxu0 %v11211_v63  ;;  %9420 = vmatprep.subr.mxu1 %v13597_v1 }
0x1d7f   :  { %9361 = vmatprep.subr.mxu0 %v13597_v1 }
0x1d80   :  { %9362 = vmatpush3.msra.mxu0 %v11220_v8 }
0x1d81   :  { %9393 = vmatprep.subr.mxu0 %v13597_v1 }
0x1e25   :  { %v2377_v49 = vpop.f32.mrf.mxu1 }
0x1e26   :  { %v2382_v41 = vrot.slane %v2377_v49, 6 }
0x1e27   :  { %v9338_v46 = vpop.f32.mrf.mxu1 }
0x1e28   :  { %v1805_v46 = vrot.slane %v10835_v0, 2 }
0x1e29   :  { %v2299_v48 = vpop.f32.mrf.mxu0 }
0x1e2a   :  { %v2384_v51 = vsel %vm406_vm8, %v2299_v48, %v2382_v41 }
0x1e2b   :  { %v2385_v54 = vadd.f32 %v2384_v51, %v11302_v52  ;;  %v9311_v6 = vpop.f32.mrf.mxu0  ;;  %v1797_v51 = vrot.slane %v10892_v61, 2 }
0x1e2d   :  { %v8172_v56 = vmul.f32 -1.442695, %v2385_v54 }
0x1e2f   :  { %10070 = vpow2.f32 %v8172_v56 }
0x1e3c   :  { %v10071_v28 = vpop.eup %10070 }
0x1e3d   :  { %v2389_v22 = vadd.f32 1.0, %v10071_v28 }
0x1e3f   :  { %10072 = vrcp.f32 %v2389_v22 }
0x1e4c   :  { %v10073_v55 = vpop.eup %10072 }
0x1e4d   :  { %v2392_v27 = vmul.f32 2.0, %v10073_v55  ;;  %v2394_v62 = vmul.f32 %v10073_v55, %v11398_v23 }
0x1e4f   :  { %v8173_v30 = vadd.f32 -1.0, %v2392_v27 }
0x1e51   :  { %2396 = vrot.lane.b32.xlu1 %v8173_v30, %s10364_s20 }
0x1ec3   :  { %v2397_v12 = vpop.permute.xlu1 %2396 }
0x1ec4   :  { %v2399_v24 = vmul.f32 %v10073_v55, %v2397_v12 }
0x1ec6   :  { %2401 = vrot.lane.b32.xlu0 %v2399_v24, %s10365_s21 }
0x1eca   :  { %1802 = vrot.lane.b32.xlu0 %v10892_v61, %s10365_s21 }
0x1f38   :  { %v2402_v26 = vpop.permute.xlu0 %2401 }
0x1f39   :  { %v11486_v44 = vadd.f32 %v2402_v26, %v2394_v62 }
0x1f3b   :  { %10074 = vtanh.f32 %v11486_v44 }
0x1f3c   :  { %v1803_v6 = vpop.permute.xlu0 %1802 }
0x1f48   :  { %v10075_v49 = vpop.eup %10074 }
0x1f49   :  { %2407 = vrot.lane.b32.xlu1 %v10075_v49, %s10364_s20 }
0x1f4d   :  { %1806 = vrot.lane.b32.xlu1 %v1805_v46, %s10364_s20 }
0x1f51   :  { %1794 = vrot.lane.b32.xlu1 %v10835_v0, %s10365_s21 }
0x1fbb   :  { %v2408_v41 = vpop.permute.xlu1 %2407 }
0x1fbc   :  { %v11494_v48 = vmul.f32 %v10073_v55, %v2408_v41 }
0x1fbe   :  { %2412 = vrot.lane.b32.xlu1 %v11494_v48, %s10366_s11  ;;  %v2489_v23 = vrot.slane %v11494_v48, 2 }
0x1fbf   :  { %v1807_v54 = vpop.permute.xlu1 %1806 }
0x1fc0   :  { %2490 = vrot.lane.b32.xlu0 %v2489_v23, %s10366_s11  ;;  %v11505_v0 = vsel %vm62_vm1, %v1803_v6, %v1807_v54 }
0x1fc3   :  { %v1795_v28 = vpop.permute.xlu1 %1794 }
0x1fc4   :  { %1798 = vrot.lane.b32.xlu0 %v1797_v51, %s10364_s20 }
0x2030   :  { %v2413_v55 = vpop.permute.xlu1 %2412 }
0x2032   :  { %v2491_v56 = vpop.permute.xlu0 %2490 }
0x2033   :  { %v2493_v22 = vsel %vm247_vm6, %v11505_v0, %v2491_v56 }
0x2034   :  { %9391 = vmatmul.mubr.msk.f32.vlgmr.msra.gmra.mxu1 %vm1861_vm15, %v2493_v22 }
0x2035   :  { %9421 = vmatpush3.msra.mxu1 %v11056_v57  ;;  %9444 = vmatprep.mubr.msk.f32.mxu1 %vm10363_vm0, %v13597_v1 }
0x2036   :  { %v1799_v61 = vpop.permute.xlu0 %1798  ;;  %9422 = vmatprep.subr.mxu1 %v13597_v1 }
0x2037   :  { %v11515_v27 = vsel %vm62_vm1, %v1795_v28, %v1799_v61  ;;  %9423 = vmatpush3.msra.mxu1 %v11061_v34 }
0x2038   :  { %v2415_v30 = vsel %vm247_vm6, %v11515_v27, %v2413_v55  ;;  %9424 = vmatprep.subr.mxu1 %v13597_v1 }
0x2039   :  { %9364 = vmatmul.mubr.msk.f32.vlgmr.msra.gmra.mxu0 %vm1861_vm15, %v2415_v30  ;;  %9425 = vmatpush3.msra.mxu1 %v11079_v60 }
0x203a   :  { %9394 = vmatpush3.msra.mxu0 %v11066_v36  ;;  %9426 = vmatprep.subr.mxu1 %v13597_v1 }
0x203b   :  { %9395 = vmatprep.subr.mxu0 %v13597_v1  ;;  %9427 = vmatpush3.msra.mxu1 %v11093_v7 }
0x203c   :  { %9396 = vmatpush3.msra.mxu0 %v11073_v38  ;;  %9428 = vmatprep.subr.mxu1 %v13597_v1 }
0x203d   :  { %9397 = vmatprep.subr.mxu0 %v13597_v1  ;;  %9429 = vmatpush3.msra.mxu1 %v11107_v59 }
0x203e   :  { %9398 = vmatpush3.msra.mxu0 %v11085_v4  ;;  %9430 = vmatprep.subr.mxu1 %v13597_v1 }
0x203f   :  { %9399 = vmatprep.subr.mxu0 %v13597_v1  ;;  %9431 = vmatpush3.msra.mxu1 %v11122_v37 }
0x2040   :  { %9400 = vmatpush3.msra.mxu0 %v11101_v58  ;;  %9432 = vmatprep.subr.mxu1 %v13597_v1 }
0x2041   :  { %9401 = vmatprep.subr.mxu0 %v13597_v1  ;;  %9433 = vmatpush3.msra.mxu1 %v11132_v19 }
0x2042   :  { %9402 = vmatpush3.msra.mxu0 %v11115_v10  ;;  %9434 = vmatprep.subr.mxu1 %v13597_v1 }
0x2043   :  { %9403 = vmatprep.subr.mxu0 %v13597_v1  ;;  %9435 = vmatpush3.msra.mxu1 %v11146_v14 }
0x2044   :  { %9404 = vmatpush3.msra.mxu0 %v11137_v13  ;;  %9436 = vmatprep.subr.mxu1 %v13597_v1 }
0x2045   :  { %9405 = vmatprep.subr.mxu0 %v13597_v1  ;;  %9437 = vmatpush3.msra.mxu1 %v11160_v16 }
0x2046   :  { %9406 = vmatpush3.msra.mxu0 %v11151_v15  ;;  %9438 = vmatprep.subr.mxu1 %v13597_v1 }
0x2047   :  { %9407 = vmatprep.subr.mxu0 %v13597_v1  ;;  %9439 = vmatpush3.msra.mxu1 %v11174_v32 }
0x2048   :  { %9408 = vmatpush3.msra.mxu0 %v11165_v31  ;;  %9440 = vmatprep.subr.mxu1 %v13597_v1 }
0x2049   :  { %9409 = vmatprep.subr.mxu0 %v13597_v1  ;;  %9417 = vmatprep.mubr.msk.f32.mxu0 %vm10363_vm0, %v13597_v1 }
0x204a   :  { %9410 = vmatpush3.msra.mxu0 %v11179_v33  ;;  %9441 = vmatpush3.msra.mxu1 %v11188_v35 }
0x204b   :  { %9411 = vmatprep.subr.mxu0 %v13597_v1  ;;  %9442 = vmatprep.subr.mxu1 %v13597_v1 }
0x204c   :  { %9412 = vmatpush3.msra.mxu0 %v11199_v11  ;;  %9443 = vmatpush3.msra.mxu1 %v11204_v20 }
0x204d   :  { %9413 = vmatprep.subr.mxu0 %v13597_v1  ;;  %9474 = vmatprep.subr.mxu1 %v13597_v1 }
0x204e   :  { %9414 = vmatpush3.msra.mxu0 %v11211_v63 }
0x204f   :  { %9415 = vmatprep.subr.mxu0 %v13597_v1 }
0x2050   :  { %9416 = vmatpush3.msra.mxu0 %v11220_v8 }
0x2051   :  { %9447 = vmatprep.subr.mxu0 %v13597_v1 }
0x20f4   :  { %v2563_v12 = vpop.f32.mrf.mxu1 }
0x20f5   :  { %v2568_v62 = vrot.slane %v2563_v12, 6 }
0x20f6   :  { %v9392_v24 = vpop.f32.mrf.mxu1 }
0x20f9   :  { %v2485_v26 = vpop.f32.mrf.mxu0 }
0x20fa   :  { %v2570_v49 = vsel %vm406_vm8, %v2485_v26, %v2568_v62 }
0x20fb   :  { %v2571_v46 = vadd.f32 %v2570_v49, %v11302_v52  ;;  %v9365_v41 = vpop.f32.mrf.mxu0 }
0x20fd   :  { %v8176_v51 = vmul.f32 -1.442695, %v2571_v46 }
0x20ff   :  { %10076 = vpow2.f32 %v8176_v51 }
0x210c   :  { %v10077_v54 = vpop.eup %10076 }
0x210d   :  { %v2575_v6 = vadd.f32 1.0, %v10077_v54 }
0x210f   :  { %10078 = vrcp.f32 %v2575_v6  ;;  %v11668_v6 = vld [vmem:[%s13591_s1 + $0xdc] sm:$0xff] }
0x211c   :  { %v10079_v56 = vpop.eup %10078 }
0x211d   :  { %v2578_v28 = vmul.f32 2.0, %v10079_v56  ;;  %v2580_v30 = vmul.f32 %v10079_v56, %v11486_v44 }
0x211f   :  { %v8177_v22 = vadd.f32 -1.0, %v2578_v28  ;;  %v11698_v28 = vld [vmem:[%s13591_s1 + $0x134] sm:$0xff] }
0x2121   :  { %2582 = vrot.lane.b32.xlu0 %v8177_v22, %s10364_s20  ;;  %v11706_v22 = vld [vmem:[%s13591_s1 + $0xc4] sm:$0xff] }
0x2193   :  { %v2583_v61 = vpop.permute.xlu0 %2582 }
0x2194   :  { %v2585_v55 = vmul.f32 %v10079_v56, %v2583_v61  ;;  %v11712_v61 = vld [vmem:[%s13591_s1 + $0x12c] sm:$0xff] }
0x2196   :  { %2587 = vrot.lane.b32.xlu1 %v2585_v55, %s10365_s21  ;;  %v11720_v55 = vld [vmem:[%s13591_s1 + $0xbc] sm:$0xff] }
0x2208   :  { %v2588_v12 = vpop.permute.xlu1 %2587 }
0x2209   :  { %v11573_v24 = vadd.f32 %v2588_v12, %v2580_v30  ;;  %v11726_v30 = vld [vmem:[%s13591_s1 + $0x124] sm:$0xff]  ;;  %v11734_v12 = vld [vmem:[%s13591_s1 + $0xb4] sm:$0xff] }
0x220b   :  { %10080 = vtanh.f32 %v11573_v24 }
0x2218   :  { %v10081_v62 = vpop.eup %10080 }
0x2219   :  { %2593 = vrot.lane.b32.xlu0 %v10081_v62, %s10364_s20  ;;  %v11748_v62 = vld [vmem:[%s13591_s1 + $0xac] sm:$0xff] }
0x228b   :  { %v2594_v26 = vpop.permute.xlu0 %2593 }
0x228c   :  { %v11577_v49 = vmul.f32 %v10079_v56, %v2594_v26  ;;  %v11692_v56 = vld [vmem:[%s13591_s1 + $0xcc] sm:$0xff]  ;;  %v11754_v26 = vld [vmem:[%s13591_s1 + $0x114] sm:$0xff] }
0x228e   :  { %2598 = vrot.lane.b32.xlu0 %v11577_v49, %s10366_s11  ;;  %v2675_v46 = vrot.slane %v11577_v49, 2 }
0x2290   :  { %2676 = vrot.lane.b32.xlu1 %v2675_v46, %s10366_s11 }
0x2300   :  { %v2599_v44 = vpop.permute.xlu0 %2598 }
0x2301   :  { %v2601_v41 = vsel %vm247_vm6, %v11505_v0, %v2599_v44  ;;  %v11762_v44 = vld [vmem:[%s13591_s1 + $0xa4] sm:$0xff] }
0x2302   :  { %9418 = vmatmul.mubr.msk.f32.vlgmr.msra.gmra.mxu0 %vm1861_vm15, %v2601_v41  ;;  %v2677_v51 = vpop.permute.xlu1 %2676  ;;  %v11768_v41 = vld [vmem:[%s13591_s1 + $0x10c] sm:$0xff] }
0x2303   :  { %v2679_v54 = vsel %vm247_vm6, %v11515_v27, %v2677_v51  ;;  %9448 = vmatpush3.msra.mxu0 %v11066_v36  ;;  %9471 = vmatprep.mubr.msk.f32.mxu0 %vm10363_vm0, %v13597_v1  ;;  %v11776_v51 = vld [vmem:[%s13591_s1 + $0x9c] sm:$0xff] }
0x2304   :  { %9445 = vmatmul.mubr.msk.f32.vlgmr.msra.gmra.mxu1 %vm1861_vm15, %v2679_v54  ;;  %9449 = vmatprep.subr.mxu0 %v13597_v1  ;;  %v11782_v54 = vld [vmem:[%s13591_s1 + $0x104] sm:$0xff] }
0x2305   :  { %9450 = vmatpush3.msra.mxu0 %v11073_v38  ;;  %9475 = vmatpush3.msra.mxu1 %v11056_v57 }
0x2306   :  { %9451 = vmatprep.subr.mxu0 %v13597_v1  ;;  %9476 = vmatprep.subr.mxu1 %v13597_v1 }
0x2307   :  { %9452 = vmatpush3.msra.mxu0 %v11085_v4  ;;  %9477 = vmatpush3.msra.mxu1 %v11061_v34 }
0x2308   :  { %9453 = vmatprep.subr.mxu0 %v13597_v1  ;;  %9478 = vmatprep.subr.mxu1 %v13597_v1 }
0x2309   :  { %9454 = vmatpush3.msra.mxu0 %v11101_v58  ;;  %9479 = vmatpush3.msra.mxu1 %v11079_v60 }
0x230a   :  { %9455 = vmatprep.subr.mxu0 %v13597_v1  ;;  %9480 = vmatprep.subr.mxu1 %v13597_v1 }
0x230b   :  { %9456 = vmatpush3.msra.mxu0 %v11115_v10  ;;  %9481 = vmatpush3.msra.mxu1 %v11093_v7 }
0x230c   :  { %9457 = vmatprep.subr.mxu0 %v13597_v1  ;;  %9482 = vmatprep.subr.mxu1 %v13597_v1 }
0x230d   :  { %9458 = vmatpush3.msra.mxu0 %v11137_v13  ;;  %9483 = vmatpush3.msra.mxu1 %v11107_v59 }
0x230e   :  { %9459 = vmatprep.subr.mxu0 %v13597_v1  ;;  %9484 = vmatprep.subr.mxu1 %v13597_v1 }
0x230f   :  { %9460 = vmatpush3.msra.mxu0 %v11151_v15  ;;  %9485 = vmatpush3.msra.mxu1 %v11122_v37 }
0x2310   :  { %9461 = vmatprep.subr.mxu0 %v13597_v1  ;;  %9486 = vmatprep.subr.mxu1 %v13597_v1 }
0x2311   :  { %9462 = vmatpush3.msra.mxu0 %v11165_v31  ;;  %9487 = vmatpush3.msra.mxu1 %v11132_v19 }
0x2312   :  { %9463 = vmatprep.subr.mxu0 %v13597_v1  ;;  %9488 = vmatprep.subr.mxu1 %v13597_v1 }
0x2313   :  { %9464 = vmatpush3.msra.mxu0 %v11179_v33  ;;  %9489 = vmatpush3.msra.mxu1 %v11146_v14 }
0x2314   :  { %9465 = vmatprep.subr.mxu0 %v13597_v1  ;;  %9490 = vmatprep.subr.mxu1 %v13597_v1 }
0x2315   :  { %9466 = vmatpush3.msra.mxu0 %v11199_v11  ;;  %9491 = vmatpush3.msra.mxu1 %v11160_v16 }
0x2316   :  { %9467 = vmatprep.subr.mxu0 %v13597_v1  ;;  %9492 = vmatprep.subr.mxu1 %v13597_v1 }
0x2317   :  { %9468 = vmatpush3.msra.mxu0 %v11211_v63  ;;  %9493 = vmatpush3.msra.mxu1 %v11174_v32 }
0x2318   :  { %9469 = vmatprep.subr.mxu0 %v13597_v1  ;;  %9494 = vmatprep.subr.mxu1 %v13597_v1 }
0x2319   :  { %9470 = vmatpush3.msra.mxu0 %v11220_v8  ;;  %9495 = vmatpush3.msra.mxu1 %v11188_v35 }
0x231a   :  { %9496 = vmatprep.subr.mxu1 %v13597_v1  ;;  %9498 = vmatprep.mubr.msk.f32.mxu1 %vm10363_vm0, %v13597_v1 }
0x231b   :  { %9497 = vmatpush3.msra.mxu1 %v11204_v20  ;;  %9501 = vmatprep.subr.mxu0 %v13597_v1 }
0x231c   :  { %9528 = vmatprep.subr.mxu1 %v13597_v1 }
0x23c2   :  { %v2671_v57 = vpop.f32.mrf.mxu0 }
0x23c4   :  { %v9419_v34 = vpop.f32.mrf.mxu0  ;;  %v2749_v36 = vpop.f32.mrf.mxu1 }
0x23c5   :  { %v2754_v38 = vrot.slane %v2749_v36, 6  ;;  %v11796_v34 = vld [vmem:[%s13591_s1 + $0xfc] sm:$0xff]  ;;  %v11804_v36 = vld [vmem:[%s13591_s1 + $0x8c] sm:$0xff] }
0x23c6   :  { %v9446_v60 = vpop.f32.mrf.mxu1 }
0x23c7   :  { %v2756_v4 = vsel %vm406_vm8, %v2671_v57, %v2754_v38  ;;  %v11790_v57 = vld [vmem:[%s13591_s1 + $0x94] sm:$0xff]  ;;  %v11818_v60 = vld [vmem:[%s13591_s1 + $0x84] sm:$0xff] }
0x23c8   :  { %v2757_v7 = vadd.f32 %v2756_v4, %v11302_v52  ;;  %v11810_v38 = vld [vmem:[%s13591_s1 + $0xf4] sm:$0xff]  ;;  %v11824_v4 = vld [vmem:[%s13591_s1 + $0xec] sm:$0xff] }
0x23ca   :  { %v8180_v58 = vmul.f32 -1.442695, %v2757_v7  ;;  %v11833_v7 = vld [vmem:[%s13591_s1 + $0xe4] sm:$0xff] }
0x23cc   :  { %10082 = vpow2.f32 %v8180_v58 }
0x23d9   :  { %v10083_v59 = vpop.eup %10082 }
0x23da   :  { %v2761_v10 = vadd.f32 1.0, %v10083_v59 }
0x23dc   :  { %10084 = vrcp.f32 %v2761_v10 }
0x23e9   :  { %v10085_v37 = vpop.eup %10084 }
0x23ea   :  { %v2764_v19 = vmul.f32 2.0, %v10085_v37  ;;  %v2766_v16 = vmul.f32 %v10085_v37, %v11573_v24  ;;  %v11740_v24 = vld [vmem:[%s13591_s1 + $0x11c] sm:$0xff] }
0x23ec   :  { %v8181_v13 = vadd.f32 -1.0, %v2764_v19 }
0x23ee   :  { %2768 = vrot.lane.b32.xlu1 %v8181_v13, %s10364_s20 }
0x2460   :  { %v2769_v14 = vpop.permute.xlu1 %2768 }
0x2461   :  { %v2771_v15 = vmul.f32 %v10085_v37, %v2769_v14 }
0x2463   :  { %2773 = vrot.lane.b32.xlu0 %v2771_v15, %s10365_s21 }
0x24d5   :  { %v2774_v31 = vpop.permute.xlu0 %2773 }
0x24d6   :  { %v11648_v32 = vadd.f32 %v2774_v31, %v2766_v16 }
0x24d8   :  { %10086 = vtanh.f32 %v11648_v32 }
0x24e5   :  { %v10087_v33 = vpop.eup %10086 }
0x24e6   :  { %2779 = vrot.lane.b32.xlu1 %v10087_v33, %s10364_s20 }
0x2558   :  { %v2780_v35 = vpop.permute.xlu1 %2779 }
0x2559   :  { %v11652_v11 = vmul.f32 %v10085_v37, %v2780_v35 }
0x255b   :  { %2784 = vrot.lane.b32.xlu1 %v11652_v11, %s10366_s11  ;;  %v2861_v20 = vrot.slane %v11652_v11, 2 }
0x255d   :  { %2862 = vrot.lane.b32.xlu0 %v2861_v20, %s10366_s11 }
0x25cd   :  { %v2785_v63 = vpop.permute.xlu1 %2784 }
0x25ce   :  { %v2787_v8 = vsel %vm247_vm6, %v11415_v39, %v2785_v63  ;;  %v11678_v39 = vld [vmem:[%s13591_s1 + $0xd4] sm:$0xff] }
0x25cf   :  { %9472 = vmatmul.mubr.msk.f32.vlgmr.msra.gmra.mxu0 %vm1861_vm15, %v2787_v8  ;;  %v2863_v0 = vpop.permute.xlu0 %2862 }
0x25d0   :  { %v2865_v27 = vsel %vm247_vm6, %v11425_v25, %v2863_v0  ;;  %9502 = vmatpush3.msra.mxu0 %v11668_v6  ;;  %9525 = vmatprep.mubr.msk.f32.mxu0 %vm10363_vm0, %v13597_v1  ;;  %v11684_v25 = vld [vmem:[%s13591_s1 + $0x13c] sm:$0xff] }
0x25d1   :  { %9499 = vmatmul.mubr.msk.f32.vlgmr.msra.gmra.mxu1 %vm1861_vm15, %v2865_v27  ;;  %9503 = vmatprep.subr.mxu0 %v13597_v1 }
0x25d2   :  { %9504 = vmatpush3.msra.mxu0 %v11678_v39  ;;  %9529 = vmatpush3.msra.mxu1 %v11684_v25 }
0x25d3   :  { %9505 = vmatprep.subr.mxu0 %v13597_v1  ;;  %9530 = vmatprep.subr.mxu1 %v13597_v1 }
0x25d4   :  { %9506 = vmatpush3.msra.mxu0 %v11692_v56  ;;  %9531 = vmatpush3.msra.mxu1 %v11698_v28 }
0x25d5   :  { %9507 = vmatprep.subr.mxu0 %v13597_v1  ;;  %9532 = vmatprep.subr.mxu1 %v13597_v1 }
0x25d6   :  { %9508 = vmatpush3.msra.mxu0 %v11706_v22  ;;  %9533 = vmatpush3.msra.mxu1 %v11712_v61 }
0x25d7   :  { %9509 = vmatprep.subr.mxu0 %v13597_v1  ;;  %9534 = vmatprep.subr.mxu1 %v13597_v1 }
0x25d8   :  { %9510 = vmatpush3.msra.mxu0 %v11720_v55  ;;  %9535 = vmatpush3.msra.mxu1 %v11726_v30 }
0x25d9   :  { %9511 = vmatprep.subr.mxu0 %v13597_v1  ;;  %9536 = vmatprep.subr.mxu1 %v13597_v1 }
0x25da   :  { %9512 = vmatpush3.msra.mxu0 %v11734_v12  ;;  %9537 = vmatpush3.msra.mxu1 %v11740_v24 }
0x25db   :  { %9513 = vmatprep.subr.mxu0 %v13597_v1  ;;  %9538 = vmatprep.subr.mxu1 %v13597_v1 }
0x25dc   :  { %9514 = vmatpush3.msra.mxu0 %v11748_v62  ;;  %9539 = vmatpush3.msra.mxu1 %v11754_v26 }
0x25dd   :  { %9515 = vmatprep.subr.mxu0 %v13597_v1  ;;  %9540 = vmatprep.subr.mxu1 %v13597_v1 }
0x25de   :  { %9516 = vmatpush3.msra.mxu0 %v11762_v44  ;;  %9541 = vmatpush3.msra.mxu1 %v11768_v41 }
0x25df   :  { %9517 = vmatprep.subr.mxu0 %v13597_v1  ;;  %9542 = vmatprep.subr.mxu1 %v13597_v1 }
0x25e0   :  { %9518 = vmatpush3.msra.mxu0 %v11776_v51  ;;  %9543 = vmatpush3.msra.mxu1 %v11782_v54 }
0x25e1   :  { %9519 = vmatprep.subr.mxu0 %v13597_v1  ;;  %9544 = vmatprep.subr.mxu1 %v13597_v1 }
0x25e2   :  { %9520 = vmatpush3.msra.mxu0 %v11790_v57  ;;  %9545 = vmatpush3.msra.mxu1 %v11796_v34 }
0x25e3   :  { %9521 = vmatprep.subr.mxu0 %v13597_v1  ;;  %9546 = vmatprep.subr.mxu1 %v13597_v1 }
0x25e4   :  { %9522 = vmatpush3.msra.mxu0 %v11804_v36  ;;  %9547 = vmatpush3.msra.mxu1 %v11810_v38 }
0x25e5   :  { %9523 = vmatprep.subr.mxu0 %v13597_v1  ;;  %9548 = vmatprep.subr.mxu1 %v13597_v1 }
0x25e6   :  { %9524 = vmatpush3.msra.mxu0 %v11818_v60  ;;  %9549 = vmatpush3.msra.mxu1 %v11824_v4 }
0x25e7   :  { %9550 = vmatprep.subr.mxu1 %v13597_v1  ;;  %9552 = vmatprep.mubr.msk.f32.mxu1 %vm10363_vm0, %v13597_v1 }
0x25e8   :  { %9551 = vmatpush3.msra.mxu1 %v11833_v7  ;;  %9555 = vmatprep.subr.mxu0 %v13597_v1 }
0x25e9   :  { %9582 = vmatprep.subr.mxu1 %v13597_v1 }
0x268f   :  { %v2857_v58 = vpop.f32.mrf.mxu0 }
0x2691   :  { %v9473_v59 = vpop.f32.mrf.mxu0  ;;  %v2935_v10 = vpop.f32.mrf.mxu1 }
0x2692   :  { %v2940_v37 = vrot.slane %v2935_v10, 6 }
0x2693   :  { %v9500_v19 = vpop.f32.mrf.mxu1 }
0x2694   :  { %v2942_v13 = vsel %vm406_vm8, %v2857_v58, %v2940_v37 }
0x2695   :  { %v2943_v14 = vadd.f32 %v2942_v13, %v11302_v52 }
0x2697   :  { %v8184_v15 = vmul.f32 -1.442695, %v2943_v14 }
0x2699   :  { %10088 = vpow2.f32 %v8184_v15 }
0x26a6   :  { %v10089_v16 = vpop.eup %10088 }
0x26a7   :  { %v2947_v31 = vadd.f32 1.0, %v10089_v16 }
0x26a9   :  { %10090 = vrcp.f32 %v2947_v31 }
0x26b6   :  { %v10091_v33 = vpop.eup %10090 }
0x26b7   :  { %v2950_v35 = vmul.f32 2.0, %v10091_v33  ;;  %v2952_v27 = vmul.f32 %v10091_v33, %v11648_v32 }
0x26b9   :  { %v8185_v63 = vadd.f32 -1.0, %v2950_v35 }
0x26bb   :  { %2954 = vrot.lane.b32.xlu0 %v8185_v63, %s10364_s20 }
0x272d   :  { %v2955_v8 = vpop.permute.xlu0 %2954 }
0x272e   :  { %v2957_v0 = vmul.f32 %v10091_v33, %v2955_v8 }
0x2730   :  { %2959 = vrot.lane.b32.xlu1 %v2957_v0, %s10365_s21 }
0x27a2   :  { %v2960_v59 = vpop.permute.xlu1 %2959 }
0x27a3   :  { %v11843_v58 = vadd.f32 %v2960_v59, %v2952_v27 }
0x27a5   :  { %10092 = vtanh.f32 %v11843_v58 }
0x27b2   :  { %v10093_v52 = vpop.eup %10092 }
0x27b3   :  { %2965 = vrot.lane.b32.xlu0 %v10093_v52, %s10364_s20 }
0x2825   :  { %v2966_v10 = vpop.permute.xlu0 %2965 }
0x2826   :  { %v11847_v37 = vmul.f32 %v10091_v33, %v2966_v10 }
0x2828   :  { %2970 = vrot.lane.b32.xlu0 %v11847_v37, %s10366_s11  ;;  %v3047_v19 = vrot.slane %v11847_v37, 2 }
0x282a   :  { %3048 = vrot.lane.b32.xlu1 %v3047_v19, %s10366_s11 }
0x289a   :  { %v2971_v32 = vpop.permute.xlu0 %2970 }
0x289b   :  { %v2973_v13 = vsel %vm247_vm6, %v11327_v53, %v2971_v32 }
0x289c   :  { %9526 = vmatmul.mubr.msk.f32.vlgmr.msra.gmra.mxu0 %vm1861_vm15, %v2973_v13  ;;  %v3049_v14 = vpop.permute.xlu1 %3048 }
0x289d   :  { %v3051_v15 = vsel %vm247_vm6, %v11337_v21, %v3049_v14  ;;  %9556 = vmatpush3.msra.mxu0 %v11668_v6  ;;  %9579 = vmatprep.mubr.msk.f32.mxu0 %vm10363_vm0, %v13597_v1 }
0x289e   :  { %9553 = vmatmul.mubr.msk.f32.vlgmr.msra.gmra.mxu1 %vm1861_vm15, %v3051_v15  ;;  %9557 = vmatprep.subr.mxu0 %v13597_v1 }
0x289f   :  { %9558 = vmatpush3.msra.mxu0 %v11678_v39  ;;  %9583 = vmatpush3.msra.mxu1 %v11684_v25 }
0x28a0   :  { %9559 = vmatprep.subr.mxu0 %v13597_v1  ;;  %9584 = vmatprep.subr.mxu1 %v13597_v1 }
0x28a1   :  { %9560 = vmatpush3.msra.mxu0 %v11692_v56  ;;  %9585 = vmatpush3.msra.mxu1 %v11698_v28  ;;  %v10242_v28 = vld [vmem:[%s13591_s1 + $0x144] sm:$0xf] }
0x28a2   :  { %9561 = vmatprep.subr.mxu0 %v13597_v1  ;;  %9586 = vmatprep.subr.mxu1 %v13597_v1 }
0x28a3   :  { %9562 = vmatpush3.msra.mxu0 %v11706_v22  ;;  %9587 = vmatpush3.msra.mxu1 %v11712_v61 }
0x28a4   :  { %9563 = vmatprep.subr.mxu0 %v13597_v1  ;;  %9588 = vmatprep.subr.mxu1 %v13597_v1 }
0x28a5   :  { %9564 = vmatpush3.msra.mxu0 %v11720_v55  ;;  %9589 = vmatpush3.msra.mxu1 %v11726_v30 }
0x28a6   :  { %9565 = vmatprep.subr.mxu0 %v13597_v1  ;;  %9590 = vmatprep.subr.mxu1 %v13597_v1 }
0x28a7   :  { %9566 = vmatpush3.msra.mxu0 %v11734_v12  ;;  %9591 = vmatpush3.msra.mxu1 %v11740_v24 }
0x28a8   :  { %9567 = vmatprep.subr.mxu0 %v13597_v1  ;;  %9592 = vmatprep.subr.mxu1 %v13597_v1 }
0x28a9   :  { %9568 = vmatpush3.msra.mxu0 %v11748_v62  ;;  %9593 = vmatpush3.msra.mxu1 %v11754_v26 }
0x28aa   :  { %9569 = vmatprep.subr.mxu0 %v13597_v1  ;;  %9594 = vmatprep.subr.mxu1 %v13597_v1 }
0x28ab   :  { %9570 = vmatpush3.msra.mxu0 %v11762_v44  ;;  %9595 = vmatpush3.msra.mxu1 %v11768_v41 }
0x28ac   :  { %9571 = vmatprep.subr.mxu0 %v13597_v1  ;;  %9596 = vmatprep.subr.mxu1 %v13597_v1 }
0x28ad   :  { %9572 = vmatpush3.msra.mxu0 %v11776_v51  ;;  %9597 = vmatpush3.msra.mxu1 %v11782_v54 }
0x28ae   :  { %9573 = vmatprep.subr.mxu0 %v13597_v1  ;;  %9598 = vmatprep.subr.mxu1 %v13597_v1 }
0x28af   :  { %9574 = vmatpush3.msra.mxu0 %v11790_v57  ;;  %9599 = vmatpush3.msra.mxu1 %v11796_v34 }
0x28b0   :  { %9575 = vmatprep.subr.mxu0 %v13597_v1  ;;  %9600 = vmatprep.subr.mxu1 %v13597_v1 }
0x28b1   :  { %9576 = vmatpush3.msra.mxu0 %v11804_v36  ;;  %9601 = vmatpush3.msra.mxu1 %v11810_v38 }
0x28b2   :  { %9577 = vmatprep.subr.mxu0 %v13597_v1  ;;  %9602 = vmatprep.subr.mxu1 %v13597_v1 }
0x28b3   :  { %9578 = vmatpush3.msra.mxu0 %v11818_v60  ;;  %9603 = vmatpush3.msra.mxu1 %v11824_v4 }
0x28b4   :  { %9604 = vmatprep.subr.mxu1 %v13597_v1  ;;  %9606 = vmatprep.mubr.msk.f32.mxu1 %vm10363_vm0, %v13597_v1 }
0x28b5   :  { %9605 = vmatpush3.msra.mxu1 %v11833_v7  ;;  %9609 = vmatprep.subr.mxu0 %v13597_v1 }
0x295c   :  { %v3043_v53 = vpop.f32.mrf.mxu0 }
0x295e   :  { %v9527_v21 = vpop.f32.mrf.mxu0  ;;  %v3121_v6 = vpop.f32.mrf.mxu1 }
0x295f   :  { %v3126_v39 = vrot.slane %v3121_v6, 6  ;;  %v3727_v6 = vld [vmem:[%s13593_s3 + $0xf8] sm:$0xff] }
0x2960   :  { %v9554_v25 = vpop.f32.mrf.mxu1 }
0x2961   :  { %v3128_v56 = vsel %vm406_vm8, %v3043_v53, %v3126_v39  ;;  %v3726_v39 = vld [vmem:[%s13593_s3 + $0xf0] sm:$0xff]  ;;  %v3724_v25 = vld [vmem:[%s13593_s3 + $0xe0] sm:$0xff] }
0x2962   :  { %v3129_v22 = vadd.f32 %v10242_v28, %v3128_v56  ;;  %v3722_v56 = vld [vmem:[%s13593_s3 + $0xd0] sm:$0xff] }
0x2964   :  { %v8188_v61 = vmul.f32 -1.442695, %v3129_v22 }
0x2966   :  { %10094 = vpow2.f32 %v8188_v61 }
0x2973   :  { %v10095_v55 = vpop.eup %10094 }
0x2974   :  { %v3133_v30 = vadd.f32 1.0, %v10095_v55 }
0x2976   :  { %10096 = vrcp.f32 %v3133_v30 }
0x2983   :  { %v10097_v12 = vpop.eup %10096 }
0x2984   :  { %v3136_v24 = vmul.f32 2.0, %v10097_v12  ;;  %v3138_v41 = vmul.f32 %v10097_v12, %v11843_v58 }
0x2986   :  { %v8189_v62 = vadd.f32 -1.0, %v3136_v24 }
0x2988   :  { %3140 = vrot.lane.b32.xlu1 %v8189_v62, %s10364_s20 }
0x29fa   :  { %v3141_v26 = vpop.permute.xlu1 %3140 }
0x29fb   :  { %v3143_v44 = vmul.f32 %v10097_v12, %v3141_v26 }
0x29fd   :  { %3145 = vrot.lane.b32.xlu0 %v3143_v44, %s10365_s21 }
0x2a6f   :  { %v3146_v51 = vpop.permute.xlu0 %3145 }
0x2a70   :  { %v3148_v54 = vadd.f32 %v3146_v51, %v3138_v41 }
0x2a72   :  { %10098 = vtanh.f32 %v3148_v54 }
0x2a7f   :  { %v10099_v57 = vpop.eup %10098 }
0x2a80   :  { %3151 = vrot.lane.b32.xlu1 %v10099_v57, %s10364_s20 }
0x2af2   :  { %v3152_v34 = vpop.permute.xlu1 %3151 }
0x2af3   :  { %v11920_v36 = vmul.f32 %v10097_v12, %v3152_v34 }
0x2af5   :  { %3156 = vrot.lane.b32.xlu1 %v11920_v36, %s10366_s11  ;;  %v3233_v38 = vrot.slane %v11920_v36, 2 }
0x2af7   :  { %3234 = vrot.lane.b32.xlu0 %v3233_v38, %s10366_s11 }
0x2b67   :  { %v3157_v60 = vpop.permute.xlu1 %3156 }
0x2b68   :  { %v3159_v4 = vsel %vm247_vm6, %v11233_v43, %v3157_v60 }
0x2b69   :  { %9580 = vmatmul.mubr.msk.f32.vlgmr.msra.gmra.mxu0 %vm1861_vm15, %v3159_v4  ;;  %v3235_v7 = vpop.permute.xlu0 %3234  ;;  %v1834_v4 = vsel %vm62_vm1, %v11229_v40, %v11238_v42 }
0x2b6a   :  { %v3237_v16 = vsel %vm247_vm6, %v11245_v18, %v3235_v7  ;;  %9625 = vmatprep.mubr.msk.f32.mxu0 %vm10363_vm0, %v13597_v1  ;;  %9610 = vmatpush3.msra.mxu0 %v3727_v6 }
0x2b6b   :  { %9607 = vmatmul.mubr.msk.f32.vlgmr.msra.gmra.mxu1 %vm1861_vm15, %v3237_v16  ;;  %9611 = vmatprep.subr.mxu0 %v13597_v1 }
0x2b6c   :  { %9612 = vmatpush3.msra.mxu0 %v3726_v39 }
0x2b6d   :  { %9613 = vmatprep.subr.mxu0 %v13597_v1 }
0x2c29   :  { %v3229_v31 = vpop.f32.mrf.mxu0 }
0x2c2b   :  { %v9581_v33 = vpop.f32.mrf.mxu0  ;;  %v3307_v35 = vpop.f32.mrf.mxu1 }
0x2c2c   :  { %v3312_v63 = vrot.slane %v3307_v35, 6 }
0x2c2d   :  { %v9608_v8 = vpop.f32.mrf.mxu1 }
0x2c2e   :  { %v3314_v0 = vsel %vm406_vm8, %v3229_v31, %v3312_v63 }
0x2c2f   :  { %v3315_v27 = vadd.f32 %v10242_v28, %v3314_v0  ;;  %v3721_v28 = vld [vmem:[%s13593_s3 + $0xc8] sm:$0xff] }
0x2c31   :  { %v8192_v43 = vmul.f32 -1.442695, %v3315_v27 }
0x2c33   :  { %10100 = vpow2.f32 %v8192_v43 }
0x2c40   :  { %v10101_v59 = vpop.eup %10100 }
0x2c41   :  { %v3319_v58 = vadd.f32 1.0, %v10101_v59 }
0x2c43   :  { %10102 = vrcp.f32 %v3319_v58 }
0x2c50   :  { %v10103_v52 = vpop.eup %10102 }
0x2c51   :  { %v3322_v18 = vmul.f32 2.0, %v10103_v52  ;;  %v3324_v14 = vmul.f32 %v10103_v52, %v3148_v54 }
0x2c53   :  { %v8193_v10 = vadd.f32 -1.0, %v3322_v18 }
0x2c55   :  { %3326 = vrot.lane.b32.xlu0 %v8193_v10, %s10364_s20 }
0x2cc7   :  { %v3327_v32 = vpop.permute.xlu0 %3326 }
0x2cc8   :  { %v3329_v13 = vmul.f32 %v10103_v52, %v3327_v32 }
0x2cca   :  { %3331 = vrot.lane.b32.xlu1 %v3329_v13, %s10365_s21 }
0x2cce   :  { %3350 = vrot.lane.b32.xlu1 %v11406_v29, %s10365_s21 }
0x2cd2   :  { %3357 = vrot.lane.b32.xlu1 %v11494_v48, %s10365_s21 }
0x2cd6   :  { %3341 = vrot.lane.b32.xlu1 %v11318_v47, %s10365_s21 }
0x2cda   :  { %3367 = vrot.lane.b32.xlu1 %v2861_v20, %s10364_s20  ;;  %v3725_v20 = vld [vmem:[%s13593_s3 + $0xe8] sm:$0xff] }
0x2cdb   :  { %9614 = vmatpush3.msra.mxu0 %v3725_v20 }
0x2cdc   :  { %9615 = vmatprep.subr.mxu0 %v13597_v1 }
0x2cdd   :  { %9616 = vmatpush3.msra.mxu0 %v3724_v25 }
0x2cde   :  { %9617 = vmatprep.subr.mxu0 %v13597_v1 }
0x2d3c   :  { %v3332_v15 = vpop.permute.xlu1 %3331 }
0x2d3d   :  { %v3334_v53 = vadd.f32 %v3332_v15, %v3324_v14 }
0x2d3f   :  { %10104 = vtanh.f32 %v3334_v53 }
0x2d40   :  { %v3351_v30 = vpop.permute.xlu1 %3350 }
0x2d4c   :  { %v10105_v21 = vpop.eup %10104 }
0x2d4d   :  { %3337 = vrot.lane.b32.xlu0 %v10105_v21, %s10364_s20 }
0x2d51   :  { %3353 = vrot.lane.b32.xlu0 %v3233_v38, %s10364_s20 }
0x2d55   :  { %3360 = vrot.lane.b32.xlu0 %v3047_v19, %s10364_s20  ;;  %v3723_v19 = vld [vmem:[%s13593_s3 + $0xd8] sm:$0xff] }
0x2d56   :  { %9618 = vmatpush3.msra.mxu0 %v3723_v19 }
0x2d57   :  { %9619 = vmatprep.subr.mxu0 %v13597_v1 }
0x2d58   :  { %9620 = vmatpush3.msra.mxu0 %v3722_v56 }
0x2d59   :  { %3364 = vrot.lane.b32.xlu0 %v11577_v49, %s10365_s21  ;;  %9621 = vmatprep.subr.mxu0 %v13597_v1  ;;  %v3358_v49 = vpop.permute.xlu1 %3357 }
0x2d5a   :  { %9622 = vmatpush3.msra.mxu0 %v3721_v28 }
0x2d5b   :  { %9623 = vmatprep.subr.mxu0 %v13597_v1 }
0x2d5d   :  { %3371 = vrot.lane.b32.xlu0 %v11652_v11, %s10365_s21  ;;  %v3720_v11 = vld [vmem:[%s13593_s3 + $0xc0] sm:$0xff]  ;;  %v3342_v44 = vpop.permute.xlu1 %3341 }
0x2d5e   :  { %9624 = vmatpush3.msra.mxu0 %v3720_v11 }
0x2dbf   :  { %v3338_v22 = vpop.permute.xlu0 %3337 }
0x2dc0   :  { %v3340_v61 = vmul.f32 %v10103_v52, %v3338_v22 }
0x2dc2   :  { %v3345_v55 = vrot.slane %v3340_v61, 2  ;;  %3392 = vrot.lane.b32.xlu0 %v3340_v61, %s10365_s21 }
0x2dc4   :  { %3346 = vrot.lane.b32.xlu1 %v3345_v55, %s10364_s20 }
0x2dc6   :  { %3378 = vrot.lane.b32.xlu0 %v11847_v37, %s10365_s21  ;;  %v3354_v37 = vpop.permute.xlu0 %3353 }
0x2dc7   :  { %v3356_v47 = vsel %vm62_vm1, %v3351_v30, %v3354_v37 }
0x2dc8   :  { %3374 = vrot.lane.b32.xlu1 %v2675_v46, %s10364_s20  ;;  %v10367_v46 = vmov 1966171168  }
0x2dc9   :  { %v3404_v24 = vunpack.c.l.s4 %v10367_v46 }
0x2dca   :  { %3385 = vrot.lane.b32.xlu0 %v11920_v36, %s10365_s21  ;;  %v3361_v12 = vpop.permute.xlu0 %3360 }
0x2dcb   :  { %v3405_v26 = vunpack.c.0.s8 %v3404_v24 }
0x2dcc   :  { %3381 = vrot.lane.b32.xlu1 %v2489_v23, %s10364_s20 }
0x2dcd   :  { %v12005_v48 = vsub.s32 %v3405_v26, %v10400_v2 }
0x2dce   :  { %3395 = vrot.lane.b32.xlu0 %v2117_v9, %s10364_s20  ;;  %v3365_v62 = vpop.permute.xlu0 %3364  ;;  %v3368_v9 = vpop.permute.xlu1 %3367 }
0x2dcf   :  { %v3434_v41 = vrot.slane %v3356_v47, %v12005_v48  ;;  %v3370_v16 = vsel %vm62_vm1, %v3365_v62, %v3368_v9 }
0x2dd0   :  { %3388 = vrot.lane.b32.xlu1 %v2303_v45, %s10364_s20  ;;  %v3363_v45 = vsel %vm62_vm1, %v3358_v49, %v3361_v12  ;;  %v3480_v0 = vrot.slane %v3370_v16, %v12005_v48 }
0x2dd1   :  { %v3435_v34 = vcombine.high %v3434_v41, %v3434_v41  ;;  %v3457_v7 = vrot.slane %v3363_v45, %v12005_v48  ;;  %v3442_v35 = vrot.slane %v3434_v41, %v12005_v48 }
0x2dd2   :  { %v3372_v23 = vpop.permute.xlu0 %3371  ;;  %v3481_v14 = vcombine.high %v3480_v0, %v3480_v0  ;;  %v3488_v39 = vrot.slane %v3480_v0, %v12005_v48 }
0x2dd3   :  { %v3449_v8 = vrot.slane %v3435_v34, %v12005_v48  ;;  %v3458_v43 = vcombine.high %v3457_v7, %v3457_v7  ;;  %v3591_v52 = vrot.slane %v3442_v35, %v10403_v3  ;;  %v3465_v18 = vrot.slane %v3457_v7, %v12005_v48 }
0x2dd4   :  { %v3495_v30 = vrot.slane %v3481_v14, %v12005_v48 }
0x2dd5   :  { %v3595_v13 = vrot.slane %v3449_v8, %v10403_v3  ;;  %v3472_v6 = vrot.slane %v3458_v43, %v12005_v48  ;;  %v3601_v61 = vrot.slane %v3465_v18, %v10403_v3 }
0x2dd7   :  { %v3605_v24 = vrot.slane %v3472_v6, %v10403_v3  ;;  %v3813_v6 = vld [vmem:[%s13593_s3 + $0x58] sm:$0xff] }
0x2dd8   :  { %9628 = vmatprep.subr.mxu1 %v3813_v6 }
0x2dd9   :  { %9629 = vmatpush3.msra.mxu1 %v3813_v6 }
0x2e34   :  { %v3393_v29 = vpop.permute.xlu0 %3392 }
0x2e36   :  { %v3347_v51 = vpop.permute.xlu1 %3346 }
0x2e37   :  { %v3349_v54 = vsel %vm62_vm1, %v3342_v44, %v3347_v51  ;;  %v3399_v57 = vsel %vm62_vm1, %v3393_v29, %v3347_v51 }
0x2e38   :  { %v3409_v36 = vrot.slane %v3349_v54, %v12005_v48  ;;  %v3717_v38 = vrot.slane %v3399_v57, 6  ;;  %v3379_v60 = vpop.permute.xlu0 %3378  ;;  %v3615_v54 = vrot.slane %v3495_v30, %v10403_v3  ;;  %v3807_v30 = vld [vmem:[%s13593_s3 + $0x28] sm:$0xff] }
0x2e3a   :  { %v3375_v31 = vpop.permute.xlu1 %3374  ;;  %v3719_v33 = vsel %vm406_vm8, %v1834_v4, %v3717_v38  ;;  %v3410_v27 = vcombine.high %v3409_v36, %v3409_v36  ;;  %v3417_v59 = vrot.slane %v3409_v36, %v12005_v48 }
0x2e3b   :  { %v3377_v63 = vsel %vm62_vm1, %v3372_v23, %v3375_v31  ;;  %9626 = vmatmul.mubr.msk.f32.vlgmr.msra.gmra.mxu0 %vm247_vm6, %v3719_v33  ;;  %v3611_v23 = vrot.slane %v3488_v39, %v10403_v3  ;;  %v3821_v39 = vld [vmem:[%s13593_s3 + $0x98] sm:$0xff] }
0x2e3c   :  { %v3503_v40 = vrot.slane %v3377_v63, %v12005_v48  ;;  %v3386_v42 = vpop.permute.xlu0 %3385  ;;  %v3424_v15 = vrot.slane %v3410_v27, %v12005_v48  ;;  %v3658_v19 = vsel %vm327_vm7, %v3417_v59, %v3591_v52  ;;  %9647 = vmatprep.subr.mxu0 %v3821_v39 }
0x2e3d   :  { %v3660_v62 = vsel %vm406_vm8, %v3658_v19, %v3601_v61  ;;  %9648 = vmatpush3.msra.mxu0 %v3821_v39  ;;  %v3811_v19 = vld [vmem:[%s13593_s3 + $0x48] sm:$0xff]  ;;  %v3817_v61 = vld [vmem:[%s13593_s3 + $0x78] sm:$0xff] }
0x2e3e   :  { %v3382_v58 = vpop.permute.xlu1 %3381  ;;  %v3504_v10 = vcombine.high %v3503_v40, %v3503_v40  ;;  %v3511_v20 = vrot.slane %v3503_v40, %v12005_v48  ;;  %v3659_v12 = vsel %vm327_vm7, %v3424_v15, %v3595_v13  ;;  %v3663_v36 = vsel %vm3662_vm2, %v3660_v62, %v3611_v23  ;;  %v3814_v62 = vld [vmem:[%s13593_s3 + $0x60] sm:$0xff] }
0x2e3f   :  { %v3384_v32 = vsel %vm62_vm1, %v3379_v60, %v3382_v58  ;;  %v3661_v51 = vsel %vm406_vm8, %v3659_v12, %v3605_v24  ;;  %vm3674_vm7 = vcmask 1046528   ;;  %v3815_v12 = vld [vmem:[%s13593_s3 + $0x68] sm:$0xff] }
0x2e40   :  { %v3526_v53 = vrot.slane %v3384_v32, %v12005_v48  ;;  %v3396_v21 = vpop.permute.xlu0 %3395  ;;  %v3518_v55 = vrot.slane %v3504_v10, %v12005_v48  ;;  %v3621_v26 = vrot.slane %v3511_v20, %v10403_v3  ;;  %v3664_v31 = vsel %vm3662_vm2, %v3661_v51, %v3615_v54  ;;  %v3812_v20 = vld [vmem:[%s13593_s3 + $0x50] sm:$0xff]  ;;  %v8194_v54 = vld [vmem:[%s13591_s1 + $0x148] ss:$0 sm:$0xff] }
0x2e41   :  { %v3398_v25 = vsel %vm62_vm1, %v3393_v29, %v3396_v21  ;;  %9630 = vmatprep.subr.mxu1 %v3812_v20 }
0x2e42   :  { %v3527_v56 = vcombine.high %v3526_v53, %v3526_v53  ;;  %v3534_v28 = vrot.slane %v3526_v53, %v12005_v48  ;;  %v3572_v11 = vrot.slane %v3398_v25, %v12005_v48  ;;  %v3389_v22 = vpop.permute.xlu1 %3388  ;;  %v3625_v41 = vrot.slane %v3518_v55, %v10403_v3  ;;  %v3820_v25 = vld [vmem:[%s13593_s3 + $0x90] sm:$0xff]  ;;  %9631 = vmatpush3.msra.mxu1 %v3812_v20 }
0x2e43   :  { %v3391_v37 = vsel %vm62_vm1, %v3386_v42, %v3389_v22  ;;  %v3666_v4 = vsel %vm3665_vm3, %v3663_v36, %v3621_v26  ;;  %9649 = vmatprep.subr.mxu0 %v3820_v25  ;;  %9632 = vmatprep.subr.mxu1 %v3811_v19  ;;  %v3809_v22 = vld [vmem:[%s13593_s3 + $0x38] sm:$0xff]  ;;  %v3808_v55 = vld [vmem:[%s13593_s3 + $0x30] sm:$0xff]  ;;  %v10368_v26 = vmov 8   ;;  %v8195_v36 = vld [vmem:[%s13591_s1 + $0x149] ss:$0 sm:$0xff] }
0x2e44   :  { %v3541_v49 = vrot.slane %v3527_v56, %v12005_v48  ;;  %v3573_v46 = vcombine.high %v3572_v11, %v3572_v11  ;;  %v3549_v44 = vrot.slane %v3391_v37, %v12005_v48  ;;  %v3631_v47 = vrot.slane %v3534_v28, %v10403_v3  ;;  %v3819_v56 = vld [vmem:[%s13593_s3 + $0x88] sm:$0xff]  ;;  %9650 = vmatpush3.msra.mxu0 %v3820_v25  ;;  %v3810_v28 = vld [vmem:[%s13593_s3 + $0x40] sm:$0xff]  ;;  %v3816_v37 = vld [vmem:[%s13593_s3 + $0x70] sm:$0xff] }
0x2e45   :  { %v3580_v9 = vrot.slane %v3572_v11, %v12005_v48  ;;  %v3667_v63 = vsel %vm3665_vm3, %v3664_v31, %v3625_v41  ;;  %v3818_v11 = vld [vmem:[%s13593_s3 + $0x80] sm:$0xff]  ;;  %9651 = vmatprep.subr.mxu0 %v3819_v56  ;;  %9633 = vmatpush3.msra.mxu1 %v3811_v19  ;;  %v12150_v31 = vld [vmem:[%s13593_s3 + $0x18] sm:$0xff] }
0x2e46   :  { %v3550_v29 = vcombine.high %v3549_v44, %v3549_v44  ;;  %v3557_v45 = vrot.slane %v3549_v44, %v12005_v48  ;;  %v3635_v57 = vrot.slane %v3541_v49, %v10403_v3  ;;  %v3587_v34 = vrot.slane %v3573_v46, %v12005_v48  ;;  %9652 = vmatpush3.msra.mxu0 %v3819_v56  ;;  %v3806_v46 = vld [vmem:[%s13593_s3 + $0x20] sm:$0xff] }
0x2e47   :  { %v3651_v7 = vrot.slane %v3580_v9, %v10403_v3  ;;  %v3669_v16 = vsel %vm3668_vm4, %v3666_v4, %v3631_v47  ;;  %9634 = vmatprep.subr.mxu1 %v3810_v28  ;;  %9653 = vmatprep.subr.mxu0 %v3818_v11  ;;  %v10243_v44 = vld [vmem:[%s13590_s0] sm:$0x3] }
0x2e48   :  { %v3564_v38 = vrot.slane %v3550_v29, %v12005_v48  ;;  %v3641_v60 = vrot.slane %v3557_v45, %v10403_v3  ;;  %v3655_v0 = vrot.slane %v3587_v34, %v10403_v3  ;;  %v3670_v27 = vsel %vm3668_vm4, %v3667_v63, %v3635_v57  ;;  %9635 = vmatpush3.msra.mxu1 %v3810_v28 }
0x2e49   :  { %9654 = vmatpush3.msra.mxu0 %v3818_v11  ;;  %9636 = vmatprep.subr.mxu1 %v3809_v22 }
0x2e4a   :  { %v3645_v33 = vrot.slane %v3564_v38, %v10403_v3  ;;  %v3672_v35 = vsel %vm3671_vm9, %v3669_v16, %v3641_v60  ;;  %9655 = vmatprep.subr.mxu0 %v3817_v61  ;;  %9637 = vmatpush3.msra.mxu1 %v3809_v22 }
0x2e4b   :  { %v3675_v8 = vsel %vm3674_vm7, %v3672_v35, %v3651_v7  ;;  %9656 = vmatpush3.msra.mxu0 %v3817_v61  ;;  %9638 = vmatprep.subr.mxu1 %v3808_v55  ;;  %v12160_v35 = vld [vmem:[%s13593_s3 + $0x10] sm:$0xff] }
0x2e4c   :  { %v3677_v40 = vsel %vm247_vm6, %v3675_v8, 0.0  ;;  %v3673_v42 = vsel %vm3671_vm9, %v3670_v27, %v3645_v33  ;;  %9657 = vmatprep.subr.mxu0 %v3816_v37  ;;  %9639 = vmatpush3.msra.mxu1 %v3808_v55  ;;  %v8196_v33 = vld [vmem:[%s13593_s3 + $0x141] ss:$0 sm:$0xff] }
0x2e4d   :  { %3678 = vadd.xlane.f32.xlu1 %v3677_v40  ;;  %v3676_v43 = vsel %vm3674_vm7, %v3673_v42, %v3655_v0  ;;  %9658 = vmatpush3.msra.mxu0 %v3816_v37  ;;  %v12178_v0 = vld [vmem:[%s13593_s3] sm:$0xff]  ;;  %v4010_v40 = vadd.s32 1, %v10456_v17  ;;  %v4004_v42 = vadd.s32 24, %v10400_v2 }
0x2e4e   :  { %v3680_v59 = vsel %vm247_vm6, %v3676_v43, 0.0  ;;  %9640 = vmatprep.subr.mxu1 %v3807_v30  ;;  %9659 = vmatprep.subr.mxu0 %v3815_v12 }
0x2e4f   :  { %3681 = vadd.xlane.f32.xlu0 %v3680_v59  ;;  %9641 = vmatpush3.msra.mxu1 %v3807_v30  ;;  %v4011_v59 = vmul.u32 4, %v4010_v40 }
0x2e50   :  { %9660 = vmatpush3.msra.mxu0 %v3815_v12  ;;  %9642 = vmatprep.subr.mxu1 %v3806_v46 }
0x2e51   :  { %9643 = vmatpush3.msra.mxu1 %v3806_v46  ;;  %9661 = vmatprep.subr.mxu0 %v3814_v62  ;;  %vm4015_vm11 = vcmp.lt.s32.totalorder %v4004_v42, %v4011_v59  ;;  %v4028_v46 = vmul.u32 4, %v10400_v2 }
0x2e52   :  { %9666 = vmatprep.subr.mxu1 %v13597_v1  ;;  %9662 = vmatpush3.msra.mxu0 %v3814_v62 }
0x2e53   :  { %10009 = vset.pattern.permute.xlu0 %v10368_v26 }
0x2ed6   :  { %v3679_v58 = vpop.xlane.xlu1 %3678 }
0x2ed7   :  { %v3684_v52 = vmul.f32 0.015625, %v3679_v58  ;;  %v4003_v58 = vadd.s32 16, %v10400_v2 }
0x2ed8   :  { %v3682_v18 = vpop.xlane.xlu0 %3681 }
0x2ed9   :  { %v12075_v10 = vsub.f32 %v3675_v8, %v3684_v52  ;;  %v3685_v32 = vmul.f32 0.015625, %v3682_v18  ;;  %v12171_v8 = vld [vmem:[%s13593_s3 + $0x8] sm:$0xff]  ;;  %v13595_v18 = vmov 1.0   ;;  %vm4014_vm14 = vcmp.lt.s32.totalorder %v4003_v58, %v4011_v59  ;;  %v10294_v52 = vld [vmem:[#allocation2 + $0xb8] sm:$0xff] }
0x2edb   :  { %v12077_v13 = vsub.f32 %v3676_v43, %v3685_v32  ;;  %v3688_v14 = vmul.f32 %v12075_v10, %v12075_v10  ;;  %v4005_v43 = vmul.u32 4, %v10456_v17 }
0x2edd   :  { %v3690_v15 = vsel %vm247_vm6, %v3688_v14, 0.0  ;;  %v3689_v53 = vmul.f32 %v12077_v13, %v12077_v13  ;;  %vm4009_vm10 = vcmp.ge.s32.totalorder %v4004_v42, %v4005_v43  ;;  %vm4008_vm13 = vcmp.ge.s32.totalorder %v4003_v58, %v4005_v43 }
0x2ede   :  { %3691 = vadd.xlane.f32.xlu0 %v3690_v15  ;;  %vm12191_vm12 = vmand %vm4009_vm10, %vm4015_vm11  ;;  %vm4006_vm10 = vcmp.ge.s32.totalorder %v10400_v2, %v4005_v43  ;;  %vm4012_vm11 = vcmp.lt.s32.totalorder %v10400_v2, %v4011_v59 }
0x2edf   :  { %v3693_v21 = vsel %vm247_vm6, %v3689_v53, 0.0  ;;  %vm12202_vm2 = vmand %vm4008_vm13, %vm4014_vm14 }
0x2ee0   :  { %3694 = vadd.xlane.f32.xlu1 %v3693_v21  ;;  %vm12224_vm13 = vmand %vm4006_vm10, %vm4012_vm11  ;;  %vm4295_vm11 = vcmask 64512  }
0x2ef4   :  { %3979 = vperm.xlu0 %10009, %v10243_v44  }
0x2efb   :  { %v3802_v49 = vpop.f32.mrf.mxu0 }
0x2efc   :  { %v12165_v63 = vadd.f32 %v8196_v33, %v3802_v49 }
0x2efd   :  { %v9627_v24 = vpop.f32.mrf.mxu0 }
0x2efe   :  { %v13599_v27 = vrot.slane %v12165_v63, 2  ;;  %v4030_v24 = vadd.s32 1, %v10400_v2 }
0x2f00   :  { %v4031_v62 = vmul.u32 4, %v4030_v24 }
0x2f67   :  { %v3692_v23 = vpop.xlane.xlu0 %3691 }
0x2f68   :  { %v3696_v47 = vmul.f32 0.015625, %v3692_v23 }
0x2f69   :  { %v3695_v9 = vpop.xlane.xlu1 %3694 }
0x2f6a   :  { %v3698_v41 = vadd.f32 1e-05, %v3696_v47  ;;  %v3697_v29 = vmul.f32 0.015625, %v3695_v9 }
0x2f6c   :  { %10106 = vrsqrt.f32 %v3698_v41  ;;  %v3699_v45 = vadd.f32 1e-05, %v3697_v29 }
0x2f6e   :  { %10108 = vrsqrt.f32 %v3699_v45 }
0x2f6f   :  { %v3980_v15 = vpop.permute.xlu0 %3979 }
0x2f70   :  { %vm3981_vm14 = vcmp.lt.s32.totalorder %v10456_v17, %v3980_v15 }
0x2f71   :  { %v8202_v53 = vsel %vm3981_vm14, 1.0, %v13597_v1 }
0x2f72   :  { %v8203_v21 = vadd.f32 -1.0, %v8202_v53 }
0x2f74   :  { %v3985_v6 = vmul.f32 1e+09, %v8203_v21 }
0x2f76   :  { %v3989_v39 = vrot.slane %v3985_v6, %v10403_v3  ;;  %v3996_v20 = vrot.slane %v3985_v6, %v10406_v5 }
0x2f78   :  { %3991 = vbcast.lane.b32.xlu1 %v3989_v39, 256 }
0x2f79   :  { %v10107_v51 = vpop.eup %10106 }
0x2f7a   :  { %v3702_v57 = vmul.f32 %v10107_v51, %v12075_v10  ;;  %v4002_v10 = vadd.s32 8, %v10400_v2 }
0x2f7b   :  { %v10109_v34 = vpop.eup %10108 }
0x2f7c   :  { %v3703_v38 = vmul.f32 %v10109_v34, %v12077_v13  ;;  %v3708_v60 = vmul.f32 %v8194_v54, %v3702_v57  ;;  %vm4007_vm3 = vcmp.ge.s32.totalorder %v4002_v10, %v4005_v43  ;;  %vm4013_vm4 = vcmp.lt.s32.totalorder %v4002_v10, %v4011_v59  ;;  %3998 = vbcast.lane.b32.xlu1 %v3996_v20, 256 }
0x2f7d   :  { %vm12212_vm9 = vmand %vm4007_vm3, %vm4013_vm4  ;;  %vm4029_vm3 = vcmp.ge.s32.totalorder %v10456_v17, %v4028_v46  ;;  %vm4032_vm4 = vcmp.lt.s32.totalorder %v10456_v17, %v4031_v62 }
0x2f7e   :  { %v3709_v4 = vmul.f32 %v8194_v54, %v3703_v38  ;;  %v3714_v7 = vadd.f32 %v8195_v36, %v3708_v60  ;;  %vm12258_vm10 = vmand %vm4029_vm3, %vm4032_vm4 }
0x2f7f   :  { %9688 = vmatprep.subr.msk.mxu0 %vm12258_vm10, %v13595_v18 }
0x2f80   :  { %v3715_v16 = vadd.f32 %v8195_v36, %v3709_v4  ;;  %9644 = vmatprep.mubr.msk.f32.mxu1 %vm247_vm6, %v3714_v7  ;;  %9663 = vmatprep.mubr.msk.f32.mxu0 %vm247_vm6, %v3714_v7 }
0x2f82   :  { %9645 = vmatmul.mubr.msk.f32.vlgmr.msra.gmra.mxu1 %vm247_vm6, %v3715_v16  ;;  %9664 = vmatmul.mubr.msk.f32.vlgmr.msra.gmra.mxu0 %vm247_vm6, %v3715_v16 }
0x2f83   :  { %9667 = vmatpush3.msra.mxu1 %v12150_v31  ;;  %9674 = vmatprep.mubr.msk.f32.mxu1 %vm10363_vm0, %v13597_v1 }
0x2f84   :  { %9668 = vmatprep.subr.mxu1 %v13597_v1  ;;  %9689 = vmatpush3.msk.msra.mxu0 %vm12258_vm10, %v13595_v18 }
0x2f85   :  { %9669 = vmatpush3.msra.mxu1 %v12160_v35 }
0x2f86   :  { %9670 = vmatprep.subr.mxu1 %v13597_v1 }
0x2f87   :  { %9671 = vmatpush3.msra.mxu1 %v12171_v8 }
0x2f88   :  { %9672 = vmatprep.subr.mxu1 %v13597_v1 }
0x2f89   :  { %9673 = vmatpush3.msra.mxu1 %v12178_v0 }
0x2f8a   :  { %9675 = vmatmul.mubr.msk.f32.vlgmr.msra.gmra.mxu1 %vm62_vm1, %v13599_v27  ;;  %9677 = vmatprep.subr.msk.mxu1 %vm12191_vm12, %v13595_v18 }
0x2f8b   :  { %9678 = vmatpush3.msk.msra.mxu1 %vm12191_vm12, %v13595_v18 }
0x2f8c   :  { %9679 = vmatprep.subr.msk.mxu1 %vm12202_vm2, %v13595_v18 }
0x2f8d   :  { %9680 = vmatpush3.msk.msra.mxu1 %vm12202_vm2, %v13595_v18 }
0x2f8e   :  { %9681 = vmatprep.subr.msk.mxu1 %vm12212_vm9, %v13595_v18 }
0x2f8f   :  { %9682 = vmatpush3.msk.msra.mxu1 %vm12212_vm9, %v13595_v18 }
0x2f90   :  { %9683 = vmatprep.subr.msk.mxu1 %vm12224_vm13, %v13595_v18 }
0x2f91   :  { %9684 = vmatpush3.msk.msra.mxu1 %vm12224_vm13, %v13595_v18 }
0x2f92   :  { %9693 = vmatprep.subr.mxu1 %v13597_v1 }
0x2fea   :  { %v12268_v44 = vpop.permute.xlu1 %3991 }
0x2feb   :  { %13701 = vst [vmem:[#allocation8_spill] sm:$0xff] %v12268_v44 }
0x2fee   :  { %v12270_v47 = vpop.permute.xlu1 %3998 }
0x2fef   :  { %13702 = vst [vmem:[#allocation9_spill] sm:$0xff] %v12270_v47 }
0x3042   :  { %v12239_v25 = vpop.f32.mrf.mxu1 }
0x3043   :  { %13697 = vst [vmem:[#allocation6_spill] sm:$0xff] %v12239_v25 }
0x3044   :  { %v12241_v19 = vpop.f32.mrf.mxu1 }
0x3045   :  { %13698 = vst [vmem:[#allocation7_spill] sm:$0xff] %v12241_v19 }
0x304a   :  { %v4171_v56 = vpop.f32.mrf.mxu1 }
0x304b   :  { %v4182_v28 = vrot.slane %v4171_v56, %v12005_v48 }
0x304c   :  { %v9676_v11 = vpop.f32.mrf.mxu1  ;;  %v13831_v26 = vld [vmem:[#allocation7_spill] sm:$0xff] }
0x304d   :  { %v4183_v22 = vcombine.high %v4182_v28, %v4182_v28  ;;  %v4190_v61 = vrot.slane %v4182_v28, %v12005_v48 }
0x304f   :  { %v4197_v55 = vrot.slane %v4183_v22, %v12005_v48  ;;  %v4201_v37 = vrot.slane %v4190_v61, %v10403_v3 }
0x3051   :  { %v4205_v30 = vrot.slane %v4197_v55, %v10403_v3  ;;  %v4208_v12 = vmul.f32 %v4201_v37, %v12241_v19 }
0x3053   :  { %v4209_v49 = vmul.f32 %v12239_v25, %v4205_v30  ;;  %9685 = vmatprep.mubr.msk.f32.mxu1 %vm62_vm1, %v4208_v12 }
0x3055   :  { %9686 = vmatmul.mubr.msk.f32.vlgmr.msra.gmra.mxu1 %vm62_vm1, %v4209_v49 }
0x3056   :  { %9701 = vmatprep.mubr.msk.f32.mxu1 %vm10363_vm0, %v13597_v1 }
0x3115   :  { %v9687_v23 = vpop.f32.mrf.mxu1 }
0x3116   :  { %v4292_v9 = vmul.f32 0.5, %v9687_v23 }
0x3117   :  { %v4282_v41 = vpop.f32.mrf.mxu1 }
0x3118   :  { %v4294_v29 = vadd.f32 %v4292_v9, %v12270_v47  ;;  %v4291_v45 = vmul.f32 0.5, %v4282_v41 }
0x311a   :  { %v4303_v51 = vsel %vm4295_vm11, %v4294_v29, -inf  ;;  %v4293_v54 = vadd.f32 %v4291_v45, %v12268_v44  ;;  %v12291_v45 = vld [vmem:[%s13593_s3 + $0xb0] sm:$0xff] }
0x311b   :  { %v4304_v57 = vrot.slane %v4303_v51, 4  ;;  %13704 = vst [vmem:[#allocation11_spill] sm:$0xff] %v12291_v45 }
0x311c   :  { %v4296_v34 = vsel %vm4295_vm11, %v4293_v54, -inf }
0x311d   :  { %v4305_v36 = vmax.f32 %v4303_v51, %v4304_v57  ;;  %v4297_v38 = vrot.slane %v4296_v34, 4  ;;  %v12298_v51 = vld [vmem:[%s13593_s3 + $0xa8] sm:$0xff]  ;;  %v12308_v57 = vpop.f32.mrf.mxu0 }
0x311e   :  { %13705 = vst [vmem:[#allocation12_spill] sm:$0xff] %v12298_v51  ;;  %13707 = vst [vmem:[#allocation14_spill] sm:$0xff] %v12308_v57 }
0x311f   :  { %v4306_v60 = vrot.slane %v4305_v36, 2  ;;  %v4298_v4 = vmax.f32 %v4296_v34, %v4297_v38  ;;  %v12310_v34 = vpop.f32.mrf.mxu0 }
0x3120   :  { %13708 = vst [vmem:[#allocation15_spill] sm:$0xff] %v12310_v34 }
0x3121   :  { %v4307_v7 = vmax.f32 %v4305_v36, %v4306_v60  ;;  %v4299_v16 = vrot.slane %v4298_v4, 2 }
0x3123   :  { %v4308_v33 = vrot.slane %v4307_v7, 1  ;;  %v4300_v40 = vmax.f32 %v4298_v4, %v4299_v16 }
0x3125   :  { %v4309_v42 = vmax.f32 %v4307_v7, %v4308_v33  ;;  %v4301_v43 = vrot.slane %v4300_v40, 1 }
0x3127   :  { %v4311_v59 = vsub.f32 %v4294_v29, %v4309_v42  ;;  %v4302_v58 = vmax.f32 %v4300_v40, %v4301_v43  ;;  %v12284_v29 = vld [vmem:[%s13593_s3 + $0xb8] sm:$0xff] }
0x3128   :  { %13703 = vst [vmem:[#allocation10_spill] sm:$0xff] %v12284_v29  ;;  %9694 = vmatpush3.msra.mxu1 %v12284_v29  ;;  %v4076_v29 = vld [vmem:[#allocation2 + $0xe8] sm:$0xff] }
0x3129   :  { %v4314_v10 = vmul.f32 1.442695, %v4311_v59  ;;  %v4310_v15 = vsub.f32 %v4293_v54, %v4302_v58  ;;  %9695 = vmatprep.subr.mxu1 %v13597_v1  ;;  %v12304_v54 = vld [vmem:[%s13593_s3 + $0xa0] sm:$0xff] }
0x312a   :  { %9696 = vmatpush3.msra.mxu1 %v12291_v45  ;;  %13706 = vst [vmem:[#allocation13_spill] sm:$0xff] %v12304_v54  ;;  %v4078_v45 = vld [vmem:[#allocation2 + $0xf8] sm:$0xff] }
0x312b   :  { %10110 = vpow2.f32 %v4314_v10  ;;  %v4312_v53 = vmul.f32 1.442695, %v4310_v15  ;;  %9697 = vmatprep.subr.mxu1 %v13597_v1 }
0x312c   :  { %9698 = vmatpush3.msra.mxu1 %v12298_v51 }
0x312d   :  { %10112 = vpow2.f32 %v4312_v53  ;;  %9699 = vmatprep.subr.mxu1 %v13597_v1 }
0x312e   :  { %9700 = vmatpush3.msra.mxu1 %v12304_v54  ;;  %v4081_v54 = vld [vmem:[#allocation2 + $0x110] sm:$0xff] }
0x3138   :  { %v10111_v21 = vpop.eup %10110 }
0x3139   :  { %v4323_v6 = vsel %vm4295_vm11, %v10111_v21, 0.0 }
0x313a   :  { %v10113_v39 = vpop.eup %10112  ;;  %v4324_v20 = vrot.slane %v4323_v6, 4 }
0x313b   :  { %v4316_v56 = vsel %vm4295_vm11, %v10113_v39, 0.0 }
0x313c   :  { %v4325_v28 = vadd.f32 %v4324_v20, %v4323_v6  ;;  %v4317_v11 = vrot.slane %v4316_v56, 4 }
0x313e   :  { %v4326_v22 = vrot.slane %v4325_v28, 2  ;;  %v4318_v61 = vadd.f32 %v4317_v11, %v4316_v56  ;;  %v12319_v56 = vld [vmem:[#allocation2 + $0xb8] sm:$0xff]  ;;  %v12323_v11 = vld [vmem:[#allocation2 + $0xa8] sm:$0xff] }
0x313f   :  { %4541 = vmatprep.subr.mxu0 %v12319_v56 }
0x3140   :  { %v4319_v55 = vrot.slane %v4318_v61, 2  ;;  %v4327_v37 = vadd.f32 %v4326_v22, %v4325_v28  ;;  %v12321_v28 = vld [vmem:[#allocation2 + $0xb0] sm:$0xff]  ;;  %v12326_v22 = vld [vmem:[#allocation2 + $0xa0] sm:$0xff] }
0x3142   :  { %v4320_v30 = vadd.f32 %v4319_v55, %v4318_v61  ;;  %v4328_v12 = vrot.slane %v4327_v37, 1  ;;  %v12329_v61 = vld [vmem:[#allocation2 + $0x98] sm:$0xff]  ;;  %v12332_v55 = vld [vmem:[#allocation2 + $0x90] sm:$0xff] }
0x3144   :  { %v4321_v49 = vrot.slane %v4320_v30, 1  ;;  %v4329_v46 = vadd.f32 %v4328_v12, %v4327_v37  ;;  %v12335_v37 = vld [vmem:[#allocation2 + $0x88] sm:$0xff]  ;;  %v12341_v12 = vld [vmem:[#allocation2 + $0x78] sm:$0xff] }
0x3146   :  { %v4322_v24 = vadd.f32 %v4321_v49, %v4320_v30  ;;  %10114 = vrcp.f32 %v4329_v46  ;;  %v12338_v30 = vld [vmem:[#allocation2 + $0x80] sm:$0xff]  ;;  %v12344_v49 = vld [vmem:[#allocation2 + $0x70] sm:$0xff]  ;;  %v12347_v46 = vld [vmem:[#allocation2 + $0x68] sm:$0xff] }
0x3148   :  { %10116 = vrcp.f32 %v4322_v24  ;;  %v12350_v24 = vld [vmem:[#allocation2 + $0x60] sm:$0xff] }
0x3153   :  { %v10115_v62 = vpop.eup %10114 }
0x3154   :  { %v4333_v41 = vmul.f32 %v10115_v62, %v10111_v21  ;;  %v12353_v62 = vld [vmem:[#allocation2 + $0x58] sm:$0xff] }
0x3155   :  { %v10117_v23 = vpop.eup %10116 }
0x3156   :  { %v4331_v9 = vmul.f32 %v10117_v23, %v10113_v39  ;;  %v12356_v23 = vld [vmem:[#allocation2 + $0x50] sm:$0xff] }
0x3158   :  { %9690 = vmatprep.mubr.msk.f32.mxu0 %vm4295_vm11, %v4331_v9  ;;  %v12359_v9 = vld [vmem:[#allocation2 + $0x48] sm:$0xff] }
0x3159   :  { %9691 = vmatmul.mubr.msk.f32.vlgmr.msra.gmra.mxu0 %vm4295_vm11, %v4333_v41  ;;  %v12362_v41 = vld [vmem:[#allocation2 + $0x40] sm:$0xff] }
0x315a   :  { %4597 = vmatprep.mubr.f32.mxu0 %v13597_v1  ;;  %4542 = vmatpush1.msra.mxu0 %v12321_v28 }
0x315b   :  { %4543 = vmatprep.subr.mxu0 %v12323_v11 }
0x315c   :  { %4544 = vmatpush1.msra.mxu0 %v12326_v22 }
0x315d   :  { %4545 = vmatprep.subr.mxu0 %v12329_v61 }
0x315e   :  { %4546 = vmatpush1.msra.mxu0 %v12332_v55 }
0x315f   :  { %4547 = vmatprep.subr.mxu0 %v12335_v37 }
0x3160   :  { %4548 = vmatpush1.msra.mxu0 %v12338_v30 }
0x3161   :  { %4549 = vmatprep.subr.mxu0 %v12341_v12 }
0x3162   :  { %4550 = vmatpush1.msra.mxu0 %v12344_v49 }
0x3163   :  { %4551 = vmatprep.subr.mxu0 %v12347_v46 }
0x3164   :  { %4552 = vmatpush1.msra.mxu0 %v12350_v24 }
0x3165   :  { %4553 = vmatprep.subr.mxu0 %v12353_v62 }
0x3166   :  { %4554 = vmatpush1.msra.mxu0 %v12356_v23 }
0x3167   :  { %4555 = vmatprep.subr.mxu0 %v12359_v9 }
0x3168   :  { %4556 = vmatpush1.msra.mxu0 %v12362_v41 }
0x3219   :  { %v9692_v36 = vpop.f32.mrf.mxu0 }
0x321a   :  { %v4416_v38 = vmul.f32 %v9692_v36, %v12308_v57  ;;  %v12365_v36 = vld [vmem:[#allocation2 + $0x38] sm:$0xff] }
0x321b   :  { %v4406_v60 = vpop.f32.mrf.mxu0  ;;  %4557 = vmatprep.subr.mxu0 %v12365_v36  ;;  %v4082_v57 = vld [vmem:[#allocation2 + $0x118] sm:$0xff] }
0x321c   :  { %v4424_v4 = vsel %vm62_vm1, %v4416_v38, 0.0  ;;  %v4415_v7 = vmul.f32 %v4406_v60, %v12310_v34  ;;  %v12368_v38 = vld [vmem:[#allocation2 + $0x30] sm:$0xff]  ;;  %v12371_v60 = vld [vmem:[#allocation2 + $0x28] sm:$0xff]  ;;  %v4083_v34 = vld [vmem:[#allocation2 + $0x120] sm:$0xff] }
0x321d   :  { %v4425_v16 = vrot.slane %v4424_v4, 4  ;;  %4558 = vmatpush1.msra.mxu0 %v12368_v38 }
0x321e   :  { %v4417_v33 = vsel %vm62_vm1, %v4415_v7, 0.0  ;;  %4559 = vmatprep.subr.mxu0 %v12371_v60  ;;  %v12379_v7 = vld [vmem:[#allocation2 + $0x18] sm:$0xff] }
0x321f   :  { %v4426_v40 = vadd.f32 %v4425_v16, %v4424_v4  ;;  %v4418_v42 = vrot.slane %v4417_v33, 4  ;;  %v12376_v4 = vld [vmem:[#allocation2 + $0x20] sm:$0xff]  ;;  %v12381_v16 = vld [vmem:[#allocation2 + $0x10] sm:$0xff] }
0x3220   :  { %4560 = vmatpush1.msra.mxu0 %v12376_v4 }
0x3221   :  { %v4427_v43 = vrot.slane %v4426_v40, 2  ;;  %v4419_v59 = vadd.f32 %v4418_v42, %v4417_v33  ;;  %v12383_v33 = vld [vmem:[#allocation2 + $0x8] sm:$0xff]  ;;  %4561 = vmatprep.subr.mxu0 %v12379_v7  ;;  %v12395_v42 = vld [vmem:[%s13593_s3 + $0x140] ss:$0 sm:$0xff] }
0x3222   :  { %4562 = vmatpush1.msra.mxu0 %v12381_v16  ;;  %13709 = vst [vmem:[#allocation16_spill] sm:$0xff] %v12395_v42 }
0x3223   :  { %v4428_v58 = vadd.f32 %v4427_v43, %v4426_v40  ;;  %v4420_v10 = vrot.slane %v4419_v59, 2  ;;  %4563 = vmatprep.subr.mxu0 %v12383_v33  ;;  %v12388_v40 = vld [vmem:[#allocation2] sm:$0xff] }
0x3224   :  { %4564 = vmatpush1.msra.mxu0 %v12388_v40 }
0x3225   :  { %v4429_v15 = vrot.slane %v4428_v58, 1  ;;  %v4421_v53 = vadd.f32 %v4420_v10, %v4419_v59  ;;  %9723 = vmatprep.subr.mxu0 %v13597_v1 }
0x3227   :  { %v4422_v21 = vrot.slane %v4421_v53, 1  ;;  %v4430_v6 = vadd.f32 %v4429_v15, %v4428_v58 }
0x3229   :  { %v4423_v39 = vadd.f32 %v4422_v21, %v4421_v53 }
0x322b   :  { %v4437_v20 = vsel %vm243_vm5, %v4430_v6, %v4423_v39  ;;  %v12411_v6 = vld [vmem:[%s13593_s3 + $0x17b] sm:$0xff]  ;;  %v12427_v39 = vld [vmem:[%s13593_s3 + $0x16b] sm:$0xff] }
0x322c   :  { %9702 = vmatmul.mubr.msk.f32.vlgmr.msra.gmra.mxu1 %vm62_vm1, %v4437_v20  ;;  %13710 = vst [vmem:[#allocation17_spill] sm:$0xff] %v12411_v6  ;;  %13712 = vst [vmem:[#allocation19_spill] sm:$0xff] %v12427_v39  ;;  %v12434_v20 = vld [vmem:[%s13593_s3 + $0x163] sm:$0xff] }
0x322d   :  { %4794 = vmatprep.mubr.f32.mxu1 %v13597_v1  ;;  %13713 = vst [vmem:[#allocation20_spill] sm:$0xff] %v12434_v20 }
0x32ec   :  { %v4506_v43 = vpop.f32.mrf.mxu1 }
0x32ed   :  { %v4507_v59 = vadd.f32 %v12395_v42, %v4506_v43  ;;  %v4070_v43 = vld [vmem:[#allocation2 + $0xc0] ss:$8 sm:$0x3] }
0x32ee   :  { %v9703_v58 = vpop.f32.mrf.mxu1 }
0x32ef   :  { %4511 = vrot.lane.b32.xlu1 %v4507_v59, %s10365_s21  ;;  %v12439_v59 = vrot.slane %v4070_v43, %v10403_v3 }
0x32f1   :  { %13714 = vst [vmem:[#allocation21_spill] sm:$0xff] %v12439_v59 }
0x32f3   :  { %4514 = vrot.lane.b32.xlu1 %v12165_v63, %s10364_s20 }
0x3361   :  { %v12401_v10 = vpop.permute.xlu1 %4511 }
0x3362   :  { %v4517_v15 = vsel %vm62_vm1, %v10593_v50, %v12401_v10  ;;  %v12420_v50 = vld [vmem:[%s13593_s3 + $0x173] sm:$0xff] }
0x3363   :  { %13711 = vst [vmem:[#allocation18_spill] sm:$0xff] %v12420_v50 }
0x3365   :  { %v4515_v53 = vpop.permute.xlu1 %4514 }
0x3366   :  { %v4518_v21 = vsel %vm247_vm6, %v4517_v15, %v4515_v53  ;;  %v12443_v53 = vrot.slane %v4070_v43, %v10406_v5 }
0x3367   :  { %8221 = vmatmul.mubr.msk.f32.vlgmr.msra.gmra.mxu0 %vm1861_vm15, %v4518_v21 }
0x3368   :  { %9724 = vmatpush3.msra.mxu0 %v12411_v6  ;;  %9731 = vmatprep.mubr.msk.f32.mxu0 %vm10363_vm0, %v13597_v1  ;;  %13715 = vst [vmem:[#allocation22_spill] sm:$0xff] %v12443_v53 }
0x3369   :  { %9725 = vmatprep.subr.mxu0 %v13597_v1 }
0x336a   :  { %9726 = vmatpush3.msra.mxu0 %v12420_v50 }
0x336b   :  { %9727 = vmatprep.subr.mxu0 %v13597_v1 }
0x336c   :  { %9728 = vmatpush3.msra.mxu0 %v12427_v39 }
0x336d   :  { %9729 = vmatprep.subr.mxu0 %v13597_v1 }
0x336e   :  { %9730 = vmatpush3.msra.mxu0 %v12434_v20 }
0x336f   :  { %9734 = vmatprep.subr.mxu0 %v13597_v1 }
0x3427   :  { %v4599_v58 = vpop.f32.mrf.mxu0 }
0x3428   :  { %v4600_v15 = vadd.f32 %v4599_v58, %v12439_v59 }
0x3429   :  { %v4601_v21 = vpop.f32.mrf.mxu0 }
0x342a   :  { %4606 = vrot.lane.b32.xlu1 %v4600_v15, %s10365_s21  ;;  %v4602_v18 = vadd.f32 %v4601_v21, %v12443_v53 }
0x342e   :  { %4608 = vrot.lane.b32.xlu1 %v4602_v18, %s10365_s21 }
0x3432   :  { %4619 = vrot.lane.b32.xlu1 %v4602_v18, %s10366_s11  ;;  %v13716_v18 = vrot.slane %v12165_v63, 2 }
0x349c   :  { %v4607_v1 = vpop.permute.xlu1 %4606 }
0x34a0   :  { %v4609_v27 = vpop.permute.xlu1 %4608 }
0x34a1   :  { %v4610_v2 = vsel %vm62_vm1, %v4607_v1, %v4609_v27  ;;  %v4086_v27 = vld [vmem:[#allocation2 + $0x138] sm:$0xff] }
0x34a2   :  { %v4612_v20 = vadd.f32 %v4610_v2, %v4600_v15 }
0x34a4   :  { %v8222_v39 = vmul.f32 -1.442695, %v4612_v20  ;;  %v4620_v50 = vpop.permute.xlu1 %4619  ;;  %v4085_v20 = vld [vmem:[#allocation2 + $0x130] sm:$0xff] }
0x34a5   :  { %v4703_v53 = vrot.slane %v4085_v20, 1 }
0x34a6   :  { %10118 = vpow2.f32 %v8222_v39  ;;  %v4088_v39 = vld [vmem:[#allocation2 + $0x148] sm:$0x1] }
0x34a7   :  { %v4709_v21 = vrot.slane %v4088_v39, 1 }
0x34b3   :  { %v10119_v58 = vpop.eup %10118 }
0x34b4   :  { %v4616_v59 = vadd.f32 1.0, %v10119_v58  ;;  %v4087_v58 = vld [vmem:[#allocation2 + $0x140] sm:$0x1] }
0x34b5   :  { %v4707_v42 = vrot.slane %v4087_v58, 1 }
0x34b6   :  { %10120 = vrcp.f32 %v4616_v59  ;;  %v4705_v59 = vrot.slane %v4086_v27, 1 }
0x34b7   :  { %v12464_v27 = vsel %vm3674_vm7, %v4703_v53, %v4707_v42 }
0x34b8   :  { %v12460_v51 = vsel %vm3674_vm7, %v4705_v59, %v4709_v21  ;;  %13718 = vst [vmem:[#allocation24_spill] sm:$0xff] %v12464_v27  ;;  %v4075_v21 = vld [vmem:[#allocation2 + $0xe0] sm:$0xff] }
0x34b9   :  { %13717 = vst [vmem:[#allocation23_spill] sm:$0xff] %v12460_v51  ;;  %4746 = vmatprep.subr.mxu1 %v12460_v51 }
0x34ba   :  { %4747 = vmatpush1.msra.mxu1 %v12464_v27  ;;  %v4685_v27 = vrot.slane %v4076_v29, 1 }
0x34c3   :  { %v12450_v43 = vpop.eup %10120 }
0x34c4   :  { %v4622_v6 = vmul.f32 %v12450_v43, %v4620_v50  ;;  %v4084_v50 = vld [vmem:[#allocation2 + $0x128] sm:$0xff] }
0x34c6   :  { %4624 = vrot.lane.b32.xlu1 %v4622_v6, %s10364_s20  ;;  %v4701_v6 = vrot.slane %v4084_v50, 1  ;;  %v4077_v50 = vld [vmem:[#allocation2 + $0xf0] sm:$0xff] }
0x34c8   :  { %v12467_v39 = vsel %vm3674_vm7, %v4701_v6, %v4705_v59  ;;  %v4687_v59 = vrot.slane %v4077_v50, 1 }
0x34c9   :  { %13719 = vst [vmem:[#allocation25_spill] sm:$0xff] %v12467_v39  ;;  %4748 = vmatprep.subr.mxu1 %v12467_v39  ;;  %v4072_v39 = vld [vmem:[#allocation2 + $0xc8] sm:$0xfe] }
0x34ca   :  { %4635 = vrot.lane.b32.xlu1 %v12165_v63, %s10365_s21  ;;  %v4699_v63 = vrot.slane %v4083_v34, 1  ;;  %v4689_v34 = vrot.slane %v4078_v45, 1 }
0x34ce   :  { %4644 = vrot.lane.b32.xlu1 %v13716_v18, %s10365_s21  ;;  %v4697_v18 = vrot.slane %v4082_v57, 1  ;;  %v12471_v57 = vsel %vm3674_vm7, %v4699_v63, %v4703_v53  ;;  %v4073_v53 = vld [vmem:[#allocation2 + $0xd0] sm:$0xff] }
0x34cf   :  { %4749 = vmatpush1.msra.mxu1 %v12471_v57 }
0x3538   :  { %v4625_v1 = vpop.permute.xlu1 %4624 }
0x3539   :  { %v4627_v2 = vadd.f32 %v4625_v1, %v4600_v15  ;;  %v4695_v15 = vrot.slane %v4081_v54, 1  ;;  %v4080_v1 = vld [vmem:[#allocation2 + $0x108] sm:$0xff]  ;;  %v12474_v54 = vsel %vm3674_vm7, %v4697_v18, %v4701_v6  ;;  %v4683_v6 = vrot.slane %v4075_v21, 1 }
0x353a   :  { %v4693_v20 = vrot.slane %v4080_v1, 1  ;;  %v4074_v1 = vld [vmem:[#allocation2 + $0xd8] sm:$0xff]  ;;  %4750 = vmatprep.subr.mxu1 %v12474_v54  ;;  %v4680_v21 = vrot.slane %v4072_v39, 1  ;;  %v4071_v39 = vld [vmem:[#allocation2 + $0xc0] sm:$0xfe] }
0x353b   :  { %10122 = vtanh.f32 %v4627_v2  ;;  %v4079_v2 = vld [vmem:[#allocation2 + $0x100] sm:$0xff]  ;;  %v12478_v42 = vsel %vm3674_vm7, %v4695_v15, %v4699_v63  ;;  %v4681_v50 = vrot.slane %v4074_v1, 1  ;;  %v13727_v1 = vmov 0.0  }
0x353c   :  { %v4691_v58 = vrot.slane %v4079_v2, 1  ;;  %v12482_v2 = vsel %vm3674_vm7, %v4693_v20, %v4697_v18  ;;  %4751 = vmatpush1.msra.mxu1 %v12478_v42  ;;  %v12491_v63 = vsel %vm3674_vm7, %v4689_v34, %v4693_v20  ;;  %v4678_v18 = vrot.slane %v4073_v53, 1  ;;  %v4636_v53 = vpop.permute.xlu1 %4635 }
0x353d   :  { %4752 = vmatprep.subr.mxu1 %v12482_v2  ;;  %v12507_v20 = vsel %vm3674_vm7, %v4681_v50, %v4685_v27 }
0x353e   :  { %v12486_v45 = vsel %vm3674_vm7, %v4691_v58, %v4695_v15  ;;  %v12495_v29 = vsel %vm3674_vm7, %v4687_v59, %v4691_v58  ;;  %v12499_v15 = vsel %vm3674_vm7, %v4685_v27, %v4689_v34  ;;  %13723 = vst [vmem:[#allocation29_spill] sm:$0xff] %v12507_v20  ;;  %v12511_v58 = vsel %vm3674_vm7, %v4678_v18, %v4683_v6 }
0x353f   :  { %13720 = vst [vmem:[#allocation26_spill] sm:$0xff] %v12495_v29  ;;  %4753 = vmatpush1.msra.mxu1 %v12486_v45  ;;  %13721 = vst [vmem:[#allocation27_spill] sm:$0xff] %v12499_v15  ;;  %v12515_v34 = vsel %vm3674_vm7, %v4680_v21, %v4681_v50  ;;  %v4638_v21 = vmul.f32 %v12450_v43, %v4636_v53 }
0x3540   :  { %4754 = vmatprep.subr.mxu1 %v12491_v63  ;;  %13724 = vst [vmem:[#allocation30_spill] sm:$0xff] %v12511_v58  ;;  %13725 = vst [vmem:[#allocation31_spill] sm:$0xff] %v12515_v34 }
0x3541   :  { %4755 = vmatpush1.msra.mxu1 %v12495_v29 }
0x3542   :  { %4756 = vmatprep.subr.mxu1 %v12499_v15 }
0x3548   :  { %v10123_v51 = vpop.eup %10122 }
0x3549   :  { %4631 = vrot.lane.b32.xlu0 %v10123_v51, %s10366_s11  ;;  %v12503_v51 = vsel %vm3674_vm7, %v4683_v6, %v4687_v59  ;;  %v4677_v59 = vrot.slane %v4071_v39, 1  ;;  %v4629_v6 = vsub.f32 1.0, %v12450_v43  ;;  %v4645_v39 = vpop.permute.xlu1 %4644 }
0x354a   :  { %13722 = vst [vmem:[#allocation28_spill] sm:$0xff] %v12503_v51  ;;  %4757 = vmatpush1.msra.mxu1 %v12503_v51 }
0x354b   :  { %4758 = vmatprep.subr.mxu1 %v12507_v20  ;;  %v12521_v27 = vsel %vm3674_vm7, %v4677_v59, %v4678_v18  ;;  %v4090_v59 = vld [vmem:[#allocation2 + $0x141] ss:$8 sm:$0x3]  ;;  %vm4916_vm7 = vcmask 254976  }
0x354c   :  { %4759 = vmatpush1.msra.mxu1 %v12511_v58  ;;  %13726 = vst [vmem:[#allocation32_spill] sm:$0xff] %v12521_v27  ;;  %v12539_v43 = vrot.slane %v4090_v59, %v10406_v5 }
0x354d   :  { %4760 = vmatprep.subr.mxu1 %v12515_v34 }
0x354e   :  { %4761 = vmatpush1.msra.mxu1 %v12521_v27  ;;  %v12536_v27 = vrot.slane %v4090_v59, %v10403_v3  ;;  %13729 = vst [vmem:[#allocation34_spill] sm:$0xff] %v12539_v43 }
0x354f   :  { %9704 = vmatprep.subr.mxu1 %v13727_v1 }
0x3550   :  { %13728 = vst [vmem:[#allocation33_spill] sm:$0xff] %v12536_v27 }
0x35bb   :  { %v4632_v50 = vpop.permute.xlu0 %4631 }
0x35bc   :  { %v4634_v20 = vmul.f32 %v4632_v50, %v4629_v6 }
0x35be   :  { %v12527_v51 = vadd.f32 %v4638_v21, %v4634_v20 }
0x35c0   :  { %4641 = vrot.lane.b32.xlu0 %v12527_v51, %s10366_s11 }
0x3632   :  { %v4642_v34 = vpop.permute.xlu0 %4641 }
0x3633   :  { %v4647_v18 = vsel %vm62_vm1, %v4642_v34, %v4645_v39 }
0x3634   :  { %8223 = vmatmul.mubr.msk.f32.vlgmr.msra.gmra.mxu1 %vm247_vm6, %v4647_v18 }
0x3635   :  { %9720 = vmatprep.mubr.msk.f32.mxu1 %vm10363_vm0, %v13727_v1 }
0x36f4   :  { %v4796_v20 = vpop.f32.mrf.mxu1 }
0x36f5   :  { %v4797_v53 = vadd.f32 %v4796_v20, %v12536_v27 }
0x36f6   :  { %v4798_v6 = vpop.f32.mrf.mxu1 }
0x36f7   :  { %v4799_v50 = vadd.f32 %v4798_v6, %v12539_v43  ;;  %4803 = vrot.lane.b32.xlu0 %v4797_v53, %s10365_s21 }
0x36f9   :  { %4805 = vrot.lane.b32.xlu1 %v4799_v50, %s10365_s21 }
0x36fb   :  { %4816 = vrot.lane.b32.xlu0 %v4799_v50, %s10366_s11  ;;  %v12551_v50 = vld [vmem:[%s13593_s3 + $0x138] sm:$0xff] }
0x36fc   :  { %9705 = vmatpush3.msra.mxu1 %v12551_v50 }
0x36fd   :  { %9706 = vmatprep.subr.mxu1 %v13727_v1 }
0x3769   :  { %v4804_v34 = vpop.permute.xlu0 %4803 }
0x376b   :  { %v4806_v21 = vpop.permute.xlu1 %4805 }
0x376c   :  { %v4807_v18 = vsel %vm62_vm1, %v4804_v34, %v4806_v21  ;;  %v12592_v34 = vld [vmem:[%s13593_s3 + $0x108] sm:$0xff]  ;;  %v12601_v21 = vld [vmem:[%s13593_s3 + $0x100] sm:$0xff] }
0x376d   :  { %v4809_v58 = vadd.f32 %v4807_v18, %v4797_v53  ;;  %v4817_v27 = vpop.permute.xlu0 %4816  ;;  %13732 = vst [vmem:[#allocation37_spill] sm:$0xff] %v12592_v34  ;;  %v13733_v18 = vmov 1.0  }
0x376f   :  { %v8224_v15 = vmul.f32 -1.442695, %v4809_v58  ;;  %v12570_v58 = vld [vmem:[%s13593_s3 + $0x120] sm:$0xff] }
0x3771   :  { %10124 = vpow2.f32 %v8224_v15  ;;  %v12556_v15 = vld [vmem:[%s13593_s3 + $0x130] sm:$0xff] }
0x3772   :  { %9707 = vmatpush3.msra.mxu1 %v12556_v15 }
0x3773   :  { %9708 = vmatprep.subr.mxu1 %v13727_v1 }
0x377e   :  { %v10125_v5 = vpop.eup %10124 }
0x377f   :  { %v4813_v59 = vadd.f32 1.0, %v10125_v5 }
0x3781   :  { %10126 = vrcp.f32 %v4813_v59 }
0x378e   :  { %v10127_v20 = vpop.eup %10126 }
0x378f   :  { %v4819_v29 = vmul.f32 %v10127_v20, %v4817_v27  ;;  %v12577_v27 = vld [vmem:[%s13593_s3 + $0x118] sm:$0xff]  ;;  %v4826_v5 = vsub.f32 1.0, %v10127_v20 }
0x3790   :  { %13730 = vst [vmem:[#allocation35_spill] sm:$0xff] %v12577_v27 }
0x3791   :  { %4821 = vrot.lane.b32.xlu1 %v4819_v29, %s10364_s20  ;;  %v12563_v29 = vld [vmem:[%s13593_s3 + $0x128] sm:$0xff] }
0x3792   :  { %9709 = vmatpush3.msra.mxu1 %v12563_v29 }
0x3793   :  { %9710 = vmatprep.subr.mxu1 %v13727_v1 }
0x3794   :  { %9711 = vmatpush3.msra.mxu1 %v12570_v58 }
0x3795   :  { %9712 = vmatprep.subr.mxu1 %v13727_v1 }
0x3796   :  { %9713 = vmatpush3.msra.mxu1 %v12577_v27 }
0x3797   :  { %9714 = vmatprep.subr.mxu1 %v13727_v1 }
0x3803   :  { %v4822_v6 = vpop.permute.xlu1 %4821 }
0x3804   :  { %v4824_v43 = vadd.f32 %v4822_v6, %v4797_v53  ;;  %v12584_v53 = vld [vmem:[%s13593_s3 + $0x110] sm:$0xff]  ;;  %v4832_v6 = vmul.f32 %v10127_v20, %v4645_v39 }
0x3805   :  { %13731 = vst [vmem:[#allocation36_spill] sm:$0xff] %v12584_v53  ;;  %9715 = vmatpush3.msra.mxu1 %v12584_v53 }
0x3806   :  { %10128 = vtanh.f32 %v4824_v43  ;;  %9716 = vmatprep.subr.mxu1 %v13727_v1 }
0x3807   :  { %9717 = vmatpush3.msra.mxu1 %v12592_v34 }
0x3808   :  { %9718 = vmatprep.subr.mxu1 %v13727_v1 }
0x3809   :  { %9719 = vmatpush3.msra.mxu1 %v12601_v21 }
0x380a   :  { %9745 = vmatprep.subr.msk.mxu1 %vm12191_vm12, %v13733_v18 }
0x3813   :  { %v10129_v43 = vpop.eup %10128 }
0x3814   :  { %4828 = vrot.lane.b32.xlu0 %v10129_v43, %s10366_s11 }
0x3886   :  { %v4829_v59 = vpop.permute.xlu0 %4828 }
0x3887   :  { %v4831_v43 = vmul.f32 %v4829_v59, %v4826_v5  ;;  %v12647_v59 = vcvt.s32.f32 %v10456_v17 }
0x3889   :  { %v12607_v53 = vadd.f32 %v4832_v6, %v4831_v43 }
0x388b   :  { %4835 = vrot.lane.b32.xlu1 %v12607_v53, %s10366_s11 }
0x38fd   :  { %v4836_v34 = vpop.permute.xlu1 %4835 }
0x38fe   :  { %v4838_v27 = vsel %vm62_vm1, %v4836_v34, %v12401_v10  ;;  %v12639_v10 = vld [vmem:[%s13593_s3 + $0x142] ss:$0 sm:$0xff] }
0x38ff   :  { %9721 = vmatmul.mubr.msk.f32.vlgmr.msra.gmra.mxu1 %vm247_vm6, %v4838_v27 }
0x3900   :  { %9746 = vmatpush3.msk.msra.mxu1 %vm12191_vm12, %v13733_v18 }
0x3901   :  { %9747 = vmatprep.subr.msk.mxu1 %vm12202_vm2, %v13733_v18 }
0x3902   :  { %9748 = vmatpush3.msk.msra.mxu1 %vm12202_vm2, %v13733_v18 }
0x3903   :  { %9749 = vmatprep.subr.msk.mxu1 %vm12212_vm9, %v13733_v18 }
0x3904   :  { %9750 = vmatpush3.msk.msra.mxu1 %vm12212_vm9, %v13733_v18 }
0x3905   :  { %9751 = vmatprep.subr.msk.mxu1 %vm12224_vm13, %v13733_v18 }
0x3906   :  { %9752 = vmatpush3.msk.msra.mxu1 %vm12224_vm13, %v13733_v18 }
0x3907   :  { %5423 = vmatprep.subr.mxu1 %v12319_v56 }
0x39bf   :  { %v4912_v39 = vpop.f32.mrf.mxu1 }
0x39c0   :  { %v12642_v20 = vadd.f32 %v12639_v10, %v4912_v39 }
0x39c1   :  { %v9722_v27 = vpop.f32.mrf.mxu1 }
0x39c2   :  { %13734 = vst [vmem:[#allocation38_spill] sm:$0xff] %v12642_v20  ;;  %v4917_v5 = vsel %vm4916_vm7, %v12642_v20, -inf }
0x39c3   :  { %4918 = vmax.xlane.f32.xlu0 %v4917_v5 }
0x3a4c   :  { %v4919_v6 = vpop.xlane.xlu0 %4918 }
0x3a4d   :  { %vm4920_vm14 = vcmp.eq.f32.partialorder %v12642_v20, %v4919_v6  ;;  %v12965_v20 = vld [vmem:[#allocation2 + $0x18] sm:$0xff] }
0x3a4e   :  { %v4921_v56 = vsel %vm4920_vm14, %v12647_v59, 32.0 }
0x3a4f   :  { %v4922_v43 = vsel %vm4916_vm7, %v4921_v56, inf }
0x3a50   :  { %4923 = vmin.xlane.f32.xlu1 %v4922_v43 }
0x3a61   :  { %5407 = vrot.lane.b32.xlu1 %v12527_v51, %s10365_s21 }
0x3ad9   :  { %v4924_v39 = vpop.xlane.xlu1 %4923 }
0x3ada   :  { %vm4925_vm3 = vcmp.eq.f32.partialorder %v12647_v59, %v4924_v39 }
0x3adb   :  { %v8227_v27 = vsel %vm4925_vm3, 1.0, %v13727_v1 }
0x3adc   :  { %9732 = vmatmul.mubr.msk.f32.vlgmr.msra.gmra.mxu0 %vm62_vm1, %v8227_v27 }
0x3add   :  { %9735 = vmatpush3.msra.mxu0 %v12150_v31  ;;  %9742 = vmatprep.mubr.msk.f32.mxu0 %vm10363_vm0, %v13727_v1 }
0x3ade   :  { %9736 = vmatprep.subr.mxu0 %v13727_v1 }
0x3adf   :  { %9737 = vmatpush3.msra.mxu0 %v12160_v35 }
0x3ae0   :  { %9738 = vmatprep.subr.mxu0 %v13727_v1 }
0x3ae1   :  { %9739 = vmatpush3.msra.mxu0 %v12171_v8 }
0x3ae2   :  { %9740 = vmatprep.subr.mxu0 %v13727_v1 }
0x3ae3   :  { %9741 = vmatpush3.msra.mxu0 %v12178_v0 }
0x3ae4   :  { %9743 = vmatmul.mubr.msk.f32.vlgmr.msra.gmra.mxu0 %vm62_vm1, %v4836_v34  ;;  %9756 = vmatprep.subr.msk.mxu0 %vm12258_vm10, %v13733_v18 }
0x3ae5   :  { %9757 = vmatpush3.msk.msra.mxu0 %vm12258_vm10, %v13733_v18 }
0x3ae6   :  { %9761 = vmatprep.subr.mxu0 %v13727_v1 }
0x3b9c   :  { %v12674_v17 = vpop.f32.mrf.mxu0 }
0x3b9e   :  { %v9733_v31 = vpop.f32.mrf.mxu0 }
0x3ba4   :  { %v5069_v35 = vpop.f32.mrf.mxu0 }
0x3ba5   :  { %v5080_v8 = vrot.slane %v5069_v35, %v12005_v48 }
0x3ba6   :  { %v9744_v5 = vpop.f32.mrf.mxu0 }
0x3ba7   :  { %v5081_v0 = vcombine.high %v5080_v8, %v5080_v8  ;;  %v5088_v34 = vrot.slane %v5080_v8, %v12005_v48 }
0x3ba9   :  { %v5095_v6 = vrot.slane %v5081_v0, %v12005_v48  ;;  %v5099_v56 = vrot.slane %v5088_v34, %v10403_v3 }
0x3bab   :  { %v5103_v43 = vrot.slane %v5095_v6, %v10403_v3  ;;  %v5106_v39 = vmul.f32 %v5099_v56, %v12241_v19 }
0x3bad   :  { %v5107_v27 = vmul.f32 %v12239_v25, %v5103_v43  ;;  %9753 = vmatprep.mubr.msk.f32.mxu1 %vm62_vm1, %v5106_v39 }
0x3baf   :  { %9754 = vmatmul.mubr.msk.f32.vlgmr.msra.gmra.mxu1 %vm62_vm1, %v5107_v27 }
0x3bb0   :  { %5424 = vmatpush1.msra.mxu1 %v12321_v28  ;;  %5479 = vmatprep.mubr.f32.mxu1 %v13727_v1 }
0x3bb1   :  { %5425 = vmatprep.subr.mxu1 %v12323_v11 }
0x3bb2   :  { %5426 = vmatpush1.msra.mxu1 %v12326_v22 }
0x3bb3   :  { %5427 = vmatprep.subr.mxu1 %v12329_v61 }
0x3bb4   :  { %5428 = vmatpush1.msra.mxu1 %v12332_v55 }
0x3bb5   :  { %5429 = vmatprep.subr.mxu1 %v12335_v37 }
0x3bb6   :  { %5430 = vmatpush1.msra.mxu1 %v12338_v30 }
0x3bb7   :  { %5431 = vmatprep.subr.mxu1 %v12341_v12 }
0x3bb8   :  { %5432 = vmatpush1.msra.mxu1 %v12344_v49 }
0x3bb9   :  { %5433 = vmatprep.subr.mxu1 %v12347_v46 }
0x3bba   :  { %5434 = vmatpush1.msra.mxu1 %v12350_v24 }
0x3bbb   :  { %5435 = vmatprep.subr.mxu1 %v12353_v62 }
0x3bbc   :  { %5436 = vmatpush1.msra.mxu1 %v12356_v23 }
0x3bbd   :  { %5437 = vmatprep.subr.mxu1 %v12359_v9 }
0x3bbe   :  { %5438 = vmatpush1.msra.mxu1 %v12362_v41 }
0x3bbf   :  { %5439 = vmatprep.subr.mxu1 %v12365_v36 }
0x3bc0   :  { %5440 = vmatpush1.msra.mxu1 %v12368_v38 }
0x3bc1   :  { %5441 = vmatprep.subr.mxu1 %v12371_v60 }
0x3bc2   :  { %5442 = vmatpush1.msra.mxu1 %v12376_v4 }
0x3bc3   :  { %5443 = vmatprep.subr.mxu1 %v12379_v7 }
0x3bc4   :  { %5444 = vmatpush1.msra.mxu1 %v12381_v16 }
0x3bc5   :  { %5445 = vmatprep.subr.mxu1 %v12383_v33 }
0x3bc6   :  { %5446 = vmatpush1.msra.mxu1 %v12388_v40 }
0x3bc7   :  { %9791 = vmatprep.subr.mxu1 %v13727_v1 }
0x3c6f   :  { %v9755_v28 = vpop.f32.mrf.mxu1 }
0x3c70   :  { %v5190_v11 = vmul.f32 0.5, %v9755_v28 }
0x3c71   :  { %v5180_v22 = vpop.f32.mrf.mxu1 }
0x3c72   :  { %v5192_v61 = vadd.f32 %v5190_v11, %v12270_v47  ;;  %v5189_v55 = vmul.f32 0.5, %v5180_v22 }
0x3c74   :  { %v5200_v37 = vsel %vm4295_vm11, %v5192_v61, -inf  ;;  %v5191_v30 = vadd.f32 %v5189_v55, %v12268_v44 }
0x3c75   :  { %v5201_v12 = vrot.slane %v5200_v37, 4 }
0x3c76   :  { %v5193_v49 = vsel %vm4295_vm11, %v5191_v30, -inf }
0x3c77   :  { %v5202_v46 = vmax.f32 %v5200_v37, %v5201_v12  ;;  %v5194_v24 = vrot.slane %v5193_v49, 4 }
0x3c79   :  { %v5203_v62 = vrot.slane %v5202_v46, 2  ;;  %v5195_v23 = vmax.f32 %v5193_v49, %v5194_v24  ;;  %v13735_v24 = vld [vmem:[#allocation10_spill] sm:$0xff] }
0x3c7b   :  { %v5204_v9 = vmax.f32 %v5202_v46, %v5203_v62  ;;  %v5196_v41 = vrot.slane %v5195_v23, 2  ;;  %v13736_v62 = vld [vmem:[#allocation11_spill] sm:$0xff] }
0x3c7d   :  { %v5205_v36 = vrot.slane %v5204_v9, 1  ;;  %v5197_v38 = vmax.f32 %v5195_v23, %v5196_v41  ;;  %v13737_v23 = vld [vmem:[#allocation12_spill] sm:$0xff]  ;;  %v13739_v41 = vld [vmem:[#allocation23_spill] sm:$0xff] }
0x3c7f   :  { %v5206_v60 = vmax.f32 %v5204_v9, %v5205_v36  ;;  %v5198_v4 = vrot.slane %v5197_v38, 1  ;;  %v13738_v9 = vld [vmem:[#allocation13_spill] sm:$0xff] }
0x3c81   :  { %v5208_v7 = vsub.f32 %v5192_v61, %v5206_v60  ;;  %v5199_v16 = vmax.f32 %v5197_v38, %v5198_v4  ;;  %v13740_v38 = vld [vmem:[#allocation14_spill] sm:$0xff] }
0x3c83   :  { %v5211_v33 = vmul.f32 1.442695, %v5208_v7  ;;  %v5207_v40 = vsub.f32 %v5191_v30, %v5199_v16  ;;  %v13741_v16 = vld [vmem:[#allocation15_spill] sm:$0xff] }
0x3c85   :  { %10130 = vpow2.f32 %v5211_v33  ;;  %v5209_v31 = vmul.f32 1.442695, %v5207_v40 }
0x3c87   :  { %10132 = vpow2.f32 %v5209_v31 }
0x3c92   :  { %v10131_v35 = vpop.eup %10130 }
0x3c93   :  { %v5220_v8 = vsel %vm4295_vm11, %v10131_v35, 0.0 }
0x3c94   :  { %v10133_v5 = vpop.eup %10132  ;;  %v5221_v0 = vrot.slane %v5220_v8, 4 }
0x3c95   :  { %v5213_v34 = vsel %vm4295_vm11, %v10133_v5, 0.0 }
0x3c96   :  { %v5222_v6 = vadd.f32 %v5221_v0, %v5220_v8  ;;  %v5214_v56 = vrot.slane %v5213_v34, 4 }
0x3c98   :  { %v5223_v43 = vrot.slane %v5222_v6, 2  ;;  %v5215_v39 = vadd.f32 %v5214_v56, %v5213_v34 }
0x3c9a   :  { %v5224_v27 = vadd.f32 %v5223_v43, %v5222_v6  ;;  %v5216_v28 = vrot.slane %v5215_v39, 2 }
0x3c9c   :  { %v5225_v11 = vrot.slane %v5224_v27, 1  ;;  %v5217_v22 = vadd.f32 %v5216_v28, %v5215_v39 }
0x3c9e   :  { %v5226_v61 = vadd.f32 %v5225_v11, %v5224_v27  ;;  %v5218_v55 = vrot.slane %v5217_v22, 1 }
0x3ca0   :  { %v5219_v37 = vadd.f32 %v5218_v55, %v5217_v22  ;;  %10134 = vrcp.f32 %v5226_v61  ;;  %v13742_v22 = vld [vmem:[#allocation24_spill] sm:$0xff]  ;;  %v13743_v61 = vld [vmem:[#allocation25_spill] sm:$0xff]  ;;  %v13744_v55 = vld [vmem:[#allocation26_spill] sm:$0xff] }
0x3ca2   :  { %10136 = vrcp.f32 %v5219_v37  ;;  %v13745_v37 = vld [vmem:[#allocation27_spill] sm:$0xff] }
0x3cad   :  { %v10135_v30 = vpop.eup %10134 }
0x3cae   :  { %v5230_v46 = vmul.f32 %v10135_v30, %v10131_v35  ;;  %v13746_v30 = vld [vmem:[#allocation28_spill] sm:$0xff] }
0x3caf   :  { %v10137_v12 = vpop.eup %10136 }
0x3cb0   :  { %v5228_v49 = vmul.f32 %v10137_v12, %v10133_v5  ;;  %v13747_v12 = vld [vmem:[#allocation29_spill] sm:$0xff] }
0x3cb2   :  { %9758 = vmatprep.mubr.msk.f32.mxu0 %vm4295_vm11, %v5228_v49  ;;  %v13748_v49 = vld [vmem:[#allocation30_spill] sm:$0xff] }
0x3cb3   :  { %9759 = vmatmul.mubr.msk.f32.vlgmr.msra.gmra.mxu0 %vm4295_vm11, %v5230_v46  ;;  %v13749_v46 = vld [vmem:[#allocation31_spill] sm:$0xff] }
0x3cb4   :  { %9762 = vmatpush3.msra.mxu0 %v13735_v24  ;;  %9769 = vmatprep.mubr.msk.f32.mxu0 %vm10363_vm0, %v13727_v1  ;;  %v13750_v24 = vld [vmem:[#allocation32_spill] sm:$0xff] }
0x3cb5   :  { %9763 = vmatprep.subr.mxu0 %v13727_v1 }
0x3cb6   :  { %9764 = vmatpush3.msra.mxu0 %v13736_v62 }
0x3cb7   :  { %9765 = vmatprep.subr.mxu0 %v13727_v1 }
0x3cb8   :  { %9766 = vmatpush3.msra.mxu0 %v13737_v23  ;;  %v13751_v23 = vld [vmem:[#allocation16_spill] sm:$0xff] }
0x3cb9   :  { %9767 = vmatprep.subr.mxu0 %v13727_v1 }
0x3cba   :  { %9768 = vmatpush3.msra.mxu0 %v13738_v9 }
0x3cbb   :  { %5543 = vmatprep.subr.mxu0 %v13739_v41 }
0x3d73   :  { %v9760_v36 = vpop.f32.mrf.mxu0 }
0x3d74   :  { %v5313_v60 = vmul.f32 %v9760_v36, %v13740_v38 }
0x3d75   :  { %v5303_v4 = vpop.f32.mrf.mxu0 }
0x3d76   :  { %v5321_v7 = vsel %vm62_vm1, %v5313_v60, 0.0  ;;  %v5312_v33 = vmul.f32 %v5303_v4, %v13741_v16  ;;  %v5408_v4 = vpop.permute.xlu1 %5407 }
0x3d77   :  { %v5322_v40 = vrot.slane %v5321_v7, 4 }
0x3d78   :  { %v5314_v31 = vsel %vm62_vm1, %v5312_v33, 0.0 }
0x3d79   :  { %v5323_v35 = vadd.f32 %v5322_v40, %v5321_v7  ;;  %v5315_v8 = vrot.slane %v5314_v31, 4  ;;  %v13752_v40 = vld [vmem:[#allocation17_spill] sm:$0xff] }
0x3d7b   :  { %v5324_v5 = vrot.slane %v5323_v35, 2  ;;  %v5316_v0 = vadd.f32 %v5315_v8, %v5314_v31  ;;  %v13753_v31 = vld [vmem:[#allocation18_spill] sm:$0xff] }
0x3d7d   :  { %v5325_v34 = vadd.f32 %v5324_v5, %v5323_v35  ;;  %v5317_v6 = vrot.slane %v5316_v0, 2  ;;  %v13754_v35 = vld [vmem:[#allocation19_spill] sm:$0xff]  ;;  %v13756_v5 = vld [vmem:[#allocation21_spill] sm:$0xff] }
0x3d7f   :  { %v5326_v56 = vrot.slane %v5325_v34, 1  ;;  %v5318_v43 = vadd.f32 %v5317_v6, %v5316_v0  ;;  %v13757_v6 = vld [vmem:[#allocation22_spill] sm:$0xff] }
0x3d81   :  { %v5319_v39 = vrot.slane %v5318_v43, 1  ;;  %v5327_v27 = vadd.f32 %v5326_v56, %v5325_v34 }
0x3d83   :  { %v5320_v28 = vadd.f32 %v5319_v39, %v5318_v43 }
0x3d85   :  { %v5330_v11 = vsel %vm243_vm5, %v5327_v27, %v5320_v28 }
0x3d86   :  { %9770 = vmatmul.mubr.msk.f32.vlgmr.msra.gmra.mxu0 %vm62_vm1, %v5330_v11 }
0x3d87   :  { %5544 = vmatpush1.msra.mxu0 %v13742_v22  ;;  %5591 = vmatprep.mubr.f32.mxu0 %v13727_v1 }
0x3d88   :  { %5545 = vmatprep.subr.mxu0 %v13743_v61 }
0x3d89   :  { %5546 = vmatpush1.msra.mxu0 %v12471_v57 }
0x3d8a   :  { %5547 = vmatprep.subr.mxu0 %v12474_v54 }
0x3d8b   :  { %5548 = vmatpush1.msra.mxu0 %v12478_v42 }
0x3d8c   :  { %5549 = vmatprep.subr.mxu0 %v12482_v2 }
0x3d8d   :  { %5550 = vmatpush1.msra.mxu0 %v12486_v45 }
0x3d8e   :  { %5551 = vmatprep.subr.mxu0 %v12491_v63 }
0x3d8f   :  { %5552 = vmatpush1.msra.mxu0 %v13744_v55 }
0x3d90   :  { %5553 = vmatprep.subr.mxu0 %v13745_v37 }
0x3d91   :  { %5554 = vmatpush1.msra.mxu0 %v13746_v30 }
0x3d92   :  { %5555 = vmatprep.subr.mxu0 %v13747_v12 }
0x3d93   :  { %5556 = vmatpush1.msra.mxu0 %v13748_v49 }
0x3d94   :  { %5557 = vmatprep.subr.mxu0 %v13749_v46 }
0x3d95   :  { %5558 = vmatpush1.msra.mxu0 %v13750_v24 }
0x3d96   :  { %9772 = vmatprep.subr.mxu0 %v13727_v1 }
0x3e46   :  { %v5399_v62 = vpop.f32.mrf.mxu0 }
0x3e47   :  { %v5400_v9 = vadd.f32 %v13751_v23, %v5399_v62 }
0x3e48   :  { %v9771_v36 = vpop.f32.mrf.mxu0 }
0x3e49   :  { %5404 = vrot.lane.b32.xlu0 %v5400_v9, %s10365_s21 }
0x3ebb   :  { %v12753_v60 = vpop.permute.xlu0 %5404 }
0x3ebc   :  { %v5410_v7 = vsel %vm62_vm1, %v12674_v17, %v12753_v60  ;;  %v13755_v17 = vld [vmem:[#allocation20_spill] sm:$0xff] }
0x3ebd   :  { %v5411_v33 = vsel %vm247_vm6, %v5410_v7, %v5408_v4  ;;  %13783 = vst [vmem:[#allocation20_spill] sm:$0xff] %v12965_v20 }
0x3ebe   :  { %8240 = vmatmul.mubr.msk.f32.vlgmr.msra.gmra.mxu1 %vm1861_vm15, %v5411_v33 }
0x3ebf   :  { %9792 = vmatpush3.msra.mxu1 %v13752_v40  ;;  %9799 = vmatprep.mubr.msk.f32.mxu1 %vm10363_vm0, %v13727_v1 }
0x3ec0   :  { %9793 = vmatprep.subr.mxu1 %v13727_v1 }
0x3ec1   :  { %9794 = vmatpush3.msra.mxu1 %v13753_v31 }
0x3ec2   :  { %9795 = vmatprep.subr.mxu1 %v13727_v1 }
0x3ec3   :  { %9796 = vmatpush3.msra.mxu1 %v13754_v35 }
0x3ec4   :  { %9797 = vmatprep.subr.mxu1 %v13727_v1 }
0x3ec5   :  { %9798 = vmatpush3.msra.mxu1 %v13755_v17 }
0x3ec6   :  { %9802 = vmatprep.subr.mxu1 %v13727_v1 }
0x3f7e   :  { %v5481_v8 = vpop.f32.mrf.mxu1 }
0x3f7f   :  { %v5482_v0 = vadd.f32 %v5481_v8, %v13756_v5 }
0x3f80   :  { %v5483_v34 = vpop.f32.mrf.mxu1 }
0x3f81   :  { %v5484_v56 = vadd.f32 %v5483_v34, %v13757_v6  ;;  %5488 = vrot.lane.b32.xlu0 %v5482_v0, %s10365_s21 }
0x3f83   :  { %5490 = vrot.lane.b32.xlu1 %v5484_v56, %s10365_s21 }
0x3f85   :  { %5501 = vrot.lane.b32.xlu0 %v5484_v56, %s10366_s11 }
0x3ff3   :  { %v5489_v43 = vpop.permute.xlu0 %5488 }
0x3ff5   :  { %v5491_v39 = vpop.permute.xlu1 %5490 }
0x3ff6   :  { %v5492_v27 = vsel %vm62_vm1, %v5489_v43, %v5491_v39 }
0x3ff7   :  { %v5494_v28 = vadd.f32 %v5492_v27, %v5482_v0  ;;  %v5502_v36 = vpop.permute.xlu0 %5501  ;;  %v13762_v27 = vld [vmem:[#allocation34_spill] sm:$0xff] }
0x3ff9   :  { %v8241_v11 = vmul.f32 -1.442695, %v5494_v28 }
0x3ffb   :  { %10138 = vpow2.f32 %v8241_v11 }
0x4008   :  { %v10139_v62 = vpop.eup %10138 }
0x4009   :  { %v5498_v23 = vadd.f32 1.0, %v10139_v62 }
0x400b   :  { %10140 = vrcp.f32 %v5498_v23 }
0x4018   :  { %v10141_v9 = vpop.eup %10140 }
0x4019   :  { %v5504_v4 = vmul.f32 %v10141_v9, %v5502_v36  ;;  %v5511_v31 = vsub.f32 1.0, %v10141_v9  ;;  %v5517_v17 = vmul.f32 %v10141_v9, %v12527_v51  ;;  %v13758_v51 = vld [vmem:[#allocation35_spill] sm:$0xff] }
0x401b   :  { %5506 = vrot.lane.b32.xlu1 %v5504_v4, %s10364_s20 }
0x408d   :  { %v5507_v7 = vpop.permute.xlu1 %5506 }
0x408e   :  { %v5509_v33 = vadd.f32 %v5507_v7, %v5482_v0  ;;  %v13760_v0 = vld [vmem:[#allocation37_spill] sm:$0xff] }
0x4090   :  { %10142 = vtanh.f32 %v5509_v33 }
0x409d   :  { %v10143_v40 = vpop.eup %10142 }
0x409e   :  { %5513 = vrot.lane.b32.xlu0 %v10143_v40, %s10366_s11 }
0x4110   :  { %v5514_v35 = vpop.permute.xlu0 %5513 }
0x4111   :  { %v5516_v8 = vmul.f32 %v5514_v35, %v5511_v31 }
0x4113   :  { %v12779_v34 = vadd.f32 %v5517_v17, %v5516_v8 }
0x4115   :  { %5520 = vrot.lane.b32.xlu1 %v12779_v34, %s10366_s11 }
0x4187   :  { %v5521_v56 = vpop.permute.xlu1 %5520 }
0x4188   :  { %v5523_v43 = vsel %vm62_vm1, %v5521_v56, %v12607_v53 }
0x4189   :  { %8242 = vmatmul.mubr.msk.f32.vlgmr.msra.gmra.mxu0 %vm247_vm6, %v5523_v43 }
0x418a   :  { %9773 = vmatpush3.msra.mxu0 %v12551_v50  ;;  %9788 = vmatprep.mubr.msk.f32.mxu0 %vm10363_vm0, %v13727_v1  ;;  %v13759_v50 = vld [vmem:[#allocation36_spill] sm:$0xff] }
0x418b   :  { %9774 = vmatprep.subr.mxu0 %v13727_v1 }
0x418c   :  { %9775 = vmatpush3.msra.mxu0 %v12556_v15 }
0x418d   :  { %9776 = vmatprep.subr.mxu0 %v13727_v1 }
0x418e   :  { %9777 = vmatpush3.msra.mxu0 %v12563_v29  ;;  %v13761_v29 = vld [vmem:[#allocation33_spill] sm:$0xff] }
0x418f   :  { %9778 = vmatprep.subr.mxu0 %v13727_v1 }
0x4190   :  { %9779 = vmatpush3.msra.mxu0 %v12570_v58 }
0x4191   :  { %9780 = vmatprep.subr.mxu0 %v13727_v1 }
0x4192   :  { %9781 = vmatpush3.msra.mxu0 %v13758_v51 }
0x4193   :  { %9782 = vmatprep.subr.mxu0 %v13727_v1 }
0x4194   :  { %9783 = vmatpush3.msra.mxu0 %v13759_v50 }
0x4195   :  { %9784 = vmatprep.subr.mxu0 %v13727_v1 }
0x4196   :  { %9785 = vmatpush3.msra.mxu0 %v13760_v0 }
0x4197   :  { %9786 = vmatprep.subr.mxu0 %v13727_v1 }
0x4198   :  { %9787 = vmatpush3.msra.mxu0 %v12601_v21 }
0x4199   :  { %9813 = vmatprep.subr.msk.mxu0 %vm12191_vm12, %v13733_v18 }
0x4249   :  { %v5593_v15 = vpop.f32.mrf.mxu0 }
0x424a   :  { %v5594_v58 = vadd.f32 %v5593_v15, %v13761_v29 }
0x424b   :  { %v5595_v39 = vpop.f32.mrf.mxu0 }
0x424c   :  { %v5596_v28 = vadd.f32 %v5595_v39, %v13762_v27  ;;  %5600 = vrot.lane.b32.xlu0 %v5594_v58, %s10365_s21 }
0x424e   :  { %5602 = vrot.lane.b32.xlu1 %v5596_v28, %s10365_s21 }
0x4250   :  { %5613 = vrot.lane.b32.xlu0 %v5596_v28, %s10366_s11 }
0x42be   :  { %v5601_v11 = vpop.permute.xlu0 %5600 }
0x42c0   :  { %v5603_v62 = vpop.permute.xlu1 %5602 }
0x42c1   :  { %v5604_v21 = vsel %vm62_vm1, %v5601_v11, %v5603_v62 }
0x42c2   :  { %v5606_v23 = vadd.f32 %v5604_v21, %v5594_v58  ;;  %v5614_v33 = vpop.permute.xlu0 %5613 }
0x42c4   :  { %v8243_v9 = vmul.f32 -1.442695, %v5606_v23 }
0x42c6   :  { %10144 = vpow2.f32 %v8243_v9  ;;  %v12862_v9 = vld [vmem:[%s13593_s3 + $0x18] sm:$0xff] }
0x42d3   :  { %v10145_v36 = vpop.eup %10144 }
0x42d4   :  { %v5610_v4 = vadd.f32 1.0, %v10145_v36  ;;  %v12871_v36 = vld [vmem:[%s13593_s3 + $0x10] sm:$0xff] }
0x42d6   :  { %10146 = vrcp.f32 %v5610_v4  ;;  %v12878_v4 = vld [vmem:[%s13593_s3 + $0x8] sm:$0xff] }
0x42e3   :  { %v10147_v7 = vpop.eup %10146 }
0x42e4   :  { %v5616_v40 = vmul.f32 %v10147_v7, %v5614_v33  ;;  %v5623_v8 = vsub.f32 1.0, %v10147_v7  ;;  %v5629_v43 = vmul.f32 %v10147_v7, %v12607_v53  ;;  %v12843_v53 = vld [vmem:[#allocation2 + $0xb8] sm:$0xff]  ;;  %v12885_v7 = vld [vmem:[%s13593_s3] sm:$0xff] }
0x42e6   :  { %5618 = vrot.lane.b32.xlu1 %v5616_v40, %s10364_s20 }
0x4358   :  { %v5619_v31 = vpop.permute.xlu1 %5618 }
0x4359   :  { %v5621_v35 = vadd.f32 %v5619_v31, %v5594_v58 }
0x435b   :  { %10148 = vtanh.f32 %v5621_v35 }
0x4368   :  { %v10149_v17 = vpop.eup %10148 }
0x4369   :  { %5625 = vrot.lane.b32.xlu0 %v10149_v17, %s10366_s11 }
0x43db   :  { %v5626_v56 = vpop.permute.xlu0 %5625 }
0x43dc   :  { %v5628_v51 = vmul.f32 %v5626_v56, %v5623_v8 }
0x43de   :  { %v12815_v50 = vadd.f32 %v5629_v43, %v5628_v51 }
0x43e0   :  { %5632 = vrot.lane.b32.xlu1 %v12815_v50, %s10366_s11 }
0x4452   :  { %v5633_v0 = vpop.permute.xlu1 %5632 }
0x4453   :  { %v5635_v15 = vsel %vm62_vm1, %v5633_v0, %v12753_v60 }
0x4454   :  { %9789 = vmatmul.mubr.msk.f32.vlgmr.msra.gmra.mxu0 %vm247_vm6, %v5635_v15 }
0x4455   :  { %9814 = vmatpush3.msk.msra.mxu0 %vm12191_vm12, %v13733_v18 }
0x4456   :  { %9815 = vmatprep.subr.msk.mxu0 %vm12202_vm2, %v13733_v18 }
0x4457   :  { %9816 = vmatpush3.msk.msra.mxu0 %vm12202_vm2, %v13733_v18 }
0x4458   :  { %9817 = vmatprep.subr.msk.mxu0 %vm12212_vm9, %v13733_v18 }
0x4459   :  { %9818 = vmatpush3.msk.msra.mxu0 %vm12212_vm9, %v13733_v18 }
0x445a   :  { %9819 = vmatprep.subr.msk.mxu0 %vm12224_vm13, %v13733_v18 }
0x445b   :  { %9820 = vmatpush3.msk.msra.mxu0 %vm12224_vm13, %v13733_v18 }
0x445c   :  { %6215 = vmatprep.subr.mxu0 %v12843_v53 }
0x4514   :  { %v5705_v60 = vpop.f32.mrf.mxu0 }
0x4515   :  { %v12847_v58 = vadd.f32 %v12639_v10, %v5705_v60 }
0x4516   :  { %v9790_v39 = vpop.f32.mrf.mxu0 }
0x4517   :  { %13763 = vst [vmem:[#allocation10_spill] sm:$0xff] %v12847_v58  ;;  %v5709_v28 = vsel %vm4916_vm7, %v12847_v58, -inf  ;;  %v12907_v39 = vld [vmem:[#allocation2 + $0xb0] sm:$0xff] }
0x4518   :  { %5710 = vmax.xlane.f32.xlu0 %v5709_v28  ;;  %13764 = vst [vmem:[#allocation11_spill] sm:$0xff] %v12907_v39  ;;  %v12911_v28 = vld [vmem:[#allocation2 + $0xa8] sm:$0xff] }
0x4519   :  { %13765 = vst [vmem:[#allocation12_spill] sm:$0xff] %v12911_v28 }
0x45a1   :  { %v5711_v11 = vpop.xlane.xlu0 %5710 }
0x45a2   :  { %vm5712_vm4 = vcmp.eq.f32.partialorder %v12847_v58, %v5711_v11  ;;  %v12914_v11 = vld [vmem:[#allocation2 + $0xa0] sm:$0xff] }
0x45a3   :  { %v5713_v62 = vsel %vm5712_vm4, %v12647_v59, 32.0  ;;  %13766 = vst [vmem:[#allocation13_spill] sm:$0xff] %v12914_v11  ;;  %v12962_v58 = vld [vmem:[#allocation2 + $0x20] sm:$0xff] }
0x45a4   :  { %v5714_v21 = vsel %vm4916_vm7, %v5713_v62, inf  ;;  %v12917_v62 = vld [vmem:[#allocation2 + $0x98] sm:$0xff]  ;;  %13782 = vst [vmem:[#allocation19_spill] sm:$0xff] %v12962_v58 }
0x45a5   :  { %5715 = vmin.xlane.f32.xlu1 %v5714_v21  ;;  %13767 = vst [vmem:[#allocation23_spill] sm:$0xff] %v12917_v62  ;;  %v12920_v21 = vld [vmem:[#allocation2 + $0x90] sm:$0xff] }
0x45a6   :  { %13768 = vst [vmem:[#allocation14_spill] sm:$0xff] %v12920_v21 }
0x45b6   :  { %6199 = vrot.lane.b32.xlu1 %v12779_v34, %s10365_s21 }
0x462e   :  { %v5716_v23 = vpop.xlane.xlu1 %5715 }
0x462f   :  { %vm5717_vm14 = vcmp.eq.f32.partialorder %v12647_v59, %v5716_v23  ;;  %v12923_v23 = vld [vmem:[#allocation2 + $0x88] sm:$0xff] }
0x4630   :  { %v8245_v10 = vsel %vm5717_vm14, 1.0, %v13727_v1  ;;  %13769 = vst [vmem:[#allocation15_spill] sm:$0xff] %v12923_v23 }
0x4631   :  { %9800 = vmatmul.mubr.msk.f32.vlgmr.msra.gmra.mxu1 %vm62_vm1, %v8245_v10  ;;  %v12926_v10 = vld [vmem:[#allocation2 + $0x80] sm:$0xff] }
0x4632   :  { %9803 = vmatpush3.msra.mxu1 %v12862_v9  ;;  %9810 = vmatprep.mubr.msk.f32.mxu1 %vm10363_vm0, %v13727_v1  ;;  %13770 = vst [vmem:[#allocation24_spill] sm:$0xff] %v12926_v10 }
0x4633   :  { %9804 = vmatprep.subr.mxu1 %v13727_v1 }
0x4634   :  { %9805 = vmatpush3.msra.mxu1 %v12871_v36 }
0x4635   :  { %9806 = vmatprep.subr.mxu1 %v13727_v1 }
0x4636   :  { %9807 = vmatpush3.msra.mxu1 %v12878_v4 }
0x4637   :  { %9808 = vmatprep.subr.mxu1 %v13727_v1 }
0x4638   :  { %9809 = vmatpush3.msra.mxu1 %v12885_v7 }
0x4639   :  { %9811 = vmatmul.mubr.msk.f32.vlgmr.msra.gmra.mxu1 %vm62_vm1, %v5633_v0  ;;  %9824 = vmatprep.subr.msk.mxu1 %vm12258_vm10, %v13733_v18 }
0x463a   :  { %9825 = vmatpush3.msk.msra.mxu1 %vm12258_vm10, %v13733_v18 }
0x463b   :  { %9829 = vmatprep.subr.mxu1 %v13727_v1 }
0x46f1   :  { %v12896_v33 = vpop.f32.mrf.mxu1 }
0x46f3   :  { %v9801_v40 = vpop.f32.mrf.mxu1 }
0x46f4   :  { %v12929_v40 = vld [vmem:[#allocation2 + $0x78] sm:$0xff] }
0x46f5   :  { %13771 = vst [vmem:[#allocation25_spill] sm:$0xff] %v12929_v40 }
0x46f9   :  { %v5861_v31 = vpop.f32.mrf.mxu1 }
0x46fa   :  { %v5872_v35 = vrot.slane %v5861_v31, %v12005_v48  ;;  %v12932_v31 = vld [vmem:[#allocation2 + $0x70] sm:$0xff] }
0x46fb   :  { %v9812_v17 = vpop.f32.mrf.mxu1  ;;  %13772 = vst [vmem:[#allocation26_spill] sm:$0xff] %v12932_v31 }
0x46fc   :  { %v5873_v8 = vcombine.high %v5872_v35, %v5872_v35  ;;  %v5880_v56 = vrot.slane %v5872_v35, %v12005_v48  ;;  %v12935_v35 = vld [vmem:[#allocation2 + $0x68] sm:$0xff]  ;;  %v12938_v17 = vld [vmem:[#allocation2 + $0x60] sm:$0xff] }
0x46fd   :  { %13773 = vst [vmem:[#allocation27_spill] sm:$0xff] %v12935_v35  ;;  %13774 = vst [vmem:[#allocation28_spill] sm:$0xff] %v12938_v17 }
0x46fe   :  { %v5887_v43 = vrot.slane %v5873_v8, %v12005_v48  ;;  %v5891_v51 = vrot.slane %v5880_v56, %v10403_v3  ;;  %v12941_v8 = vld [vmem:[#allocation2 + $0x58] sm:$0xff]  ;;  %v12944_v56 = vld [vmem:[#allocation2 + $0x50] sm:$0xff] }
0x46ff   :  { %13775 = vst [vmem:[#allocation29_spill] sm:$0xff] %v12941_v8  ;;  %13776 = vst [vmem:[#allocation30_spill] sm:$0xff] %v12944_v56 }
0x4700   :  { %v5895_v0 = vrot.slane %v5887_v43, %v10403_v3  ;;  %v5898_v15 = vmul.f32 %v5891_v51, %v12241_v19  ;;  %v12947_v43 = vld [vmem:[#allocation2 + $0x48] sm:$0xff]  ;;  %v12950_v51 = vld [vmem:[#allocation2 + $0x40] sm:$0xff] }
0x4701   :  { %13777 = vst [vmem:[#allocation31_spill] sm:$0xff] %v12947_v43  ;;  %13778 = vst [vmem:[#allocation32_spill] sm:$0xff] %v12950_v51 }
0x4702   :  { %v5899_v60 = vmul.f32 %v12239_v25, %v5895_v0  ;;  %9821 = vmatprep.mubr.msk.f32.mxu0 %vm62_vm1, %v5898_v15  ;;  %v12953_v0 = vld [vmem:[#allocation2 + $0x38] sm:$0xff]  ;;  %v12956_v15 = vld [vmem:[#allocation2 + $0x30] sm:$0xff] }
0x4703   :  { %13779 = vst [vmem:[#allocation16_spill] sm:$0xff] %v12953_v0  ;;  %13780 = vst [vmem:[#allocation17_spill] sm:$0xff] %v12956_v15 }
0x4704   :  { %9822 = vmatmul.mubr.msk.f32.vlgmr.msra.gmra.mxu0 %vm62_vm1, %v5899_v60  ;;  %v12959_v60 = vld [vmem:[#allocation2 + $0x28] sm:$0xff] }
0x4705   :  { %6216 = vmatpush1.msra.mxu0 %v12907_v39  ;;  %6271 = vmatprep.mubr.f32.mxu0 %v13727_v1  ;;  %13781 = vst [vmem:[#allocation18_spill] sm:$0xff] %v12959_v60 }
0x4706   :  { %6217 = vmatprep.subr.mxu0 %v12911_v28 }
0x4707   :  { %6218 = vmatpush1.msra.mxu0 %v12914_v11 }
0x4708   :  { %6219 = vmatprep.subr.mxu0 %v12917_v62 }
0x4709   :  { %6220 = vmatpush1.msra.mxu0 %v12920_v21 }
0x470a   :  { %6221 = vmatprep.subr.mxu0 %v12923_v23 }
0x470b   :  { %6222 = vmatpush1.msra.mxu0 %v12926_v10 }
0x470c   :  { %6223 = vmatprep.subr.mxu0 %v12929_v40 }
0x470d   :  { %6224 = vmatpush1.msra.mxu0 %v12932_v31 }
0x470e   :  { %6225 = vmatprep.subr.mxu0 %v12935_v35 }
0x470f   :  { %6226 = vmatpush1.msra.mxu0 %v12938_v17 }
0x4710   :  { %6227 = vmatprep.subr.mxu0 %v12941_v8 }
0x4711   :  { %6228 = vmatpush1.msra.mxu0 %v12944_v56 }
0x4712   :  { %6229 = vmatprep.subr.mxu0 %v12947_v43 }
0x4713   :  { %6230 = vmatpush1.msra.mxu0 %v12950_v51  ;;  %v12968_v51 = vld [vmem:[#allocation2 + $0x10] sm:$0xff] }
0x4714   :  { %6231 = vmatprep.subr.mxu0 %v12953_v0  ;;  %13784 = vst [vmem:[#allocation35_spill] sm:$0xff] %v12968_v51  ;;  %v12971_v0 = vld [vmem:[#allocation2 + $0x8] sm:$0xff] }
0x4715   :  { %6232 = vmatpush1.msra.mxu0 %v12956_v15  ;;  %13785 = vst [vmem:[#allocation36_spill] sm:$0xff] %v12971_v0  ;;  %v12974_v15 = vld [vmem:[#allocation2] sm:$0xff] }
0x4716   :  { %6233 = vmatprep.subr.mxu0 %v12959_v60  ;;  %13786 = vst [vmem:[#allocation37_spill] sm:$0xff] %v12974_v15 }
0x4717   :  { %6234 = vmatpush1.msra.mxu0 %v12962_v58 }
0x4718   :  { %6235 = vmatprep.subr.mxu0 %v12965_v20 }
0x4719   :  { %6236 = vmatpush1.msra.mxu0 %v12968_v51 }
0x471a   :  { %6237 = vmatprep.subr.mxu0 %v12971_v0 }
0x471b   :  { %6238 = vmatpush1.msra.mxu0 %v12974_v15 }
0x471c   :  { %9859 = vmatprep.subr.mxu0 %v13727_v1 }
0x47c4   :  { %v9823_v60 = vpop.f32.mrf.mxu0 }
0x47c5   :  { %v5982_v58 = vmul.f32 0.5, %v9823_v60 }
0x47c6   :  { %v5972_v43 = vpop.f32.mrf.mxu0 }
0x47c7   :  { %v5984_v56 = vadd.f32 %v5982_v58, %v12270_v47  ;;  %v5981_v20 = vmul.f32 0.5, %v5972_v43 }
0x47c9   :  { %v5992_v8 = vsel %vm4295_vm11, %v5984_v56, -inf  ;;  %v5983_v51 = vadd.f32 %v5981_v20, %v12268_v44 }
0x47ca   :  { %v5993_v17 = vrot.slane %v5992_v8, 4 }
0x47cb   :  { %v5985_v35 = vsel %vm4295_vm11, %v5983_v51, -inf }
0x47cc   :  { %v5994_v0 = vmax.f32 %v5992_v8, %v5993_v17  ;;  %v5986_v31 = vrot.slane %v5985_v35, 4 }
0x47ce   :  { %v5995_v40 = vrot.slane %v5994_v0, 2  ;;  %v5987_v10 = vmax.f32 %v5985_v35, %v5986_v31 }
0x47d0   :  { %v5996_v15 = vmax.f32 %v5994_v0, %v5995_v40  ;;  %v5988_v23 = vrot.slane %v5987_v10, 2 }
0x47d2   :  { %v5997_v21 = vrot.slane %v5996_v15, 1  ;;  %v5989_v62 = vmax.f32 %v5987_v10, %v5988_v23 }
0x47d4   :  { %v5998_v60 = vmax.f32 %v5996_v15, %v5997_v21  ;;  %v5990_v11 = vrot.slane %v5989_v62, 1 }
0x47d6   :  { %v6000_v28 = vsub.f32 %v5984_v56, %v5998_v60  ;;  %v5991_v58 = vmax.f32 %v5989_v62, %v5990_v11 }
0x47d8   :  { %v6003_v43 = vmul.f32 1.442695, %v6000_v28  ;;  %v5999_v47 = vsub.f32 %v5983_v51, %v5991_v58  ;;  %v12998_v58 = vld [vmem:[%s13593_s3 + $0xb0] sm:$0xff] }
0x47da   :  { %10150 = vpow2.f32 %v6003_v43  ;;  %v6001_v39 = vmul.f32 1.442695, %v5999_v47  ;;  %v13005_v43 = vld [vmem:[%s13593_s3 + $0xa8] sm:$0xff] }
0x47dc   :  { %10152 = vpow2.f32 %v6001_v39 }
0x47e7   :  { %v10151_v20 = vpop.eup %10150 }
0x47e8   :  { %v6012_v44 = vsel %vm4295_vm11, %v10151_v20, 0.0 }
0x47e9   :  { %v10153_v17 = vpop.eup %10152  ;;  %v6013_v8 = vrot.slane %v6012_v44, 4 }
0x47ea   :  { %v6005_v31 = vsel %vm4295_vm11, %v10153_v17, 0.0 }
0x47eb   :  { %v6014_v40 = vadd.f32 %v6013_v8, %v6012_v44  ;;  %v6006_v35 = vrot.slane %v6005_v31, 4  ;;  %v12989_v44 = vld [vmem:[%s13593_s3 + $0xb8] sm:$0xff] }
0x47ed   :  { %v6015_v0 = vrot.slane %v6014_v40, 2  ;;  %v6007_v23 = vadd.f32 %v6006_v35, %v6005_v31 }
0x47ef   :  { %v6016_v21 = vadd.f32 %v6015_v0, %v6014_v40  ;;  %v6008_v10 = vrot.slane %v6007_v23, 2 }
0x47f1   :  { %v6017_v56 = vrot.slane %v6016_v21, 1  ;;  %v6009_v11 = vadd.f32 %v6008_v10, %v6007_v23 }
0x47f3   :  { %v6018_v28 = vadd.f32 %v6017_v56, %v6016_v21  ;;  %v6010_v62 = vrot.slane %v6009_v11, 1 }
0x47f5   :  { %v6011_v51 = vadd.f32 %v6010_v62, %v6009_v11  ;;  %10154 = vrcp.f32 %v6018_v28 }
0x47f7   :  { %10156 = vrcp.f32 %v6011_v51 }
0x4802   :  { %v10155_v47 = vpop.eup %10154 }
0x4803   :  { %v6022_v60 = vmul.f32 %v10155_v47, %v10151_v20  ;;  %v13012_v20 = vld [vmem:[%s13593_s3 + $0xa0] sm:$0xff] }
0x4804   :  { %v10157_v39 = vpop.eup %10156 }
0x4805   :  { %v6020_v15 = vmul.f32 %v10157_v39, %v10153_v17 }
0x4807   :  { %9826 = vmatprep.mubr.msk.f32.mxu1 %vm4295_vm11, %v6020_v15 }
0x4808   :  { %9827 = vmatmul.mubr.msk.f32.vlgmr.msra.gmra.mxu1 %vm4295_vm11, %v6022_v60 }
0x4809   :  { %9830 = vmatpush3.msra.mxu1 %v12989_v44  ;;  %9837 = vmatprep.mubr.msk.f32.mxu1 %vm10363_vm0, %v13727_v1 }
0x480a   :  { %9831 = vmatprep.subr.mxu1 %v13727_v1 }
0x480b   :  { %9832 = vmatpush3.msra.mxu1 %v12998_v58 }
0x480c   :  { %9833 = vmatprep.subr.mxu1 %v13727_v1 }
0x480d   :  { %9834 = vmatpush3.msra.mxu1 %v13005_v43 }
0x480e   :  { %9835 = vmatprep.subr.mxu1 %v13727_v1 }
0x480f   :  { %9836 = vmatpush3.msra.mxu1 %v13012_v20 }
0x4810   :  { %6335 = vmatprep.subr.mxu1 %v13739_v41 }
0x48c8   :  { %v9828_v17 = vpop.f32.mrf.mxu1 }
0x48c9   :  { %v6105_v8 = vmul.f32 %v9828_v17, %v13740_v38 }
0x48ca   :  { %v6095_v31 = vpop.f32.mrf.mxu1 }
0x48cb   :  { %v6113_v40 = vsel %vm62_vm1, %v6105_v8, 0.0  ;;  %v6104_v35 = vmul.f32 %v6095_v31, %v13741_v16  ;;  %v13042_v31 = vld [vmem:[%s13593_s3 + $0x140] ss:$0 sm:$0xff] }
0x48cc   :  { %v6114_v0 = vrot.slane %v6113_v40, 4 }
0x48cd   :  { %v6106_v23 = vsel %vm62_vm1, %v6104_v35, 0.0 }
0x48ce   :  { %v6115_v21 = vadd.f32 %v6114_v0, %v6113_v40  ;;  %v6107_v10 = vrot.slane %v6106_v23, 4 }
0x48d0   :  { %v6116_v56 = vrot.slane %v6115_v21, 2  ;;  %v6108_v11 = vadd.f32 %v6107_v10, %v6106_v23  ;;  %v6200_v23 = vpop.permute.xlu1 %6199 }
0x48d2   :  { %v6117_v28 = vadd.f32 %v6116_v56, %v6115_v21  ;;  %v6109_v62 = vrot.slane %v6108_v11, 2  ;;  %v13056_v56 = vld [vmem:[%s13593_s3 + $0x17b] sm:$0xff] }
0x48d4   :  { %v6118_v51 = vrot.slane %v6117_v28, 1  ;;  %v6110_v47 = vadd.f32 %v6109_v62, %v6108_v11  ;;  %v13072_v11 = vld [vmem:[%s13593_s3 + $0x16b] sm:$0xff] }
0x48d6   :  { %v6111_v39 = vrot.slane %v6110_v47, 1  ;;  %v6119_v15 = vadd.f32 %v6118_v51, %v6117_v28  ;;  %v13079_v28 = vld [vmem:[%s13593_s3 + $0x163] sm:$0xff] }
0x48d7   :  { %13787 = vst [vmem:[#allocation39_spill] sm:$0xff] %v13079_v28 }
0x48d8   :  { %v6112_v60 = vadd.f32 %v6111_v39, %v6110_v47 }
0x48da   :  { %v6122_v17 = vsel %vm243_vm5, %v6119_v15, %v6112_v60 }
0x48db   :  { %9838 = vmatmul.mubr.msk.f32.vlgmr.msra.gmra.mxu1 %vm62_vm1, %v6122_v17 }
0x48dc   :  { %6336 = vmatpush1.msra.mxu1 %v13742_v22  ;;  %6383 = vmatprep.mubr.f32.mxu1 %v13727_v1 }
0x48dd   :  { %6337 = vmatprep.subr.mxu1 %v13743_v61 }
0x48de   :  { %6338 = vmatpush1.msra.mxu1 %v12471_v57 }
0x48df   :  { %6339 = vmatprep.subr.mxu1 %v12474_v54 }
0x48e0   :  { %6340 = vmatpush1.msra.mxu1 %v12478_v42 }
0x48e1   :  { %6341 = vmatprep.subr.mxu1 %v12482_v2 }
0x48e2   :  { %6342 = vmatpush1.msra.mxu1 %v12486_v45 }
0x48e3   :  { %6343 = vmatprep.subr.mxu1 %v12491_v63 }
0x48e4   :  { %6344 = vmatpush1.msra.mxu1 %v13744_v55 }
0x48e5   :  { %6345 = vmatprep.subr.mxu1 %v13745_v37 }
0x48e6   :  { %6346 = vmatpush1.msra.mxu1 %v13746_v30 }
0x48e7   :  { %6347 = vmatprep.subr.mxu1 %v13747_v12 }
0x48e8   :  { %6348 = vmatpush1.msra.mxu1 %v13748_v49 }
0x48e9   :  { %6349 = vmatprep.subr.mxu1 %v13749_v46 }
0x48ea   :  { %6350 = vmatpush1.msra.mxu1 %v13750_v24 }
0x48eb   :  { %9840 = vmatprep.subr.mxu1 %v13727_v1 }
0x499b   :  { %v6191_v8 = vpop.f32.mrf.mxu1 }
0x499c   :  { %v6192_v40 = vadd.f32 %v13042_v31, %v6191_v8 }
0x499d   :  { %v9839_v35 = vpop.f32.mrf.mxu1 }
0x499e   :  { %6196 = vrot.lane.b32.xlu0 %v6192_v40, %s10365_s21 }
0x4a10   :  { %v13046_v0 = vpop.permute.xlu0 %6196 }
0x4a11   :  { %v6202_v21 = vsel %vm62_vm1, %v12896_v33, %v13046_v0  ;;  %v13065_v33 = vld [vmem:[%s13593_s3 + $0x173] sm:$0xff] }
0x4a12   :  { %v6203_v10 = vsel %vm247_vm6, %v6202_v21, %v6200_v23 }
0x4a13   :  { %8258 = vmatmul.mubr.msk.f32.vlgmr.msra.gmra.mxu0 %vm1861_vm15, %v6203_v10 }
0x4a14   :  { %9860 = vmatpush3.msra.mxu0 %v13056_v56  ;;  %9867 = vmatprep.mubr.msk.f32.mxu0 %vm10363_vm0, %v13727_v1 }
0x4a15   :  { %9861 = vmatprep.subr.mxu0 %v13727_v1 }
0x4a16   :  { %9862 = vmatpush3.msra.mxu0 %v13065_v33 }
0x4a17   :  { %9863 = vmatprep.subr.mxu0 %v13727_v1 }
0x4a18   :  { %9864 = vmatpush3.msra.mxu0 %v13072_v11 }
0x4a19   :  { %9865 = vmatprep.subr.mxu0 %v13727_v1 }
0x4a1a   :  { %9866 = vmatpush3.msra.mxu0 %v13079_v28 }
0x4a1b   :  { %9870 = vmatprep.subr.mxu0 %v13727_v1 }
0x4ad3   :  { %v6273_v62 = vpop.f32.mrf.mxu0 }
0x4ad4   :  { %v6274_v51 = vadd.f32 %v6273_v62, %v13756_v5 }
0x4ad5   :  { %v6275_v47 = vpop.f32.mrf.mxu0 }
0x4ad6   :  { %v6276_v39 = vadd.f32 %v6275_v47, %v13757_v6  ;;  %6280 = vrot.lane.b32.xlu0 %v6274_v51, %s10365_s21 }
0x4ad8   :  { %6282 = vrot.lane.b32.xlu1 %v6276_v39, %s10365_s21 }
0x4ada   :  { %6293 = vrot.lane.b32.xlu0 %v6276_v39, %s10366_s11 }
0x4b48   :  { %v6281_v15 = vpop.permute.xlu0 %6280 }
0x4b4a   :  { %v6283_v60 = vpop.permute.xlu1 %6282 }
0x4b4b   :  { %v6284_v17 = vsel %vm62_vm1, %v6281_v15, %v6283_v60 }
0x4b4c   :  { %v6286_v8 = vadd.f32 %v6284_v17, %v6274_v51  ;;  %v6294_v10 = vpop.permute.xlu0 %6293 }
0x4b4e   :  { %v8259_v40 = vmul.f32 -1.442695, %v6286_v8 }
0x4b50   :  { %10158 = vpow2.f32 %v8259_v40 }
0x4b5d   :  { %v10159_v35 = vpop.eup %10158 }
0x4b5e   :  { %v6290_v23 = vadd.f32 1.0, %v10159_v35  ;;  %v13139_v35 = vld [vmem:[%s13593_s3 + $0x110] sm:$0xff] }
0x4b5f   :  { %13791 = vst [vmem:[#allocation43_spill] sm:$0xff] %v13139_v35 }
0x4b60   :  { %10160 = vrcp.f32 %v6290_v23  ;;  %v13146_v23 = vld [vmem:[%s13593_s3 + $0x108] sm:$0xff] }
0x4b61   :  { %13792 = vst [vmem:[#allocation44_spill] sm:$0xff] %v13146_v23 }
0x4b6d   :  { %v10161_v21 = vpop.eup %10160 }
0x4b6e   :  { %v6296_v62 = vmul.f32 %v10161_v21, %v6294_v10  ;;  %v6303_v39 = vsub.f32 1.0, %v10161_v21  ;;  %v6309_v15 = vmul.f32 %v10161_v21, %v12779_v34  ;;  %v13118_v34 = vld [vmem:[%s13593_s3 + $0x128] sm:$0xff]  ;;  %v13153_v21 = vld [vmem:[%s13593_s3 + $0x100] sm:$0xff] }
0x4b6f   :  { %13788 = vst [vmem:[#allocation40_spill] sm:$0xff] %v13118_v34  ;;  %13793 = vst [vmem:[#allocation45_spill] sm:$0xff] %v13153_v21 }
0x4b70   :  { %6298 = vrot.lane.b32.xlu1 %v6296_v62, %s10364_s20 }
0x4be2   :  { %v6299_v47 = vpop.permute.xlu1 %6298 }
0x4be3   :  { %v6301_v6 = vadd.f32 %v6299_v47, %v6274_v51  ;;  %v13132_v51 = vld [vmem:[%s13593_s3 + $0x118] sm:$0xff] }
0x4be4   :  { %13790 = vst [vmem:[#allocation42_spill] sm:$0xff] %v13132_v51 }
0x4be5   :  { %10162 = vtanh.f32 %v6301_v6  ;;  %v13111_v6 = vld [vmem:[%s13593_s3 + $0x130] sm:$0xff] }
0x4bf2   :  { %v10163_v5 = vpop.eup %10162 }
0x4bf3   :  { %6305 = vrot.lane.b32.xlu0 %v10163_v5, %s10366_s11  ;;  %v13102_v5 = vld [vmem:[%s13593_s3 + $0x138] sm:$0xff] }
0x4c65   :  { %v6306_v28 = vpop.permute.xlu0 %6305 }
0x4c66   :  { %v6308_v60 = vmul.f32 %v6306_v28, %v6303_v39  ;;  %v13125_v28 = vld [vmem:[%s13593_s3 + $0x120] sm:$0xff] }
0x4c67   :  { %13789 = vst [vmem:[#allocation41_spill] sm:$0xff] %v13125_v28 }
0x4c68   :  { %v13092_v17 = vadd.f32 %v6309_v15, %v6308_v60 }
0x4c6a   :  { %6312 = vrot.lane.b32.xlu1 %v13092_v17, %s10366_s11 }
0x4cdc   :  { %v6313_v8 = vpop.permute.xlu1 %6312 }
0x4cdd   :  { %v6315_v40 = vsel %vm62_vm1, %v6313_v8, %v12815_v50 }
0x4cde   :  { %8260 = vmatmul.mubr.msk.f32.vlgmr.msra.gmra.mxu1 %vm247_vm6, %v6315_v40 }
0x4cdf   :  { %9841 = vmatpush3.msra.mxu1 %v13102_v5  ;;  %9856 = vmatprep.mubr.msk.f32.mxu1 %vm10363_vm0, %v13727_v1 }
0x4ce0   :  { %9842 = vmatprep.subr.mxu1 %v13727_v1 }
0x4ce1   :  { %9843 = vmatpush3.msra.mxu1 %v13111_v6 }
0x4ce2   :  { %9844 = vmatprep.subr.mxu1 %v13727_v1 }
0x4ce3   :  { %9845 = vmatpush3.msra.mxu1 %v13118_v34 }
0x4ce4   :  { %9846 = vmatprep.subr.mxu1 %v13727_v1 }
0x4ce5   :  { %9847 = vmatpush3.msra.mxu1 %v13125_v28 }
0x4ce6   :  { %9848 = vmatprep.subr.mxu1 %v13727_v1 }
0x4ce7   :  { %9849 = vmatpush3.msra.mxu1 %v13132_v51 }
0x4ce8   :  { %9850 = vmatprep.subr.mxu1 %v13727_v1 }
0x4ce9   :  { %9851 = vmatpush3.msra.mxu1 %v13139_v35 }
0x4cea   :  { %9852 = vmatprep.subr.mxu1 %v13727_v1 }
0x4ceb   :  { %9853 = vmatpush3.msra.mxu1 %v13146_v23 }
0x4cec   :  { %9854 = vmatprep.subr.mxu1 %v13727_v1 }
0x4ced   :  { %9855 = vmatpush3.msra.mxu1 %v13153_v21 }
0x4cee   :  { %9881 = vmatprep.subr.msk.mxu1 %vm12191_vm12, %v13733_v18 }
0x4d9e   :  { %v6385_v10 = vpop.f32.mrf.mxu1 }
0x4d9f   :  { %v6386_v62 = vadd.f32 %v6385_v10, %v13761_v29 }
0x4da0   :  { %v6387_v47 = vpop.f32.mrf.mxu1 }
0x4da1   :  { %v6388_v39 = vadd.f32 %v6387_v47, %v13762_v27  ;;  %6392 = vrot.lane.b32.xlu0 %v6386_v62, %s10365_s21 }
0x4da3   :  { %6394 = vrot.lane.b32.xlu1 %v6388_v39, %s10365_s21 }
0x4da5   :  { %6405 = vrot.lane.b32.xlu0 %v6388_v39, %s10366_s11 }
0x4e13   :  { %v6393_v15 = vpop.permute.xlu0 %6392 }
0x4e15   :  { %v6395_v60 = vpop.permute.xlu1 %6394 }
0x4e16   :  { %v6396_v8 = vsel %vm62_vm1, %v6393_v15, %v6395_v60 }
0x4e17   :  { %v6398_v40 = vadd.f32 %v6396_v8, %v6386_v62  ;;  %v6406_v29 = vpop.permute.xlu0 %6405 }
0x4e19   :  { %v8261_v21 = vmul.f32 -1.442695, %v6398_v40 }
0x4e1b   :  { %10164 = vpow2.f32 %v8261_v21 }
0x4e28   :  { %v10165_v23 = vpop.eup %10164 }
0x4e29   :  { %v6402_v35 = vadd.f32 1.0, %v10165_v23 }
0x4e2b   :  { %10166 = vrcp.f32 %v6402_v35 }
0x4e38   :  { %v10167_v10 = vpop.eup %10166 }
0x4e39   :  { %v6408_v51 = vmul.f32 %v10167_v10, %v6406_v29  ;;  %v6415_v39 = vsub.f32 1.0, %v10167_v10  ;;  %v6421_v15 = vmul.f32 %v10167_v10, %v12815_v50  ;;  %v13200_v50 = vld [vmem:[%s13593_s3 + $0x142] ss:$0 sm:$0xff] }
0x4e3b   :  { %6410 = vrot.lane.b32.xlu1 %v6408_v51, %s10364_s20 }
0x4ead   :  { %v6411_v47 = vpop.permute.xlu1 %6410 }
0x4eae   :  { %v6413_v27 = vadd.f32 %v6411_v47, %v6386_v62 }
0x4eb0   :  { %10168 = vtanh.f32 %v6413_v27 }
0x4ebd   :  { %v10169_v28 = vpop.eup %10168 }
0x4ebe   :  { %6417 = vrot.lane.b32.xlu0 %v10169_v28, %s10366_s11 }
0x4f30   :  { %v6418_v34 = vpop.permute.xlu0 %6417 }
0x4f31   :  { %v6420_v60 = vmul.f32 %v6418_v34, %v6415_v39 }
0x4f33   :  { %v13168_v21 = vadd.f32 %v6421_v15, %v6420_v60 }
0x4f35   :  { %6424 = vrot.lane.b32.xlu1 %v13168_v21, %s10366_s11 }
0x4fa7   :  { %v6425_v35 = vpop.permute.xlu1 %6424 }
0x4fa8   :  { %v6427_v29 = vsel %vm62_vm1, %v6425_v35, %v13046_v0 }
0x4fa9   :  { %9857 = vmatmul.mubr.msk.f32.vlgmr.msra.gmra.mxu1 %vm247_vm6, %v6427_v29 }
0x4faa   :  { %9882 = vmatpush3.msk.msra.mxu1 %vm12191_vm12, %v13733_v18 }
0x4fab   :  { %9883 = vmatprep.subr.msk.mxu1 %vm12202_vm2, %v13733_v18 }
0x4fac   :  { %9884 = vmatpush3.msk.msra.mxu1 %vm12202_vm2, %v13733_v18 }
0x4fad   :  { %9885 = vmatprep.subr.msk.mxu1 %vm12212_vm9, %v13733_v18 }
0x4fae   :  { %9886 = vmatpush3.msk.msra.mxu1 %vm12212_vm9, %v13733_v18 }
0x4faf   :  { %9887 = vmatprep.subr.msk.mxu1 %vm12224_vm13, %v13733_v18 }
0x4fb0   :  { %9888 = vmatpush3.msk.msra.mxu1 %vm12224_vm13, %v13733_v18 }
0x4fb1   :  { %7007 = vmatprep.subr.mxu1 %v12843_v53 }
0x5069   :  { %v6497_v27 = vpop.f32.mrf.mxu1 }
0x506a   :  { %v13203_v0 = vadd.f32 %v13200_v50, %v6497_v27  ;;  %v13795_v27 = vld [vmem:[#allocation11_spill] sm:$0xff] }
0x506b   :  { %v9858_v34 = vpop.f32.mrf.mxu1 }
0x506c   :  { %13794 = vst [vmem:[#allocation46_spill] sm:$0xff] %v13203_v0  ;;  %v6501_v28 = vsel %vm4916_vm7, %v13203_v0, -inf  ;;  %v13796_v34 = vld [vmem:[#allocation12_spill] sm:$0xff] }
0x506d   :  { %6502 = vmax.xlane.f32.xlu0 %v6501_v28  ;;  %v13797_v28 = vld [vmem:[#allocation13_spill] sm:$0xff] }
0x50f6   :  { %v6503_v51 = vpop.xlane.xlu0 %6502 }
0x50f7   :  { %vm6504_vm3 = vcmp.eq.f32.partialorder %v13203_v0, %v6503_v51  ;;  %v13798_v51 = vld [vmem:[#allocation23_spill] sm:$0xff] }
0x50f8   :  { %v6505_v23 = vsel %vm6504_vm3, %v12647_v59, 32.0 }
0x50f9   :  { %v6506_v53 = vsel %vm4916_vm7, %v6505_v23, inf  ;;  %v13799_v23 = vld [vmem:[#allocation14_spill] sm:$0xff] }
0x50fa   :  { %6507 = vmin.xlane.f32.xlu1 %v6506_v53  ;;  %v13800_v53 = vld [vmem:[#allocation15_spill] sm:$0xff] }
0x510b   :  { %6991 = vrot.lane.b32.xlu1 %v13092_v17, %s10365_s21 }
0x5183   :  { %v6508_v62 = vpop.xlane.xlu1 %6507 }
0x5184   :  { %vm6509_vm4 = vcmp.eq.f32.partialorder %v12647_v59, %v6508_v62  ;;  %v13801_v62 = vld [vmem:[#allocation24_spill] sm:$0xff] }
0x5185   :  { %v8263_v8 = vsel %vm6509_vm4, 1.0, %v13727_v1 }
0x5186   :  { %9868 = vmatmul.mubr.msk.f32.vlgmr.msra.gmra.mxu0 %vm62_vm1, %v8263_v8  ;;  %v13802_v8 = vld [vmem:[#allocation25_spill] sm:$0xff] }
0x5187   :  { %9871 = vmatpush3.msra.mxu0 %v12862_v9  ;;  %9878 = vmatprep.mubr.msk.f32.mxu0 %vm10363_vm0, %v13727_v1 }
0x5188   :  { %9872 = vmatprep.subr.mxu0 %v13727_v1 }
0x5189   :  { %9873 = vmatpush3.msra.mxu0 %v12871_v36 }
0x518a   :  { %9874 = vmatprep.subr.mxu0 %v13727_v1 }
0x518b   :  { %9875 = vmatpush3.msra.mxu0 %v12878_v4 }
0x518c   :  { %9876 = vmatprep.subr.mxu0 %v13727_v1 }
0x518d   :  { %9877 = vmatpush3.msra.mxu0 %v12885_v7 }
0x518e   :  { %9879 = vmatmul.mubr.msk.f32.vlgmr.msra.gmra.mxu0 %vm62_vm1, %v6425_v35  ;;  %9892 = vmatprep.subr.msk.mxu0 %vm12258_vm10, %v13733_v18 }
0x518f   :  { %9893 = vmatpush3.msk.msra.mxu0 %vm12258_vm10, %v13733_v18 }
0x5190   :  { %9897 = vmatprep.subr.mxu0 %v13727_v1 }
0x5246   :  { %v13232_v9 = vpop.f32.mrf.mxu0 }
0x5248   :  { %v9869_v36 = vpop.f32.mrf.mxu0 }
0x5249   :  { %v13803_v36 = vld [vmem:[#allocation26_spill] sm:$0xff] }
0x524e   :  { %v6653_v4 = vpop.f32.mrf.mxu0 }
0x524f   :  { %v6664_v40 = vrot.slane %v6653_v4, %v12005_v48  ;;  %v13804_v4 = vld [vmem:[#allocation27_spill] sm:$0xff] }
0x5250   :  { %v9880_v10 = vpop.f32.mrf.mxu0 }
0x5251   :  { %v6665_v7 = vcombine.high %v6664_v40, %v6664_v40  ;;  %v6672_v47 = vrot.slane %v6664_v40, %v12005_v48  ;;  %v13805_v40 = vld [vmem:[#allocation28_spill] sm:$0xff]  ;;  %v13806_v10 = vld [vmem:[#allocation29_spill] sm:$0xff] }
0x5253   :  { %v6679_v39 = vrot.slane %v6665_v7, %v12005_v48  ;;  %v6683_v15 = vrot.slane %v6672_v47, %v10403_v3  ;;  %v13807_v7 = vld [vmem:[#allocation30_spill] sm:$0xff]  ;;  %v13808_v47 = vld [vmem:[#allocation31_spill] sm:$0xff] }
0x5255   :  { %v6687_v60 = vrot.slane %v6679_v39, %v10403_v3  ;;  %v6690_v35 = vmul.f32 %v6683_v15, %v12241_v19  ;;  %v13809_v39 = vld [vmem:[#allocation32_spill] sm:$0xff] }
0x5256   :  { %v13810_v15 = vld [vmem:[#allocation16_spill] sm:$0xff] }
0x5257   :  { %v6691_v29 = vmul.f32 %v12239_v25, %v6687_v60  ;;  %9889 = vmatprep.mubr.msk.f32.mxu1 %vm62_vm1, %v6690_v35  ;;  %v13811_v60 = vld [vmem:[#allocation17_spill] sm:$0xff]  ;;  %v13812_v35 = vld [vmem:[#allocation18_spill] sm:$0xff] }
0x5259   :  { %9890 = vmatmul.mubr.msk.f32.vlgmr.msra.gmra.mxu1 %vm62_vm1, %v6691_v29  ;;  %v13813_v29 = vld [vmem:[#allocation19_spill] sm:$0xff] }
0x525a   :  { %7008 = vmatpush1.msra.mxu1 %v13795_v27  ;;  %7063 = vmatprep.mubr.f32.mxu1 %v13727_v1  ;;  %v13814_v27 = vld [vmem:[#allocation20_spill] sm:$0xff] }
0x525b   :  { %7009 = vmatprep.subr.mxu1 %v13796_v34  ;;  %v13815_v34 = vld [vmem:[#allocation35_spill] sm:$0xff] }
0x525c   :  { %7010 = vmatpush1.msra.mxu1 %v13797_v28  ;;  %v13816_v28 = vld [vmem:[#allocation36_spill] sm:$0xff] }
0x525d   :  { %7011 = vmatprep.subr.mxu1 %v13798_v51  ;;  %v13817_v51 = vld [vmem:[#allocation37_spill] sm:$0xff] }
0x525e   :  { %7012 = vmatpush1.msra.mxu1 %v13799_v23 }
0x525f   :  { %7013 = vmatprep.subr.mxu1 %v13800_v53 }
0x5260   :  { %7014 = vmatpush1.msra.mxu1 %v13801_v62 }
0x5261   :  { %7015 = vmatprep.subr.mxu1 %v13802_v8  ;;  %v13818_v8 = vld [vmem:[#allocation9_spill] sm:$0xff] }
0x5262   :  { %7016 = vmatpush1.msra.mxu1 %v13803_v36 }
0x5263   :  { %7017 = vmatprep.subr.mxu1 %v13804_v4 }
0x5264   :  { %7018 = vmatpush1.msra.mxu1 %v13805_v40 }
0x5265   :  { %7019 = vmatprep.subr.mxu1 %v13806_v10  ;;  %v13819_v10 = vld [vmem:[#allocation8_spill] sm:$0xff] }
0x5266   :  { %7020 = vmatpush1.msra.mxu1 %v13807_v7 }
0x5267   :  { %7021 = vmatprep.subr.mxu1 %v13808_v47 }
0x5268   :  { %7022 = vmatpush1.msra.mxu1 %v13809_v39 }
0x5269   :  { %7023 = vmatprep.subr.mxu1 %v13810_v15 }
0x526a   :  { %7024 = vmatpush1.msra.mxu1 %v13811_v60 }
0x526b   :  { %7025 = vmatprep.subr.mxu1 %v13812_v35 }
0x526c   :  { %7026 = vmatpush1.msra.mxu1 %v13813_v29 }
0x526d   :  { %7027 = vmatprep.subr.mxu1 %v13814_v27 }
0x526e   :  { %7028 = vmatpush1.msra.mxu1 %v13815_v34 }
0x526f   :  { %7029 = vmatprep.subr.mxu1 %v13816_v28 }
0x5270   :  { %7030 = vmatpush1.msra.mxu1 %v13817_v51 }
0x5271   :  { %9927 = vmatprep.subr.mxu1 %v13727_v1 }
0x5319   :  { %v9891_v23 = vpop.f32.mrf.mxu1 }
0x531a   :  { %v6774_v53 = vmul.f32 0.5, %v9891_v23 }
0x531b   :  { %v6764_v62 = vpop.f32.mrf.mxu1 }
0x531c   :  { %v6776_v36 = vadd.f32 %v6774_v53, %v13818_v8  ;;  %v6773_v4 = vmul.f32 0.5, %v6764_v62 }
0x531e   :  { %v6784_v40 = vsel %vm4295_vm11, %v6776_v36, -inf  ;;  %v6775_v7 = vadd.f32 %v6773_v4, %v13819_v10 }
0x531f   :  { %v6785_v47 = vrot.slane %v6784_v40, 4 }
0x5320   :  { %v6777_v39 = vsel %vm4295_vm11, %v6775_v7, -inf }
0x5321   :  { %v6786_v15 = vmax.f32 %v6784_v40, %v6785_v47  ;;  %v6778_v60 = vrot.slane %v6777_v39, 4 }
0x5323   :  { %v6787_v35 = vrot.slane %v6786_v15, 2  ;;  %v6779_v29 = vmax.f32 %v6777_v39, %v6778_v60 }
0x5325   :  { %v6788_v27 = vmax.f32 %v6786_v15, %v6787_v35  ;;  %v6780_v34 = vrot.slane %v6779_v29, 2 }
0x5327   :  { %v6789_v28 = vrot.slane %v6788_v27, 1  ;;  %v6781_v51 = vmax.f32 %v6779_v29, %v6780_v34 }
0x5329   :  { %v6790_v23 = vmax.f32 %v6788_v27, %v6789_v28  ;;  %v6782_v0 = vrot.slane %v6781_v51, 1 }
0x532b   :  { %v6792_v25 = vsub.f32 %v6776_v36, %v6790_v23  ;;  %v6783_v53 = vmax.f32 %v6781_v51, %v6782_v0 }
0x532d   :  { %v6795_v62 = vmul.f32 1.442695, %v6792_v25  ;;  %v6791_v8 = vsub.f32 %v6775_v7, %v6783_v53 }
0x532f   :  { %10170 = vpow2.f32 %v6795_v62  ;;  %v6793_v19 = vmul.f32 1.442695, %v6791_v8 }
0x5331   :  { %10172 = vpow2.f32 %v6793_v19 }
0x533c   :  { %v10171_v4 = vpop.eup %10170 }
0x533d   :  { %v6804_v10 = vsel %vm4295_vm11, %v10171_v4, 0.0 }
0x533e   :  { %v10173_v40 = vpop.eup %10172  ;;  %v6805_v47 = vrot.slane %v6804_v10, 4 }
0x533f   :  { %v6797_v39 = vsel %vm4295_vm11, %v10173_v40, 0.0 }
0x5340   :  { %v6806_v15 = vadd.f32 %v6805_v47, %v6804_v10  ;;  %v6798_v60 = vrot.slane %v6797_v39, 4 }
0x5342   :  { %v6807_v35 = vrot.slane %v6806_v15, 2  ;;  %v6799_v29 = vadd.f32 %v6798_v60, %v6797_v39 }
0x5344   :  { %v6808_v27 = vadd.f32 %v6807_v35, %v6806_v15  ;;  %v6800_v34 = vrot.slane %v6799_v29, 2 }
0x5346   :  { %v6809_v36 = vrot.slane %v6808_v27, 1  ;;  %v6801_v0 = vadd.f32 %v6800_v34, %v6799_v29 }
0x5348   :  { %v6810_v25 = vadd.f32 %v6809_v36, %v6808_v27  ;;  %v6802_v7 = vrot.slane %v6801_v0, 1 }
0x534a   :  { %v6803_v28 = vadd.f32 %v6802_v7, %v6801_v0  ;;  %10174 = vrcp.f32 %v6810_v25 }
0x534c   :  { %10176 = vrcp.f32 %v6803_v28 }
0x5357   :  { %v10175_v19 = vpop.eup %10174 }
0x5358   :  { %v6814_v23 = vmul.f32 %v10175_v19, %v10171_v4 }
0x5359   :  { %v10177_v8 = vpop.eup %10176 }
0x535a   :  { %v6812_v51 = vmul.f32 %v10177_v8, %v10173_v40  ;;  %v6992_v8 = vpop.permute.xlu1 %6991 }
0x535c   :  { %9894 = vmatprep.mubr.msk.f32.mxu0 %vm4295_vm11, %v6812_v51 }
0x535d   :  { %9895 = vmatmul.mubr.msk.f32.vlgmr.msra.gmra.mxu0 %vm4295_vm11, %v6814_v23 }
0x535e   :  { %9898 = vmatpush3.msra.mxu0 %v12989_v44  ;;  %9905 = vmatprep.mubr.msk.f32.mxu0 %vm10363_vm0, %v13727_v1 }
0x535f   :  { %9899 = vmatprep.subr.mxu0 %v13727_v1 }
0x5360   :  { %9900 = vmatpush3.msra.mxu0 %v12998_v58 }
0x5361   :  { %9901 = vmatprep.subr.mxu0 %v13727_v1 }
0x5362   :  { %9902 = vmatpush3.msra.mxu0 %v13005_v43 }
0x5363   :  { %9903 = vmatprep.subr.mxu0 %v13727_v1 }
0x5364   :  { %9904 = vmatpush3.msra.mxu0 %v13012_v20 }
0x5365   :  { %7127 = vmatprep.subr.mxu0 %v13739_v41 }
0x541d   :  { %v9896_v10 = vpop.f32.mrf.mxu0 }
0x541e   :  { %v6897_v44 = vmul.f32 %v9896_v10, %v13740_v38  ;;  %v13821_v10 = vld [vmem:[#allocation21_spill] sm:$0xff] }
0x541f   :  { %v6887_v53 = vpop.f32.mrf.mxu0 }
0x5420   :  { %v6905_v62 = vsel %vm62_vm1, %v6897_v44, 0.0  ;;  %v6896_v4 = vmul.f32 %v6887_v53, %v13741_v16  ;;  %v13822_v53 = vld [vmem:[#allocation22_spill] sm:$0xff] }
0x5421   :  { %v6906_v40 = vrot.slane %v6905_v62, 4 }
0x5422   :  { %v6898_v58 = vsel %vm62_vm1, %v6896_v4, 0.0 }
0x5423   :  { %v6907_v47 = vadd.f32 %v6906_v40, %v6905_v62  ;;  %v6899_v39 = vrot.slane %v6898_v58, 4 }
0x5425   :  { %v6908_v43 = vrot.slane %v6907_v47, 2  ;;  %v6900_v15 = vadd.f32 %v6899_v39, %v6898_v58 }
0x5427   :  { %v6909_v60 = vadd.f32 %v6908_v43, %v6907_v47  ;;  %v6901_v35 = vrot.slane %v6900_v15, 2 }
0x5429   :  { %v6910_v20 = vrot.slane %v6909_v60, 1  ;;  %v6902_v29 = vadd.f32 %v6901_v35, %v6900_v15 }
0x542b   :  { %v6903_v27 = vrot.slane %v6902_v29, 1  ;;  %v6911_v34 = vadd.f32 %v6910_v20, %v6909_v60 }
0x542d   :  { %v6904_v36 = vadd.f32 %v6903_v27, %v6902_v29 }
0x542f   :  { %v6914_v0 = vsel %vm243_vm5, %v6911_v34, %v6904_v36 }
0x5430   :  { %9906 = vmatmul.mubr.msk.f32.vlgmr.msra.gmra.mxu0 %vm62_vm1, %v6914_v0 }
0x5431   :  { %7128 = vmatpush1.msra.mxu0 %v13742_v22  ;;  %7175 = vmatprep.mubr.f32.mxu0 %v13727_v1 }
0x5432   :  { %7129 = vmatprep.subr.mxu0 %v13743_v61 }
0x5433   :  { %7130 = vmatpush1.msra.mxu0 %v12471_v57 }
0x5434   :  { %7131 = vmatprep.subr.mxu0 %v12474_v54 }
0x5435   :  { %7132 = vmatpush1.msra.mxu0 %v12478_v42 }
0x5436   :  { %7133 = vmatprep.subr.mxu0 %v12482_v2 }
0x5437   :  { %7134 = vmatpush1.msra.mxu0 %v12486_v45 }
0x5438   :  { %7135 = vmatprep.subr.mxu0 %v12491_v63 }
0x5439   :  { %7136 = vmatpush1.msra.mxu0 %v13744_v55 }
0x543a   :  { %7137 = vmatprep.subr.mxu0 %v13745_v37 }
0x543b   :  { %7138 = vmatpush1.msra.mxu0 %v13746_v30 }
0x543c   :  { %7139 = vmatprep.subr.mxu0 %v13747_v12 }
0x543d   :  { %7140 = vmatpush1.msra.mxu0 %v13748_v49 }
0x543e   :  { %7141 = vmatprep.subr.mxu0 %v13749_v46 }
0x543f   :  { %7142 = vmatpush1.msra.mxu0 %v13750_v24 }
0x5440   :  { %9908 = vmatprep.subr.mxu0 %v13727_v1 }
0x54f0   :  { %v6983_v25 = vpop.f32.mrf.mxu0 }
0x54f1   :  { %v6984_v7 = vadd.f32 %v13042_v31, %v6983_v25  ;;  %v13820_v31 = vld [vmem:[#allocation39_spill] sm:$0xff] }
0x54f2   :  { %v9907_v28 = vpop.f32.mrf.mxu0 }
0x54f3   :  { %6988 = vrot.lane.b32.xlu0 %v6984_v7, %s10365_s21 }
0x5565   :  { %v13311_v19 = vpop.permute.xlu0 %6988 }
0x5566   :  { %v6994_v51 = vsel %vm62_vm1, %v13232_v9, %v13311_v19 }
0x5567   :  { %v6995_v23 = vsel %vm247_vm6, %v6994_v51, %v6992_v8  ;;  %v13824_v8 = vld [vmem:[#allocation41_spill] sm:$0xff]  ;;  %v13825_v51 = vld [vmem:[#allocation42_spill] sm:$0xff] }
0x5568   :  { %8276 = vmatmul.mubr.msk.f32.vlgmr.msra.gmra.mxu1 %vm1861_vm15, %v6995_v23  ;;  %v13827_v23 = vld [vmem:[#allocation44_spill] sm:$0xff] }
0x5569   :  { %9928 = vmatpush3.msra.mxu1 %v13056_v56  ;;  %9935 = vmatprep.mubr.msk.f32.mxu1 %vm10363_vm0, %v13727_v1 }
0x556a   :  { %9929 = vmatprep.subr.mxu1 %v13727_v1 }
0x556b   :  { %9930 = vmatpush3.msra.mxu1 %v13065_v33 }
0x556c   :  { %9931 = vmatprep.subr.mxu1 %v13727_v1 }
0x556d   :  { %9932 = vmatpush3.msra.mxu1 %v13072_v11 }
0x556e   :  { %9933 = vmatprep.subr.mxu1 %v13727_v1 }
0x556f   :  { %9934 = vmatpush3.msra.mxu1 %v13820_v31 }
0x5570   :  { %9938 = vmatprep.subr.mxu1 %v13727_v1 }
0x5628   :  { %v7065_v9 = vpop.f32.mrf.mxu1 }
0x5629   :  { %v7066_v56 = vadd.f32 %v7065_v9, %v13821_v10  ;;  %v13829_v9 = vld [vmem:[#allocation33_spill] sm:$0xff] }
0x562a   :  { %v7067_v44 = vpop.f32.mrf.mxu1 }
0x562b   :  { %v7068_v62 = vadd.f32 %v7067_v44, %v13822_v53  ;;  %7072 = vrot.lane.b32.xlu0 %v7066_v56, %s10365_s21 }
0x562d   :  { %7074 = vrot.lane.b32.xlu1 %v7068_v62, %s10365_s21 }
0x562f   :  { %7085 = vrot.lane.b32.xlu0 %v7068_v62, %s10366_s11  ;;  %v13830_v62 = vld [vmem:[#allocation34_spill] sm:$0xff] }
0x569d   :  { %v7073_v33 = vpop.permute.xlu0 %7072 }
0x569f   :  { %v7075_v11 = vpop.permute.xlu1 %7074 }
0x56a0   :  { %v7076_v4 = vsel %vm62_vm1, %v7073_v33, %v7075_v11 }
0x56a1   :  { %v7078_v40 = vadd.f32 %v7076_v4, %v7066_v56  ;;  %v7086_v15 = vpop.permute.xlu0 %7085 }
0x56a3   :  { %v8277_v58 = vmul.f32 -1.442695, %v7078_v40 }
0x56a5   :  { %10178 = vpow2.f32 %v8277_v58 }
0x56b2   :  { %v10179_v47 = vpop.eup %10178 }
0x56b3   :  { %v7082_v39 = vadd.f32 1.0, %v10179_v47 }
0x56b5   :  { %10180 = vrcp.f32 %v7082_v39 }
0x56c2   :  { %v10181_v43 = vpop.eup %10180 }
0x56c3   :  { %v7088_v60 = vmul.f32 %v10181_v43, %v7086_v15  ;;  %v7095_v27 = vsub.f32 1.0, %v10181_v43  ;;  %v7101_v36 = vmul.f32 %v10181_v43, %v13092_v17  ;;  %v13823_v17 = vld [vmem:[#allocation40_spill] sm:$0xff] }
0x56c5   :  { %7090 = vrot.lane.b32.xlu1 %v7088_v60, %s10364_s20 }
0x5737   :  { %v7091_v35 = vpop.permute.xlu1 %7090 }
0x5738   :  { %v7093_v20 = vadd.f32 %v7091_v35, %v7066_v56 }
0x573a   :  { %10182 = vtanh.f32 %v7093_v20 }
0x5747   :  { %v10183_v29 = vpop.eup %10182 }
0x5748   :  { %7097 = vrot.lane.b32.xlu0 %v10183_v29, %s10366_s11 }
0x57ba   :  { %v7098_v34 = vpop.permute.xlu0 %7097 }
0x57bb   :  { %v7100_v0 = vmul.f32 %v7098_v34, %v7095_v27 }
0x57bd   :  { %v13337_v25 = vadd.f32 %v7101_v36, %v7100_v0 }
0x57bf   :  { %7104 = vrot.lane.b32.xlu1 %v13337_v25, %s10366_s11 }
0x5831   :  { %v7105_v7 = vpop.permute.xlu1 %7104 }
0x5832   :  { %v7107_v28 = vsel %vm62_vm1, %v7105_v7, %v13168_v21 }
0x5833   :  { %8278 = vmatmul.mubr.msk.f32.vlgmr.msra.gmra.mxu0 %vm247_vm6, %v7107_v28 }
0x5834   :  { %9909 = vmatpush3.msra.mxu0 %v13102_v5  ;;  %9924 = vmatprep.mubr.msk.f32.mxu0 %vm10363_vm0, %v13727_v1  ;;  %v13826_v5 = vld [vmem:[#allocation43_spill] sm:$0xff] }
0x5835   :  { %9910 = vmatprep.subr.mxu0 %v13727_v1 }
0x5836   :  { %9911 = vmatpush3.msra.mxu0 %v13111_v6  ;;  %v13828_v6 = vld [vmem:[#allocation45_spill] sm:$0xff] }
0x5837   :  { %9912 = vmatprep.subr.mxu0 %v13727_v1 }
0x5838   :  { %9913 = vmatpush3.msra.mxu0 %v13823_v17 }
0x5839   :  { %9914 = vmatprep.subr.mxu0 %v13727_v1 }
0x583a   :  { %9915 = vmatpush3.msra.mxu0 %v13824_v8 }
0x583b   :  { %9916 = vmatprep.subr.mxu0 %v13727_v1 }
0x583c   :  { %9917 = vmatpush3.msra.mxu0 %v13825_v51 }
0x583d   :  { %9918 = vmatprep.subr.mxu0 %v13727_v1 }
0x583e   :  { %9919 = vmatpush3.msra.mxu0 %v13826_v5 }
0x583f   :  { %9920 = vmatprep.subr.mxu0 %v13727_v1 }
0x5840   :  { %9921 = vmatpush3.msra.mxu0 %v13827_v23 }
0x5841   :  { %9922 = vmatprep.subr.mxu0 %v13727_v1 }
0x5842   :  { %9923 = vmatpush3.msra.mxu0 %v13828_v6  ;;  %v10295_v6 = vld [vmem:[%s13593_s3 + $0x18] sm:$0xff] }
0x5843   :  { %9949 = vmatprep.subr.msk.mxu0 %vm12191_vm12, %v13733_v18 }
0x58f3   :  { %v7177_v31 = vpop.f32.mrf.mxu0 }
0x58f4   :  { %v7178_v56 = vadd.f32 %v7177_v31, %v13829_v9  ;;  %v10296_v31 = vld [vmem:[%s13593_s3 + $0x10] sm:$0xff] }
0x58f5   :  { %v7179_v44 = vpop.f32.mrf.mxu0 }
0x58f6   :  { %v7180_v33 = vadd.f32 %v7179_v44, %v13830_v62  ;;  %7184 = vrot.lane.b32.xlu0 %v7178_v56, %s10365_s21 }
0x58f8   :  { %7186 = vrot.lane.b32.xlu1 %v7180_v33, %s10365_s21 }
0x58fa   :  { %7197 = vrot.lane.b32.xlu0 %v7180_v33, %s10366_s11 }
0x5968   :  { %v7185_v11 = vpop.permute.xlu0 %7184 }
0x596a   :  { %v7187_v4 = vpop.permute.xlu1 %7186 }
0x596b   :  { %v7188_v40 = vsel %vm62_vm1, %v7185_v11, %v7187_v4 }
0x596c   :  { %v7190_v58 = vadd.f32 %v7188_v40, %v7178_v56  ;;  %v7198_v60 = vpop.permute.xlu0 %7197 }
0x596e   :  { %v8279_v47 = vmul.f32 -1.442695, %v7190_v58 }
0x5970   :  { %10184 = vpow2.f32 %v8279_v47 }
0x597d   :  { %v10185_v39 = vpop.eup %10184 }
0x597e   :  { %v7194_v43 = vadd.f32 1.0, %v10185_v39 }
0x5980   :  { %10186 = vrcp.f32 %v7194_v43 }
0x598d   :  { %v10187_v15 = vpop.eup %10186 }
0x598e   :  { %v7200_v35 = vmul.f32 %v10187_v15, %v7198_v60  ;;  %v7207_v34 = vsub.f32 1.0, %v10187_v15  ;;  %v7213_v0 = vmul.f32 %v10187_v15, %v13168_v21  ;;  %v13832_v60 = vld [vmem:[#allocation6_spill] sm:$0xff] }
0x5990   :  { %7202 = vrot.lane.b32.xlu1 %v7200_v35, %s10364_s20 }
0x5a02   :  { %v7203_v20 = vpop.permute.xlu1 %7202 }
0x5a03   :  { %v7205_v29 = vadd.f32 %v7203_v20, %v7178_v56  ;;  %v10298_v56 = vld [vmem:[%s13593_s3] sm:$0xff]  ;;  %v10299_v20 = vld [vmem:[#allocation2 + $0xb0] sm:$0xff] }
0x5a05   :  { %10188 = vtanh.f32 %v7205_v29  ;;  %v10300_v29 = vld [vmem:[#allocation2 + $0xa8] sm:$0xff] }
0x5a12   :  { %v10189_v27 = vpop.eup %10188 }
0x5a13   :  { %7209 = vrot.lane.b32.xlu0 %v10189_v27, %s10366_s11  ;;  %v10301_v27 = vld [vmem:[#allocation2 + $0xa0] sm:$0xff] }
0x5a85   :  { %v7210_v36 = vpop.permute.xlu0 %7209 }
0x5a86   :  { %v7212_v7 = vmul.f32 %v7210_v36, %v7207_v34  ;;  %v10303_v34 = vld [vmem:[#allocation2 + $0x90] sm:$0xff]  ;;  %v10305_v36 = vld [vmem:[#allocation2 + $0x80] sm:$0xff] }
0x5a88   :  { %v13373_v28 = vadd.f32 %v7213_v0, %v7212_v7  ;;  %v10306_v0 = vld [vmem:[#allocation2 + $0x78] sm:$0xff]  ;;  %v10307_v7 = vld [vmem:[#allocation2 + $0x70] sm:$0xff] }
0x5a8a   :  { %7216 = vrot.lane.b32.xlu1 %v13373_v28, %s10366_s11 }
0x5afc   :  { %v7217_v17 = vpop.permute.xlu1 %7216 }
0x5afd   :  { %v7219_v8 = vsel %vm62_vm1, %v7217_v17, %v13311_v19 }
0x5afe   :  { %9925 = vmatmul.mubr.msk.f32.vlgmr.msra.gmra.mxu0 %vm247_vm6, %v7219_v8  ;;  %v10309_v8 = vld [vmem:[#allocation2 + $0x60] sm:$0xff] }
0x5aff   :  { %9950 = vmatpush3.msk.msra.mxu0 %vm12191_vm12, %v13733_v18 }
0x5b00   :  { %9951 = vmatprep.subr.msk.mxu0 %vm12202_vm2, %v13733_v18 }
0x5b01   :  { %9952 = vmatpush3.msk.msra.mxu0 %vm12202_vm2, %v13733_v18 }
0x5b02   :  { %9953 = vmatprep.subr.msk.mxu0 %vm12212_vm9, %v13733_v18 }
0x5b03   :  { %9954 = vmatpush3.msk.msra.mxu0 %vm12212_vm9, %v13733_v18 }
0x5b04   :  { %9955 = vmatprep.subr.msk.mxu0 %vm12224_vm13, %v13733_v18 }
0x5b05   :  { %9956 = vmatpush3.msk.msra.mxu0 %vm12224_vm13, %v13733_v18 }
0x5b06   :  { %7799 = vmatprep.subr.mxu0 %v10294_v52  ;;  %v10310_v52 = vld [vmem:[#allocation2 + $0x58] sm:$0xff] }
0x5bbe   :  { %v7289_v32 = vpop.f32.mrf.mxu0 }
0x5bbf   :  { %v13402_v21 = vadd.f32 %v13200_v50, %v7289_v32  ;;  %v10311_v32 = vld [vmem:[#allocation2 + $0x50] sm:$0xff] }
0x5bc0   :  { %v9926_v19 = vpop.f32.mrf.mxu0 }
0x5bc1   :  { %v7293_v51 = vsel %vm4916_vm7, %v13402_v21, -inf  ;;  %v10312_v19 = vld [vmem:[#allocation2 + $0x48] sm:$0xff] }
0x5bc2   :  { %7294 = vmax.xlane.f32.xlu0 %v7293_v51  ;;  %v10313_v51 = vld [vmem:[#allocation2 + $0x40] sm:$0xff] }
0x5c4b   :  { %v7295_v13 = vpop.xlane.xlu0 %7294 }
0x5c4c   :  { %vm7296_vm12 = vcmp.eq.f32.partialorder %v13402_v21, %v7295_v13  ;;  %v10314_v13 = vld [vmem:[#allocation2 + $0x38] sm:$0xff] }
0x5c4d   :  { %v7297_v5 = vsel %vm7296_vm12, %v12647_v59, 32.0 }
0x5c4e   :  { %v7298_v23 = vsel %vm4916_vm7, %v7297_v5, inf  ;;  %v10315_v5 = vld [vmem:[#allocation2 + $0x30] sm:$0xff] }
0x5c4f   :  { %7299 = vmin.xlane.f32.xlu1 %v7298_v23  ;;  %v10316_v23 = vld [vmem:[#allocation2 + $0x28] sm:$0xff] }
0x5c60   :  { %7783 = vrot.lane.b32.xlu1 %v13337_v25, %s10365_s21 }
0x5cd8   :  { %v7300_v14 = vpop.xlane.xlu1 %7299 }
0x5cd9   :  { %vm7301_vm2 = vcmp.eq.f32.partialorder %v12647_v59, %v7300_v14  ;;  %v10297_v59 = vld [vmem:[%s13593_s3 + $0x8] sm:$0xff]  ;;  %v10317_v14 = vld [vmem:[#allocation2 + $0x20] sm:$0xff] }
0x5cda   :  { %v8281_v50 = vsel %vm7301_vm2, 1.0, %v13727_v1 }
0x5cdb   :  { %9936 = vmatmul.mubr.msk.f32.vlgmr.msra.gmra.mxu1 %vm62_vm1, %v8281_v50  ;;  %v10318_v50 = vld [vmem:[#allocation2 + $0x18] sm:$0xff] }
0x5cdc   :  { %9939 = vmatpush3.msra.mxu1 %v10295_v6  ;;  %9946 = vmatprep.mubr.msk.f32.mxu1 %vm10363_vm0, %v13727_v1  ;;  %v10319_v6 = vld [vmem:[#allocation2 + $0x10] sm:$0xff] }
0x5cdd   :  { %9940 = vmatprep.subr.mxu1 %v13727_v1 }
0x5cde   :  { %9941 = vmatpush3.msra.mxu1 %v10296_v31  ;;  %v10320_v31 = vld [vmem:[#allocation2 + $0x8] sm:$0xff] }
0x5cdf   :  { %9942 = vmatprep.subr.mxu1 %v13727_v1 }
0x5ce0   :  { %9943 = vmatpush3.msra.mxu1 %v10297_v59  ;;  %v10321_v59 = vld [vmem:[#allocation2] sm:$0xff] }
0x5ce1   :  { %9944 = vmatprep.subr.mxu1 %v13727_v1 }
0x5ce2   :  { %9945 = vmatpush3.msra.mxu1 %v10298_v56 }
0x5ce3   :  { %9947 = vmatmul.mubr.msk.f32.vlgmr.msra.gmra.mxu1 %vm62_vm1, %v7217_v17  ;;  %9960 = vmatprep.subr.msk.mxu1 %vm12258_vm10, %v13733_v18  ;;  %v10308_v17 = vld [vmem:[#allocation2 + $0x68] sm:$0xff] }
0x5ce4   :  { %9961 = vmatpush3.msk.msra.mxu1 %vm12258_vm10, %v13733_v18 }
0x5ce5   :  { %9965 = vmatprep.subr.mxu1 %v13727_v1 }
0x5d9b   :  { %v13439_v44 = vpop.f32.mrf.mxu1 }
0x5d9d   :  { %v9937_v33 = vpop.f32.mrf.mxu1 }
0x5da3   :  { %v7445_v11 = vpop.f32.mrf.mxu1 }
0x5da4   :  { %v7456_v4 = vrot.slane %v7445_v11, %v12005_v48 }
0x5da5   :  { %v9948_v40 = vpop.f32.mrf.mxu1 }
0x5da6   :  { %v7457_v58 = vcombine.high %v7456_v4, %v7456_v4  ;;  %v7464_v47 = vrot.slane %v7456_v4, %v12005_v48  ;;  %v13833_v4 = vld [vmem:[#allocation9_spill] sm:$0xff] }
0x5da8   :  { %v7471_v39 = vrot.slane %v7457_v58, %v12005_v48  ;;  %v7475_v43 = vrot.slane %v7464_v47, %v10403_v3  ;;  %v10302_v48 = vld [vmem:[#allocation2 + $0x98] sm:$0xff] }
0x5daa   :  { %v7479_v15 = vrot.slane %v7471_v39, %v10403_v3  ;;  %v7482_v18 = vmul.f32 %v7475_v43, %v13831_v26  ;;  %v10304_v3 = vld [vmem:[#allocation2 + $0x88] sm:$0xff] }
0x5dab   :  { %v13834_v39 = vld [vmem:[#allocation8_spill] sm:$0xff] }
0x5dac   :  { %v7483_v35 = vmul.f32 %v13832_v60, %v7479_v15  ;;  %9957 = vmatprep.mubr.msk.f32.mxu0 %vm62_vm1, %v7482_v18 }
0x5dae   :  { %9958 = vmatmul.mubr.msk.f32.vlgmr.msra.gmra.mxu0 %vm62_vm1, %v7483_v35 }
0x5daf   :  { %7800 = vmatpush1.msra.mxu0 %v10299_v20  ;;  %7855 = vmatprep.mubr.f32.mxu0 %v13727_v1 }
0x5db0   :  { %7801 = vmatprep.subr.mxu0 %v10300_v29 }
0x5db1   :  { %7802 = vmatpush1.msra.mxu0 %v10301_v27 }
0x5db2   :  { %7803 = vmatprep.subr.mxu0 %v10302_v48 }
0x5db3   :  { %7804 = vmatpush1.msra.mxu0 %v10303_v34 }
0x5db4   :  { %7805 = vmatprep.subr.mxu0 %v10304_v3 }
0x5db5   :  { %7806 = vmatpush1.msra.mxu0 %v10305_v36 }
0x5db6   :  { %7807 = vmatprep.subr.mxu0 %v10306_v0 }
0x5db7   :  { %7808 = vmatpush1.msra.mxu0 %v10307_v7 }
0x5db8   :  { %7809 = vmatprep.subr.mxu0 %v10308_v17 }
0x5db9   :  { %7810 = vmatpush1.msra.mxu0 %v10309_v8 }
0x5dba   :  { %7811 = vmatprep.subr.mxu0 %v10310_v52 }
0x5dbb   :  { %7812 = vmatpush1.msra.mxu0 %v10311_v32 }
0x5dbc   :  { %7813 = vmatprep.subr.mxu0 %v10312_v19 }
0x5dbd   :  { %7814 = vmatpush1.msra.mxu0 %v10313_v51 }
0x5dbe   :  { %7815 = vmatprep.subr.mxu0 %v10314_v13 }
0x5dbf   :  { %7816 = vmatpush1.msra.mxu0 %v10315_v5 }
0x5dc0   :  { %7817 = vmatprep.subr.mxu0 %v10316_v23 }
0x5dc1   :  { %7818 = vmatpush1.msra.mxu0 %v10317_v14 }
0x5dc2   :  { %7819 = vmatprep.subr.mxu0 %v10318_v50 }
0x5dc3   :  { %7820 = vmatpush1.msra.mxu0 %v10319_v6 }
0x5dc4   :  { %7821 = vmatprep.subr.mxu0 %v10320_v31 }
0x5dc5   :  { %7822 = vmatpush1.msra.mxu0 %v10321_v59 }
0x5e6e   :  { %v9959_v56 = vpop.f32.mrf.mxu0 }
0x5e6f   :  { %v7566_v33 = vmul.f32 0.5, %v9959_v56 }
0x5e70   :  { %v7556_v11 = vpop.f32.mrf.mxu0 }
0x5e71   :  { %v7568_v40 = vadd.f32 %v7566_v33, %v13833_v4  ;;  %v7565_v58 = vmul.f32 0.5, %v7556_v11 }
0x5e73   :  { %v7576_v47 = vsel %vm4295_vm11, %v7568_v40, -inf  ;;  %v7567_v43 = vadd.f32 %v7565_v58, %v13834_v39 }
0x5e74   :  { %v7577_v15 = vrot.slane %v7576_v47, 4 }
0x5e75   :  { %v7569_v26 = vsel %vm4295_vm11, %v7567_v43, -inf }
0x5e76   :  { %v7578_v18 = vmax.f32 %v7576_v47, %v7577_v15  ;;  %v7570_v60 = vrot.slane %v7569_v26, 4  ;;  %v10322_v15 = vld [vmem:[%s13593_s3 + $0xb8] sm:$0xff] }
0x5e78   :  { %v7579_v35 = vrot.slane %v7578_v18, 2  ;;  %v7571_v20 = vmax.f32 %v7569_v26, %v7570_v60  ;;  %v10323_v26 = vld [vmem:[%s13593_s3 + $0xb0] sm:$0xff]  ;;  %v10325_v60 = vld [vmem:[%s13593_s3 + $0xa0] sm:$0xff] }
0x5e7a   :  { %v7580_v29 = vmax.f32 %v7578_v18, %v7579_v35  ;;  %v7572_v27 = vrot.slane %v7571_v20, 2  ;;  %v10324_v18 = vld [vmem:[%s13593_s3 + $0xa8] sm:$0xff] }
0x5e7c   :  { %v7581_v48 = vrot.slane %v7580_v29, 1  ;;  %v7573_v34 = vmax.f32 %v7571_v20, %v7572_v27 }
0x5e7e   :  { %v7582_v3 = vmax.f32 %v7580_v29, %v7581_v48  ;;  %v7574_v36 = vrot.slane %v7573_v34, 1 }
0x5e80   :  { %v7584_v0 = vsub.f32 %v7568_v40, %v7582_v3  ;;  %v7575_v7 = vmax.f32 %v7573_v34, %v7574_v36 }
0x5e82   :  { %v7587_v17 = vmul.f32 1.442695, %v7584_v0  ;;  %v7583_v8 = vsub.f32 %v7567_v43, %v7575_v7 }
0x5e84   :  { %10190 = vpow2.f32 %v7587_v17  ;;  %v7585_v52 = vmul.f32 1.442695, %v7583_v8 }
0x5e86   :  { %10192 = vpow2.f32 %v7585_v52 }
0x5e91   :  { %v10191_v32 = vpop.eup %10190 }
0x5e92   :  { %v7596_v19 = vsel %vm4295_vm11, %v10191_v32, 0.0 }
0x5e93   :  { %v10193_v51 = vpop.eup %10192  ;;  %v7597_v13 = vrot.slane %v7596_v19, 4 }
0x5e94   :  { %v7589_v5 = vsel %vm4295_vm11, %v10193_v51, 0.0 }
0x5e95   :  { %v7598_v23 = vadd.f32 %v7597_v13, %v7596_v19  ;;  %v7590_v14 = vrot.slane %v7589_v5, 4 }
0x5e97   :  { %v7599_v50 = vrot.slane %v7598_v23, 2  ;;  %v7591_v6 = vadd.f32 %v7590_v14, %v7589_v5 }
0x5e99   :  { %v7600_v31 = vadd.f32 %v7599_v50, %v7598_v23  ;;  %v7592_v59 = vrot.slane %v7591_v6, 2 }
0x5e9b   :  { %v7601_v56 = vrot.slane %v7600_v31, 1  ;;  %v7593_v33 = vadd.f32 %v7592_v59, %v7591_v6 }
0x5e9d   :  { %v7602_v11 = vadd.f32 %v7601_v56, %v7600_v31  ;;  %v7594_v4 = vrot.slane %v7593_v33, 1 }
0x5e9f   :  { %v7595_v40 = vadd.f32 %v7594_v4, %v7593_v33  ;;  %10194 = vrcp.f32 %v7602_v11 }
0x5ea1   :  { %10196 = vrcp.f32 %v7595_v40 }
0x5eac   :  { %v10195_v58 = vpop.eup %10194 }
0x5ead   :  { %v7606_v43 = vmul.f32 %v10195_v58, %v10191_v32 }
0x5eae   :  { %v10197_v47 = vpop.eup %10196 }
0x5eaf   :  { %v7604_v39 = vmul.f32 %v10197_v47, %v10193_v51  ;;  %v10327_v47 = vld [vmem:[%s13593_s3 + $0x138] sm:$0xff] }
0x5eb1   :  { %9962 = vmatprep.mubr.msk.f32.mxu1 %vm4295_vm11, %v7604_v39  ;;  %v10329_v39 = vld [vmem:[%s13593_s3 + $0x128] sm:$0xff] }
0x5eb2   :  { %9963 = vmatmul.mubr.msk.f32.vlgmr.msra.gmra.mxu1 %vm4295_vm11, %v7606_v43  ;;  %v10330_v43 = vld [vmem:[%s13593_s3 + $0x120] sm:$0xff] }
0x5eb3   :  { %9966 = vmatpush3.msra.mxu1 %v10322_v15  ;;  %9973 = vmatprep.mubr.msk.f32.mxu1 %vm10363_vm0, %v13727_v1  ;;  %v10331_v15 = vld [vmem:[%s13593_s3 + $0x118] sm:$0xff] }
0x5eb4   :  { %9967 = vmatprep.subr.mxu1 %v13727_v1 }
0x5eb5   :  { %9968 = vmatpush3.msra.mxu1 %v10323_v26  ;;  %v10332_v26 = vld [vmem:[%s13593_s3 + $0x110] sm:$0xff] }
0x5eb6   :  { %9969 = vmatprep.subr.mxu1 %v13727_v1 }
0x5eb7   :  { %9970 = vmatpush3.msra.mxu1 %v10324_v18  ;;  %v10333_v18 = vld [vmem:[%s13593_s3 + $0x108] sm:$0xff] }
0x5eb8   :  { %9971 = vmatprep.subr.mxu1 %v13727_v1 }
0x5eb9   :  { %9972 = vmatpush3.msra.mxu1 %v10325_v60  ;;  %v10334_v60 = vld [vmem:[%s13593_s3 + $0x100] sm:$0xff] }
0x5eba   :  { %7919 = vmatprep.subr.mxu1 %v13739_v41 }
0x5f72   :  { %v9964_v35 = vpop.f32.mrf.mxu1 }
0x5f73   :  { %v7689_v20 = vmul.f32 %v9964_v35, %v13740_v38 }
0x5f74   :  { %v7679_v29 = vpop.f32.mrf.mxu1 }
0x5f75   :  { %v7697_v27 = vsel %vm62_vm1, %v7689_v20, 0.0  ;;  %v7688_v48 = vmul.f32 %v7679_v29, %v13741_v16 }
0x5f76   :  { %v7698_v34 = vrot.slane %v7697_v27, 4 }
0x5f77   :  { %v7690_v3 = vsel %vm62_vm1, %v7688_v48, 0.0 }
0x5f78   :  { %v7699_v36 = vadd.f32 %v7698_v34, %v7697_v27  ;;  %v7691_v0 = vrot.slane %v7690_v3, 4 }
0x5f7a   :  { %v7700_v7 = vrot.slane %v7699_v36, 2  ;;  %v7692_v17 = vadd.f32 %v7691_v0, %v7690_v3 }
0x5f7c   :  { %v7701_v8 = vadd.f32 %v7700_v7, %v7699_v36  ;;  %v7693_v52 = vrot.slane %v7692_v17, 2 }
0x5f7e   :  { %v7702_v32 = vrot.slane %v7701_v8, 1  ;;  %v7694_v19 = vadd.f32 %v7693_v52, %v7692_v17 }
0x5f80   :  { %v7695_v41 = vrot.slane %v7694_v19, 1  ;;  %v7703_v51 = vadd.f32 %v7702_v32, %v7701_v8 }
0x5f82   :  { %v7696_v13 = vadd.f32 %v7695_v41, %v7694_v19  ;;  %v13835_v19 = vld [vmem:[#allocation38_spill] sm:$0xff] }
0x5f83   :  { %v13836_v41 = vld [vmem:[#allocation46_spill] sm:$0xff] }
0x5f84   :  { %v7706_v38 = vsel %vm243_vm5, %v7703_v51, %v7696_v13 }
0x5f85   :  { %9974 = vmatmul.mubr.msk.f32.vlgmr.msra.gmra.mxu1 %vm62_vm1, %v7706_v38 }
0x5f86   :  { %7920 = vmatpush1.msra.mxu1 %v13742_v22  ;;  %7967 = vmatprep.mubr.f32.mxu1 %v13727_v1 }
0x5f87   :  { %7921 = vmatprep.subr.mxu1 %v13743_v61 }
0x5f88   :  { %7922 = vmatpush1.msra.mxu1 %v12471_v57 }
0x5f89   :  { %7923 = vmatprep.subr.mxu1 %v12474_v54  ;;  %v10326_v54 = vld [vmem:[%s13593_s3 + $0x140] ss:$0 sm:$0xff] }
0x5f8a   :  { %7924 = vmatpush1.msra.mxu1 %v12478_v42 }
0x5f8b   :  { %7925 = vmatprep.subr.mxu1 %v12482_v2 }
0x5f8c   :  { %7926 = vmatpush1.msra.mxu1 %v12486_v45 }
0x5f8d   :  { %7927 = vmatprep.subr.mxu1 %v12491_v63  ;;  %v7784_v63 = vpop.permute.xlu1 %7783 }
0x5f8e   :  { %7928 = vmatpush1.msra.mxu1 %v13744_v55 }
0x5f8f   :  { %7929 = vmatprep.subr.mxu1 %v13745_v37 }
0x5f90   :  { %7930 = vmatpush1.msra.mxu1 %v13746_v30 }
0x5f91   :  { %7931 = vmatprep.subr.mxu1 %v13747_v12 }
0x5f92   :  { %7932 = vmatpush1.msra.mxu1 %v13748_v49 }
0x5f93   :  { %7933 = vmatprep.subr.mxu1 %v13749_v46 }
0x5f94   :  { %7934 = vmatpush1.msra.mxu1 %v13750_v24 }
0x5f95   :  { %9976 = vmatprep.subr.mxu1 %v13727_v1 }
0x6045   :  { %v7775_v57 = vpop.f32.mrf.mxu1 }
0x6046   :  { %v7776_v42 = vadd.f32 %v10326_v54, %v7775_v57 }
0x6047   :  { %v9975_v2 = vpop.f32.mrf.mxu1 }
0x6048   :  { %7780 = vrot.lane.b32.xlu0 %v7776_v42, %s10365_s21  ;;  %v13837_v42 = vld [vmem:[#allocation10_spill] sm:$0xff] }
0x60ba   :  { %v13504_v45 = vpop.permute.xlu0 %7780 }
0x60bb   :  { %v7786_v16 = vsel %vm62_vm1, %v13439_v44, %v13504_v45 }
0x60bc   :  { %v7787_v22 = vsel %vm247_vm6, %v7786_v16, %v7784_v63 }
0x60bd   :  { %8294 = vmatmul.mubr.msk.f32.vlgmr.msra.gmra.mxu0 %vm1861_vm15, %v7787_v22  ;;  %v10335_v22 = vld [vmem:[%s13593_s3 + $0x142] ss:$0 sm:$0xff] }
0x617d   :  { %v7857_v61 = vpop.f32.mrf.mxu0 }
0x617e   :  { %v7858_v55 = vadd.f32 %v7857_v61, %v13821_v10 }
0x617f   :  { %v7859_v37 = vpop.f32.mrf.mxu0 }
0x6180   :  { %v7860_v30 = vadd.f32 %v7859_v37, %v13822_v53  ;;  %7864 = vrot.lane.b32.xlu0 %v7858_v55, %s10365_s21 }
0x6182   :  { %7866 = vrot.lane.b32.xlu1 %v7860_v30, %s10365_s21 }
0x6184   :  { %7877 = vrot.lane.b32.xlu0 %v7860_v30, %s10366_s11 }
0x61f2   :  { %v7865_v12 = vpop.permute.xlu0 %7864 }
0x61f4   :  { %v7867_v49 = vpop.permute.xlu1 %7866 }
0x61f5   :  { %v7868_v46 = vsel %vm62_vm1, %v7865_v12, %v7867_v49 }
0x61f6   :  { %v7870_v24 = vadd.f32 %v7868_v46, %v7858_v55  ;;  %v7878_v14 = vpop.permute.xlu0 %7877 }
0x61f8   :  { %v8295_v44 = vmul.f32 -1.442695, %v7870_v24 }
0x61fa   :  { %10198 = vpow2.f32 %v8295_v44  ;;  %v13838_v44 = vld [vmem:[#allocation5_spill] sm:$0xff] }
0x6207   :  { %v10199_v5 = vpop.eup %10198 }
0x6208   :  { %v7874_v23 = vadd.f32 1.0, %v10199_v5 }
0x620a   :  { %10200 = vrcp.f32 %v7874_v23 }
0x6217   :  { %v10201_v10 = vpop.eup %10200 }
0x6218   :  { %v7880_v50 = vmul.f32 %v10201_v10, %v7878_v14  ;;  %v7887_v59 = vsub.f32 1.0, %v10201_v10  ;;  %v7893_v33 = vmul.f32 %v10201_v10, %v13337_v25  ;;  %v10328_v25 = vld [vmem:[%s13593_s3 + $0x130] sm:$0xff] }
0x621a   :  { %7882 = vrot.lane.b32.xlu1 %v7880_v50, %s10364_s20 }
0x628c   :  { %v7883_v53 = vpop.permute.xlu1 %7882 }
0x628d   :  { %v7885_v6 = vadd.f32 %v7883_v53, %v7858_v55  ;;  %v10370_v55 = vmov 1983009808  }
0x628e   :  { %v8109_v37 = vunpack.c.l.s4 %v10370_v55 }
0x628f   :  { %10202 = vtanh.f32 %v7885_v6 }
0x6290   :  { %v8110_v49 = vunpack.c.0.s8 %v8109_v37 }
0x6292   :  { %v8113_v5 = vsub.s32 %v8110_v49, %v13838_v44 }
0x629c   :  { %v10203_v31 = vpop.eup %10202 }
0x629d   :  { %7889 = vrot.lane.b32.xlu0 %v10203_v31, %s10366_s11 }
0x630f   :  { %v7890_v56 = vpop.permute.xlu0 %7889 }
0x6310   :  { %v7892_v11 = vmul.f32 %v7890_v56, %v7887_v59 }
0x6312   :  { %v7894_v4 = vadd.f32 %v7893_v33, %v7892_v11 }
0x6314   :  { %7896 = vrot.lane.b32.xlu1 %v7894_v4, %s10366_s11 }
0x6386   :  { %v7897_v40 = vpop.permute.xlu1 %7896 }
0x6387   :  { %v7899_v58 = vsel %vm62_vm1, %v7897_v40, %v13373_v28 }
0x6388   :  { %8296 = vmatmul.mubr.msk.f32.vlgmr.msra.gmra.mxu1 %vm247_vm6, %v7899_v58 }
0x6389   :  { %9977 = vmatpush3.msra.mxu1 %v10327_v47  ;;  %9992 = vmatprep.mubr.msk.f32.mxu1 %vm10363_vm0, %v13727_v1  ;;  %vm8116_vm0 = vcmask 519170  }
0x638a   :  { %9978 = vmatprep.subr.mxu1 %v13727_v1  ;;  %vm8117_vm5 = vmor %vm8116_vm0, %vm406_vm8 }
0x638b   :  { %9979 = vmatpush3.msra.mxu1 %v10328_v25 }
0x638c   :  { %9980 = vmatprep.subr.mxu1 %v13727_v1 }
0x638d   :  { %9981 = vmatpush3.msra.mxu1 %v10329_v39 }
0x638e   :  { %9982 = vmatprep.subr.mxu1 %v13727_v1 }
0x638f   :  { %9983 = vmatpush3.msra.mxu1 %v10330_v43 }
0x6390   :  { %9984 = vmatprep.subr.mxu1 %v13727_v1 }
0x6391   :  { %9985 = vmatpush3.msra.mxu1 %v10331_v15 }
0x6392   :  { %9986 = vmatprep.subr.mxu1 %v13727_v1 }
0x6393   :  { %9987 = vmatpush3.msra.mxu1 %v10332_v26 }
0x6394   :  { %9988 = vmatprep.subr.mxu1 %v13727_v1 }
0x6395   :  { %9989 = vmatpush3.msra.mxu1 %v10333_v18 }
0x6396   :  { %9990 = vmatprep.subr.mxu1 %v13727_v1 }
0x6397   :  { %9991 = vmatpush3.msra.mxu1 %v10334_v60 }
0x6448   :  { %v7969_v35 = vpop.f32.mrf.mxu1 }
0x6449   :  { %v7970_v20 = vadd.f32 %v7969_v35, %v13829_v9 }
0x644a   :  { %v7971_v29 = vpop.f32.mrf.mxu1 }
0x644b   :  { %v7972_v27 = vadd.f32 %v7971_v29, %v13830_v62  ;;  %7976 = vrot.lane.b32.xlu0 %v7970_v20, %s10365_s21 }
0x644d   :  { %7978 = vrot.lane.b32.xlu1 %v7972_v27, %s10365_s21 }
0x644f   :  { %7989 = vrot.lane.b32.xlu0 %v7972_v27, %s10366_s11 }
0x64bd   :  { %v7977_v48 = vpop.permute.xlu0 %7976 }
0x64bf   :  { %v7979_v34 = vpop.permute.xlu1 %7978 }
0x64c0   :  { %v7980_v1 = vsel %vm62_vm1, %v7977_v48, %v7979_v34 }
0x64c1   :  { %v7982_v3 = vadd.f32 %v7980_v1, %v7970_v20  ;;  %v7990_v17 = vpop.permute.xlu0 %7989 }
0x64c3   :  { %v8297_v36 = vmul.f32 -1.442695, %v7982_v3 }
0x64c5   :  { %10204 = vpow2.f32 %v8297_v36 }
0x64d2   :  { %v10205_v0 = vpop.eup %10204 }
0x64d3   :  { %v7986_v7 = vadd.f32 1.0, %v10205_v0 }
0x64d5   :  { %10206 = vrcp.f32 %v7986_v7 }
0x64e2   :  { %v10207_v9 = vpop.eup %10206 }
0x64e3   :  { %v7992_v8 = vmul.f32 %v10207_v9, %v7990_v17  ;;  %v7999_v51 = vsub.f32 1.0, %v10207_v9  ;;  %v8005_v38 = vmul.f32 %v10207_v9, %v13373_v28 }
0x64e5   :  { %7994 = vrot.lane.b32.xlu1 %v7992_v8, %s10364_s20 }
0x6557   :  { %v7995_v62 = vpop.permute.xlu1 %7994 }
0x6558   :  { %v7997_v52 = vadd.f32 %v7995_v62, %v7970_v20 }
0x655a   :  { %10208 = vtanh.f32 %v7997_v52 }
0x6567   :  { %v10209_v32 = vpop.eup %10208 }
0x6568   :  { %8001 = vrot.lane.b32.xlu0 %v10209_v32, %s10366_s11 }
0x656c   :  { %8086 = vrot.lane.b32.xlu0 %v13835_v19, %s10365_s21 }
0x6570   :  { %8094 = vrot.lane.b32.xlu0 %v13836_v41, %s10366_s11 }
0x65da   :  { %v8002_v13 = vpop.permute.xlu0 %8001 }
0x65db   :  { %v8004_v57 = vmul.f32 %v8002_v13, %v7999_v51 }
0x65dd   :  { %v8006_v54 = vadd.f32 %v8005_v38, %v8004_v57 }
0x65de   :  { %v8087_v30 = vpop.permute.xlu0 %8086 }
0x65df   :  { %8008 = vrot.lane.b32.xlu1 %v8006_v54, %s10366_s11  ;;  %v8101_v46 = vsel %vm62_vm1, 0.0, %v8087_v30 }
0x65e2   :  { %v8095_v24 = vpop.permute.xlu0 %8094 }
0x65e3   :  { %8090 = vrot.lane.b32.xlu1 %v13837_v42, %s10364_s20 }
0x6651   :  { %v8009_v2 = vpop.permute.xlu1 %8008 }
0x6652   :  { %v8011_v63 = vsel %vm62_vm1, %v8009_v2, %v13504_v45 }
0x6653   :  { %9993 = vmatmul.mubr.msk.f32.vlgmr.msra.gmra.mxu1 %vm247_vm6, %v8011_v63 }
0x6655   :  { %v8091_v12 = vpop.permute.xlu1 %8090 }
0x6656   :  { %v8102_v45 = vsel %vm247_vm6, %v8101_v46, %v8091_v12 }
0x6657   :  { %v8103_v10 = vsel %vm1861_vm15, %v8102_v45, %v8095_v24 }
0x6713   :  { %v8081_v16 = vpop.f32.mrf.mxu1 }
0x6714   :  { %v8082_v61 = vadd.f32 %v10335_v22, %v8081_v16 }
0x6715   :  { %v9994_v28 = vpop.f32.mrf.mxu1 }
0x6716   :  { %8098 = vrot.lane.b32.xlu1 %v8082_v61, %s10365_s21 }
0x6788   :  { %v8099_v23 = vpop.permute.xlu1 %8098 }
0x6789   :  { %v8104_v14 = vsel %vm62_vm1, %v13402_v21, %v8099_v23 }
0x678a   :  { %v8107_v50 = vcombine.low %v8103_v10, %v8104_v14 }
0x678c   :  { %v8114_v53 = vrot.slane %v8107_v50, %v8113_v5 }
0x678e   :  { %8118 = vst.msk [vmem:[%s13594_s4] sm:$0xf] %vm8117_vm5, %v8114_v53 }
0x678f   :  { %8123 = vsyncpa [#allocation3], 1 }

</bundles_post_ra>
